<compile_context>
chip_gen: v7x
topology: tpu7x:2x2x1
jax: 0.10.0
libtpu: 0.0.40
codegen_flags: <defaults>
</compile_context>

<pallas_src>
import functools
import math

import jax
import jax.numpy as jnp
from jax import lax
from jax.experimental import pallas as pl
from jax.experimental.pallas import tpu as pltpu

_EPS = 1e-7
_MIN_NORM = 1e-15


# --------------------------------------------------------------------------
# Plain-JAX Lorentz helpers (only used to build test inputs on the manifold)
# --------------------------------------------------------------------------
def _proj(x, c):
    K = 1.0 / c
    y = x[..., 1:]
    y_sq = jnp.sum(y * y, axis=-1, keepdims=True)
    x0 = jnp.sqrt(jnp.clip(K + y_sq, _MIN_NORM))
    return jnp.concatenate([x0, y], axis=-1)


def _expmap0(u, c):
    K = 1.0 / c
    sqrtK = math.sqrt(K)
    x = u[..., 1:]
    x_norm = jnp.clip(jnp.linalg.norm(x, axis=-1, keepdims=True), _MIN_NORM)
    theta = x_norm / sqrtK
    x0 = sqrtK * jnp.cosh(theta)
    xs = sqrtK * jnp.sinh(theta) * x / x_norm
    return jnp.concatenate([x0, xs], axis=-1)


# --------------------------------------------------------------------------
# Kernel 1: fused HypLinear for all 3H heads
#   logmap0(e) @ W_fused + b_fused  ->  per-head proj_tan0 + expmap0 + proj
#   Q heads get the Minkowski sign baked into the time column; V heads are
#   emitted in bf16.
# --------------------------------------------------------------------------
def _project_kqv_kernel(e_ref, w_ref, b_ref, qk_ref, v_ref, *,
                        curve, cout, num_heads):
    # e_ref : (tn, Cin)  hyperboloid points
    # w_ref : (Cin, 3H*Cout) fused weights, b_ref: (1, 3H*Cout)
    # qk_ref: (2H, tn, Cout) f32   (K heads then Q heads, Q time negated)
    # v_ref : ( H, tn, Cout) bf16
    K = 1.0 / curve
    sqrtK = math.sqrt(K)

    e = e_ref[...]
    tn, cin = e.shape

    # ---- logmap0 prologue (tangent vector at the origin); mask-based to
    #      avoid lane-shifting slices ----
    col_in = lax.broadcasted_iota(jnp.int32, (tn, cin), 1)
    is_time_in = col_in == 0
    x0 = jnp.sum(jnp.where(is_time_in, e, 0.0), axis=-1, keepdims=True)
    y_sq = jnp.sum(jnp.where(is_time_in, 0.0, e * e), axis=-1, keepdims=True)
    y_norm = jnp.maximum(jnp.sqrt(y_sq), _MIN_NORM)
    theta0 = jnp.maximum(x0 / sqrtK, 1.0 + _EPS)
    acosh0 = jnp.log(theta0 + jnp.sqrt(theta0 * theta0 - 1.0))
    u = jnp.where(is_time_in, 0.0, (sqrtK * acosh0 / y_norm) * e)

    # ---- single fused, lane-dense (3H*Cout wide) MXU matmul ----
    # TODO(synk): bias added in tangent space (exact HypLinear not provided).
    y = jnp.dot(u, w_ref[...], preferred_element_type=jnp.float32) + b_ref[...]

    # ---- per-head proj_tan0 + expmap0 + hyperboloid projection epilogue ----
    col_out = lax.broadcasted_iota(jnp.int32, (tn, cout), 1)
    is_time_out = col_out == 0
    for g in range(3 * num_heads):
        yg = y[:, g * cout:(g + 1) * cout]                      # (tn, Cout)
        sp_sq = jnp.sum(jnp.where(is_time_out, 0.0, yg * yg),
                        axis=-1, keepdims=True)
        nrm = jnp.maximum(jnp.sqrt(sp_sq), _MIN_NORM)
        th = nrm / sqrtK
        ep = jnp.exp(th)
        en = jnp.exp(-th)
        cosh_t = 0.5 * (ep + en)
        sinh_t = 0.5 * (ep - en)
        spatial = (sqrtK * sinh_t / nrm) * yg
        if g < num_heads:                       # K heads
            qk_ref[g] = jnp.where(is_time_out, sqrtK * cosh_t, spatial)
        elif g < 2 * num_heads:                 # Q heads (Minkowski-signed)
            qk_ref[g] = jnp.where(is_time_out, -sqrtK * cosh_t, spatial)
        else:                                   # V heads -> bf16
            v_ref[g - 2 * num_heads] = jnp.where(
                is_time_out, sqrtK * cosh_t, spatial).astype(jnp.bfloat16)


# --------------------------------------------------------------------------
# Kernel 2: flash-style hyperbolic attention + hyperboloid renormalization +
#           Lorentzian head-mean aggregation.
#   grid = (N//tq [parallel], H [arbitrary], N//tk [arbitrary])
# --------------------------------------------------------------------------
def _flash_attn_agg_kernel(q_ref, k_ref, v_ref, o_ref,
                           m_sc, l_sc, acc_sc, hacc_sc, *,
                           curve, temp, num_heads, hyper_version):
    h = pl.program_id(1)
    ki = pl.program_id(2)
    nk = pl.num_programs(2)

    @pl.when(jnp.logical_and(h == 0, ki == 0))
    def _():
        hacc_sc[...] = jnp.zeros(hacc_sc.shape, jnp.float32)

    @pl.when(ki == 0)
    def _():
        m_sc[...] = jnp.full(m_sc.shape, -jnp.inf, jnp.float32)
        l_sc[...] = jnp.zeros(l_sc.shape, jnp.float32)
        acc_sc[...] = jnp.zeros(acc_sc.shape, jnp.float32)

    q_m = q_ref[0]     # (tq, D), Minkowski sign already applied to time col
    k = k_ref[0]       # (tk, D) f32
    v = v_ref[0]       # (tk, D) bf16
    tq, d = q_m.shape

    # <q,k>_L via plain contraction (sign was baked into Q in kernel 1).
    # Kept in f32: theta ~ 1 / prod ~ -1/c cancellation is precision critical.
    prod = lax.dot_general(q_m, k, (((1,), (1,)), ((), ())),
                           preferred_element_type=jnp.float32)
    if hyper_version == "dot":
        s = (prod + 1.0 / curve) / temp
    else:  # 'dist'
        Kc = 1.0 / curve
        theta = jnp.maximum(-prod * curve, 1.0 + _EPS)
        acosh = jnp.log(theta + jnp.sqrt(theta * theta - 1.0))
        sqdist = jnp.minimum(Kc * acosh * acosh, 50.0)
        s = -sqdist / temp

    # online softmax over keys
    m_prev = m_sc[...]
    m_new = jnp.maximum(m_prev, jnp.max(s, axis=-1, keepdims=True))
    alpha = jnp.exp(m_prev - m_new)
    p = jnp.exp(s - m_new)
    l_sc[...] = alpha * l_sc[...] + jnp.sum(p, axis=-1, keepdims=True)
    acc_sc[...] = alpha * acc_sc[...] + jnp.dot(
        p.astype(jnp.bfloat16), v, preferred_element_type=jnp.float32)
    m_sc[...] = m_new

    is_last_k = ki == nk - 1
    col = lax.broadcasted_iota(jnp.int32, (tq, d), 1)
    sign = jnp.where(col == 0, -1.0, 1.0)

    @pl.when(is_last_k)
    def _():
        # finalize head h: normalize softmax, re-project onto the hyperboloid
        av = acc_sc[...] * pl.reciprocal(l_sc[...], approx=True)
        mink = jnp.sum(av * av * sign, axis=-1, keepdims=True)
        coeff = (1.0 / math.sqrt(curve)) * lax.rsqrt(
            jnp.maximum(jnp.abs(mink), _MIN_NORM))
        # head-mean accumulation; the final Lorentzian renormalization is
        # scale-invariant, so the 1/num_heads weight is dropped.
        hacc_sc[...] += av * coeff

    @pl.when(jnp.logical_and(is_last_k, h == num_heads - 1))
    def _():
        mvec = hacc_sc[...]
        mink_m = jnp.sum(mvec * mvec * sign, axis=-1, keepdims=True)
        o_ref[...] = mvec * ((1.0 / math.sqrt(curve)) * lax.rsqrt(
            jnp.maximum(jnp.abs(mink_m), _MIN_NORM)))


# --------------------------------------------------------------------------
# Wrapper: full HyperFormerConv.forward
# --------------------------------------------------------------------------
def _choose_tile(n, preferred):
    for t in (preferred, 512, 256, 128, 64, 32, 16, 8):
        if t <= preferred and n % t == 0:
            return t
    return n


def hyperformer_conv(e, adjs, W, b, *, curve, temp, num_heads,
                     hyper_version="dist"):
    """e: (N, Cin) points on the hyperboloid. W: (3H, Cin, Cout) stacked
    [Wk..., Wq..., Wv...]; b: (3H, 1, Cout). adjs unused by the 'dist'/'dot'
    branches of the reference. Returns (N, Cout)."""
    del adjs
    N, Cin = e.shape
    threeH, _, Cout = W.shape
    assert threeH == 3 * num_heads
    H = num_heads

    e = e.astype(jnp.float32)
    # fused weights: heads stacked along the (lane-dense) output axis
    w_fused = jnp.transpose(W, (1, 0, 2)).reshape(Cin, threeH * Cout)
    w_fused = w_fused.astype(jnp.float32)
    b_fused = b.reshape(1, threeH * Cout).astype(jnp.float32)

    # --- Pallas kernel 1: one fused HypLinear matmul for all 3H heads ---
    tn = _choose_tile(N, 512)
    qk, v = pl.pallas_call(
        functools.partial(_project_kqv_kernel, curve=curve, cout=Cout,
                          num_heads=H),
        out_shape=(jax.ShapeDtypeStruct((2 * H, N, Cout), jnp.float32),
                   jax.ShapeDtypeStruct((H, N, Cout), jnp.bfloat16)),
        grid=(N // tn,),
        in_specs=[
            pl.BlockSpec((tn, Cin), lambda i: (i, 0)),
            pl.BlockSpec((Cin, threeH * Cout), lambda i: (0, 0)),
            pl.BlockSpec((1, threeH * Cout), lambda i: (0, 0)),
        ],
        out_specs=[
            pl.BlockSpec((2 * H, tn, Cout), lambda i: (0, i, 0)),
            pl.BlockSpec((H, tn, Cout), lambda i: (0, i, 0)),
        ],
        compiler_params=pltpu.CompilerParams(
            dimension_semantics=("parallel",),
            vmem_limit_bytes=64 * 1024 * 1024),
    )(e, w_fused, b_fused)

    # --- Pallas kernel 2: flash-style hyperbolic attention + head mean ---
    tq = _choose_tile(N, 256)
    tk = _choose_tile(N, 512)
    kern = functools.partial(_flash_attn_agg_kernel, curve=curve, temp=temp,
                             num_heads=H, hyper_version=hyper_version)
    out = pl.pallas_call(
        kern,
        out_shape=jax.ShapeDtypeStruct((N, Cout), jnp.float32),
        grid=(N // tq, H, N // tk),
        in_specs=[
            # Q block: resident across the k-tile axis (same block index)
            pl.BlockSpec((1, tq, Cout),
                         lambda qi, h, ki: (num_heads + h, qi, 0)),
            pl.BlockSpec((1, tk, Cout),
                         lambda qi, h, ki: (h, ki, 0)),
            pl.BlockSpec((1, tk, Cout),
                         lambda qi, h, ki: (h, ki, 0)),
        ],
        out_specs=pl.BlockSpec((tq, Cout), lambda qi, h, ki: (qi, 0)),
        scratch_shapes=[
            pltpu.VMEM((tq, 1), jnp.float32),      # m (online-softmax max)
            pltpu.VMEM((tq, 1), jnp.float32),      # l (online-softmax denom)
            pltpu.VMEM((tq, Cout), jnp.float32),   # per-head accumulator
            pltpu.VMEM((tq, Cout), jnp.float32),   # head-mean accumulator
        ],
        compiler_params=pltpu.CompilerParams(
            dimension_semantics=("parallel", "arbitrary", "arbitrary"),
            vmem_limit_bytes=64 * 1024 * 1024),
    )(qk, qk, v)
    return out


if __name__ == "__main__":
    # Small deterministic example
    N, Cin, Cout, H = 64, 16, 16, 4
    curve, temp = 1.0, 0.5

    key0 = jax.random.PRNGKey(0)
    k1, k2, k3 = jax.random.split(key0, 3)

    # Input node embeddings on the hyperboloid (expmap0 of tangent vectors)
    tan = 0.5 * jax.random.normal(k1, (N, Cin), jnp.float32)
    tan = tan.at[:, 0].set(0.0)
    e = _proj(_expmap0(tan, curve), curve)  # (N, Cin), <e,e>_L = -1/c

    # Deterministic parameters: stacked [Wk(H), Wq(H), Wv(H)]
    W = jax.random.normal(k2, (3 * H, Cin, Cout), jnp.float32) / math.sqrt(Cin)
    b = 0.01 * jax.random.normal(k3, (3 * H, 1, Cout), jnp.float32)

    adjs = [jnp.zeros((2, 1), jnp.int32)]  # unused by 'dist'/'dot' branches

    out_dist = hyperformer_conv(e, adjs, W, b, curve=curve, temp=temp,
                                num_heads=H, hyper_version="dist")
    out_dot = hyperformer_conv(e, adjs, W, b, curve=curve, temp=temp,
                               num_heads=H, hyper_version="dot")
    out_dist, out_dot = jax.block_until_ready((out_dist, out_dot))
    assert out_dist.shape == (N, Cout) and out_dot.shape == (N, Cout)
    assert bool(jnp.all(jnp.isfinite(out_dist)))
    assert bool(jnp.all(jnp.isfinite(out_dot)))
    print("KERNEL_OK")
</pallas_src>

<mosaic_0001>
module attributes {stable_mosaic.version = 11 : i64} {
  func.func @_project_kqv_kernel(%arg0: i32, %arg1: memref<64x16xf32, #tpu.memory_space<vmem>>, %arg2: memref<16x192xf32, #tpu.memory_space<vmem>>, %arg3: memref<1x192xf32, #tpu.memory_space<vmem>>, %arg4: memref<8x64x16xf32, #tpu.memory_space<vmem>>, %arg5: memref<4x64x16xbf16, #tpu.memory_space<vmem>>) attributes {dimension_semantics = [#tpu.dimension_semantics<parallel>], iteration_bounds = array<i64: 1>, scalar_prefetch = 0 : i64, scratch_operands = 0 : i64, tpu.core_type = #tpu.core_type<tc>, window_params = [{transform_indices = @transform_0, window_bounds = array<i64: 64, 16>}, {pipeline_mode = #tpu.pipeline_mode<synchronous>, transform_indices = @transform_1, window_bounds = array<i64: 16, 192>}, {pipeline_mode = #tpu.pipeline_mode<synchronous>, transform_indices = @transform_2, window_bounds = array<i64: 1, 192>}, {transform_indices = @transform_3, window_bounds = array<i64: 8, 64, 16>}, {transform_indices = @transform_4, window_bounds = array<i64: 4, 64, 16>}]} {
    %c0 = arith.constant 0 : index
    %c0_0 = arith.constant 0 : index
    %0 = vector.load %arg1[%c0, %c0_0] : memref<64x16xf32, #tpu.memory_space<vmem>>, vector<64x16xf32>
    %1 = tpu.iota {dimensions = array<i32: 1>} : vector<64x16xi32>
    %c0_i32 = arith.constant 0 : i32
    %2 = vector.broadcast %c0_i32 : i32 to vector<64x16xi32>
    %3 = arith.cmpi eq, %1, %2 : vector<64x16xi32>
    %cst = arith.constant 0.000000e+00 : f32
    %4 = vector.broadcast %cst : f32 to vector<64x16xf32>
    %5 = arith.select %3, %0, %4 : vector<64x16xi1>, vector<64x16xf32>
    %cst_1 = arith.constant dense<0.000000e+00> : vector<64xf32>
    %6 = vector.multi_reduction <add>, %5, %cst_1 [1] : vector<64x16xf32> to vector<64xf32>
    %7 = vector.shape_cast %6 : vector<64xf32> to vector<64x1xf32>
    %8 = arith.mulf %0, %0 : vector<64x16xf32>
    %cst_2 = arith.constant 0.000000e+00 : f32
    %9 = vector.broadcast %cst_2 : f32 to vector<64x16xf32>
    %10 = arith.select %3, %9, %8 : vector<64x16xi1>, vector<64x16xf32>
    %cst_3 = arith.constant dense<0.000000e+00> : vector<64xf32>
    %11 = vector.multi_reduction <add>, %10, %cst_3 [1] : vector<64x16xf32> to vector<64xf32>
    %12 = vector.shape_cast %11 : vector<64xf32> to vector<64x1xf32>
    %13 = math.sqrt %12 : vector<64x1xf32>
    %cst_4 = arith.constant 1.000000e-15 : f32
    %14 = vector.broadcast %cst_4 : f32 to vector<64x1xf32>
    %15 = arith.maximumf %13, %14 : vector<64x1xf32>
    %cst_5 = arith.constant 1.000000e+00 : f32
    %16 = vector.broadcast %cst_5 : f32 to vector<64x1xf32>
    %17 = arith.divf %7, %16 : vector<64x1xf32>
    %cst_6 = arith.constant 1.00000012 : f32
    %18 = vector.broadcast %cst_6 : f32 to vector<64x1xf32>
    %19 = arith.maximumf %17, %18 : vector<64x1xf32>
    %20 = arith.mulf %19, %19 : vector<64x1xf32>
    %cst_7 = arith.constant 1.000000e+00 : f32
    %21 = vector.broadcast %cst_7 : f32 to vector<64x1xf32>
    %22 = arith.subf %20, %21 : vector<64x1xf32>
    %23 = math.sqrt %22 : vector<64x1xf32>
    %24 = arith.addf %19, %23 : vector<64x1xf32>
    %25 = math.log %24 : vector<64x1xf32>
    %cst_8 = arith.constant 1.000000e+00 : f32
    %26 = vector.broadcast %cst_8 : f32 to vector<64x1xf32>
    %27 = arith.mulf %26, %25 : vector<64x1xf32>
    %28 = arith.divf %27, %15 : vector<64x1xf32>
    %29 = vector.broadcast %28 : vector<64x1xf32> to vector<64x16xf32>
    %30 = arith.mulf %29, %0 : vector<64x16xf32>
    %cst_9 = arith.constant 0.000000e+00 : f32
    %31 = vector.broadcast %cst_9 : f32 to vector<64x16xf32>
    %32 = arith.select %3, %31, %30 : vector<64x16xi1>, vector<64x16xf32>
    %c0_10 = arith.constant 0 : index
    %c0_11 = arith.constant 0 : index
    %33 = vector.load %arg2[%c0_10, %c0_11] : memref<16x192xf32, #tpu.memory_space<vmem>>, vector<16x192xf32>
    %cst_12 = arith.constant dense<0.000000e+00> : vector<64x192xf32>
    %34 = tpu.matmul %32, %33, %cst_12 {dimension_numbers = #tpu.dot_dimension_numbers<[1], [0], [0], [1], [0, 0, 1, 1], [], []>} : vector<64x16xf32>, vector<16x192xf32>, vector<64x192xf32> -> vector<64x192xf32>
    %c0_13 = arith.constant 0 : index
    %c0_14 = arith.constant 0 : index
    %35 = vector.load %arg3[%c0_13, %c0_14] : memref<1x192xf32, #tpu.memory_space<vmem>>, vector<1x192xf32>
    %36 = vector.broadcast %35 : vector<1x192xf32> to vector<64x192xf32>
    %37 = arith.addf %34, %36 : vector<64x192xf32>
    %38 = tpu.iota {dimensions = array<i32: 1>} : vector<64x16xi32>
    %c0_i32_15 = arith.constant 0 : i32
    %39 = vector.broadcast %c0_i32_15 : i32 to vector<64x16xi32>
    %40 = arith.cmpi eq, %38, %39 : vector<64x16xi32>
    %41 = vector.extract_strided_slice %37 {offsets = [0, 0], sizes = [64, 16], strides = [1, 1]} : vector<64x192xf32> to vector<64x16xf32>
    %42 = arith.mulf %41, %41 : vector<64x16xf32>
    %cst_16 = arith.constant 0.000000e+00 : f32
    %43 = vector.broadcast %cst_16 : f32 to vector<64x16xf32>
    %44 = arith.select %40, %43, %42 : vector<64x16xi1>, vector<64x16xf32>
    %cst_17 = arith.constant dense<0.000000e+00> : vector<64xf32>
    %45 = vector.multi_reduction <add>, %44, %cst_17 [1] : vector<64x16xf32> to vector<64xf32>
    %46 = vector.shape_cast %45 : vector<64xf32> to vector<64x1xf32>
    %47 = math.sqrt %46 : vector<64x1xf32>
    %cst_18 = arith.constant 1.000000e-15 : f32
    %48 = vector.broadcast %cst_18 : f32 to vector<64x1xf32>
    %49 = arith.maximumf %47, %48 : vector<64x1xf32>
    %cst_19 = arith.constant 1.000000e+00 : f32
    %50 = vector.broadcast %cst_19 : f32 to vector<64x1xf32>
    %51 = arith.divf %49, %50 : vector<64x1xf32>
    %52 = math.exp %51 : vector<64x1xf32>
    %cst_20 = arith.constant 0.000000e+00 : f32
    %53 = vector.broadcast %cst_20 : f32 to vector<64x1xf32>
    %54 = arith.subf %53, %51 : vector<64x1xf32>
    %55 = math.exp %54 : vector<64x1xf32>
    %56 = arith.addf %52, %55 : vector<64x1xf32>
    %cst_21 = arith.constant 5.000000e-01 : f32
    %57 = vector.broadcast %cst_21 : f32 to vector<64x1xf32>
    %58 = arith.mulf %57, %56 : vector<64x1xf32>
    %59 = arith.subf %52, %55 : vector<64x1xf32>
    %cst_22 = arith.constant 5.000000e-01 : f32
    %60 = vector.broadcast %cst_22 : f32 to vector<64x1xf32>
    %61 = arith.mulf %60, %59 : vector<64x1xf32>
    %cst_23 = arith.constant 1.000000e+00 : f32
    %62 = vector.broadcast %cst_23 : f32 to vector<64x1xf32>
    %63 = arith.mulf %62, %61 : vector<64x1xf32>
    %64 = arith.divf %63, %49 : vector<64x1xf32>
    %65 = vector.broadcast %64 : vector<64x1xf32> to vector<64x16xf32>
    %66 = arith.mulf %65, %41 : vector<64x16xf32>
    %cst_24 = arith.constant 1.000000e+00 : f32
    %67 = vector.broadcast %cst_24 : f32 to vector<64x1xf32>
    %68 = arith.mulf %67, %58 : vector<64x1xf32>
    %69 = vector.shape_cast %68 : vector<64x1xf32> to vector<64x1xf32>
    %70 = vector.broadcast %69 : vector<64x1xf32> to vector<64x16xf32>
    %71 = arith.select %40, %70, %66 : vector<64x16xi1>, vector<64x16xf32>
    %c0_25 = arith.constant 0 : index
    %c0_26 = arith.constant 0 : index
    %c0_27 = arith.constant 0 : index
    %72 = vector.load %arg4[%c0_25, %c0_26, %c0_27] : memref<8x64x16xf32, #tpu.memory_space<vmem>>, vector<1x64x16xf32>
    %73 = vector.shape_cast %72 : vector<1x64x16xf32> to vector<64x16xf32>
    %74 = vector.shape_cast %71 : vector<64x16xf32> to vector<1x64x16xf32>
    tpu.vector_store %arg4[%c0_25, %c0_26, %c0_27], %74 {strides = array<i32>} : memref<8x64x16xf32, #tpu.memory_space<vmem>>, vector<1x64x16xf32>,
    %75 = vector.extract_strided_slice %37 {offsets = [0, 16], sizes = [64, 16], strides = [1, 1]} : vector<64x192xf32> to vector<64x16xf32>
    %76 = arith.mulf %75, %75 : vector<64x16xf32>
    %cst_28 = arith.constant 0.000000e+00 : f32
    %77 = vector.broadcast %cst_28 : f32 to vector<64x16xf32>
    %78 = arith.select %40, %77, %76 : vector<64x16xi1>, vector<64x16xf32>
    %cst_29 = arith.constant dense<0.000000e+00> : vector<64xf32>
    %79 = vector.multi_reduction <add>, %78, %cst_29 [1] : vector<64x16xf32> to vector<64xf32>
    %80 = vector.shape_cast %79 : vector<64xf32> to vector<64x1xf32>
    %81 = math.sqrt %80 : vector<64x1xf32>
    %cst_30 = arith.constant 1.000000e-15 : f32
    %82 = vector.broadcast %cst_30 : f32 to vector<64x1xf32>
    %83 = arith.maximumf %81, %82 : vector<64x1xf32>
    %cst_31 = arith.constant 1.000000e+00 : f32
    %84 = vector.broadcast %cst_31 : f32 to vector<64x1xf32>
    %85 = arith.divf %83, %84 : vector<64x1xf32>
    %86 = math.exp %85 : vector<64x1xf32>
    %cst_32 = arith.constant 0.000000e+00 : f32
    %87 = vector.broadcast %cst_32 : f32 to vector<64x1xf32>
    %88 = arith.subf %87, %85 : vector<64x1xf32>
    %89 = math.exp %88 : vector<64x1xf32>
    %90 = arith.addf %86, %89 : vector<64x1xf32>
    %cst_33 = arith.constant 5.000000e-01 : f32
    %91 = vector.broadcast %cst_33 : f32 to vector<64x1xf32>
    %92 = arith.mulf %91, %90 : vector<64x1xf32>
    %93 = arith.subf %86, %89 : vector<64x1xf32>
    %cst_34 = arith.constant 5.000000e-01 : f32
    %94 = vector.broadcast %cst_34 : f32 to vector<64x1xf32>
    %95 = arith.mulf %94, %93 : vector<64x1xf32>
    %cst_35 = arith.constant 1.000000e+00 : f32
    %96 = vector.broadcast %cst_35 : f32 to vector<64x1xf32>
    %97 = arith.mulf %96, %95 : vector<64x1xf32>
    %98 = arith.divf %97, %83 : vector<64x1xf32>
    %99 = vector.broadcast %98 : vector<64x1xf32> to vector<64x16xf32>
    %100 = arith.mulf %99, %75 : vector<64x16xf32>
    %cst_36 = arith.constant 1.000000e+00 : f32
    %101 = vector.broadcast %cst_36 : f32 to vector<64x1xf32>
    %102 = arith.mulf %101, %92 : vector<64x1xf32>
    %103 = vector.shape_cast %102 : vector<64x1xf32> to vector<64x1xf32>
    %104 = vector.broadcast %103 : vector<64x1xf32> to vector<64x16xf32>
    %105 = arith.select %40, %104, %100 : vector<64x16xi1>, vector<64x16xf32>
    %c1 = arith.constant 1 : index
    %c0_37 = arith.constant 0 : index
    %c0_38 = arith.constant 0 : index
    %106 = vector.load %arg4[%c1, %c0_37, %c0_38] : memref<8x64x16xf32, #tpu.memory_space<vmem>>, vector<1x64x16xf32>
    %107 = vector.shape_cast %106 : vector<1x64x16xf32> to vector<64x16xf32>
    %108 = vector.shape_cast %105 : vector<64x16xf32> to vector<1x64x16xf32>
    tpu.vector_store %arg4[%c1, %c0_37, %c0_38], %108 {strides = array<i32>} : memref<8x64x16xf32, #tpu.memory_space<vmem>>, vector<1x64x16xf32>,
    %109 = vector.extract_strided_slice %37 {offsets = [0, 32], sizes = [64, 16], strides = [1, 1]} : vector<64x192xf32> to vector<64x16xf32>
    %110 = arith.mulf %109, %109 : vector<64x16xf32>
    %cst_39 = arith.constant 0.000000e+00 : f32
    %111 = vector.broadcast %cst_39 : f32 to vector<64x16xf32>
    %112 = arith.select %40, %111, %110 : vector<64x16xi1>, vector<64x16xf32>
    %cst_40 = arith.constant dense<0.000000e+00> : vector<64xf32>
    %113 = vector.multi_reduction <add>, %112, %cst_40 [1] : vector<64x16xf32> to vector<64xf32>
    %114 = vector.shape_cast %113 : vector<64xf32> to vector<64x1xf32>
    %115 = math.sqrt %114 : vector<64x1xf32>
    %cst_41 = arith.constant 1.000000e-15 : f32
    %116 = vector.broadcast %cst_41 : f32 to vector<64x1xf32>
    %117 = arith.maximumf %115, %116 : vector<64x1xf32>
    %cst_42 = arith.constant 1.000000e+00 : f32
    %118 = vector.broadcast %cst_42 : f32 to vector<64x1xf32>
    %119 = arith.divf %117, %118 : vector<64x1xf32>
    %120 = math.exp %119 : vector<64x1xf32>
    %cst_43 = arith.constant 0.000000e+00 : f32
    %121 = vector.broadcast %cst_43 : f32 to vector<64x1xf32>
    %122 = arith.subf %121, %119 : vector<64x1xf32>
    %123 = math.exp %122 : vector<64x1xf32>
    %124 = arith.addf %120, %123 : vector<64x1xf32>
    %cst_44 = arith.constant 5.000000e-01 : f32
    %125 = vector.broadcast %cst_44 : f32 to vector<64x1xf32>
    %126 = arith.mulf %125, %124 : vector<64x1xf32>
    %127 = arith.subf %120, %123 : vector<64x1xf32>
    %cst_45 = arith.constant 5.000000e-01 : f32
    %128 = vector.broadcast %cst_45 : f32 to vector<64x1xf32>
    %129 = arith.mulf %128, %127 : vector<64x1xf32>
    %cst_46 = arith.constant 1.000000e+00 : f32
    %130 = vector.broadcast %cst_46 : f32 to vector<64x1xf32>
    %131 = arith.mulf %130, %129 : vector<64x1xf32>
    %132 = arith.divf %131, %117 : vector<64x1xf32>
    %133 = vector.broadcast %132 : vector<64x1xf32> to vector<64x16xf32>
    %134 = arith.mulf %133, %109 : vector<64x16xf32>
    %cst_47 = arith.constant 1.000000e+00 : f32
    %135 = vector.broadcast %cst_47 : f32 to vector<64x1xf32>
    %136 = arith.mulf %135, %126 : vector<64x1xf32>
    %137 = vector.shape_cast %136 : vector<64x1xf32> to vector<64x1xf32>
    %138 = vector.broadcast %137 : vector<64x1xf32> to vector<64x16xf32>
    %139 = arith.select %40, %138, %134 : vector<64x16xi1>, vector<64x16xf32>
    %c2 = arith.constant 2 : index
    %c0_48 = arith.constant 0 : index
    %c0_49 = arith.constant 0 : index
    %140 = vector.load %arg4[%c2, %c0_48, %c0_49] : memref<8x64x16xf32, #tpu.memory_space<vmem>>, vector<1x64x16xf32>
    %141 = vector.shape_cast %140 : vector<1x64x16xf32> to vector<64x16xf32>
    %142 = vector.shape_cast %139 : vector<64x16xf32> to vector<1x64x16xf32>
    tpu.vector_store %arg4[%c2, %c0_48, %c0_49], %142 {strides = array<i32>} : memref<8x64x16xf32, #tpu.memory_space<vmem>>, vector<1x64x16xf32>,
    %143 = vector.extract_strided_slice %37 {offsets = [0, 48], sizes = [64, 16], strides = [1, 1]} : vector<64x192xf32> to vector<64x16xf32>
    %144 = arith.mulf %143, %143 : vector<64x16xf32>
    %cst_50 = arith.constant 0.000000e+00 : f32
    %145 = vector.broadcast %cst_50 : f32 to vector<64x16xf32>
    %146 = arith.select %40, %145, %144 : vector<64x16xi1>, vector<64x16xf32>
    %cst_51 = arith.constant dense<0.000000e+00> : vector<64xf32>
    %147 = vector.multi_reduction <add>, %146, %cst_51 [1] : vector<64x16xf32> to vector<64xf32>
    %148 = vector.shape_cast %147 : vector<64xf32> to vector<64x1xf32>
    %149 = math.sqrt %148 : vector<64x1xf32>
    %cst_52 = arith.constant 1.000000e-15 : f32
    %150 = vector.broadcast %cst_52 : f32 to vector<64x1xf32>
    %151 = arith.maximumf %149, %150 : vector<64x1xf32>
    %cst_53 = arith.constant 1.000000e+00 : f32
    %152 = vector.broadcast %cst_53 : f32 to vector<64x1xf32>
    %153 = arith.divf %151, %152 : vector<64x1xf32>
    %154 = math.exp %153 : vector<64x1xf32>
    %cst_54 = arith.constant 0.000000e+00 : f32
    %155 = vector.broadcast %cst_54 : f32 to vector<64x1xf32>
    %156 = arith.subf %155, %153 : vector<64x1xf32>
    %157 = math.exp %156 : vector<64x1xf32>
    %158 = arith.addf %154, %157 : vector<64x1xf32>
    %cst_55 = arith.constant 5.000000e-01 : f32
    %159 = vector.broadcast %cst_55 : f32 to vector<64x1xf32>
    %160 = arith.mulf %159, %158 : vector<64x1xf32>
    %161 = arith.subf %154, %157 : vector<64x1xf32>
    %cst_56 = arith.constant 5.000000e-01 : f32
    %162 = vector.broadcast %cst_56 : f32 to vector<64x1xf32>
    %163 = arith.mulf %162, %161 : vector<64x1xf32>
    %cst_57 = arith.constant 1.000000e+00 : f32
    %164 = vector.broadcast %cst_57 : f32 to vector<64x1xf32>
    %165 = arith.mulf %164, %163 : vector<64x1xf32>
    %166 = arith.divf %165, %151 : vector<64x1xf32>
    %167 = vector.broadcast %166 : vector<64x1xf32> to vector<64x16xf32>
    %168 = arith.mulf %167, %143 : vector<64x16xf32>
    %cst_58 = arith.constant 1.000000e+00 : f32
    %169 = vector.broadcast %cst_58 : f32 to vector<64x1xf32>
    %170 = arith.mulf %169, %160 : vector<64x1xf32>
    %171 = vector.shape_cast %170 : vector<64x1xf32> to vector<64x1xf32>
    %172 = vector.broadcast %171 : vector<64x1xf32> to vector<64x16xf32>
    %173 = arith.select %40, %172, %168 : vector<64x16xi1>, vector<64x16xf32>
    %c3 = arith.constant 3 : index
    %c0_59 = arith.constant 0 : index
    %c0_60 = arith.constant 0 : index
    %174 = vector.load %arg4[%c3, %c0_59, %c0_60] : memref<8x64x16xf32, #tpu.memory_space<vmem>>, vector<1x64x16xf32>
    %175 = vector.shape_cast %174 : vector<1x64x16xf32> to vector<64x16xf32>
    %176 = vector.shape_cast %173 : vector<64x16xf32> to vector<1x64x16xf32>
    tpu.vector_store %arg4[%c3, %c0_59, %c0_60], %176 {strides = array<i32>} : memref<8x64x16xf32, #tpu.memory_space<vmem>>, vector<1x64x16xf32>,
    %177 = vector.extract_strided_slice %37 {offsets = [0, 64], sizes = [64, 16], strides = [1, 1]} : vector<64x192xf32> to vector<64x16xf32>
    %178 = arith.mulf %177, %177 : vector<64x16xf32>
    %cst_61 = arith.constant 0.000000e+00 : f32
    %179 = vector.broadcast %cst_61 : f32 to vector<64x16xf32>
    %180 = arith.select %40, %179, %178 : vector<64x16xi1>, vector<64x16xf32>
    %cst_62 = arith.constant dense<0.000000e+00> : vector<64xf32>
    %181 = vector.multi_reduction <add>, %180, %cst_62 [1] : vector<64x16xf32> to vector<64xf32>
    %182 = vector.shape_cast %181 : vector<64xf32> to vector<64x1xf32>
    %183 = math.sqrt %182 : vector<64x1xf32>
    %cst_63 = arith.constant 1.000000e-15 : f32
    %184 = vector.broadcast %cst_63 : f32 to vector<64x1xf32>
    %185 = arith.maximumf %183, %184 : vector<64x1xf32>
    %cst_64 = arith.constant 1.000000e+00 : f32
    %186 = vector.broadcast %cst_64 : f32 to vector<64x1xf32>
    %187 = arith.divf %185, %186 : vector<64x1xf32>
    %188 = math.exp %187 : vector<64x1xf32>
    %cst_65 = arith.constant 0.000000e+00 : f32
    %189 = vector.broadcast %cst_65 : f32 to vector<64x1xf32>
    %190 = arith.subf %189, %187 : vector<64x1xf32>
    %191 = math.exp %190 : vector<64x1xf32>
    %192 = arith.addf %188, %191 : vector<64x1xf32>
    %cst_66 = arith.constant 5.000000e-01 : f32
    %193 = vector.broadcast %cst_66 : f32 to vector<64x1xf32>
    %194 = arith.mulf %193, %192 : vector<64x1xf32>
    %195 = arith.subf %188, %191 : vector<64x1xf32>
    %cst_67 = arith.constant 5.000000e-01 : f32
    %196 = vector.broadcast %cst_67 : f32 to vector<64x1xf32>
    %197 = arith.mulf %196, %195 : vector<64x1xf32>
    %cst_68 = arith.constant 1.000000e+00 : f32
    %198 = vector.broadcast %cst_68 : f32 to vector<64x1xf32>
    %199 = arith.mulf %198, %197 : vector<64x1xf32>
    %200 = arith.divf %199, %185 : vector<64x1xf32>
    %201 = vector.broadcast %200 : vector<64x1xf32> to vector<64x16xf32>
    %202 = arith.mulf %201, %177 : vector<64x16xf32>
    %cst_69 = arith.constant -1.000000e+00 : f32
    %203 = vector.broadcast %cst_69 : f32 to vector<64x1xf32>
    %204 = arith.mulf %203, %194 : vector<64x1xf32>
    %205 = vector.shape_cast %204 : vector<64x1xf32> to vector<64x1xf32>
    %206 = vector.broadcast %205 : vector<64x1xf32> to vector<64x16xf32>
    %207 = arith.select %40, %206, %202 : vector<64x16xi1>, vector<64x16xf32>
    %c4 = arith.constant 4 : index
    %c0_70 = arith.constant 0 : index
    %c0_71 = arith.constant 0 : index
    %208 = vector.load %arg4[%c4, %c0_70, %c0_71] : memref<8x64x16xf32, #tpu.memory_space<vmem>>, vector<1x64x16xf32>
    %209 = vector.shape_cast %208 : vector<1x64x16xf32> to vector<64x16xf32>
    %210 = vector.shape_cast %207 : vector<64x16xf32> to vector<1x64x16xf32>
    tpu.vector_store %arg4[%c4, %c0_70, %c0_71], %210 {strides = array<i32>} : memref<8x64x16xf32, #tpu.memory_space<vmem>>, vector<1x64x16xf32>,
    %211 = vector.extract_strided_slice %37 {offsets = [0, 80], sizes = [64, 16], strides = [1, 1]} : vector<64x192xf32> to vector<64x16xf32>
    %212 = arith.mulf %211, %211 : vector<64x16xf32>
    %cst_72 = arith.constant 0.000000e+00 : f32
    %213 = vector.broadcast %cst_72 : f32 to vector<64x16xf32>
    %214 = arith.select %40, %213, %212 : vector<64x16xi1>, vector<64x16xf32>
    %cst_73 = arith.constant dense<0.000000e+00> : vector<64xf32>
    %215 = vector.multi_reduction <add>, %214, %cst_73 [1] : vector<64x16xf32> to vector<64xf32>
    %216 = vector.shape_cast %215 : vector<64xf32> to vector<64x1xf32>
    %217 = math.sqrt %216 : vector<64x1xf32>
    %cst_74 = arith.constant 1.000000e-15 : f32
    %218 = vector.broadcast %cst_74 : f32 to vector<64x1xf32>
    %219 = arith.maximumf %217, %218 : vector<64x1xf32>
    %cst_75 = arith.constant 1.000000e+00 : f32
    %220 = vector.broadcast %cst_75 : f32 to vector<64x1xf32>
    %221 = arith.divf %219, %220 : vector<64x1xf32>
    %222 = math.exp %221 : vector<64x1xf32>
    %cst_76 = arith.constant 0.000000e+00 : f32
    %223 = vector.broadcast %cst_76 : f32 to vector<64x1xf32>
    %224 = arith.subf %223, %221 : vector<64x1xf32>
    %225 = math.exp %224 : vector<64x1xf32>
    %226 = arith.addf %222, %225 : vector<64x1xf32>
    %cst_77 = arith.constant 5.000000e-01 : f32
    %227 = vector.broadcast %cst_77 : f32 to vector<64x1xf32>
    %228 = arith.mulf %227, %226 : vector<64x1xf32>
    %229 = arith.subf %222, %225 : vector<64x1xf32>
    %cst_78 = arith.constant 5.000000e-01 : f32
    %230 = vector.broadcast %cst_78 : f32 to vector<64x1xf32>
    %231 = arith.mulf %230, %229 : vector<64x1xf32>
    %cst_79 = arith.constant 1.000000e+00 : f32
    %232 = vector.broadcast %cst_79 : f32 to vector<64x1xf32>
    %233 = arith.mulf %232, %231 : vector<64x1xf32>
    %234 = arith.divf %233, %219 : vector<64x1xf32>
    %235 = vector.broadcast %234 : vector<64x1xf32> to vector<64x16xf32>
    %236 = arith.mulf %235, %211 : vector<64x16xf32>
    %cst_80 = arith.constant -1.000000e+00 : f32
    %237 = vector.broadcast %cst_80 : f32 to vector<64x1xf32>
    %238 = arith.mulf %237, %228 : vector<64x1xf32>
    %239 = vector.shape_cast %238 : vector<64x1xf32> to vector<64x1xf32>
    %240 = vector.broadcast %239 : vector<64x1xf32> to vector<64x16xf32>
    %241 = arith.select %40, %240, %236 : vector<64x16xi1>, vector<64x16xf32>
    %c5 = arith.constant 5 : index
    %c0_81 = arith.constant 0 : index
    %c0_82 = arith.constant 0 : index
    %242 = vector.load %arg4[%c5, %c0_81, %c0_82] : memref<8x64x16xf32, #tpu.memory_space<vmem>>, vector<1x64x16xf32>
    %243 = vector.shape_cast %242 : vector<1x64x16xf32> to vector<64x16xf32>
    %244 = vector.shape_cast %241 : vector<64x16xf32> to vector<1x64x16xf32>
    tpu.vector_store %arg4[%c5, %c0_81, %c0_82], %244 {strides = array<i32>} : memref<8x64x16xf32, #tpu.memory_space<vmem>>, vector<1x64x16xf32>,
    %245 = vector.extract_strided_slice %37 {offsets = [0, 96], sizes = [64, 16], strides = [1, 1]} : vector<64x192xf32> to vector<64x16xf32>
    %246 = arith.mulf %245, %245 : vector<64x16xf32>
    %cst_83 = arith.constant 0.000000e+00 : f32
    %247 = vector.broadcast %cst_83 : f32 to vector<64x16xf32>
    %248 = arith.select %40, %247, %246 : vector<64x16xi1>, vector<64x16xf32>
    %cst_84 = arith.constant dense<0.000000e+00> : vector<64xf32>
    %249 = vector.multi_reduction <add>, %248, %cst_84 [1] : vector<64x16xf32> to vector<64xf32>
    %250 = vector.shape_cast %249 : vector<64xf32> to vector<64x1xf32>
    %251 = math.sqrt %250 : vector<64x1xf32>
    %cst_85 = arith.constant 1.000000e-15 : f32
    %252 = vector.broadcast %cst_85 : f32 to vector<64x1xf32>
    %253 = arith.maximumf %251, %252 : vector<64x1xf32>
    %cst_86 = arith.constant 1.000000e+00 : f32
    %254 = vector.broadcast %cst_86 : f32 to vector<64x1xf32>
    %255 = arith.divf %253, %254 : vector<64x1xf32>
    %256 = math.exp %255 : vector<64x1xf32>
    %cst_87 = arith.constant 0.000000e+00 : f32
    %257 = vector.broadcast %cst_87 : f32 to vector<64x1xf32>
    %258 = arith.subf %257, %255 : vector<64x1xf32>
    %259 = math.exp %258 : vector<64x1xf32>
    %260 = arith.addf %256, %259 : vector<64x1xf32>
    %cst_88 = arith.constant 5.000000e-01 : f32
    %261 = vector.broadcast %cst_88 : f32 to vector<64x1xf32>
    %262 = arith.mulf %261, %260 : vector<64x1xf32>
    %263 = arith.subf %256, %259 : vector<64x1xf32>
    %cst_89 = arith.constant 5.000000e-01 : f32
    %264 = vector.broadcast %cst_89 : f32 to vector<64x1xf32>
    %265 = arith.mulf %264, %263 : vector<64x1xf32>
    %cst_90 = arith.constant 1.000000e+00 : f32
    %266 = vector.broadcast %cst_90 : f32 to vector<64x1xf32>
    %267 = arith.mulf %266, %265 : vector<64x1xf32>
    %268 = arith.divf %267, %253 : vector<64x1xf32>
    %269 = vector.broadcast %268 : vector<64x1xf32> to vector<64x16xf32>
    %270 = arith.mulf %269, %245 : vector<64x16xf32>
    %cst_91 = arith.constant -1.000000e+00 : f32
    %271 = vector.broadcast %cst_91 : f32 to vector<64x1xf32>
    %272 = arith.mulf %271, %262 : vector<64x1xf32>
    %273 = vector.shape_cast %272 : vector<64x1xf32> to vector<64x1xf32>
    %274 = vector.broadcast %273 : vector<64x1xf32> to vector<64x16xf32>
    %275 = arith.select %40, %274, %270 : vector<64x16xi1>, vector<64x16xf32>
    %c6 = arith.constant 6 : index
    %c0_92 = arith.constant 0 : index
    %c0_93 = arith.constant 0 : index
    %276 = vector.load %arg4[%c6, %c0_92, %c0_93] : memref<8x64x16xf32, #tpu.memory_space<vmem>>, vector<1x64x16xf32>
    %277 = vector.shape_cast %276 : vector<1x64x16xf32> to vector<64x16xf32>
    %278 = vector.shape_cast %275 : vector<64x16xf32> to vector<1x64x16xf32>
    tpu.vector_store %arg4[%c6, %c0_92, %c0_93], %278 {strides = array<i32>} : memref<8x64x16xf32, #tpu.memory_space<vmem>>, vector<1x64x16xf32>,
    %279 = vector.extract_strided_slice %37 {offsets = [0, 112], sizes = [64, 16], strides = [1, 1]} : vector<64x192xf32> to vector<64x16xf32>
    %280 = arith.mulf %279, %279 : vector<64x16xf32>
    %cst_94 = arith.constant 0.000000e+00 : f32
    %281 = vector.broadcast %cst_94 : f32 to vector<64x16xf32>
    %282 = arith.select %40, %281, %280 : vector<64x16xi1>, vector<64x16xf32>
    %cst_95 = arith.constant dense<0.000000e+00> : vector<64xf32>
    %283 = vector.multi_reduction <add>, %282, %cst_95 [1] : vector<64x16xf32> to vector<64xf32>
    %284 = vector.shape_cast %283 : vector<64xf32> to vector<64x1xf32>
    %285 = math.sqrt %284 : vector<64x1xf32>
    %cst_96 = arith.constant 1.000000e-15 : f32
    %286 = vector.broadcast %cst_96 : f32 to vector<64x1xf32>
    %287 = arith.maximumf %285, %286 : vector<64x1xf32>
    %cst_97 = arith.constant 1.000000e+00 : f32
    %288 = vector.broadcast %cst_97 : f32 to vector<64x1xf32>
    %289 = arith.divf %287, %288 : vector<64x1xf32>
    %290 = math.exp %289 : vector<64x1xf32>
    %cst_98 = arith.constant 0.000000e+00 : f32
    %291 = vector.broadcast %cst_98 : f32 to vector<64x1xf32>
    %292 = arith.subf %291, %289 : vector<64x1xf32>
    %293 = math.exp %292 : vector<64x1xf32>
    %294 = arith.addf %290, %293 : vector<64x1xf32>
    %cst_99 = arith.constant 5.000000e-01 : f32
    %295 = vector.broadcast %cst_99 : f32 to vector<64x1xf32>
    %296 = arith.mulf %295, %294 : vector<64x1xf32>
    %297 = arith.subf %290, %293 : vector<64x1xf32>
    %cst_100 = arith.constant 5.000000e-01 : f32
    %298 = vector.broadcast %cst_100 : f32 to vector<64x1xf32>
    %299 = arith.mulf %298, %297 : vector<64x1xf32>
    %cst_101 = arith.constant 1.000000e+00 : f32
    %300 = vector.broadcast %cst_101 : f32 to vector<64x1xf32>
    %301 = arith.mulf %300, %299 : vector<64x1xf32>
    %302 = arith.divf %301, %287 : vector<64x1xf32>
    %303 = vector.broadcast %302 : vector<64x1xf32> to vector<64x16xf32>
    %304 = arith.mulf %303, %279 : vector<64x16xf32>
    %cst_102 = arith.constant -1.000000e+00 : f32
    %305 = vector.broadcast %cst_102 : f32 to vector<64x1xf32>
    %306 = arith.mulf %305, %296 : vector<64x1xf32>
    %307 = vector.shape_cast %306 : vector<64x1xf32> to vector<64x1xf32>
    %308 = vector.broadcast %307 : vector<64x1xf32> to vector<64x16xf32>
    %309 = arith.select %40, %308, %304 : vector<64x16xi1>, vector<64x16xf32>
    %c7 = arith.constant 7 : index
    %c0_103 = arith.constant 0 : index
    %c0_104 = arith.constant 0 : index
    %310 = vector.load %arg4[%c7, %c0_103, %c0_104] : memref<8x64x16xf32, #tpu.memory_space<vmem>>, vector<1x64x16xf32>
    %311 = vector.shape_cast %310 : vector<1x64x16xf32> to vector<64x16xf32>
    %312 = vector.shape_cast %309 : vector<64x16xf32> to vector<1x64x16xf32>
    tpu.vector_store %arg4[%c7, %c0_103, %c0_104], %312 {strides = array<i32>} : memref<8x64x16xf32, #tpu.memory_space<vmem>>, vector<1x64x16xf32>,
    %313 = vector.extract_strided_slice %37 {offsets = [0, 128], sizes = [64, 16], strides = [1, 1]} : vector<64x192xf32> to vector<64x16xf32>
    %314 = arith.mulf %313, %313 : vector<64x16xf32>
    %cst_105 = arith.constant 0.000000e+00 : f32
    %315 = vector.broadcast %cst_105 : f32 to vector<64x16xf32>
    %316 = arith.select %40, %315, %314 : vector<64x16xi1>, vector<64x16xf32>
    %cst_106 = arith.constant dense<0.000000e+00> : vector<64xf32>
    %317 = vector.multi_reduction <add>, %316, %cst_106 [1] : vector<64x16xf32> to vector<64xf32>
    %318 = vector.shape_cast %317 : vector<64xf32> to vector<64x1xf32>
    %319 = math.sqrt %318 : vector<64x1xf32>
    %cst_107 = arith.constant 1.000000e-15 : f32
    %320 = vector.broadcast %cst_107 : f32 to vector<64x1xf32>
    %321 = arith.maximumf %319, %320 : vector<64x1xf32>
    %cst_108 = arith.constant 1.000000e+00 : f32
    %322 = vector.broadcast %cst_108 : f32 to vector<64x1xf32>
    %323 = arith.divf %321, %322 : vector<64x1xf32>
    %324 = math.exp %323 : vector<64x1xf32>
    %cst_109 = arith.constant 0.000000e+00 : f32
    %325 = vector.broadcast %cst_109 : f32 to vector<64x1xf32>
    %326 = arith.subf %325, %323 : vector<64x1xf32>
    %327 = math.exp %326 : vector<64x1xf32>
    %328 = arith.addf %324, %327 : vector<64x1xf32>
    %cst_110 = arith.constant 5.000000e-01 : f32
    %329 = vector.broadcast %cst_110 : f32 to vector<64x1xf32>
    %330 = arith.mulf %329, %328 : vector<64x1xf32>
    %331 = arith.subf %324, %327 : vector<64x1xf32>
    %cst_111 = arith.constant 5.000000e-01 : f32
    %332 = vector.broadcast %cst_111 : f32 to vector<64x1xf32>
    %333 = arith.mulf %332, %331 : vector<64x1xf32>
    %cst_112 = arith.constant 1.000000e+00 : f32
    %334 = vector.broadcast %cst_112 : f32 to vector<64x1xf32>
    %335 = arith.mulf %334, %333 : vector<64x1xf32>
    %336 = arith.divf %335, %321 : vector<64x1xf32>
    %337 = vector.broadcast %336 : vector<64x1xf32> to vector<64x16xf32>
    %338 = arith.mulf %337, %313 : vector<64x16xf32>
    %cst_113 = arith.constant 1.000000e+00 : f32
    %339 = vector.broadcast %cst_113 : f32 to vector<64x1xf32>
    %340 = arith.mulf %339, %330 : vector<64x1xf32>
    %341 = vector.shape_cast %340 : vector<64x1xf32> to vector<64x1xf32>
    %342 = vector.broadcast %341 : vector<64x1xf32> to vector<64x16xf32>
    %343 = arith.select %40, %342, %338 : vector<64x16xi1>, vector<64x16xf32>
    %344 = arith.truncf %343 : vector<64x16xf32> to vector<64x16xbf16>
    %c0_114 = arith.constant 0 : index
    %c0_115 = arith.constant 0 : index
    %c0_116 = arith.constant 0 : index
    %345 = vector.load %arg5[%c0_114, %c0_115, %c0_116] : memref<4x64x16xbf16, #tpu.memory_space<vmem>>, vector<1x64x16xbf16>
    %346 = vector.shape_cast %345 : vector<1x64x16xbf16> to vector<64x16xbf16>
    %347 = vector.shape_cast %344 : vector<64x16xbf16> to vector<1x64x16xbf16>
    tpu.vector_store %arg5[%c0_114, %c0_115, %c0_116], %347 {strides = array<i32>} : memref<4x64x16xbf16, #tpu.memory_space<vmem>>, vector<1x64x16xbf16>,
    %348 = vector.extract_strided_slice %37 {offsets = [0, 144], sizes = [64, 16], strides = [1, 1]} : vector<64x192xf32> to vector<64x16xf32>
    %349 = arith.mulf %348, %348 : vector<64x16xf32>
    %cst_117 = arith.constant 0.000000e+00 : f32
    %350 = vector.broadcast %cst_117 : f32 to vector<64x16xf32>
    %351 = arith.select %40, %350, %349 : vector<64x16xi1>, vector<64x16xf32>
    %cst_118 = arith.constant dense<0.000000e+00> : vector<64xf32>
    %352 = vector.multi_reduction <add>, %351, %cst_118 [1] : vector<64x16xf32> to vector<64xf32>
    %353 = vector.shape_cast %352 : vector<64xf32> to vector<64x1xf32>
    %354 = math.sqrt %353 : vector<64x1xf32>
    %cst_119 = arith.constant 1.000000e-15 : f32
    %355 = vector.broadcast %cst_119 : f32 to vector<64x1xf32>
    %356 = arith.maximumf %354, %355 : vector<64x1xf32>
    %cst_120 = arith.constant 1.000000e+00 : f32
    %357 = vector.broadcast %cst_120 : f32 to vector<64x1xf32>
    %358 = arith.divf %356, %357 : vector<64x1xf32>
    %359 = math.exp %358 : vector<64x1xf32>
    %cst_121 = arith.constant 0.000000e+00 : f32
    %360 = vector.broadcast %cst_121 : f32 to vector<64x1xf32>
    %361 = arith.subf %360, %358 : vector<64x1xf32>
    %362 = math.exp %361 : vector<64x1xf32>
    %363 = arith.addf %359, %362 : vector<64x1xf32>
    %cst_122 = arith.constant 5.000000e-01 : f32
    %364 = vector.broadcast %cst_122 : f32 to vector<64x1xf32>
    %365 = arith.mulf %364, %363 : vector<64x1xf32>
    %366 = arith.subf %359, %362 : vector<64x1xf32>
    %cst_123 = arith.constant 5.000000e-01 : f32
    %367 = vector.broadcast %cst_123 : f32 to vector<64x1xf32>
    %368 = arith.mulf %367, %366 : vector<64x1xf32>
    %cst_124 = arith.constant 1.000000e+00 : f32
    %369 = vector.broadcast %cst_124 : f32 to vector<64x1xf32>
    %370 = arith.mulf %369, %368 : vector<64x1xf32>
    %371 = arith.divf %370, %356 : vector<64x1xf32>
    %372 = vector.broadcast %371 : vector<64x1xf32> to vector<64x16xf32>
    %373 = arith.mulf %372, %348 : vector<64x16xf32>
    %cst_125 = arith.constant 1.000000e+00 : f32
    %374 = vector.broadcast %cst_125 : f32 to vector<64x1xf32>
    %375 = arith.mulf %374, %365 : vector<64x1xf32>
    %376 = vector.shape_cast %375 : vector<64x1xf32> to vector<64x1xf32>
    %377 = vector.broadcast %376 : vector<64x1xf32> to vector<64x16xf32>
    %378 = arith.select %40, %377, %373 : vector<64x16xi1>, vector<64x16xf32>
    %379 = arith.truncf %378 : vector<64x16xf32> to vector<64x16xbf16>
    %c1_126 = arith.constant 1 : index
    %c0_127 = arith.constant 0 : index
    %c0_128 = arith.constant 0 : index
    %380 = vector.load %arg5[%c1_126, %c0_127, %c0_128] : memref<4x64x16xbf16, #tpu.memory_space<vmem>>, vector<1x64x16xbf16>
    %381 = vector.shape_cast %380 : vector<1x64x16xbf16> to vector<64x16xbf16>
    %382 = vector.shape_cast %379 : vector<64x16xbf16> to vector<1x64x16xbf16>
    tpu.vector_store %arg5[%c1_126, %c0_127, %c0_128], %382 {strides = array<i32>} : memref<4x64x16xbf16, #tpu.memory_space<vmem>>, vector<1x64x16xbf16>,
    %383 = vector.extract_strided_slice %37 {offsets = [0, 160], sizes = [64, 16], strides = [1, 1]} : vector<64x192xf32> to vector<64x16xf32>
    %384 = arith.mulf %383, %383 : vector<64x16xf32>
    %cst_129 = arith.constant 0.000000e+00 : f32
    %385 = vector.broadcast %cst_129 : f32 to vector<64x16xf32>
    %386 = arith.select %40, %385, %384 : vector<64x16xi1>, vector<64x16xf32>
    %cst_130 = arith.constant dense<0.000000e+00> : vector<64xf32>
    %387 = vector.multi_reduction <add>, %386, %cst_130 [1] : vector<64x16xf32> to vector<64xf32>
    %388 = vector.shape_cast %387 : vector<64xf32> to vector<64x1xf32>
    %389 = math.sqrt %388 : vector<64x1xf32>
    %cst_131 = arith.constant 1.000000e-15 : f32
    %390 = vector.broadcast %cst_131 : f32 to vector<64x1xf32>
    %391 = arith.maximumf %389, %390 : vector<64x1xf32>
    %cst_132 = arith.constant 1.000000e+00 : f32
    %392 = vector.broadcast %cst_132 : f32 to vector<64x1xf32>
    %393 = arith.divf %391, %392 : vector<64x1xf32>
    %394 = math.exp %393 : vector<64x1xf32>
    %cst_133 = arith.constant 0.000000e+00 : f32
    %395 = vector.broadcast %cst_133 : f32 to vector<64x1xf32>
    %396 = arith.subf %395, %393 : vector<64x1xf32>
    %397 = math.exp %396 : vector<64x1xf32>
    %398 = arith.addf %394, %397 : vector<64x1xf32>
    %cst_134 = arith.constant 5.000000e-01 : f32
    %399 = vector.broadcast %cst_134 : f32 to vector<64x1xf32>
    %400 = arith.mulf %399, %398 : vector<64x1xf32>
    %401 = arith.subf %394, %397 : vector<64x1xf32>
    %cst_135 = arith.constant 5.000000e-01 : f32
    %402 = vector.broadcast %cst_135 : f32 to vector<64x1xf32>
    %403 = arith.mulf %402, %401 : vector<64x1xf32>
    %cst_136 = arith.constant 1.000000e+00 : f32
    %404 = vector.broadcast %cst_136 : f32 to vector<64x1xf32>
    %405 = arith.mulf %404, %403 : vector<64x1xf32>
    %406 = arith.divf %405, %391 : vector<64x1xf32>
    %407 = vector.broadcast %406 : vector<64x1xf32> to vector<64x16xf32>
    %408 = arith.mulf %407, %383 : vector<64x16xf32>
    %cst_137 = arith.constant 1.000000e+00 : f32
    %409 = vector.broadcast %cst_137 : f32 to vector<64x1xf32>
    %410 = arith.mulf %409, %400 : vector<64x1xf32>
    %411 = vector.shape_cast %410 : vector<64x1xf32> to vector<64x1xf32>
    %412 = vector.broadcast %411 : vector<64x1xf32> to vector<64x16xf32>
    %413 = arith.select %40, %412, %408 : vector<64x16xi1>, vector<64x16xf32>
    %414 = arith.truncf %413 : vector<64x16xf32> to vector<64x16xbf16>
    %c2_138 = arith.constant 2 : index
    %c0_139 = arith.constant 0 : index
    %c0_140 = arith.constant 0 : index
    %415 = vector.load %arg5[%c2_138, %c0_139, %c0_140] : memref<4x64x16xbf16, #tpu.memory_space<vmem>>, vector<1x64x16xbf16>
    %416 = vector.shape_cast %415 : vector<1x64x16xbf16> to vector<64x16xbf16>
    %417 = vector.shape_cast %414 : vector<64x16xbf16> to vector<1x64x16xbf16>
    tpu.vector_store %arg5[%c2_138, %c0_139, %c0_140], %417 {strides = array<i32>} : memref<4x64x16xbf16, #tpu.memory_space<vmem>>, vector<1x64x16xbf16>,
    %418 = vector.extract_strided_slice %37 {offsets = [0, 176], sizes = [64, 16], strides = [1, 1]} : vector<64x192xf32> to vector<64x16xf32>
    %419 = arith.mulf %418, %418 : vector<64x16xf32>
    %cst_141 = arith.constant 0.000000e+00 : f32
    %420 = vector.broadcast %cst_141 : f32 to vector<64x16xf32>
    %421 = arith.select %40, %420, %419 : vector<64x16xi1>, vector<64x16xf32>
    %cst_142 = arith.constant dense<0.000000e+00> : vector<64xf32>
    %422 = vector.multi_reduction <add>, %421, %cst_142 [1] : vector<64x16xf32> to vector<64xf32>
    %423 = vector.shape_cast %422 : vector<64xf32> to vector<64x1xf32>
    %424 = math.sqrt %423 : vector<64x1xf32>
    %cst_143 = arith.constant 1.000000e-15 : f32
    %425 = vector.broadcast %cst_143 : f32 to vector<64x1xf32>
    %426 = arith.maximumf %424, %425 : vector<64x1xf32>
    %cst_144 = arith.constant 1.000000e+00 : f32
    %427 = vector.broadcast %cst_144 : f32 to vector<64x1xf32>
    %428 = arith.divf %426, %427 : vector<64x1xf32>
    %429 = math.exp %428 : vector<64x1xf32>
    %cst_145 = arith.constant 0.000000e+00 : f32
    %430 = vector.broadcast %cst_145 : f32 to vector<64x1xf32>
    %431 = arith.subf %430, %428 : vector<64x1xf32>
    %432 = math.exp %431 : vector<64x1xf32>
    %433 = arith.addf %429, %432 : vector<64x1xf32>
    %cst_146 = arith.constant 5.000000e-01 : f32
    %434 = vector.broadcast %cst_146 : f32 to vector<64x1xf32>
    %435 = arith.mulf %434, %433 : vector<64x1xf32>
    %436 = arith.subf %429, %432 : vector<64x1xf32>
    %cst_147 = arith.constant 5.000000e-01 : f32
    %437 = vector.broadcast %cst_147 : f32 to vector<64x1xf32>
    %438 = arith.mulf %437, %436 : vector<64x1xf32>
    %cst_148 = arith.constant 1.000000e+00 : f32
    %439 = vector.broadcast %cst_148 : f32 to vector<64x1xf32>
    %440 = arith.mulf %439, %438 : vector<64x1xf32>
    %441 = arith.divf %440, %426 : vector<64x1xf32>
    %442 = vector.broadcast %441 : vector<64x1xf32> to vector<64x16xf32>
    %443 = arith.mulf %442, %418 : vector<64x16xf32>
    %cst_149 = arith.constant 1.000000e+00 : f32
    %444 = vector.broadcast %cst_149 : f32 to vector<64x1xf32>
    %445 = arith.mulf %444, %435 : vector<64x1xf32>
    %446 = vector.shape_cast %445 : vector<64x1xf32> to vector<64x1xf32>
    %447 = vector.broadcast %446 : vector<64x1xf32> to vector<64x16xf32>
    %448 = arith.select %40, %447, %443 : vector<64x16xi1>, vector<64x16xf32>
    %449 = arith.truncf %448 : vector<64x16xf32> to vector<64x16xbf16>
    %c3_150 = arith.constant 3 : index
    %c0_151 = arith.constant 0 : index
    %c0_152 = arith.constant 0 : index
    %450 = vector.load %arg5[%c3_150, %c0_151, %c0_152] : memref<4x64x16xbf16, #tpu.memory_space<vmem>>, vector<1x64x16xbf16>
    %451 = vector.shape_cast %450 : vector<1x64x16xbf16> to vector<64x16xbf16>
    %452 = vector.shape_cast %449 : vector<64x16xbf16> to vector<1x64x16xbf16>
    tpu.vector_store %arg5[%c3_150, %c0_151, %c0_152], %452 {strides = array<i32>} : memref<4x64x16xbf16, #tpu.memory_space<vmem>>, vector<1x64x16xbf16>,
    return
  }
  func.func @transform_0(%arg0: i32) -> (i32, i32) {
    %c0_i32 = arith.constant 0 : i32
    %c0_i32_0 = arith.constant 0 : i32
    return %arg0, %c0_i32 : i32, i32
  }
  func.func @transform_1(%arg0: i32) -> (i32, i32) {
    %c0_i32 = arith.constant 0 : i32
    %c0_i32_0 = arith.constant 0 : i32
    %c0_i32_1 = arith.constant 0 : i32
    return %c0_i32, %c0_i32_0 : i32, i32
  }
  func.func @transform_2(%arg0: i32) -> (i32, i32) {
    %c0_i32 = arith.constant 0 : i32
    %c0_i32_0 = arith.constant 0 : i32
    %c0_i32_1 = arith.constant 0 : i32
    return %c0_i32, %c0_i32_0 : i32, i32
  }
  func.func @transform_3(%arg0: i32) -> (i32, i32, i32) {
    %c0_i32 = arith.constant 0 : i32
    %c0_i32_0 = arith.constant 0 : i32
    %c0_i32_1 = arith.constant 0 : i32
    return %c0_i32, %arg0, %c0_i32_0 : i32, i32, i32
  }
  func.func @transform_4(%arg0: i32) -> (i32, i32, i32) {
    %c0_i32 = arith.constant 0 : i32
    %c0_i32_0 = arith.constant 0 : i32
    %c0_i32_1 = arith.constant 0 : i32
    return %c0_i32, %arg0, %c0_i32_0 : i32, i32, i32
  }
}

</mosaic_0001>

<bundles_post_ra>
// kernel: tpu_custom_call.1
= control target key start
LH: loop header
LB: loop body
LE: loop exit
PB: predicated region body
PF: predicated region fallthrough
CT: control target
= control target key end

     0   :  { %10 = vsyncpa [#allocation3], 0  ;;  %s8748_s0 = inlined_call_operand.hbm [shape: f32[64,16], index: 0, kind: input, shape index: {}]   ;;  %s8749_s1 = inlined_call_operand.hbm [shape: f32[16,192], index: 1, kind: input, shape index: {}]   ;;  %s8750_s2 = inlined_call_operand.hbm [shape: f32[1,192], index: 2, kind: input, shape index: {}]   ;;  %s8751_s3 = inlined_call_operand.hbm [shape: f32[8,64,16], index: 3, kind: output, shape index: {0}]   ;;  %s8752_s4 = inlined_call_operand.hbm [shape: bf16[4,64,16], index: 4, kind: output, shape index: {1}]  }
   0x1   :  { %11 = vsyncpa [#allocation6], 0 }
   0x2   :  { %12 = vsyncpa [#allocation4], 0 }
   0x3   :  { %13 = vsyncpa [#allocation10], 0  ;;  %s4900_s15 = smov [#allocation5]   ;;  %s4782_s19 = scalar_lea.hbm %s8749_s1, 512 }
   0x4   :  { %s31_s16 = sshll.u32 %s4900_s15, 4  ;;  %p4783_p0 = scmp.ne.s32.totalorder %s8749_s1, %s4782_s19  ;;  %s32_s16 = int_to_ptr.vmem [resolvable:$true] %s31_s16 }
   0x5   :  { %p4786_p1 = scmp.lt.u32.totalorder %s4782_s19, %s8749_s1 }
   0x7   :  { %p4788_p2 = pnand %p4786_p1, %p4783_p0 }
   0x9   :  { %4791 = shalt.err (!%p4788_p2)
}
   0xa   :  { %s4792_s24 = scalar_lea.vmem %s32_s16, 512  ;;  %p4797_p4 = scmp.lt.s32.totalorder %s32_s16, %s32_s16 }
   0xb   :  { %p4793_p3 = scmp.ne.s32.totalorder %s32_s16, %s4792_s24  ;;  %p4798_p5 = scmp.lt.s32.totalorder %s4792_s24, %s4792_s24 }
   0xd   :  { %p4799_p6 = por %p4798_p5, %p4797_p4 }
   0xf   :  { %p4800_p7 = pnand %p4799_p6, %p4793_p3 }
  0x11   :  { %4803 = shalt.err (!%p4800_p7)
}
  0x12   :  { %s4901_s25 = smov 256   ;;  %s4902_s26 = smov 16  }
  0x13   :  { %37 = dma.hbm_to_vmem [thread:$0]  %s8749_s1, 512, %s32_s16, [#allocation6], %s4901_s25, %s4901_s25, %s4902_s26  }
  0x14   :  { %s4903_s29 = smov [#allocation2]   ;;  %s4804_s7 = scalar_lea.hbm %s8748_s0, 1024 }
  0x15   :  { %s19_s30 = sshll.u32 %s4903_s29, 4  ;;  %p4805_p8 = scmp.ne.s32.totalorder %s8748_s0, %s4804_s7  ;;  %s20_s30 = int_to_ptr.vmem [resolvable:$true] %s19_s30 }
  0x16   :  { %p4808_p9 = scmp.lt.u32.totalorder %s4804_s7, %s8748_s0 }
  0x18   :  { %p4810_p10 = pnand %p4808_p9, %p4805_p8 }
  0x1a   :  { %4813 = shalt.err (!%p4810_p10)
}
  0x1b   :  { %s4814_s12 = scalar_lea.vmem %s20_s30, 1024  ;;  %p4819_p12 = scmp.lt.s32.totalorder %s20_s30, %s20_s30 }
  0x1c   :  { %p4815_p11 = scmp.ne.s32.totalorder %s20_s30, %s4814_s12  ;;  %p4820_p13 = scmp.lt.s32.totalorder %s4814_s12, %s4814_s12 }
  0x1e   :  { %p4821_p0 = por %p4820_p13, %p4819_p12 }
  0x20   :  { %p4822_p1 = pnand %p4821_p0, %p4815_p11 }
  0x22   :  { %4825 = shalt.err (!%p4822_p1)
}
  0x23   :  { %s4904_s1 = smov 128   ;;  %s4905_s13 = smov 8  }
  0x24   :  { %25 = dma.hbm_to_vmem [thread:$0]  %s8748_s0, 1024, %s20_s30, [#allocation3], %s4904_s1, %s4904_s1, %s4905_s13  }
  0x25   :  { %s4906_s16 = smov [#allocation7]   ;;  %s4826_s20 = scalar_lea.hbm %s8750_s2, 32 }
  0x26   :  { %s44_s17 = sshll.u32 %s4906_s16, 4  ;;  %p4827_p2 = scmp.ne.s32.totalorder %s8750_s2, %s4826_s20  ;;  %s45_s17 = int_to_ptr.vmem [resolvable:$true] %s44_s17 }
  0x27   :  { %p4830_p3 = scmp.lt.u32.totalorder %s4826_s20, %s8750_s2 }
  0x29   :  { %p4832_p4 = pnand %p4830_p3, %p4827_p2 }
  0x2b   :  { %4835 = shalt.err (!%p4832_p4)
}
  0x2c   :  { %s4836_s25 = scalar_lea.vmem %s45_s17, 32  ;;  %p4841_p6 = scmp.lt.s32.totalorder %s45_s17, %s45_s17 }
  0x2d   :  { %p4837_p5 = scmp.ne.s32.totalorder %s45_s17, %s4836_s25  ;;  %p4842_p7 = scmp.lt.s32.totalorder %s4836_s25, %s4836_s25 }
  0x2f   :  { %p4843_p8 = por %p4842_p7, %p4841_p6 }
  0x31   :  { %p4844_p9 = pnand %p4843_p8, %p4837_p5 }
  0x33   :  { %4847 = shalt.err (!%p4844_p9)
}
  0x34   :  { %47 = dma.hbm_to_vmem [thread:$0]  %s8750_s2, 32, %s45_s17, [#allocation6]  }
  0x35   :  { %4892 = dma.done.wait [#allocation3], 1024  }
  0x36   :  { %4893 = vsyncadd [#allocation3], 4294966272 }
  0x37   :  { %4894 = dma.done.wait [#allocation6], 544  }
  0x38   :  { %4895 = vsyncadd [#allocation6], 4294966752  ;;  %v65_v0 = vlaneseq  ;;  %vm76_vm1 = vcmask 130048   ;;  %v4986_v2 = vld [vmem:[#allocation2 + $0x10] sm:$0xff]  ;;  %v4988_v3 = vld [vmem:[#allocation2] sm:$0xff]  ;;  %v4907_v55 = vmov 0.0  }
  0x39   :  { %v4990_v4 = vld [vmem:[#allocation2 + $0x18] sm:$0xff]  ;;  %v5001_v8 = vld [vmem:[#allocation2 + $0x8] sm:$0xff]  ;;  %v5010_v13 = vld [vmem:[#allocation2 + $0x20] sm:$0xff]  ;;  %v101_v25 = vmul.f32 %v4988_v3, %v4988_v3  ;;  %v103_v31 = vmul.f32 %v4986_v2, %v4986_v2  ;;  %445 = vmatprep.mubr.f32.mxu0 %v4907_v55  ;;  %469 = vmatprep.mubr.f32.mxu1 %v4907_v55  ;;  %s4908_s2 = smov 112   ;;  %s4909_s28 = smov 96  }
  0x3a   :  { %v4983_v1 = vand.u32 127, %v65_v0  ;;  %v5008_v12 = vld [vmem:[#allocation2 + $0x28] sm:$0xff]  ;;  %v5020_v18 = vld [vmem:[#allocation2 + $0x38] sm:$0xff]  ;;  %v5022_v19 = vld [vmem:[#allocation2 + $0x30] sm:$0xff]  ;;  %v102_v24 = vmul.f32 %v5001_v8, %v5001_v8  ;;  %v104_v30 = vmul.f32 %v4990_v4, %v4990_v4  ;;  %v105_v37 = vmul.f32 %v5010_v13, %v5010_v13  ;;  %s4910_s29 = smov 80   ;;  %s4911_s30 = smov 64  }
  0x3b   :  { %v106_v36 = vmul.f32 %v5008_v12, %v5008_v12  ;;  %v108_v42 = vmul.f32 %v5020_v18, %v5020_v18  ;;  %v107_v43 = vmul.f32 %v5022_v19, %v5022_v19  ;;  %v342_v50 = vld [vmem:[#allocation5 + $0x8] sm:$0xff]  ;;  %v344_v51 = vld [vmem:[#allocation5 + $0x18] sm:$0xff]  ;;  %v341_v52 = vld [vmem:[#allocation5] sm:$0xff]  ;;  %s4912_s5 = smov 48   ;;  %s4913_s6 = smov 32  }
  0x3c   :  { %8855 = vst [vmem:[#allocation15_spill] sm:$0xff] %v4983_v1  ;;  %vm67_vm0 = vcmp.eq.s32.totalorder %v4983_v1, 0  ;;  %v3867_v53 = vpack.c.bf16 %v344_v51, %v342_v50  ;;  %v343_v54 = vld [vmem:[#allocation5 + $0x10] sm:$0xff] }
  0x3d   :  { %v70_v5 = vsel %vm67_vm0, %v4986_v2, 0.0  ;;  %v68_v6 = vsel %vm67_vm0, %v4988_v3, 0.0  ;;  %v71_v7 = vsel %vm67_vm0, %v4990_v4, 0.0  ;;  %v69_v11 = vsel %vm67_vm0, %v5001_v8, 0.0 }
  0x3e   :  { %v83_v9 = vsel %vm76_vm1, %v70_v5, 0.0  ;;  %v77_v10 = vsel %vm76_vm1, %v68_v6, 0.0  ;;  %v86_v14 = vsel %vm76_vm1, %v71_v7, 0.0  ;;  %v80_v15 = vsel %vm76_vm1, %v69_v11, 0.0  ;;  %3868 = vmatprep.subr.bf16.mxu0 %v3867_v53  ;;  %3871 = vmatprep.subr.bf16.mxu1 %v3867_v53 }
  0x3f   :  { %84 = vadd.xlane.f32.xlu1 %v83_v9  ;;  %78 = vadd.xlane.f32.xlu0 %v77_v10  ;;  %v73_v16 = vsel %vm67_vm0, %v5008_v12, 0.0  ;;  %v72_v17 = vsel %vm67_vm0, %v5010_v13, 0.0  ;;  %v75_v22 = vsel %vm67_vm0, %v5020_v18, 0.0  ;;  %v74_v23 = vsel %vm67_vm0, %v5022_v19, 0.0 }
  0x40   :  { %v92_v20 = vsel %vm76_vm1, %v73_v16, 0.0  ;;  %v89_v21 = vsel %vm76_vm1, %v72_v17, 0.0  ;;  %v98_v26 = vsel %vm76_vm1, %v75_v22, 0.0  ;;  %v95_v27 = vsel %vm76_vm1, %v74_v23, 0.0 }
  0x41   :  { %v110_v28 = vsel %vm67_vm0, 0.0, %v102_v24  ;;  %v109_v29 = vsel %vm67_vm0, 0.0, %v101_v25  ;;  %v112_v34 = vsel %vm67_vm0, 0.0, %v104_v30  ;;  %v111_v35 = vsel %vm67_vm0, 0.0, %v103_v31 }
  0x42   :  { %v120_v32 = vsel %vm76_vm1, %v110_v28, 0.0  ;;  %v117_v33 = vsel %vm76_vm1, %v109_v29, 0.0  ;;  %v126_v38 = vsel %vm76_vm1, %v112_v34, 0.0  ;;  %v123_v39 = vsel %vm76_vm1, %v111_v35, 0.0 }
  0x43   :  { %87 = vadd.xlane.f32.xlu1 %v86_v14  ;;  %81 = vadd.xlane.f32.xlu0 %v80_v15  ;;  %v114_v40 = vsel %vm67_vm0, 0.0, %v106_v36  ;;  %v113_v41 = vsel %vm67_vm0, 0.0, %v105_v37  ;;  %v116_v46 = vsel %vm67_vm0, 0.0, %v108_v42  ;;  %v115_v47 = vsel %vm67_vm0, 0.0, %v107_v43 }
  0x44   :  { %v132_v44 = vsel %vm76_vm1, %v114_v40, 0.0  ;;  %v129_v45 = vsel %vm76_vm1, %v113_v41, 0.0  ;;  %v138_v48 = vsel %vm76_vm1, %v116_v46, 0.0  ;;  %v135_v49 = vsel %vm76_vm1, %v115_v47, 0.0 }
  0x45   :  { %v3869_v56 = vpack.c.bf16 %v343_v54, %v341_v52 }
  0x47   :  { %93 = vadd.xlane.f32.xlu1 %v92_v20  ;;  %90 = vadd.xlane.f32.xlu0 %v89_v21 }
  0x48   :  { %3870 = vmatpush1.bf16.msra.mxu0 %v3869_v56  ;;  %3872 = vmatpush1.bf16.msra.mxu1 %v3869_v56 }
  0x4b   :  { %99 = vadd.xlane.f32.xlu1 %v98_v26  ;;  %96 = vadd.xlane.f32.xlu0 %v95_v27 }
  0x4f   :  { %121 = vadd.xlane.f32.xlu1 %v120_v32  ;;  %118 = vadd.xlane.f32.xlu0 %v117_v33 }
  0x53   :  { %127 = vadd.xlane.f32.xlu1 %v126_v38  ;;  %124 = vadd.xlane.f32.xlu0 %v123_v39 }
  0x57   :  { %133 = vadd.xlane.f32.xlu1 %v132_v44  ;;  %130 = vadd.xlane.f32.xlu0 %v129_v45 }
  0x5b   :  { %139 = vadd.xlane.f32.xlu1 %v138_v48  ;;  %136 = vadd.xlane.f32.xlu0 %v135_v49 }
  0xcc   :  { %v85_v57 = vpop.xlane.xlu1 %84  ;;  %v79_v58 = vpop.xlane.xlu0 %78 }
  0xcd   :  { %v207_v59 = vmax.f32 %v85_v57, 1.0000001  ;;  %v5076_v60 = vmax.f32 %v79_v58, 1.0000001 }
  0xcf   :  { %v215_v61 = vmul.f32 %v207_v59, %v207_v59  ;;  %v213_v62 = vmul.f32 %v5076_v60, %v5076_v60 }
  0xd0   :  { %v88_v63 = vpop.xlane.xlu1 %87  ;;  %v82_v5 = vpop.xlane.xlu0 %81 }
  0xd1   :  { %v3789_v6 = vadd.f32 -1.0, %v215_v61  ;;  %v3787_v7 = vadd.f32 -1.0, %v213_v62  ;;  %v5080_v9 = vmax.f32 %v88_v63, 1.0000001  ;;  %v5082_v10 = vmax.f32 %v82_v5, 1.0000001 }
  0xd3   :  { %3950 = vrsqrt.f32 %v3789_v6  ;;  %v216_v15 = vmul.f32 %v5080_v9, %v5080_v9  ;;  %v214_v16 = vmul.f32 %v5082_v10, %v5082_v10  ;;  %vm245_vm2 = vcmp.eq.f32.partialorder %v3789_v6, inf }
  0xd4   :  { %3952 = vrsqrt.f32 %v3787_v7  ;;  %v94_v11 = vpop.xlane.xlu1 %93  ;;  %v91_v14 = vpop.xlane.xlu0 %90  ;;  %v248_v37 = vand.u32 2147483648, %v3789_v6  ;;  %vm247_vm3 = vcmp.eq.f32.partialorder %v3789_v6, 0.0  ;;  %vm231_vm4 = vcmp.eq.f32.partialorder %v3787_v7, inf }
  0xd5   :  { %v5088_v17 = vmax.f32 %v94_v11, 1.0000001  ;;  %v5090_v20 = vmax.f32 %v91_v14, 1.0000001  ;;  %v5092_v21 = vadd.f32 -1.0, %v216_v15  ;;  %v5094_v22 = vadd.f32 -1.0, %v214_v16 }
  0xd6   :  { %vm233_vm5 = vcmp.eq.f32.partialorder %v3787_v7, 0.0  ;;  %v234_v47 = vand.u32 2147483648, %v3787_v7 }
  0xd7   :  { %v218_v23 = vmul.f32 %v5088_v17, %v5088_v17  ;;  %v217_v24 = vmul.f32 %v5090_v20, %v5090_v20  ;;  %3954 = vrsqrt.f32 %v5092_v21  ;;  %vm252_vm6 = vcmp.eq.f32.partialorder %v5092_v21, inf }
  0xd8   :  { %v100_v25 = vpop.xlane.xlu1 %99  ;;  %v97_v26 = vpop.xlane.xlu0 %96  ;;  %3956 = vrsqrt.f32 %v5094_v22  ;;  %vm254_vm7 = vcmp.eq.f32.partialorder %v5092_v21, 0.0  ;;  %v255_v56 = vand.u32 2147483648, %v5092_v21  ;;  %vm238_vm8 = vcmp.eq.f32.partialorder %v5094_v22, inf }
  0xd9   :  { %v5102_v27 = vadd.f32 -1.0, %v218_v23  ;;  %v5104_v28 = vadd.f32 -1.0, %v217_v24  ;;  %v5106_v29 = vmax.f32 %v97_v26, 1.0000001  ;;  %v5108_v31 = vmax.f32 %v100_v25, 1.0000001 }
  0xda   :  { %vm240_vm9 = vcmp.eq.f32.partialorder %v5094_v22, 0.0  ;;  %v241_v57 = vand.u32 2147483648, %v5094_v22 }
  0xdb   :  { %3958 = vrsqrt.f32 %v5102_v27  ;;  %v219_v35 = vmul.f32 %v5106_v29, %v5106_v29  ;;  %v220_v40 = vmul.f32 %v5108_v31, %v5108_v31  ;;  %vm266_vm10 = vcmp.eq.f32.partialorder %v5102_v27, inf }
  0xdc   :  { %v5110_v32 = vpop.xlane.xlu1 %121  ;;  %3960 = vrsqrt.f32 %v5104_v28  ;;  %v5116_v36 = vpop.xlane.xlu0 %118  ;;  %vm268_vm11 = vcmp.eq.f32.partialorder %v5102_v27, 0.0  ;;  %vm259_vm12 = vcmp.eq.f32.partialorder %v5104_v28, inf  ;;  %vm261_vm13 = vcmp.eq.f32.partialorder %v5104_v28, 0.0 }
  0xdd   :  { %v3951_v30 = vpop.eup %3950  ;;  %3962 = vrsqrt.f32 %v5110_v32  ;;  %v5121_v41 = vadd.f32 -1.0, %v219_v35  ;;  %v5126_v48 = vadd.f32 -1.0, %v220_v40  ;;  %v262_v15 = vand.u32 2147483648, %v5104_v28 }
  0xde   :  { %v3953_v33 = vpop.eup %3952  ;;  %v244_v34 = vmul.f32 %v3951_v30, %v3789_v6  ;;  %3964 = vrsqrt.f32 %v5116_v36  ;;  %vm150_vm14 = vcmp.eq.f32.partialorder %v5110_v32, inf  ;;  %vm152_vm15 = vcmp.eq.f32.partialorder %v5110_v32, 0.0 }
  0xdf   :  { %v230_v38 = vmul.f32 %v3953_v33, %v3787_v7  ;;  %3966 = vrsqrt.f32 %v5121_v41  ;;  %v153_v26 = vand.u32 2147483648, %v5110_v32 }
  0xe0   :  { %v246_v39 = vsel %vm245_vm2, %v3789_v6, %v244_v34  ;;  %v5124_v46 = vpop.xlane.xlu1 %127  ;;  %v5134_v53 = vpop.xlane.xlu0 %124  ;;  %vm143_vm2 = vcmp.eq.f32.partialorder %v5116_v36, inf  ;;  %v146_v34 = vand.u32 2147483648, %v5116_v36 }
  0xe1   :  { %v3955_v42 = vpop.eup %3954  ;;  %v249_v44 = vsel %vm247_vm3, %v248_v37, %v246_v39  ;;  %v232_v45 = vsel %vm231_vm4, %v3787_v7, %v230_v38  ;;  %3968 = vrsqrt.f32 %v5124_v46  ;;  %v283_v38 = vand.u32 2147483648, %v5126_v48 }
  0xe2   :  { %v3957_v43 = vpop.eup %3956  ;;  %v251_v49 = vmul.f32 %v3955_v42, %v5092_v21  ;;  %v287_v50 = vadd.f32 %v249_v44, %v207_v59  ;;  %v235_v51 = vsel %vm233_vm5, %v234_v47, %v232_v45  ;;  %v269_v59 = vand.u32 2147483648, %v5102_v27 }
  0xe3   :  { %v237_v52 = vmul.f32 %v3957_v43, %v5094_v22  ;;  %3970 = vrsqrt.f32 %v5126_v48  ;;  %v285_v62 = vadd.f32 %v235_v51, %v5076_v60  ;;  %vm145_vm3 = vcmp.eq.f32.partialorder %v5116_v36, 0.0 }
  0xe4   :  { %v253_v63 = vsel %vm252_vm6, %v5092_v21, %v251_v49  ;;  %v5150_v5 = vpop.xlane.xlu1 %133  ;;  %3972 = vlog2.f32 %v287_v50  ;;  %v5164_v24 = vpop.xlane.xlu0 %130  ;;  %vm280_vm4 = vcmp.eq.f32.partialorder %v5126_v48, inf  ;;  %vm273_vm5 = vcmp.eq.f32.partialorder %v5121_v41, inf }
  0xe5   :  { %v3959_v54 = vpop.eup %3958  ;;  %v239_v6 = vsel %vm238_vm8, %v5094_v22, %v237_v52  ;;  %3974 = vrsqrt.f32 %v5134_v53  ;;  %v256_v16 = vsel %vm254_vm7, %v255_v56, %v253_v63  ;;  %vm164_vm6 = vcmp.eq.f32.partialorder %v5124_v46, inf }
  0xe6   :  { %v3961_v58 = vpop.eup %3960  ;;  %v265_v7 = vmul.f32 %v3959_v54, %v5102_v27  ;;  %3976 = vrsqrt.f32 %v5150_v5  ;;  %v242_v25 = vsel %vm240_vm9, %v241_v57, %v239_v6  ;;  %v288_v37 = vadd.f32 %v256_v16, %v5080_v9 }
  0xe7   :  { %v3963_v61 = vpop.eup %3962  ;;  %v258_v60 = vmul.f32 %v3961_v58, %v5104_v28  ;;  %3978 = vlog2.f32 %v285_v62  ;;  %v286_v42 = vadd.f32 %v242_v25, %v5082_v10  ;;  %vm275_vm7 = vcmp.eq.f32.partialorder %v5121_v41, 0.0 }
  0xe8   :  { %v149_v11 = vmul.f32 %v3963_v61, %v5110_v32  ;;  %v3965_v14 = vpop.eup %3964  ;;  %v267_v21 = vsel %vm266_vm10, %v5102_v27, %v265_v7  ;;  %v5182_v39 = vpop.xlane.xlu1 %139  ;;  %3980 = vrsqrt.f32 %v5164_v24  ;;  %vm166_vm8 = vcmp.eq.f32.partialorder %v5124_v46, 0.0 }
  0xe9   :  { %v142_v23 = vmul.f32 %v3965_v14, %v5116_v36  ;;  %v3967_v35 = vpop.eup %3966  ;;  %v260_v22 = vsel %vm259_vm12, %v5104_v28, %v258_v60  ;;  %v270_v9 = vsel %vm268_vm11, %v269_v59, %v267_v21  ;;  %v167_v47 = vand.u32 2147483648, %v5124_v46  ;;  %v5200_v27 = vpop.xlane.xlu0 %136 }
  0xea   :  { %v151_v30 = vsel %vm150_vm14, %v5110_v32, %v149_v11  ;;  %v263_v45 = vsel %vm261_vm13, %v262_v15, %v260_v22  ;;  %3982 = vrsqrt.f32 %v5182_v39  ;;  %vm282_vm9 = vcmp.eq.f32.partialorder %v5126_v48, 0.0 }
  0xeb   :  { %v144_v33 = vsel %vm143_vm2, %v5116_v36, %v142_v23  ;;  %v3969_v40 = vpop.eup %3968  ;;  %v154_v36 = vsel %vm152_vm15, %v153_v26, %v151_v30  ;;  %3984 = vlog2.f32 %v288_v37  ;;  %v272_v32 = vmul.f32 %v3967_v35, %v5121_v41 }
  0xec   :  { %v147_v43 = vsel %vm145_vm3, %v146_v34, %v144_v33  ;;  %v163_v44 = vmul.f32 %v3969_v40, %v5124_v46  ;;  %3986 = vlog2.f32 %v286_v42  ;;  %v290_v51 = vadd.f32 %v270_v9, %v5088_v17 }
  0xed   :  { %v3971_v10 = vpop.eup %3970  ;;  %v197_v49 = vmax.f32 %v147_v43, 1e-15  ;;  %v198_v52 = vmax.f32 %v154_v36, 1e-15  ;;  %vm157_vm10 = vcmp.eq.f32.partialorder %v5134_v53, inf  ;;  %v289_v56 = vadd.f32 %v263_v45, %v5090_v20 }
  0xee   :  { %v165_v50 = vsel %vm164_vm6, %v5124_v46, %v163_v44  ;;  %v5207_v28 = vpop.eup %3972  ;;  %v279_v57 = vmul.f32 %v3971_v10, %v5126_v48  ;;  %v160_v58 = vand.u32 2147483648, %v5134_v53  ;;  %3988 = vrsqrt.f32 %v5200_v27 }
  0xef   :  { %v3975_v54 = vpop.eup %3974  ;;  %v168_v61 = vsel %vm166_vm8, %v167_v47, %v165_v50  ;;  %vm178_vm11 = vcmp.eq.f32.partialorder %v5150_v5, inf  ;;  %v181_v17 = vand.u32 2147483648, %v5150_v5  ;;  %v274_v20 = vsel %vm273_vm5, %v5121_v41, %v272_v32 }
  0xf0   :  { %v3977_v59 = vpop.eup %3976  ;;  %v156_v62 = vmul.f32 %v3975_v54, %v5134_v53  ;;  %vm180_vm12 = vcmp.eq.f32.partialorder %v5150_v5, 0.0  ;;  %3990 = vrcp.f32 %v197_v49  ;;  %v276_v7 = vand.u32 2147483648, %v5121_v41 }
  0xf1   :  { %v3979_v63 = vpop.eup %3978  ;;  %v177_v6 = vmul.f32 %v3977_v59, %v5150_v5  ;;  %vm159_vm13 = vcmp.eq.f32.partialorder %v5134_v53, 0.0  ;;  %3992 = vrcp.f32 %v198_v52  ;;  %v200_v11 = vmax.f32 %v168_v61, 1e-15 }
  0xf2   :  { %v158_v46 = vsel %vm157_vm10, %v5134_v53, %v156_v62  ;;  %3994 = vlog2.f32 %v290_v51  ;;  %v277_v15 = vsel %vm275_vm7, %v276_v7, %v274_v20  ;;  %v3981_v25 = vpop.eup %3980  ;;  %v294_v26 = vmul.f32 0.6931472, %v3979_v63 }
  0xf3   :  { %v161_v14 = vsel %vm159_vm13, %v160_v58, %v158_v46  ;;  %v179_v60 = vsel %vm178_vm11, %v5150_v5, %v177_v6  ;;  %3996 = vlog2.f32 %v289_v56  ;;  %v281_v21 = vsel %vm280_vm4, %v5126_v48, %v279_v57 }
  0xf4   :  { %v199_v16 = vmax.f32 %v161_v14, 1e-15  ;;  %v182_v23 = vsel %vm180_vm12, %v181_v17, %v179_v60  ;;  %vm171_vm14 = vcmp.eq.f32.partialorder %v5164_v24, inf  ;;  %v174_v53 = vand.u32 2147483648, %v5164_v24  ;;  %v3983_v30 = vpop.eup %3982 }
  0xf5   :  { %v202_v33 = vmax.f32 %v182_v23, 1e-15  ;;  %v170_v5 = vmul.f32 %v3981_v25, %v5164_v24  ;;  %vm192_vm15 = vcmp.eq.f32.partialorder %v5182_v39, inf  ;;  %v3985_v41 = vpop.eup %3984  ;;  %v291_v34 = vadd.f32 %v277_v15, %v5106_v29 }
  0xf6   :  { %3998 = vrcp.f32 %v199_v16  ;;  %v191_v35 = vmul.f32 %v3983_v30, %v5182_v39  ;;  %v195_v37 = vand.u32 2147483648, %v5182_v39  ;;  %v3987_v22 = vpop.eup %3986  ;;  %v284_v40 = vsel %vm282_vm9, %v283_v38, %v281_v21 }
  0xf7   :  { %4000 = vrcp.f32 %v200_v11  ;;  %v172_v42 = vsel %vm171_vm14, %v5164_v24, %v170_v5  ;;  %vm173_vm2 = vcmp.eq.f32.partialorder %v5164_v24, 0.0  ;;  %vm194_vm3 = vcmp.eq.f32.partialorder %v5182_v39, 0.0 }
  0xf8   :  { %v3989_v43 = vpop.eup %3988  ;;  %v175_v9 = vsel %vm173_vm2, %v174_v53, %v172_v42  ;;  %v193_v29 = vsel %vm192_vm15, %v5182_v39, %v191_v35  ;;  %vm185_vm4 = vcmp.eq.f32.partialorder %v5200_v27, inf  ;;  %v188_v36 = vand.u32 2147483648, %v5200_v27 }
  0xf9   :  { %v201_v44 = vmax.f32 %v175_v9, 1e-15  ;;  %v184_v10 = vmul.f32 %v3989_v43, %v5200_v27  ;;  %vm187_vm5 = vcmp.eq.f32.partialorder %v5200_v27, 0.0  ;;  %4002 = vrcp.f32 %v202_v33 }
  0xfa   :  { %v3991_v48 = vpop.eup %3990  ;;  %v296_v38 = vmul.f32 0.6931472, %v3987_v22  ;;  %v292_v24 = vadd.f32 %v284_v40, %v5108_v31  ;;  %4004 = vlog2.f32 %v291_v34  ;;  %v196_v45 = vsel %vm194_vm3, %v195_v37, %v193_v29  ;;  %v345_v22 = vld [vmem:[#allocation7] sm:$0x3] }
  0xfb   :  { %v3993_v47 = vpop.eup %3992  ;;  %v186_v32 = vsel %vm185_vm4, %v5200_v27, %v184_v10  ;;  %v310_v39 = vmul.f32 %v3991_v48, %v294_v26  ;;  %4006 = vrcp.f32 %v201_v44  ;;  %v204_v54 = vmax.f32 %v196_v45, 1e-15 }
  0xfc   :  { %v3995_v49 = vpop.eup %3994  ;;  %v189_v50 = vsel %vm187_vm5, %v188_v36, %v186_v32  ;;  %v312_v51 = vmul.f32 %v3993_v47, %v296_v38  ;;  %v298_v58 = vmul.f32 0.6931472, %v5207_v28  ;;  %4008 = vlog2.f32 %v292_v24 }
  0xfd   :  { %v3997_v52 = vpop.eup %3996  ;;  %v203_v56 = vmax.f32 %v189_v50, 1e-15  ;;  %v325_v57 = vmul.f32 %v310_v39, %v4988_v3  ;;  %v300_v17 = vmul.f32 0.6931472, %v3985_v41  ;;  %v304_v7 = vmul.f32 0.6931472, %v3995_v49 }
  0xfe   :  { %v326_v61 = vmul.f32 %v312_v51, %v5001_v8  ;;  %v302_v46 = vmul.f32 0.6931472, %v3997_v52 }
  0xff   :  { %v333_v31 = vsel %vm67_vm0, 0.0, %v325_v57  ;;  %4010 = vrcp.f32 %v203_v56 }
 0x100   :  { %v3999_v59 = vpop.eup %3998  ;;  %3795 = vmatmul.mubr.msk.f32.vlgmr.msra.gmra.mrb[0].mxu0 %vm76_vm1, %v333_v31  ;;  %4012 = vrcp.f32 %v204_v54  ;;  %v334_v3 = vsel %vm67_vm0, 0.0, %v326_v61 }
 0x101   :  { %v4001_v27 = vpop.eup %4000  ;;  %v314_v62 = vmul.f32 %v3999_v59, %v298_v58  ;;  %451 = vmatprep.mubr.f32.mxu0 %v4907_v55 }
 0x102   :  { %v316_v20 = vmul.f32 %v4001_v27, %v300_v17 }
 0x103   :  { %v4003_v63 = vpop.eup %4002  ;;  %v327_v28 = vmul.f32 %v314_v62, %v4986_v2 }
 0x104   :  { %v4005_v6 = vpop.eup %4004  ;;  %3796 = vmatmul.mubr.msk.f32.gmra.mrb[2].mxu0 %vm76_vm1, %v334_v3  ;;  %v320_v14 = vmul.f32 %v4003_v63, %v304_v7  ;;  %v328_v15 = vmul.f32 %v316_v20, %v4990_v4 }
 0x105   :  { %v4007_v8 = vpop.eup %4006  ;;  %457 = vmatprep.mubr.f32.mxu0 %v4907_v55  ;;  %v335_v60 = vsel %vm67_vm0, 0.0, %v327_v28  ;;  %v306_v23 = vmul.f32 0.6931472, %v4005_v6 }
 0x106   :  { %v318_v11 = vmul.f32 %v4007_v8, %v302_v46  ;;  %v4009_v16 = vpop.eup %4008  ;;  %v330_v21 = vmul.f32 %v320_v14, %v5008_v12  ;;  %v336_v4 = vsel %vm67_vm0, 0.0, %v328_v15 }
 0x107   :  { %v308_v33 = vmul.f32 0.6931472, %v4009_v16 }
 0x108   :  { %3797 = vmatmul.mubr.msk.f32.gmra.mrb[4].mxu0 %vm76_vm1, %v335_v60  ;;  %v329_v2 = vmul.f32 %v318_v11, %v5010_v13  ;;  %v338_v13 = vsel %vm67_vm0, 0.0, %v330_v21 }
 0x109   :  { %v4011_v25 = vpop.eup %4010  ;;  %463 = vmatprep.mubr.f32.mxu0 %v4907_v55 }
 0x10a   :  { %v337_v26 = vsel %vm67_vm0, 0.0, %v329_v2  ;;  %v322_v53 = vmul.f32 %v4011_v25, %v306_v23  ;;  %v4013_v30 = vpop.eup %4012 }
 0x10b   :  { %3799 = vmatmul.mubr.msk.f32.vlgmr.msra.gmra.mrb[0].mxu1 %vm76_vm1, %v337_v26  ;;  %v324_v41 = vmul.f32 %v4013_v30, %v308_v33 }
 0x10c   :  { %475 = vmatprep.mubr.f32.mxu1 %v4907_v55  ;;  %3798 = vmatmul.mubr.msk.f32.gmra.mrb[6].mxu0 %vm76_vm1, %v336_v4  ;;  %v331_v5 = vmul.f32 %v322_v53, %v5022_v19  ;;  %v348_v19 = vshrl.u32 %v65_v0, 7 }
 0x10d   :  { %v332_v34 = vmul.f32 %v324_v41, %v5020_v18 }
 0x10e   :  { %v339_v12 = vsel %vm67_vm0, 0.0, %v331_v5  ;;  %v349_v37 = vsub.s32 0, %v348_v19  ;;  %v353_v44 = vsub.s32 1, %v348_v19 }
 0x10f   :  { %3800 = vmatmul.mubr.msk.f32.gmra.mrb[2].mxu1 %vm76_vm1, %v338_v13  ;;  %v340_v35 = vsel %vm67_vm0, 0.0, %v332_v34 }
 0x110   :  { %481 = vmatprep.mubr.f32.mxu1 %v4907_v55  ;;  %v350_v40 = vrot.slane %v345_v22, %v349_v37  ;;  %v5321_v45 = vrot.slane %v345_v22, %v353_v44 }
 0x112   :  { %8859 = vst [vmem:[#allocation19_spill] sm:$0xff] %v5321_v45 }
 0x113   :  { %3801 = vmatmul.mubr.msk.f32.gmra.mrb[4].mxu1 %vm76_vm1, %v339_v12 }
 0x114   :  { %487 = vmatprep.mubr.f32.mxu1 %v4907_v55 }
 0x117   :  { %3802 = vmatmul.mubr.msk.f32.gmra.mrb[6].mxu1 %vm76_vm1, %v340_v35 }
 0x1d3   :  { %v447_v42 = vpop.f32.mrb[0].mxu0 }
 0x1d4   :  { %v5297_v43 = vadd.f32 %v447_v42, %v350_v40  ;;  %v5299_v9 = vpop.f32.mrb[1].mxu0 }
 0x1d6   :  { %v5303_v18 = vmul.f32 %v5297_v43, %v5297_v43 }
 0x1d7   :  { %v453_v55 = vpop.f32.mrb[2].mxu0 }
 0x1d8   :  { %v5305_v29 = vadd.f32 %v453_v55, %v350_v40  ;;  %v5307_v36 = vpop.f32.mrb[3].mxu0  ;;  %718 = vrot.lane.b32.xlu0 %v5303_v18, %s4908_s2  ;;  %v502_v28 = vsel %vm67_vm0, 0.0, %v5303_v18 }
 0x1d9   :  { %8856 = vst [vmem:[#allocation16_spill] sm:$0xff] %v5307_v36  ;;  %v510_v20 = vsel %vm76_vm1, %v502_v28, 0.0 }
 0x1da   :  { %v5313_v0 = vmul.f32 %v5305_v29, %v5305_v29 }
 0x1db   :  { %v459_v10 = vpop.f32.mrb[4].mxu0 }
 0x1dc   :  { %v5315_v48 = vadd.f32 %v459_v10, %v350_v40  ;;  %720 = vrot.lane.b32.xlu1 %v5313_v0, %s4908_s2  ;;  %v5319_v38 = vpop.f32.mrb[5].mxu0  ;;  %v503_v46 = vsel %vm67_vm0, 0.0, %v5313_v0 }
 0x1dd   :  { %8858 = vst [vmem:[#allocation18_spill] sm:$0xff] %v5319_v38  ;;  %v513_v8 = vsel %vm76_vm1, %v503_v46, 0.0 }
 0x1de   :  { %8857 = vst [vmem:[#allocation17_spill] sm:$0xff] %v5315_v48  ;;  %v471_v24 = vpop.f32.mrb[0].mxu1  ;;  %v496_v15 = vmul.f32 %v5315_v48, %v5315_v48 }
 0x1df   :  { %v5323_v47 = vadd.f32 %v471_v24, %v350_v40  ;;  %v5325_v32 = vpop.f32.mrb[1].mxu1  ;;  %v465_v39 = vpop.f32.mrb[6].mxu0 }
 0x1e0   :  { %8860 = vst [vmem:[#allocation20_spill] sm:$0xff] %v5325_v32  ;;  %v5327_v49 = vadd.f32 %v465_v39, %v350_v40  ;;  %v467_v50 = vpop.f32.mrb[7].mxu0  ;;  %v504_v19 = vsel %vm67_vm0, 0.0, %v496_v15 }
 0x1e1   :  { %v5330_v51 = vadd.f32 %v467_v50, %v5321_v45  ;;  %v498_v52 = vmul.f32 %v5323_v47, %v5323_v47  ;;  %v516_v22 = vsel %vm76_vm1, %v504_v19, 0.0 }
 0x1e2   :  { %8861 = vst [vmem:[#allocation21_spill] sm:$0xff] %v5327_v49  ;;  %v477_v54 = vpop.f32.mrb[2].mxu1  ;;  %v497_v16 = vmul.f32 %v5327_v49, %v5327_v49 }
 0x1e3   :  { %8862 = vst [vmem:[#allocation22_spill] sm:$0xff] %v5330_v51  ;;  %v5334_v56 = vadd.f32 %v477_v54, %v350_v40  ;;  %v479_v57 = vpop.f32.mrb[3].mxu1  ;;  %726 = vrot.lane.b32.xlu0 %v498_v52, %s4908_s2  ;;  %v506_v6 = vsel %vm67_vm0, 0.0, %v498_v52 }
 0x1e4   :  { %v5338_v58 = vadd.f32 %v479_v57, %v5321_v45  ;;  %v522_v7 = vsel %vm76_vm1, %v506_v6, 0.0  ;;  %v505_v54 = vsel %vm67_vm0, 0.0, %v497_v16 }
 0x1e5   :  { %v499_v59 = vmul.f32 %v5334_v56, %v5334_v56 }
 0x1e6   :  { %8863 = vst [vmem:[#allocation23_spill] sm:$0xff] %v5338_v58  ;;  %v483_v31 = vpop.f32.mrb[4].mxu1 }
 0x1e7   :  { %v5342_v61 = vadd.f32 %v483_v31, %v350_v40  ;;  %728 = vrot.lane.b32.xlu1 %v499_v59, %s4908_s2  ;;  %983 = vrot.lane.b32.xlu0 %v5303_v18, %s4909_s28  ;;  %v5347_v27 = vpop.f32.mrb[5].mxu1  ;;  %v507_v11 = vsel %vm67_vm0, 0.0, %v499_v59  ;;  %v519_v31 = vsel %vm76_vm1, %v505_v54, 0.0 }
 0x1e8   :  { %8864 = vst [vmem:[#allocation24_spill] sm:$0xff] %v5347_v27  ;;  %v525_v14 = vsel %vm76_vm1, %v507_v11, 0.0 }
 0x1e9   :  { %v500_v60 = vmul.f32 %v5342_v61, %v5342_v61 }
 0x1ea   :  { %v489_v62 = vpop.f32.mrb[6].mxu1 }
 0x1eb   :  { %v5349_v17 = vadd.f32 %v489_v62, %v350_v40  ;;  %985 = vrot.lane.b32.xlu1 %v5313_v0, %s4909_s28  ;;  %991 = vrot.lane.b32.xlu0 %v498_v52, %s4909_s28  ;;  %v491_v63 = vpop.f32.mrb[7].mxu1  ;;  %v508_v40 = vsel %vm67_vm0, 0.0, %v500_v60 }
 0x1ec   :  { %v5355_v3 = vadd.f32 %v491_v63, %v5321_v45 }
 0x1ed   :  { %8865 = vst [vmem:[#allocation25_spill] sm:$0xff] %v5349_v17  ;;  %v5415_v23 = vmul.f32 %v5349_v17, %v5349_v17 }
 0x1ee   :  { %8866 = vst [vmem:[#allocation26_spill] sm:$0xff] %v5355_v3 }
 0x1ef   :  { %993 = vrot.lane.b32.xlu1 %v499_v59, %s4909_s28  ;;  %1248 = vrot.lane.b32.xlu0 %v5303_v18, %s4910_s29  ;;  %v509_v28 = vsel %vm67_vm0, 0.0, %v5415_v23 }
 0x1f3   :  { %1250 = vrot.lane.b32.xlu1 %v5313_v0, %s4910_s29  ;;  %1256 = vrot.lane.b32.xlu0 %v498_v52, %s4910_s29 }
 0x1f7   :  { %1258 = vrot.lane.b32.xlu1 %v499_v59, %s4910_s29  ;;  %1513 = vrot.lane.b32.xlu0 %v5303_v18, %s4911_s30 }
 0x1fb   :  { %1515 = vrot.lane.b32.xlu1 %v5313_v0, %s4911_s30  ;;  %1521 = vrot.lane.b32.xlu0 %v498_v52, %s4911_s30 }
 0x1ff   :  { %1523 = vrot.lane.b32.xlu1 %v499_v59, %s4911_s30  ;;  %1786 = vrot.lane.b32.xlu0 %v5303_v18, %s4912_s5 }
 0x203   :  { %1788 = vrot.lane.b32.xlu1 %v5313_v0, %s4912_s5  ;;  %1794 = vrot.lane.b32.xlu0 %v498_v52, %s4912_s5 }
 0x207   :  { %1796 = vrot.lane.b32.xlu1 %v499_v59, %s4912_s5  ;;  %2059 = vrot.lane.b32.xlu0 %v5303_v18, %s4913_s6 }
 0x20b   :  { %2061 = vrot.lane.b32.xlu1 %v5313_v0, %s4913_s6  ;;  %2067 = vrot.lane.b32.xlu0 %v498_v52, %s4913_s6 }
 0x20f   :  { %2069 = vrot.lane.b32.xlu1 %v499_v59, %s4913_s6  ;;  %2332 = vrot.lane.b32.xlu0 %v5303_v18, %s4902_s26  ;;  %v528_v18 = vsel %vm76_vm1, %v508_v40, 0.0 }
 0x213   :  { %2334 = vrot.lane.b32.xlu1 %v5313_v0, %s4902_s26  ;;  %2340 = vrot.lane.b32.xlu0 %v498_v52, %s4902_s26 }
 0x217   :  { %2342 = vrot.lane.b32.xlu1 %v499_v59, %s4902_s26 }
 0x232   :  { %511 = vadd.xlane.f32.xlu0 %v510_v20 }
 0x236   :  { %523 = vadd.xlane.f32.xlu0 %v522_v7  ;;  %v531_v7 = vsel %vm76_vm1, %v509_v28, 0.0 }
 0x23b   :  { %514 = vadd.xlane.f32.xlu1 %v513_v8 }
 0x23f   :  { %526 = vadd.xlane.f32.xlu1 %v525_v14 }
 0x24a   :  { %v719_v2 = vpop.permute.xlu0 %718 }
 0x24b   :  { %v742_v55 = vsel %vm67_vm0, 0.0, %v719_v2 }
 0x24c   :  { %730 = vrot.lane.b32.xlu0 %v500_v60, %s4908_s2  ;;  %v750_v44 = vsel %vm76_vm1, %v742_v55, 0.0 }
 0x24e   :  { %v721_v26 = vpop.permute.xlu1 %720 }
 0x24f   :  { %v743_v8 = vsel %vm67_vm0, 0.0, %v721_v26 }
 0x250   :  { %722 = vrot.lane.b32.xlu1 %v496_v15, %s4908_s2  ;;  %987 = vrot.lane.b32.xlu0 %v496_v15, %s4909_s28 }
 0x254   :  { %724 = vrot.lane.b32.xlu1 %v497_v16, %s4908_s2  ;;  %995 = vrot.lane.b32.xlu0 %v500_v60, %s4909_s28 }
 0x255   :  { %v727_v25 = vpop.permute.xlu0 %726 }
 0x256   :  { %v746_v24 = vsel %vm67_vm0, 0.0, %v727_v25 }
 0x257   :  { %v762_v50 = vsel %vm76_vm1, %v746_v24, 0.0 }
 0x258   :  { %732 = vrot.lane.b32.xlu1 %v5415_v23, %s4908_s2  ;;  %1252 = vrot.lane.b32.xlu0 %v496_v15, %s4910_s29 }
 0x259   :  { %v984_v21 = vpop.permute.xlu0 %983  ;;  %v729_v53 = vpop.permute.xlu1 %728 }
 0x25a   :  { %v1007_v52 = vsel %vm67_vm0, 0.0, %v984_v21 }
 0x25b   :  { %v1015_v59 = vsel %vm76_vm1, %v1007_v52, 0.0 }
 0x25c   :  { %989 = vrot.lane.b32.xlu1 %v497_v16, %s4909_s28  ;;  %1260 = vrot.lane.b32.xlu0 %v500_v60, %s4910_s29 }
 0x25d   :  { %v992_v30 = vpop.permute.xlu0 %991  ;;  %v986_v4 = vpop.permute.xlu1 %985 }
 0x25e   :  { %v1011_v62 = vsel %vm67_vm0, 0.0, %v992_v30  ;;  %v1008_v30 = vsel %vm67_vm0, 0.0, %v986_v4 }
 0x25f   :  { %v1027_v20 = vsel %vm76_vm1, %v1011_v62, 0.0 }
 0x260   :  { %997 = vrot.lane.b32.xlu1 %v5415_v23, %s4909_s28  ;;  %1517 = vrot.lane.b32.xlu0 %v496_v15, %s4911_s30 }
 0x261   :  { %v1249_v33 = vpop.permute.xlu0 %1248  ;;  %v994_v13 = vpop.permute.xlu1 %993 }
 0x262   :  { %v1272_v46 = vsel %vm67_vm0, 0.0, %v1249_v33 }
 0x263   :  { %v1280_v14 = vsel %vm76_vm1, %v1272_v46, 0.0 }
 0x264   :  { %1254 = vrot.lane.b32.xlu1 %v497_v16, %s4910_s29  ;;  %1525 = vrot.lane.b32.xlu0 %v500_v60, %s4911_s30 }
 0x265   :  { %v1257_v5 = vpop.permute.xlu0 %1256  ;;  %v5447_v41 = vpop.permute.xlu1 %1250 }
 0x268   :  { %1262 = vrot.lane.b32.xlu1 %v5415_v23, %s4910_s29  ;;  %1790 = vrot.lane.b32.xlu0 %v496_v15, %s4912_s5 }
 0x269   :  { %v1514_v12 = vpop.permute.xlu0 %1513  ;;  %v5449_v34 = vpop.permute.xlu1 %1258 }
 0x26a   :  { %v1537_v26 = vsel %vm67_vm0, 0.0, %v1514_v12  ;;  %v1012_v12 = vsel %vm67_vm0, 0.0, %v994_v13 }
 0x26b   :  { %v1545_v33 = vsel %vm76_vm1, %v1537_v26, 0.0 }
 0x26c   :  { %1519 = vrot.lane.b32.xlu1 %v497_v16, %s4911_s30  ;;  %1798 = vrot.lane.b32.xlu0 %v500_v60, %s4912_s5 }
 0x26d   :  { %v1522_v35 = vpop.permute.xlu0 %1521  ;;  %v5453_v37 = vpop.permute.xlu1 %1515 }
 0x26e   :  { %v1541_v19 = vsel %vm67_vm0, 0.0, %v1522_v35  ;;  %v1273_v35 = vsel %vm67_vm0, 0.0, %v5447_v41 }
 0x26f   :  { %v1557_v40 = vsel %vm76_vm1, %v1541_v19, 0.0  ;;  %v1283_v24 = vsel %vm76_vm1, %v1273_v35, 0.0 }
 0x270   :  { %1527 = vrot.lane.b32.xlu1 %v5415_v23, %s4911_s30  ;;  %2063 = vrot.lane.b32.xlu0 %v496_v15, %s4913_s6 }
 0x271   :  { %v1787_v42 = vpop.permute.xlu0 %1786  ;;  %v5461_v0 = vpop.permute.xlu1 %1523 }
 0x272   :  { %v1810_v55 = vsel %vm67_vm0, 0.0, %v1787_v42  ;;  %v1277_v42 = vsel %vm67_vm0, 0.0, %v5449_v34 }
 0x274   :  { %1792 = vrot.lane.b32.xlu1 %v497_v16, %s4912_s5  ;;  %2071 = vrot.lane.b32.xlu0 %v500_v60, %s4913_s6 }
 0x275   :  { %v1795_v10 = vpop.permute.xlu0 %1794  ;;  %v5466_v39 = vpop.permute.xlu1 %1788 }
 0x278   :  { %1800 = vrot.lane.b32.xlu1 %v5415_v23, %s4912_s5  ;;  %2336 = vrot.lane.b32.xlu0 %v496_v15, %s4902_s26  ;;  %v1276_v15 = vsel %vm67_vm0, 0.0, %v1257_v5 }
 0x279   :  { %v2060_v57 = vpop.permute.xlu0 %2059  ;;  %v5477_v63 = vpop.permute.xlu1 %1796  ;;  %v1292_v2 = vsel %vm76_vm1, %v1276_v15, 0.0 }
 0x27a   :  { %v2083_v41 = vsel %vm67_vm0, 0.0, %v2060_v57 }
 0x27b   :  { %v2091_v28 = vsel %vm76_vm1, %v2083_v41, 0.0 }
 0x27c   :  { %2065 = vrot.lane.b32.xlu1 %v497_v16, %s4913_s6  ;;  %2344 = vrot.lane.b32.xlu0 %v500_v60, %s4902_s26  ;;  %v753_v60 = vsel %vm76_vm1, %v743_v8, 0.0 }
 0x27d   :  { %v2068_v6 = vpop.permute.xlu0 %2067  ;;  %v5488_v11 = vpop.permute.xlu1 %2061 }
 0x27e   :  { %v2087_v57 = vsel %vm67_vm0, 0.0, %v2068_v6 }
 0x280   :  { %2073 = vrot.lane.b32.xlu1 %v5415_v23, %s4913_s6 }
 0x281   :  { %v5500_v21 = vpop.permute.xlu1 %2069 }
 0x284   :  { %2338 = vrot.lane.b32.xlu1 %v497_v16, %s4902_s26  ;;  %v747_v16 = vsel %vm67_vm0, 0.0, %v729_v53  ;;  %v1018_v53 = vsel %vm76_vm1, %v1008_v30, 0.0 }
 0x285   :  { %v765_v25 = vsel %vm76_vm1, %v747_v16, 0.0  ;;  %v2103_v16 = vsel %vm76_vm1, %v2087_v57, 0.0 }
 0x288   :  { %2346 = vrot.lane.b32.xlu1 %v5415_v23, %s4902_s26  ;;  %v2333_v23 = vpop.permute.xlu0 %2332 }
 0x28c   :  { %v5505_v5 = vpop.permute.xlu0 %2340 }
 0x29b   :  { %517 = vadd.xlane.f32.xlu0 %v516_v22  ;;  %v5512_v22 = vpop.permute.xlu1 %2334 }
 0x29f   :  { %529 = vadd.xlane.f32.xlu0 %v528_v18  ;;  %v1030_v18 = vsel %vm76_vm1, %v1012_v12, 0.0  ;;  %v5525_v52 = vpop.permute.xlu1 %2342 }
 0x2a3   :  { %751 = vadd.xlane.f32.xlu0 %v750_v44  ;;  %v1818_v44 = vsel %vm76_vm1, %v1810_v55, 0.0 }
 0x2a7   :  { %763 = vadd.xlane.f32.xlu0 %v762_v50  ;;  %v1814_v50 = vsel %vm67_vm0, 0.0, %v1795_v10  ;;  %v1538_v10 = vsel %vm67_vm0, 0.0, %v5453_v37  ;;  %v1542_v37 = vsel %vm67_vm0, 0.0, %v5461_v0  ;;  %v1811_v0 = vsel %vm67_vm0, 0.0, %v5466_v39 }
 0x2a8   :  { %v1830_v54 = vsel %vm76_vm1, %v1814_v50, 0.0  ;;  %v1548_v46 = vsel %vm76_vm1, %v1538_v10, 0.0  ;;  %v2360_v39 = vsel %vm67_vm0, 0.0, %v5505_v5  ;;  %v1821_v50 = vsel %vm76_vm1, %v1811_v0, 0.0 }
 0x2a9   :  { %v2084_v10 = vsel %vm67_vm0, 0.0, %v5488_v11  ;;  %v2088_v0 = vsel %vm67_vm0, 0.0, %v5500_v21 }
 0x2ab   :  { %1016 = vadd.xlane.f32.xlu0 %v1015_v59 }
 0x2ac   :  { %520 = vadd.xlane.f32.xlu1 %v519_v31  ;;  %v1295_v31 = vsel %vm76_vm1, %v1277_v42, 0.0 }
 0x2af   :  { %1028 = vadd.xlane.f32.xlu0 %v1027_v20 }
 0x2b0   :  { %532 = vadd.xlane.f32.xlu1 %v531_v7 }
 0x2b3   :  { %1281 = vadd.xlane.f32.xlu0 %v1280_v14 }
 0x2b4   :  { %754 = vadd.xlane.f32.xlu1 %v753_v60 }
 0x2b7   :  { %1293 = vadd.xlane.f32.xlu0 %v1292_v2  ;;  %v2356_v2 = vsel %vm67_vm0, 0.0, %v2333_v23 }
 0x2b8   :  { %766 = vadd.xlane.f32.xlu1 %v765_v25  ;;  %v2364_v55 = vsel %vm76_vm1, %v2356_v2, 0.0 }
 0x2bb   :  { %1546 = vadd.xlane.f32.xlu0 %v1545_v33  ;;  %v1560_v33 = vsel %vm76_vm1, %v1542_v37, 0.0 }
 0x2bc   :  { %1019 = vadd.xlane.f32.xlu1 %v1018_v53  ;;  %v1815_v53 = vsel %vm67_vm0, 0.0, %v5477_v63 }
 0x2bf   :  { %1558 = vadd.xlane.f32.xlu0 %v1557_v40  ;;  %v512_v4 = vpop.xlane.xlu0 %511 }
 0x2c0   :  { %4014 = vrsqrt.f32 %v512_v4  ;;  %1031 = vadd.xlane.f32.xlu1 %v1030_v18  ;;  %vm536_vm6 = vcmp.eq.f32.partialorder %v512_v4, inf  ;;  %v539_v8 = vand.u32 2147483648, %v512_v4  ;;  %vm538_vm7 = vcmp.eq.f32.partialorder %v512_v4, 0.0 }
 0x2c3   :  { %1819 = vadd.xlane.f32.xlu0 %v1818_v44  ;;  %v524_v13 = vpop.xlane.xlu0 %523 }
 0x2c4   :  { %4016 = vrsqrt.f32 %v524_v13  ;;  %1284 = vadd.xlane.f32.xlu1 %v1283_v24  ;;  %vm564_vm8 = vcmp.eq.f32.partialorder %v524_v13, inf  ;;  %v567_v19 = vand.u32 2147483648, %v524_v13  ;;  %vm566_vm9 = vcmp.eq.f32.partialorder %v524_v13, 0.0 }
 0x2c7   :  { %1831 = vadd.xlane.f32.xlu0 %v1830_v54  ;;  %v5533_v59 = vpop.permute.xlu0 %730  ;;  %v1833_v54 = vsel %vm76_vm1, %v1815_v53, 0.0 }
 0x2c8   :  { %v5536_v62 = vpop.xlane.xlu1 %514  ;;  %1296 = vadd.xlane.f32.xlu1 %v1295_v31  ;;  %v748_v37 = vsel %vm67_vm0, 0.0, %v5533_v59 }
 0x2c9   :  { %4018 = vrsqrt.f32 %v5536_v62  ;;  %vm543_vm10 = vcmp.eq.f32.partialorder %v5536_v62, inf  ;;  %v546_v31 = vand.u32 2147483648, %v5536_v62  ;;  %vm545_vm11 = vcmp.eq.f32.partialorder %v5536_v62, 0.0 }
 0x2ca   :  { %v4015_v34 = vpop.eup %4014 }
 0x2cb   :  { %v535_v20 = vmul.f32 %v4015_v34, %v512_v4  ;;  %2092 = vadd.xlane.f32.xlu0 %v2091_v28  ;;  %v5545_v7 = vpop.permute.xlu0 %987  ;;  %v2376_v28 = vsel %vm76_vm1, %v2360_v39, 0.0  ;;  %v2357_v39 = vsel %vm67_vm0, 0.0, %v5512_v22 }
 0x2cc   :  { %v5548_v14 = vpop.xlane.xlu1 %526  ;;  %1549 = vadd.xlane.f32.xlu1 %v1548_v46  ;;  %v2367_v22 = vsel %vm76_vm1, %v2357_v39, 0.0 }
 0x2cd   :  { %v537_v60 = vsel %vm536_vm6, %v512_v4, %v535_v20  ;;  %4020 = vrsqrt.f32 %v5548_v14  ;;  %vm571_vm12 = vcmp.eq.f32.partialorder %v5548_v14, inf  ;;  %vm573_vm13 = vcmp.eq.f32.partialorder %v5548_v14, 0.0 }
 0x2ce   :  { %v4017_v6 = vpop.eup %4016  ;;  %v540_v15 = vsel %vm538_vm7, %v539_v8, %v537_v60 }
 0x2cf   :  { %v590_v25 = vmax.f32 %v540_v15, 1e-15  ;;  %v563_v26 = vmul.f32 %v4017_v6, %v524_v13  ;;  %2104 = vadd.xlane.f32.xlu0 %v2103_v16  ;;  %v5557_v30 = vpop.permute.xlu0 %995  ;;  %v574_v15 = vand.u32 2147483648, %v5548_v14 }
 0x2d0   :  { %v723_v12 = vpop.permute.xlu1 %722  ;;  %1561 = vadd.xlane.f32.xlu1 %v1560_v33  ;;  %v2094_v33 = vsel %vm76_vm1, %v2084_v10, 0.0 }
 0x2d1   :  { %v598_v23 = vmul.f32 1.442695, %v590_v25  ;;  %v614_v40 = vsub.f32 0.0, %v590_v25  ;;  %v565_v4 = vsel %vm564_vm8, %v524_v13, %v563_v26  ;;  %v744_v8 = vsel %vm67_vm0, 0.0, %v723_v12 }
 0x2d2   :  { %v568_v18 = vsel %vm566_vm9, %v567_v19, %v565_v4  ;;  %v756_v59 = vsel %vm76_vm1, %v744_v8, 0.0 }
 0x2d3   :  { %v4019_v35 = vpop.eup %4018  ;;  %v622_v44 = vmul.f32 1.442695, %v614_v40  ;;  %v594_v24 = vmax.f32 %v568_v18, 1e-15  ;;  %2365 = vadd.xlane.f32.xlu0 %v2364_v55  ;;  %v5570_v63 = vpop.permute.xlu0 %1252  ;;  %4022 = vpow2.f32 %v598_v23  ;;  %v768_v23 = vsel %vm76_vm1, %v748_v37, 0.0 }
 0x2d4   :  { %v542_v42 = vmul.f32 %v4019_v35, %v5536_v62  ;;  %v5575_v13 = vpop.permute.xlu1 %724  ;;  %1822 = vadd.xlane.f32.xlu1 %v1821_v50  ;;  %v1009_v40 = vsel %vm67_vm0, 0.0, %v5545_v7  ;;  %v2106_v35 = vsel %vm76_vm1, %v2088_v0, 0.0 }
 0x2d5   :  { %4024 = vpow2.f32 %v622_v44  ;;  %v606_v41 = vmul.f32 1.442695, %v594_v24  ;;  %v618_v5 = vsub.f32 0.0, %v594_v24  ;;  %v1021_v7 = vsel %vm76_vm1, %v1009_v40, 0.0 }
 0x2d6   :  { %v544_v34 = vsel %vm543_vm10, %v5536_v62, %v542_v42  ;;  %4026 = vrcp.f32 %v590_v25 }
 0x2d7   :  { %v4021_v57 = vpop.eup %4020  ;;  %v630_v20 = vmul.f32 1.442695, %v618_v5  ;;  %v547_v46 = vsel %vm545_vm11, %v546_v31, %v544_v34  ;;  %2377 = vadd.xlane.f32.xlu0 %v2376_v28  ;;  %4028 = vpow2.f32 %v606_v41  ;;  %v5591_v6 = vpop.permute.xlu0 %1260  ;;  %v1013_v31 = vsel %vm67_vm0, 0.0, %v5557_v30 }
 0x2d8   :  { %v591_v11 = vmax.f32 %v547_v46, 1e-15  ;;  %v570_v60 = vmul.f32 %v4021_v57, %v5548_v14  ;;  %v5593_v62 = vpop.permute.xlu1 %732  ;;  %1834 = vadd.xlane.f32.xlu1 %v1833_v54  ;;  %v2361_v34 = vsel %vm67_vm0, 0.0, %v5525_v52  ;;  %v1033_v8 = vsel %vm76_vm1, %v1013_v31, 0.0 }
 0x2d9   :  { %4030 = vpow2.f32 %v630_v20  ;;  %v1274_v52 = vsel %vm67_vm0, 0.0, %v5570_v63 }
 0x2da   :  { %v600_v16 = vmul.f32 1.442695, %v591_v11  ;;  %v615_v2 = vsub.f32 0.0, %v591_v11  ;;  %v572_v25 = vsel %vm571_vm12, %v5548_v14, %v570_v60  ;;  %4032 = vrcp.f32 %v594_v24 }
 0x2db   :  { %v575_v26 = vsel %vm573_vm13, %v574_v15, %v572_v25  ;;  %757 = vadd.xlane.f32.xlu0 %v756_v59  ;;  %v5610_v55 = vpop.permute.xlu0 %1517 }
 0x2dc   :  { %v624_v53 = vmul.f32 1.442695, %v615_v2  ;;  %v595_v19 = vmax.f32 %v575_v26, 1e-15  ;;  %v5604_v12 = vpop.permute.xlu1 %989  ;;  %2095 = vadd.xlane.f32.xlu1 %v2094_v33  ;;  %4034 = vpow2.f32 %v600_v16  ;;  %v2379_v2 = vsel %vm76_vm1, %v2361_v34, 0.0 }
 0x2dd   :  { %v4023_v14 = vpop.eup %4022  ;;  %v749_v33 = vsel %vm67_vm0, 0.0, %v5593_v62 }
 0x2de   :  { %4036 = vpow2.f32 %v624_v53  ;;  %v608_v4 = vmul.f32 1.442695, %v595_v19  ;;  %v619_v18 = vsub.f32 0.0, %v595_v19  ;;  %v771_v39 = vsel %vm76_vm1, %v749_v33, 0.0 }
 0x2df   :  { %v4025_v21 = vpop.eup %4024  ;;  %769 = vadd.xlane.f32.xlu0 %v768_v23  ;;  %4038 = vrcp.f32 %v591_v11  ;;  %v1526_v20 = vpop.permute.xlu0 %1525 }
 0x2e0   :  { %v654_v44 = vsub.f32 %v4023_v14, %v4025_v21  ;;  %v632_v24 = vmul.f32 1.442695, %v619_v18  ;;  %v998_v50 = vpop.permute.xlu1 %997  ;;  %2107 = vadd.xlane.f32.xlu1 %v2106_v35  ;;  %v4027_v42 = vpop.eup %4026  ;;  %4040 = vpow2.f32 %v608_v4  ;;  %v638_v41 = vadd.f32 %v4025_v21, %v4023_v14 }
 0x2e1   :  { %v4029_v54 = vpop.eup %4028  ;;  %v1278_v14 = vsel %vm67_vm0, 0.0, %v5591_v6  ;;  %v1286_v4 = vsel %vm76_vm1, %v1274_v52, 0.0  ;;  %v1014_v62 = vsel %vm67_vm0, 0.0, %v998_v50 }
 0x2e2   :  { %v662_v5 = vmul.f32 0.5, %v654_v44  ;;  %4042 = vpow2.f32 %v632_v24  ;;  %v646_v11 = vmul.f32 0.5, %v638_v41  ;;  %v1298_v50 = vsel %vm76_vm1, %v1278_v14, 0.0 }
 0x2e3   :  { %v4031_v10 = vpop.eup %4030  ;;  %1022 = vadd.xlane.f32.xlu0 %v1021_v7  ;;  %4044 = vrcp.f32 %v595_v19  ;;  %v1791_v40 = vpop.permute.xlu0 %1790  ;;  %v1036_v41 = vsel %vm76_vm1, %v1014_v62, 0.0 }
 0x2e4   :  { %v671_v28 = vmul.f32 %v4027_v42, %v662_v5  ;;  %v658_v57 = vsub.f32 %v4029_v54, %v4031_v10  ;;  %v5624_v46 = vpop.permute.xlu1 %1254  ;;  %2368 = vadd.xlane.f32.xlu1 %v2367_v22  ;;  %v4033_v37 = vpop.eup %4032  ;;  %v642_v60 = vadd.f32 %v4031_v10, %v4029_v54  ;;  %v1539_v54 = vsel %vm67_vm0, 0.0, %v5610_v55 }
 0x2e5   :  { %v1812_v33 = vsel %vm67_vm0, 0.0, %v1791_v40 }
 0x2e6   :  { %v686_v30 = vmul.f32 %v671_v28, %v5297_v43  ;;  %v666_v15 = vmul.f32 0.5, %v658_v57  ;;  %v4035_v16 = vpop.eup %4034  ;;  %v650_v23 = vmul.f32 0.5, %v642_v60 }
 0x2e7   :  { %1034 = vadd.xlane.f32.xlu0 %v1033_v8  ;;  %v1799_v28 = vpop.permute.xlu0 %1798 }
 0x2e8   :  { %v4037_v25 = vpop.eup %4036  ;;  %v694_v59 = vsel %vm67_vm0, %v646_v11, %v686_v30  ;;  %v679_v26 = vmul.f32 %v4033_v37, %v666_v15  ;;  %v1263_v0 = vpop.permute.xlu1 %1262  ;;  %2380 = vadd.xlane.f32.xlu1 %v2379_v2  ;;  %v1551_v11 = vsel %vm76_vm1, %v1539_v54, 0.0  ;;  %v1543_v15 = vsel %vm67_vm0, 0.0, %v1526_v20 }
 0x2e9   :  { %702 = vst.msk [vmem:[#allocation8] sm:$0xff] %vm76_vm1, %v694_v59  ;;  %v655_v53 = vsub.f32 %v4035_v16, %v4037_v25  ;;  %v4039_v19 = vpop.eup %4038  ;;  %v639_v21 = vadd.f32 %v4037_v25, %v4035_v16  ;;  %v1279_v57 = vsel %vm67_vm0, 0.0, %v1263_v0 }
 0x2ea   :  { %v690_v63 = vmul.f32 %v679_v26, %v5323_v47  ;;  %v4041_v18 = vpop.eup %4040  ;;  %v1301_v16 = vsel %vm76_vm1, %v1279_v57, 0.0  ;;  %v1563_v26 = vsel %vm76_vm1, %v1543_v15, 0.0 }
 0x2eb   :  { %v663_v35 = vmul.f32 0.5, %v655_v53  ;;  %1287 = vadd.xlane.f32.xlu0 %v1286_v4  ;;  %v647_v31 = vmul.f32 0.5, %v639_v21  ;;  %v2064_v59 = vpop.permute.xlu0 %2063 }
 0x2ec   :  { %v4043_v44 = vpop.eup %4042  ;;  %v698_v24 = vsel %vm67_vm0, %v650_v23, %v690_v63  ;;  %v5648_v42 = vpop.permute.xlu1 %1519  ;;  %772 = vadd.xlane.f32.xlu1 %v771_v39  ;;  %v1816_v63 = vsel %vm67_vm0, 0.0, %v1799_v28  ;;  %v745_v28 = vsel %vm67_vm0, 0.0, %v5575_v13 }
 0x2ed   :  { %706 = vst.msk [vmem:[#allocation8 + $0x20] sm:$0xff] %vm76_vm1, %v698_v24  ;;  %v673_v6 = vmul.f32 %v4039_v19, %v663_v35  ;;  %v659_v7 = vsub.f32 %v4041_v18, %v4043_v44  ;;  %v4045_v5 = vpop.eup %4044  ;;  %v643_v22 = vadd.f32 %v4043_v44, %v4041_v18  ;;  %v1824_v19 = vsel %vm76_vm1, %v1812_v33, 0.0 }
 0x2ee   :  { %v1836_v40 = vsel %vm76_vm1, %v1816_v63, 0.0  ;;  %v2085_v18 = vsel %vm67_vm0, 0.0, %v2064_v59  ;;  %v759_v57 = vsel %vm76_vm1, %v745_v28, 0.0  ;;  %v1540_v13 = vsel %vm67_vm0, 0.0, %v5648_v42 }
 0x2ef   :  { %v687_v10 = vmul.f32 %v673_v6, %v5305_v29  ;;  %v667_v34 = vmul.f32 0.5, %v659_v7  ;;  %1299 = vadd.xlane.f32.xlu0 %v1298_v50  ;;  %v651_v30 = vmul.f32 0.5, %v643_v22  ;;  %v2072_v14 = vpop.permute.xlu0 %2071  ;;  %v2097_v44 = vsel %vm76_vm1, %v2085_v18, 0.0 }
 0x2f0   :  { %v1528_v8 = vpop.permute.xlu1 %1527  ;;  %1037 = vadd.xlane.f32.xlu1 %v1036_v41  ;;  %v2089_v24 = vsel %vm67_vm0, 0.0, %v2072_v14 }
 0x2f1   :  { %v695_v55 = vsel %vm67_vm0, %v647_v31, %v687_v10  ;;  %v681_v37 = vmul.f32 %v4045_v5, %v667_v34  ;;  %v1544_v52 = vsel %vm67_vm0, 0.0, %v1528_v8  ;;  %v2109_v7 = vsel %vm76_vm1, %v2089_v24, 0.0 }
 0x2f2   :  { %703 = vst.msk [vmem:[#allocation8 + $0x8] sm:$0xff] %vm76_vm1, %v695_v55  ;;  %v1566_v20 = vsel %vm76_vm1, %v1544_v52, 0.0  ;;  %v1010_v8 = vsel %vm67_vm0, 0.0, %v5604_v12 }
 0x2f3   :  { %v691_v60 = vmul.f32 %v681_v37, %v5334_v56  ;;  %1552 = vadd.xlane.f32.xlu0 %v1551_v11  ;;  %v2337_v62 = vpop.permute.xlu0 %2336  ;;  %v1024_v55 = vsel %vm76_vm1, %v1010_v8, 0.0  ;;  %v1275_v37 = vsel %vm67_vm0, 0.0, %v5624_v46 }
 0x2f4   :  { %v1793_v2 = vpop.permute.xlu1 %1792  ;;  %1302 = vadd.xlane.f32.xlu1 %v1301_v16  ;;  %v2358_v54 = vsel %vm67_vm0, 0.0, %v2337_v62  ;;  %v1289_v11 = vsel %vm76_vm1, %v1275_v37, 0.0 }
 0x2f5   :  { %v699_v25 = vsel %vm67_vm0, %v651_v30, %v691_v60  ;;  %v2370_v10 = vsel %vm76_vm1, %v2358_v54, 0.0  ;;  %v1554_v30 = vsel %vm76_vm1, %v1540_v13, 0.0  ;;  %v1813_v12 = vsel %vm67_vm0, 0.0, %v1793_v2 }
 0x2f6   :  { %707 = vst.msk [vmem:[#allocation8 + $0x28] sm:$0xff] %vm76_vm1, %v699_v25  ;;  %v1827_v60 = vsel %vm76_vm1, %v1813_v12, 0.0 }
 0x2f7   :  { %1564 = vadd.xlane.f32.xlu0 %v1563_v26  ;;  %v2345_v50 = vpop.permute.xlu0 %2344 }
 0x2f8   :  { %v1801_v0 = vpop.permute.xlu1 %1800  ;;  %1567 = vadd.xlane.f32.xlu1 %v1566_v20  ;;  %v2362_v22 = vsel %vm67_vm0, 0.0, %v2345_v50 }
 0x2f9   :  { %v1817_v53 = vsel %vm67_vm0, 0.0, %v1801_v0  ;;  %v2382_v34 = vsel %vm76_vm1, %v2362_v22, 0.0 }
 0x2fa   :  { %v1839_v23 = vsel %vm76_vm1, %v1817_v53, 0.0 }
 0x2fb   :  { %1825 = vadd.xlane.f32.xlu0 %v1824_v19 }
 0x2fc   :  { %v2066_v4 = vpop.permute.xlu1 %2065  ;;  %1840 = vadd.xlane.f32.xlu1 %v1839_v23 }
 0x2fd   :  { %v2086_v15 = vsel %vm67_vm0, 0.0, %v2066_v4 }
 0x2fe   :  { %v2100_v46 = vsel %vm76_vm1, %v2086_v15, 0.0 }
 0x2ff   :  { %1837 = vadd.xlane.f32.xlu0 %v1836_v40 }
 0x300   :  { %v2074_v21 = vpop.permute.xlu1 %2073 }
 0x301   :  { %v2090_v35 = vsel %vm67_vm0, 0.0, %v2074_v21 }
 0x302   :  { %v2112_v39 = vsel %vm76_vm1, %v2090_v35, 0.0 }
 0x303   :  { %2113 = vadd.xlane.f32.xlu1 %v2112_v39  ;;  %2098 = vadd.xlane.f32.xlu0 %v2097_v44 }
 0x304   :  { %v2339_v6 = vpop.permute.xlu1 %2338 }
 0x305   :  { %v2359_v16 = vsel %vm67_vm0, 0.0, %v2339_v6 }
 0x306   :  { %v2373_v52 = vsel %vm76_vm1, %v2359_v16, 0.0 }
 0x307   :  { %2110 = vadd.xlane.f32.xlu0 %v2109_v7 }
 0x308   :  { %v2347_v41 = vpop.permute.xlu1 %2346 }
 0x309   :  { %v2363_v5 = vsel %vm67_vm0, 0.0, %v2347_v41 }
 0x30a   :  { %v2385_v31 = vsel %vm76_vm1, %v2363_v5, 0.0 }
 0x30b   :  { %2386 = vadd.xlane.f32.xlu1 %v2385_v31  ;;  %2371 = vadd.xlane.f32.xlu0 %v2370_v10 }
 0x30f   :  { %2383 = vadd.xlane.f32.xlu0 %v2382_v34 }
 0x313   :  { %760 = vadd.xlane.f32.xlu0 %v759_v57 }
 0x317   :  { %1025 = vadd.xlane.f32.xlu0 %v1024_v55 }
 0x31b   :  { %1290 = vadd.xlane.f32.xlu0 %v1289_v11 }
 0x31f   :  { %1555 = vadd.xlane.f32.xlu0 %v1554_v30 }
 0x323   :  { %1828 = vadd.xlane.f32.xlu0 %v1827_v60 }
 0x327   :  { %2101 = vadd.xlane.f32.xlu0 %v2100_v46 }
 0x328   :  { %v518_v42 = vpop.xlane.xlu0 %517 }
 0x329   :  { %4046 = vrsqrt.f32 %v518_v42  ;;  %vm550_vm14 = vcmp.eq.f32.partialorder %v518_v42, inf  ;;  %v553_v20 = vand.u32 2147483648, %v518_v42  ;;  %vm552_vm15 = vcmp.eq.f32.partialorder %v518_v42, 0.0 }
 0x32b   :  { %2374 = vadd.xlane.f32.xlu0 %v2373_v52 }
 0x32c   :  { %v530_v25 = vpop.xlane.xlu0 %529 }
 0x32d   :  { %4048 = vrsqrt.f32 %v530_v25  ;;  %vm578_vm2 = vcmp.eq.f32.partialorder %v530_v25, inf  ;;  %v581_v14 = vand.u32 2147483648, %v530_v25  ;;  %vm580_vm3 = vcmp.eq.f32.partialorder %v530_v25, 0.0 }
 0x330   :  { %v5726_v2 = vpop.xlane.xlu0 %751 }
 0x331   :  { %vm776_vm8 = vcmp.eq.f32.partialorder %v5726_v2, inf  ;;  %vm778_vm9 = vcmp.eq.f32.partialorder %v5726_v2, 0.0 }
 0x333   :  { %v4047_v59 = vpop.eup %4046 }
 0x334   :  { %v549_v26 = vmul.f32 %v4047_v59, %v518_v42  ;;  %v5728_v33 = vpop.xlane.xlu0 %763 }
 0x335   :  { %vm804_vm10 = vcmp.eq.f32.partialorder %v5728_v33, inf  ;;  %vm806_vm11 = vcmp.eq.f32.partialorder %v5728_v33, 0.0 }
 0x336   :  { %v551_v0 = vsel %vm550_vm14, %v518_v42, %v549_v26 }
 0x337   :  { %v4049_v53 = vpop.eup %4048  ;;  %v554_v19 = vsel %vm552_vm15, %v553_v20, %v551_v0 }
 0x338   :  { %v592_v23 = vmax.f32 %v554_v19, 1e-15  ;;  %v577_v63 = vmul.f32 %v4049_v53, %v530_v25  ;;  %v5730_v4 = vpop.xlane.xlu0 %1016 }
 0x339   :  { %v521_v40 = vpop.xlane.xlu1 %520  ;;  %vm1041_vm12 = vcmp.eq.f32.partialorder %v5730_v4, inf  ;;  %vm1043_vm13 = vcmp.eq.f32.partialorder %v5730_v4, 0.0 }
 0x33a   :  { %v602_v18 = vmul.f32 1.442695, %v592_v23  ;;  %v616_v21 = vsub.f32 0.0, %v592_v23  ;;  %v579_v35 = vsel %vm578_vm2, %v530_v25, %v577_v63  ;;  %4050 = vrsqrt.f32 %v521_v40 }
 0x33b   :  { %v582_v62 = vsel %vm580_vm3, %v581_v14, %v579_v35  ;;  %vm557_vm4 = vcmp.eq.f32.partialorder %v521_v40, inf  ;;  %v560_v22 = vand.u32 2147483648, %v521_v40  ;;  %vm559_vm5 = vcmp.eq.f32.partialorder %v521_v40, 0.0 }
 0x33c   :  { %v626_v39 = vmul.f32 1.442695, %v616_v21  ;;  %v596_v44 = vmax.f32 %v582_v62, 1e-15  ;;  %4052 = vpow2.f32 %v602_v18  ;;  %v5732_v54 = vpop.xlane.xlu0 %1028 }
 0x33d   :  { %v533_v7 = vpop.xlane.xlu1 %532  ;;  %vm1069_vm14 = vcmp.eq.f32.partialorder %v5732_v54, inf  ;;  %vm1071_vm15 = vcmp.eq.f32.partialorder %v5732_v54, 0.0 }
 0x33e   :  { %4054 = vpow2.f32 %v626_v39  ;;  %v610_v24 = vmul.f32 1.442695, %v596_v44  ;;  %v620_v6 = vsub.f32 0.0, %v596_v44  ;;  %vm585_vm6 = vcmp.eq.f32.partialorder %v533_v7, inf }
 0x33f   :  { %4056 = vrcp.f32 %v592_v23  ;;  %v588_v20 = vand.u32 2147483648, %v533_v7  ;;  %vm587_vm7 = vcmp.eq.f32.partialorder %v533_v7, 0.0 }
 0x340   :  { %4058 = vpow2.f32 %v610_v24  ;;  %v634_v50 = vmul.f32 1.442695, %v620_v6  ;;  %v5734_v5 = vpop.xlane.xlu0 %1281 }
 0x341   :  { %4060 = vrsqrt.f32 %v533_v7  ;;  %vm1306_vm2 = vcmp.eq.f32.partialorder %v5734_v5, inf  ;;  %vm1308_vm3 = vcmp.eq.f32.partialorder %v5734_v5, 0.0 }
 0x342   :  { %4062 = vpow2.f32 %v634_v50 }
 0x343   :  { %4064 = vrcp.f32 %v596_v44 }
 0x344   :  { %v4051_v41 = vpop.eup %4050  ;;  %v5736_v60 = vpop.xlane.xlu0 %1293 }
 0x345   :  { %v556_v31 = vmul.f32 %v4051_v41, %v521_v40 }
 0x346   :  { %v4053_v10 = vpop.eup %4052 }
 0x347   :  { %v558_v28 = vsel %vm557_vm4, %v521_v40, %v556_v31 }
 0x348   :  { %v4055_v34 = vpop.eup %4054  ;;  %v561_v55 = vsel %vm559_vm5, %v560_v22, %v558_v28  ;;  %v5742_v21 = vpop.xlane.xlu0 %1546  ;;  %vm1334_vm5 = vcmp.eq.f32.partialorder %v5736_v60, inf }
 0x349   :  { %v4057_v57 = vpop.eup %4056  ;;  %v656_v8 = vsub.f32 %v4053_v10, %v4055_v34  ;;  %v640_v11 = vadd.f32 %v4055_v34, %v4053_v10  ;;  %v593_v13 = vmax.f32 %v561_v55, 1e-15 }
 0x34a   :  { %v4059_v37 = vpop.eup %4058 }
 0x34b   :  { %v4061_v30 = vpop.eup %4060  ;;  %v664_v12 = vmul.f32 0.5, %v656_v8  ;;  %v604_v46 = vmul.f32 1.442695, %v593_v13  ;;  %v617_v16 = vsub.f32 0.0, %v593_v13  ;;  %v648_v25 = vmul.f32 0.5, %v640_v11 }
 0x34c   :  { %v4063_v15 = vpop.eup %4062  ;;  %v584_v26 = vmul.f32 %v4061_v30, %v533_v7  ;;  %v5750_v50 = vpop.xlane.xlu0 %1558 }
 0x34d   :  { %v675_v42 = vmul.f32 %v4057_v57, %v664_v12  ;;  %v660_v52 = vsub.f32 %v4059_v37, %v4063_v15  ;;  %v628_v59 = vmul.f32 1.442695, %v617_v16  ;;  %v644_v53 = vadd.f32 %v4063_v15, %v4059_v37  ;;  %v4065_v23 = vpop.eup %4064  ;;  %v5755_v57 = vpop.xlane.xlu1 %754 }
 0x34e   :  { %4066 = vpow2.f32 %v604_v46  ;;  %v586_v63 = vsel %vm585_vm6, %v533_v7, %v584_v26  ;;  %vm783_vm4 = vcmp.eq.f32.partialorder %v5755_v57, inf  ;;  %vm785_vm6 = vcmp.eq.f32.partialorder %v5755_v57, 0.0 }
 0x34f   :  { %v688_v0 = vmul.f32 %v675_v42, %v5315_v48  ;;  %v668_v19 = vmul.f32 0.5, %v660_v52  ;;  %4068 = vpow2.f32 %v628_v59  ;;  %v589_v18 = vsel %vm587_vm7, %v588_v20, %v586_v63 }
 0x350   :  { %4070 = vrsqrt.f32 %v5726_v2  ;;  %v597_v35 = vmax.f32 %v589_v18, 1e-15  ;;  %v652_v62 = vmul.f32 0.5, %v644_v53  ;;  %v5757_v8 = vpop.xlane.xlu0 %1819  ;;  %v779_v42 = vand.u32 2147483648, %v5726_v2 }
 0x351   :  { %v696_v14 = vsel %vm67_vm0, %v648_v25, %v688_v0  ;;  %v683_v40 = vmul.f32 %v4065_v23, %v668_v19  ;;  %4072 = vrcp.f32 %v593_v13  ;;  %v5768_v59 = vpop.xlane.xlu1 %766  ;;  %vm1336_vm7 = vcmp.eq.f32.partialorder %v5736_v60, 0.0 }
 0x352   :  { %704 = vst.msk [vmem:[#allocation8 + $0x10] sm:$0xff] %vm76_vm1, %v696_v14  ;;  %v612_v44 = vmul.f32 1.442695, %v597_v35  ;;  %v621_v24 = vsub.f32 0.0, %v597_v35  ;;  %4074 = vrsqrt.f32 %v5728_v33 }
 0x353   :  { %v692_v39 = vmul.f32 %v683_v40, %v5342_v61 }
 0x354   :  { %v636_v7 = vmul.f32 1.442695, %v621_v24  ;;  %4076 = vpow2.f32 %v612_v44  ;;  %v5770_v26 = vpop.xlane.xlu0 %1831 }
 0x355   :  { %v700_v6 = vsel %vm67_vm0, %v652_v62, %v692_v39 }
 0x356   :  { %708 = vst.msk [vmem:[#allocation8 + $0x30] sm:$0xff] %vm76_vm1, %v700_v6  ;;  %4078 = vpow2.f32 %v636_v7  ;;  %v5783_v6 = vpop.xlane.xlu1 %1019 }
 0x357   :  { %4080 = vrsqrt.f32 %v5730_v4 }
 0x358   :  { %v4067_v41 = vpop.eup %4066  ;;  %4082 = vrsqrt.f32 %v5732_v54  ;;  %v5785_v7 = vpop.xlane.xlu0 %2092 }
 0x359   :  { %v4069_v31 = vpop.eup %4068  ;;  %4084 = vrcp.f32 %v597_v35 }
 0x35a   :  { %v4071_v10 = vpop.eup %4070  ;;  %v657_v22 = vsub.f32 %v4067_v41, %v4069_v31  ;;  %v641_v34 = vadd.f32 %v4069_v31, %v4067_v41  ;;  %4086 = vrsqrt.f32 %v5734_v5  ;;  %v807_v41 = vand.u32 2147483648, %v5728_v33 }
 0x35b   :  { %v4073_v55 = vpop.eup %4072  ;;  %v775_v37 = vmul.f32 %v4071_v10, %v5726_v2  ;;  %4088 = vrsqrt.f32 %v5755_v57 }
 0x35c   :  { %v665_v28 = vmul.f32 0.5, %v657_v22  ;;  %v4075_v13 = vpop.eup %4074  ;;  %v649_v12 = vmul.f32 0.5, %v641_v34  ;;  %4090 = vrsqrt.f32 %v5736_v60 }
 0x35d   :  { %v777_v16 = vsel %vm776_vm8, %v5726_v2, %v775_v37  ;;  %v803_v19 = vmul.f32 %v4075_v13, %v5728_v33  ;;  %4092 = vrsqrt.f32 %v5768_v59  ;;  %v1044_v37 = vand.u32 2147483648, %v5730_v4 }
 0x35e   :  { %v677_v11 = vmul.f32 %v4073_v55, %v665_v28  ;;  %v4077_v30 = vpop.eup %4076  ;;  %v780_v53 = vsel %vm778_vm9, %v779_v42, %v777_v16  ;;  %v1072_v13 = vand.u32 2147483648, %v5732_v54  ;;  %4094 = vrsqrt.f32 %v5742_v21 }
 0x35f   :  { %v5776_v35 = vmax.f32 %v780_v53, 1e-15  ;;  %v805_v2 = vsel %vm804_vm10, %v5728_v33, %v803_v19  ;;  %4096 = vrsqrt.f32 %v5783_v6  ;;  %vm811_vm8 = vcmp.eq.f32.partialorder %v5768_v59, inf }
 0x360   :  { %v689_v15 = vmul.f32 %v677_v11, %v5327_v49  ;;  %v4079_v46 = vpop.eup %4078  ;;  %v808_v28 = vsel %vm806_vm11, %v807_v41, %v805_v2  ;;  %4098 = vrsqrt.f32 %v5750_v50  ;;  %vm813_vm9 = vcmp.eq.f32.partialorder %v5768_v59, 0.0 }
 0x361   :  { %v661_v25 = vsub.f32 %v4077_v30, %v4079_v46  ;;  %v4081_v20 = vpop.eup %4080  ;;  %v645_v23 = vadd.f32 %v4079_v46, %v4077_v30  ;;  %v854_v11 = vsub.f32 0.0, %v5776_v35  ;;  %v5806_v46 = vmax.f32 %v808_v28, 1e-15 }
 0x362   :  { %v697_v52 = vsel %vm67_vm0, %v649_v12, %v689_v15  ;;  %v4083_v0 = vpop.eup %4082  ;;  %v1040_v62 = vmul.f32 %v4081_v20, %v5730_v4  ;;  %v1309_v12 = vand.u32 2147483648, %v5734_v5  ;;  %vm1571_vm10 = vcmp.eq.f32.partialorder %v5742_v21, inf }
 0x363   :  { %705 = vst.msk [vmem:[#allocation8 + $0x18] sm:$0xff] %vm76_vm1, %v697_v52  ;;  %v669_v63 = vmul.f32 0.5, %v661_v25  ;;  %v4085_v14 = vpop.eup %4084  ;;  %v1068_v39 = vmul.f32 %v4083_v0, %v5732_v54  ;;  %v653_v44 = vmul.f32 0.5, %v645_v23  ;;  %v5812_v52 = vpop.xlane.xlu1 %1031  ;;  %v838_v0 = vmul.f32 1.442695, %v5776_v35 }
 0x364   :  { %v4087_v40 = vpop.eup %4086  ;;  %v1042_v55 = vsel %vm1041_vm12, %v5730_v4, %v1040_v62  ;;  %v5814_v25 = vpop.xlane.xlu0 %2104  ;;  %v862_v53 = vmul.f32 1.442695, %v854_v11  ;;  %v1337_v62 = vand.u32 2147483648, %v5736_v60  ;;  %4100 = vrsqrt.f32 %v5812_v52 }
 0x365   :  { %v685_v18 = vmul.f32 %v4085_v14, %v669_v63  ;;  %v1305_v31 = vmul.f32 %v4087_v40, %v5734_v5  ;;  %v4089_v10 = vpop.eup %4088  ;;  %v1070_v33 = vsel %vm1069_vm14, %v5732_v54, %v1068_v39  ;;  %v1045_v16 = vsel %vm1043_vm13, %v1044_v37, %v1042_v55 }
 0x366   :  { %v4091_v34 = vpop.eup %4090  ;;  %v782_v15 = vmul.f32 %v4089_v10, %v5755_v57  ;;  %v1073_v54 = vsel %vm1071_vm15, %v1072_v13, %v1070_v33  ;;  %v5819_v4 = vmax.f32 %v1045_v16, 1e-15  ;;  %v858_v63 = vsub.f32 0.0, %v5806_v46 }
 0x367   :  { %v693_v24 = vmul.f32 %v685_v18, %v5349_v17  ;;  %v1307_v30 = vsel %vm1306_vm2, %v5734_v5, %v1305_v31  ;;  %v1333_v42 = vmul.f32 %v4091_v34, %v5736_v60  ;;  %v4093_v20 = vpop.eup %4092  ;;  %v5825_v14 = vmax.f32 %v1073_v54, 1e-15 }
 0x368   :  { %v1310_v19 = vsel %vm1308_vm3, %v1309_v12, %v1307_v30  ;;  %v784_v23 = vsel %vm783_vm4, %v5755_v57, %v782_v15  ;;  %v786_v5 = vand.u32 2147483648, %v5755_v57  ;;  %v810_v2 = vmul.f32 %v4093_v20, %v5768_v59  ;;  %v5842_v41 = vpop.xlane.xlu0 %2365  ;;  %v4095_v55 = vpop.eup %4094 }
 0x369   :  { %v701_v22 = vsel %vm67_vm0, %v653_v44, %v693_v24  ;;  %v1335_v40 = vsel %vm1334_vm5, %v5736_v60, %v1333_v42  ;;  %v5829_v18 = vmax.f32 %v1310_v19, 1e-15  ;;  %v5836_v39 = vadd.f32 %v5299_v9, %v5321_v45  ;;  %v5840_v24 = vpop.xlane.xlu1 %1284  ;;  %v4097_v20 = vpop.eup %4096 }
 0x36a   :  { %709 = vst.msk [vmem:[#allocation8 + $0x38] sm:$0xff] %vm76_vm1, %v701_v22  ;;  %v787_v44 = vsel %vm785_vm6, %v786_v5, %v784_v23  ;;  %v846_v31 = vmul.f32 1.442695, %v5806_v46  ;;  %v1119_v57 = vsub.f32 0.0, %v5819_v4  ;;  %v1338_v10 = vsel %vm1336_vm7, %v1337_v62, %v1335_v40  ;;  %v4099_v5 = vpop.eup %4098 }
 0x36b   :  { %8867 = vst [vmem:[#allocation27_spill] sm:$0xff] %v5836_v39  ;;  %v870_v22 = vmul.f32 1.442695, %v858_v63  ;;  %v1123_v9 = vsub.f32 0.0, %v5825_v14  ;;  %4102 = vpow2.f32 %v838_v0  ;;  %v1384_v60 = vsub.f32 0.0, %v5829_v18 }
 0x36c   :  { %v5850_v34 = vmax.f32 %v787_v44, 1e-15  ;;  %v812_v28 = vsel %vm811_vm8, %v5768_v59, %v810_v2  ;;  %4104 = vpow2.f32 %v862_v53  ;;  %v1103_v37 = vmul.f32 1.442695, %v5819_v4  ;;  %v5871_v54 = vpop.xlane.xlu0 %2377 }
 0x36d   :  { %v5854_v11 = vmax.f32 %v1338_v10, 1e-15  ;;  %v814_v33 = vand.u32 2147483648, %v5768_v59  ;;  %4106 = vrsqrt.f32 %v5757_v8  ;;  %v1127_v13 = vmul.f32 1.442695, %v1119_v57  ;;  %v5868_v42 = vpop.xlane.xlu1 %1296 }
 0x36e   :  { %v5859_v30 = vmul.f32 1.442695, %v5825_v14  ;;  %4108 = vrsqrt.f32 %v5840_v24  ;;  %v5863_v12 = vmul.f32 1.442695, %v1123_v9  ;;  %v5866_v15 = vmul.f32 1.442695, %v5829_v18  ;;  %v4101_v2 = vpop.eup %4100 }
 0x36f   :  { %v815_v16 = vsel %vm813_vm9, %v814_v33, %v812_v28  ;;  %4110 = vrcp.f32 %v5776_v35  ;;  %v5873_v0 = vmul.f32 1.442695, %v1384_v60  ;;  %v855_v53 = vsub.f32 0.0, %v5850_v34 }
 0x370   :  { %v1570_v59 = vmul.f32 %v4095_v55, %v5742_v21  ;;  %4112 = vpow2.f32 %v846_v31  ;;  %v1388_v19 = vsub.f32 0.0, %v5854_v11  ;;  %vm1573_vm11 = vcmp.eq.f32.partialorder %v5742_v21, 0.0  ;;  %v5906_v60 = vpop.xlane.xlu0 %757 }
 0x371   :  { %4114 = vpow2.f32 %v870_v22  ;;  %v5881_v23 = vmul.f32 1.442695, %v5850_v34  ;;  %v5883_v35 = vmax.f32 %v815_v16, 1e-15  ;;  %v1574_v63 = vand.u32 2147483648, %v5742_v21  ;;  %v5904_v9 = vpop.xlane.xlu1 %1549 }
 0x372   :  { %4116 = vrsqrt.f32 %v5770_v26  ;;  %v5888_v40 = vmul.f32 1.442695, %v5854_v11  ;;  %v1047_v62 = vmul.f32 %v4097_v20, %v5783_v6  ;;  %vm1048_vm12 = vcmp.eq.f32.partialorder %v5783_v6, inf }
 0x373   :  { %4118 = vrsqrt.f32 %v5868_v42  ;;  %v5893_v44 = vmul.f32 1.442695, %v855_v53  ;;  %v1572_v31 = vsel %vm1571_vm10, %v5742_v21, %v1570_v59  ;;  %vm1050_vm13 = vcmp.eq.f32.partialorder %v5783_v6, 0.0 }
 0x374   :  { %4120 = vrcp.f32 %v5806_v46  ;;  %v5900_v10 = vmul.f32 1.442695, %v1388_v19  ;;  %v1051_v22 = vand.u32 2147483648, %v5783_v6  ;;  %vm1599_vm14 = vcmp.eq.f32.partialorder %v5750_v50, inf }
 0x375   :  { %v5898_v57 = vpop.eup %4102  ;;  %4122 = vpow2.f32 %v1103_v37  ;;  %v859_v55 = vsub.f32 0.0, %v5883_v35  ;;  %vm1601_vm15 = vcmp.eq.f32.partialorder %v5750_v50, 0.0  ;;  %v1602_v46 = vand.u32 2147483648, %v5750_v50 }
 0x376   :  { %8868 = vst [vmem:[#allocation28_spill] sm:$0xff] %v5898_v57  ;;  %v5908_v28 = vpop.eup %4104  ;;  %4124 = vpow2.f32 %v1127_v13  ;;  %v1575_v16 = vsel %vm1573_vm11, %v1574_v63, %v1572_v31  ;;  %v1049_v20 = vsel %vm1048_vm12, %v5783_v6, %v1047_v62  ;;  %v5922_v59 = vmul.f32 1.442695, %v5883_v35 }
 0x377   :  { %8869 = vst [vmem:[#allocation29_spill] sm:$0xff] %v5908_v28  ;;  %v4107_v33 = vpop.eup %4106  ;;  %4126 = vrsqrt.f32 %v5785_v7  ;;  %v894_v37 = vsub.f32 %v5898_v57, %v5908_v28  ;;  %v1598_v19 = vmul.f32 %v4099_v5, %v5750_v50  ;;  %vm1076_vm2 = vcmp.eq.f32.partialorder %v5812_v52, inf }
 0x378   :  { %v4109_v53 = vpop.eup %4108  ;;  %4128 = vrsqrt.f32 %v5904_v9  ;;  %vm1078_vm3 = vcmp.eq.f32.partialorder %v5812_v52, 0.0  ;;  %v1079_v13 = vand.u32 2147483648, %v5812_v52  ;;  %v5932_v31 = vmax.f32 %v1575_v16, 1e-15  ;;  %v5945_v16 = vpop.xlane.xlu0 %769 }
 0x379   :  { %v4111_v21 = vpop.eup %4110  ;;  %v902_v63 = vmul.f32 0.5, %v894_v37  ;;  %4130 = vrcp.f32 %v5819_v4  ;;  %v1052_v3 = vsel %vm1050_vm13, %v1051_v22, %v1049_v20  ;;  %v1075_v5 = vmul.f32 %v4101_v2, %v5812_v52 }
 0x37a   :  { %v5930_v62 = vpop.eup %4112  ;;  %vm1844_vm4 = vcmp.eq.f32.partialorder %v5757_v8, inf  ;;  %4132 = vpow2.f32 %v5859_v30  ;;  %v5941_v51 = vmul.f32 1.442695, %v859_v55  ;;  %v1600_v6 = vsel %vm1599_vm14, %v5750_v50, %v1598_v19 }
 0x37b   :  { %8870 = vst [vmem:[#allocation30_spill] sm:$0xff] %v5930_v62  ;;  %v5939_v58 = vpop.eup %4114  ;;  %v911_v4 = vmul.f32 %v4111_v21, %v902_v63  ;;  %4134 = vpow2.f32 %v5863_v12  ;;  %vm1313_vm5 = vcmp.eq.f32.partialorder %v5840_v24, inf  ;;  %v1316_v30 = vand.u32 2147483648, %v5840_v24 }
 0x37c   :  { %8871 = vst [vmem:[#allocation31_spill] sm:$0xff] %v5939_v58  ;;  %v4117_v36 = vpop.eup %4116  ;;  %v898_v2 = vsub.f32 %v5930_v62, %v5939_v58  ;;  %v5954_v55 = vmax.f32 %v1052_v3, 1e-15  ;;  %vm1846_vm6 = vcmp.eq.f32.partialorder %v5757_v8, 0.0  ;;  %vm1315_vm7 = vcmp.eq.f32.partialorder %v5840_v24, 0.0  ;;  %v5992_v45 = vpop.xlane.xlu0 %1022 }
 0x37d   :  { %v4119_v22 = vpop.eup %4118  ;;  %vm1872_vm8 = vcmp.eq.f32.partialorder %v5770_v26, inf  ;;  %v1875_v12 = vand.u32 2147483648, %v5770_v26  ;;  %v926_v20 = vmul.f32 %v911_v4, %v5297_v43  ;;  %v1649_v21 = vsub.f32 0.0, %v5932_v31 }
 0x37e   :  { %v4121_v19 = vpop.eup %4120  ;;  %v1077_v63 = vsel %vm1076_vm2, %v5812_v52, %v1075_v5  ;;  %vm1874_vm9 = vcmp.eq.f32.partialorder %v5770_v26, 0.0  ;;  %v906_v37 = vmul.f32 0.5, %v898_v2  ;;  %v1603_v32 = vsel %vm1601_vm15, %v1602_v46, %v1600_v6 }
 0x37f   :  { %v5967_v27 = vpop.eup %4122  ;;  %v1843_v38 = vmul.f32 %v4107_v33, %v5757_v8  ;;  %v1312_v4 = vmul.f32 %v4109_v53, %v5840_v24  ;;  %vm1341_vm10 = vcmp.eq.f32.partialorder %v5868_v42, inf  ;;  %942 = vrot.lane.b32.xlu0 %v926_v20, %s4908_s2  ;;  %4136 = vrcp.f32 %v5825_v14  ;;  %v5988_v20 = vpop.xlane.xlu1 %1561 }
 0x380   :  { %8872 = vst [vmem:[#allocation32_spill] sm:$0xff] %v5967_v27  ;;  %v5976_v5 = vpop.eup %4124  ;;  %v1871_v3 = vmul.f32 %v4117_v36, %v5770_v26  ;;  %vm2117_vm11 = vcmp.eq.f32.partialorder %v5785_v7, inf  ;;  %v919_v46 = vmul.f32 %v4121_v19, %v906_v37  ;;  %v5983_v53 = vmul.f32 1.442695, %v5932_v31 }
 0x381   :  { %8873 = vst [vmem:[#allocation33_spill] sm:$0xff] %v5976_v5  ;;  %v4127_v33 = vpop.eup %4126  ;;  %v1120_v6 = vsub.f32 0.0, %v5954_v55  ;;  %v1080_v14 = vsel %vm1078_vm3, %v1079_v13, %v1077_v63  ;;  %v1159_v36 = vsub.f32 %v5967_v27, %v5976_v5  ;;  %v5994_v39 = vmul.f32 1.442695, %v1649_v21 }
 0x382   :  { %v4129_v2 = vpop.eup %4128  ;;  %v5996_v37 = vmax.f32 %v1603_v32, 1e-15  ;;  %vm1343_vm12 = vcmp.eq.f32.partialorder %v5868_v42, 0.0  ;;  %v930_v19 = vmul.f32 %v919_v46, %v5323_v47  ;;  %4138 = vpow2.f32 %v5866_v15 }
 0x383   :  { %v4131_v52 = vpop.eup %4130  ;;  %v1845_v13 = vsel %vm1844_vm4, %v5757_v8, %v1843_v38  ;;  %v1314_v63 = vsel %vm1313_vm5, %v5840_v24, %v1312_v4  ;;  %vm2119_vm13 = vcmp.eq.f32.partialorder %v5785_v7, 0.0  ;;  %vm1578_vm14 = vcmp.eq.f32.partialorder %v5904_v9, inf  ;;  %v6045_v24 = vpop.xlane.xlu0 %1034 }
 0x384   :  { %v1167_v32 = vmul.f32 0.5, %v1159_v36  ;;  %4140 = vpow2.f32 %v5873_v0  ;;  %v6010_v21 = vpop.eup %4132  ;;  %v6013_v15 = vmul.f32 1.442695, %v5954_v55  ;;  %v6015_v46 = vmax.f32 %v1080_v14, 1e-15  ;;  %950 = vrot.lane.b32.xlu0 %v930_v19, %s4908_s2  ;;  %v6041_v19 = vpop.xlane.xlu1 %1822 }
 0x385   :  { %8874 = vst [vmem:[#allocation34_spill] sm:$0xff] %v6010_v21  ;;  %v1873_v38 = vsel %vm1872_vm8, %v5770_v26, %v1871_v3  ;;  %v1340_v4 = vmul.f32 %v4119_v22, %v5868_v42  ;;  %v6022_v50 = vpop.eup %4134  ;;  %v6024_v36 = vmul.f32 1.442695, %v1120_v6  ;;  %v2116_v0 = vmul.f32 %v4127_v33, %v5785_v7 }
 0x386   :  { %8875 = vst [vmem:[#allocation35_spill] sm:$0xff] %v6022_v50  ;;  %4142 = vrsqrt.f32 %v5814_v25  ;;  %v1176_v17 = vmul.f32 %v4131_v52, %v1167_v32  ;;  %v8876_v14 = vand.u32 2147483648, %v5757_v8  ;;  %v1317_v3 = vsel %vm1315_vm7, %v1316_v30, %v1314_v63 }
 0x387   :  { %vm1580_vm15 = vcmp.eq.f32.partialorder %v5904_v9, 0.0  ;;  %v1163_v22 = vsub.f32 %v6010_v21, %v6022_v50  ;;  %4144 = vrcp.f32 %v5829_v18  ;;  %v1653_v33 = vsub.f32 0.0, %v5996_v37 }
 0x388   :  { %v1848_v49 = vsel %vm1846_vm6, %v8876_v14, %v1845_v13  ;;  %v1876_v6 = vsel %vm1874_vm9, %v1875_v12, %v1873_v38  ;;  %v1191_v8 = vmul.f32 %v1176_v17, %v5297_v43  ;;  %4146 = vpow2.f32 %v5881_v23 }
 0x389   :  { %v1342_v30 = vsel %vm1341_vm10, %v5868_v42, %v1340_v4  ;;  %v1577_v52 = vmul.f32 %v4129_v2, %v5904_v9  ;;  %v1171_v18 = vmul.f32 0.5, %v1163_v22  ;;  %4148 = vpow2.f32 %v5893_v44  ;;  %v4137_v13 = vpop.eup %4136 }
 0x38a   :  { %v6052_v26 = vmax.f32 %v1848_v49, 1e-15  ;;  %v6054_v12 = vmax.f32 %v1317_v3, 1e-15  ;;  %v2118_v17 = vsel %vm2117_vm11, %v5785_v7, %v2116_v0  ;;  %4150 = vrsqrt.f32 %v5988_v20  ;;  %1207 = vrot.lane.b32.xlu0 %v1191_v8, %s4909_s28 }
 0x38b   :  { %v6062_v23 = vmul.f32 1.442695, %v5996_v37  ;;  %v1124_v2 = vsub.f32 0.0, %v6015_v46  ;;  %4152 = vrsqrt.f32 %v5842_v41  ;;  %v1184_v44 = vmul.f32 %v4137_v13, %v1171_v18  ;;  %v6096_v18 = vpop.xlane.xlu0 %1287 }
 0x38c   :  { %v6067_v49 = vmul.f32 1.442695, %v6015_v46  ;;  %v6069_v63 = vmax.f32 %v1876_v6, 1e-15  ;;  %v8877_v32 = vand.u32 2147483648, %v5868_v42  ;;  %4154 = vrsqrt.f32 %v6041_v19  ;;  %v6076_v4 = vpop.eup %4138 }
 0x38d   :  { %8878 = vst [vmem:[#allocation36_spill] sm:$0xff] %v6076_v4  ;;  %v8879_v0 = vand.u32 2147483648, %v5785_v7  ;;  %v1579_v3 = vsel %vm1578_vm14, %v5904_v9, %v1577_v52  ;;  %v1195_v22 = vmul.f32 %v1184_v44, %v5323_v47  ;;  %4156 = vrcp.f32 %v5850_v34  ;;  %v6094_v7 = vpop.xlane.xlu1 %1834 }
 0x38e   :  { %v1345_v38 = vsel %vm1343_vm12, %v8877_v32, %v1342_v30  ;;  %v6087_v6 = vpop.eup %4140  ;;  %v6089_v42 = vmul.f32 1.442695, %v1653_v33  ;;  %v1922_v8 = vsub.f32 0.0, %v6052_v26  ;;  %v1385_v30 = vsub.f32 0.0, %v6054_v12 }
 0x38f   :  { %v2121_v14 = vsel %vm2119_vm13, %v8879_v0, %v2118_v17  ;;  %8880 = vst [vmem:[#allocation37_spill] sm:$0xff] %v6087_v6  ;;  %4158 = vrsqrt.f32 %v5871_v54  ;;  %v6098_v13 = vmul.f32 1.442695, %v1124_v2  ;;  %v6100_v52 = vmax.f32 %v1345_v38, 1e-15  ;;  %1215 = vrot.lane.b32.xlu0 %v1195_v22, %s4909_s28 }
 0x390   :  { %v1424_v34 = vsub.f32 %v6076_v4, %v6087_v6  ;;  %4160 = vpow2.f32 %v5888_v40  ;;  %v4143_v33 = vpop.eup %4142  ;;  %v6107_v17 = vmul.f32 1.442695, %v6052_v26  ;;  %v6109_v44 = vmax.f32 %v2121_v14, 1e-15 }
 0x391   :  { %v8881_v32 = vand.u32 2147483648, %v5904_v9  ;;  %4162 = vpow2.f32 %v5900_v10  ;;  %v4145_v38 = vpop.eup %4144  ;;  %v6117_v0 = vmul.f32 1.442695, %v6054_v12  ;;  %v1926_v22 = vsub.f32 0.0, %v6069_v63 }
 0x392   :  { %4164 = vrsqrt.f32 %v6094_v7  ;;  %v1432_v40 = vmul.f32 0.5, %v1424_v34  ;;  %v6121_v48 = vpop.eup %4146  ;;  %v6123_v14 = vmul.f32 1.442695, %v1922_v8  ;;  %v6125_v6 = vmul.f32 1.442695, %v1385_v30 }
 0x393   :  { %v1582_v2 = vsel %vm1580_vm15, %v8881_v32, %v1579_v3  ;;  %8882 = vst [vmem:[#allocation38_spill] sm:$0xff] %v6121_v48  ;;  %v6128_v9 = vmul.f32 1.442695, %v6069_v63  ;;  %4166 = vpow2.f32 %v5922_v59  ;;  %v6131_v10 = vpop.eup %4148  ;;  %v1389_v3 = vsub.f32 0.0, %v6100_v52  ;;  %v6142_v59 = vpop.xlane.xlu0 %1299 }
 0x394   :  { %8883 = vst [vmem:[#allocation39_spill] sm:$0xff] %v6131_v10  ;;  %v6134_v32 = vmax.f32 %v1582_v2, 1e-15  ;;  %v1441_v4 = vmul.f32 %v4145_v38, %v1432_v40  ;;  %4168 = vpow2.f32 %v5941_v51  ;;  %v4151_v34 = vpop.eup %4150  ;;  %v2195_v8 = vsub.f32 0.0, %v6109_v44 }
 0x395   :  { %vm2145_vm2 = vcmp.eq.f32.partialorder %v5814_v25, inf  ;;  %v895_v30 = vsub.f32 %v6121_v48, %v6131_v10  ;;  %4170 = vrcp.f32 %v5854_v11  ;;  %v6144_v50 = vpop.eup %4152  ;;  %v6146_v21 = vmul.f32 1.442695, %v1926_v22  ;;  %v6157_v11 = vpop.xlane.xlu1 %2095 }
 0x396   :  { %v6149_v2 = vmul.f32 1.442695, %v6100_v52  ;;  %4172 = vrsqrt.f32 %v5906_v60  ;;  %v1456_v51 = vmul.f32 %v1441_v4, %v5297_v43  ;;  %v4155_v38 = vpop.eup %4154  ;;  %v6154_v40 = vmul.f32 1.442695, %v6109_v44 }
 0x397   :  { %v2144_v10 = vmul.f32 %v4143_v33, %v5814_v25  ;;  %v903_v48 = vmul.f32 0.5, %v895_v30  ;;  %4174 = vrcp.f32 %v5883_v35  ;;  %v4157_v22 = vpop.eup %4156  ;;  %v6160_v1 = vmul.f32 1.442695, %v1389_v3 }
 0x398   :  { %v1650_v5 = vsub.f32 0.0, %v6134_v32  ;;  %vm2147_vm3 = vcmp.eq.f32.partialorder %v5814_v25, 0.0  ;;  %1472 = vrot.lane.b32.xlu0 %v1456_v51, %s4910_s29  ;;  %4176 = vpow2.f32 %v5983_v53  ;;  %v6168_v27 = vmul.f32 1.442695, %v2195_v8  ;;  %v6188_v51 = vpop.xlane.xlu0 %1552 }
 0x399   :  { %v6166_v4 = vpop.eup %4158  ;;  %v2148_v33 = vand.u32 2147483648, %v5814_v25  ;;  %v913_v30 = vmul.f32 %v4157_v22, %v903_v48  ;;  %4178 = vpow2.f32 %v5994_v39  ;;  %v6175_v3 = vmul.f32 1.442695, %v6134_v32 }
 0x39a   :  { %v6172_v35 = vpop.eup %4160  ;;  %vm1606_vm4 = vcmp.eq.f32.partialorder %v5988_v20, inf  ;;  %vm1608_vm5 = vcmp.eq.f32.partialorder %v5988_v20, 0.0  ;;  %4180 = vrsqrt.f32 %v6157_v11  ;;  %v2146_v8 = vsel %vm2145_vm2, %v5814_v25, %v2144_v10 }
 0x39b   :  { %8884 = vst [vmem:[#allocation40_spill] sm:$0xff] %v6172_v35  ;;  %v6180_v53 = vpop.eup %4162  ;;  %v1605_v48 = vmul.f32 %v4151_v34, %v5988_v20  ;;  %v927_v39 = vmul.f32 %v913_v30, %v5305_v29  ;;  %4182 = vpow2.f32 %v6013_v15  ;;  %v6190_v58 = vmul.f32 1.442695, %v1650_v5 }
 0x39c   :  { %8885 = vst [vmem:[#allocation41_spill] sm:$0xff] %v6180_v53  ;;  %v4165_v22 = vpop.eup %4164  ;;  %v1609_v62 = vand.u32 2147483648, %v5988_v20  ;;  %v1428_v28 = vsub.f32 %v6172_v35, %v6180_v53  ;;  %4184 = vpow2.f32 %v6024_v36  ;;  %vm1851_vm6 = vcmp.eq.f32.partialorder %v6041_v19, inf }
 0x39d   :  { %v6196_v57 = vpop.eup %4166  ;;  %vm1853_vm7 = vcmp.eq.f32.partialorder %v6041_v19, 0.0  ;;  %944 = vrot.lane.b32.xlu1 %v927_v39, %s4908_s2  ;;  %4186 = vrcp.f32 %v5932_v31  ;;  %v2149_v15 = vsel %vm2147_vm3, %v2148_v33, %v2146_v8  ;;  %vm2390_vm8 = vcmp.eq.f32.partialorder %v5842_v41, inf  ;;  %v6225_v39 = vpop.xlane.xlu1 %2107 }
 0x39e   :  { %8886 = vst [vmem:[#allocation42_spill] sm:$0xff] %v6196_v57  ;;  %v6203_v5 = vpop.eup %4168  ;;  %v1850_v36 = vmul.f32 %v4155_v38, %v6041_v19  ;;  %v1854_v34 = vand.u32 2147483648, %v6041_v19  ;;  %v1436_v30 = vmul.f32 0.5, %v1428_v28  ;;  %v1607_v53 = vsel %vm1606_vm4, %v5988_v20, %v1605_v48 }
 0x39f   :  { %8887 = vst [vmem:[#allocation43_spill] sm:$0xff] %v6203_v5  ;;  %v4171_v10 = vpop.eup %4170  ;;  %vm1879_vm9 = vcmp.eq.f32.partialorder %v6094_v7, inf  ;;  %v899_v25 = vsub.f32 %v6196_v57, %v6203_v5  ;;  %4188 = vrcp.f32 %v5954_v55  ;;  %v6220_v35 = vmax.f32 %v2149_v15, 1e-15  ;;  %v6227_v57 = vpop.xlane.xlu0 %1564 }
 0x3a0   :  { %v4173_v31 = vpop.eup %4172  ;;  %v1449_v8 = vmul.f32 %v4171_v10, %v1436_v30  ;;  %vm1881_vm10 = vcmp.eq.f32.partialorder %v6094_v7, 0.0  ;;  %4190 = vrsqrt.f32 %v5945_v16  ;;  %v1610_v10 = vsel %vm1608_vm5, %v1609_v62, %v1607_v53 }
 0x3a1   :  { %v4175_v28 = vpop.eup %4174  ;;  %v907_v5 = vmul.f32 0.5, %v899_v25  ;;  %vm2392_vm11 = vcmp.eq.f32.partialorder %v5842_v41, 0.0  ;;  %v1852_v55 = vsel %vm1851_vm6, %v6041_v19, %v1850_v36  ;;  %4192 = vpow2.f32 %v6062_v23 }
 0x3a2   :  { %v6229_v33 = vpop.eup %4176  ;;  %v1460_v15 = vmul.f32 %v1449_v8, %v5323_v47  ;;  %v2389_v25 = vmul.f32 %v6144_v50, %v5842_v41  ;;  %vm2418_vm12 = vcmp.eq.f32.partialorder %v5871_v54, inf  ;;  %v1878_v20 = vmul.f32 %v4165_v22, %v6094_v7 }
 0x3a3   :  { %8888 = vst [vmem:[#allocation44_spill] sm:$0xff] %v6229_v33  ;;  %v6239_v30 = vpop.eup %4178  ;;  %vm790_vm13 = vcmp.eq.f32.partialorder %v5906_v60, inf  ;;  %v921_v62 = vmul.f32 %v4175_v28, %v907_v5  ;;  %4194 = vpow2.f32 %v6089_v42  ;;  %vm2124_vm14 = vcmp.eq.f32.partialorder %v6157_v11, inf }
 0x3a4   :  { %8889 = vst [vmem:[#allocation45_spill] sm:$0xff] %v6239_v30  ;;  %v4181_v53 = vpop.eup %4180  ;;  %4196 = vrsqrt.f32 %v6225_v39  ;;  %1480 = vrot.lane.b32.xlu0 %v1460_v15, %s4910_s29  ;;  %v1689_v50 = vsub.f32 %v6229_v33, %v6239_v30  ;;  %v6256_v8 = vmax.f32 %v1610_v10, 1e-15  ;;  %v1855_v42 = vsel %vm1853_vm7, %v1854_v34, %v1852_v55 }
 0x3a5   :  { %v6254_v22 = vpop.eup %4182  ;;  %v931_v5 = vmul.f32 %v921_v62, %v5334_v56  ;;  %4198 = vpow2.f32 %v6067_v49  ;;  %v6265_v23 = vmul.f32 1.442695, %v6220_v35  ;;  %v2199_v15 = vsub.f32 0.0, %v6220_v35 }
 0x3a6   :  { %8890 = vst [vmem:[#allocation46_spill] sm:$0xff] %v6254_v22  ;;  %v6262_v28 = vpop.eup %4184  ;;  %vm792_vm15 = vcmp.eq.f32.partialorder %v5906_v60, 0.0  ;;  %v1697_v36 = vmul.f32 0.5, %v1689_v50  ;;  %4200 = vpow2.f32 %v6098_v13  ;;  %v2391_v19 = vsel %vm2390_vm8, %v5842_v41, %v2389_v25  ;;  %v6282_v13 = vpop.xlane.xlu0 %1825 }
 0x3a7   :  { %8891 = vst [vmem:[#allocation47_spill] sm:$0xff] %v6262_v28  ;;  %v4187_v10 = vpop.eup %4186  ;;  %vm2420_vm2 = vcmp.eq.f32.partialorder %v5871_v54, 0.0  ;;  %v1880_v49 = vsel %vm1879_vm9, %v6094_v7, %v1878_v20  ;;  %vm2126_vm3 = vcmp.eq.f32.partialorder %v6157_v11, 0.0  ;;  %952 = vrot.lane.b32.xlu1 %v931_v5, %s4908_s2  ;;  %v1160_v34 = vsub.f32 %v6254_v22, %v6262_v28  ;;  %v6289_v50 = vpop.xlane.xlu1 %2368 }
 0x3a8   :  { %4202 = vrcp.f32 %v5996_v37  ;;  %v6284_v55 = vmax.f32 %v1855_v42, 1e-15  ;;  %v2417_v25 = vmul.f32 %v6166_v4, %v5871_v54  ;;  %v789_v62 = vmul.f32 %v4173_v31, %v5906_v60 }
 0x3a9   :  { %v1706_v20 = vmul.f32 %v4187_v10, %v1697_v36  ;;  %v6292_v48 = vmul.f32 1.442695, %v6256_v8  ;;  %v2123_v5 = vmul.f32 %v4181_v53, %v6157_v11  ;;  %v1168_v38 = vmul.f32 0.5, %v1160_v34  ;;  %v4189_v37 = vpop.eup %4188 }
 0x3aa   :  { %4204 = vrcp.f32 %v6015_v46  ;;  %v1654_v42 = vsub.f32 0.0, %v6256_v8  ;;  %v8892_v28 = vand.u32 2147483648, %v6094_v7  ;;  %v4191_v36 = vpop.eup %4190  ;;  %v6303_v10 = vmul.f32 1.442695, %v2199_v15 }
 0x3ab   :  { %v1721_v31 = vmul.f32 %v1706_v20, %v5297_v43  ;;  %4206 = vpow2.f32 %v6107_v17  ;;  %v8893_v53 = vand.u32 2147483648, %v5842_v41  ;;  %v1178_v34 = vmul.f32 %v4189_v37, %v1168_v38  ;;  %v6310_v22 = vpop.eup %4192  ;;  %v6337_v20 = vpop.xlane.xlu1 %2380 }
 0x3ac   :  { %v1883_v4 = vsel %vm1881_vm10, %v8892_v28, %v1880_v49  ;;  %4208 = vpow2.f32 %v6123_v14  ;;  %8894 = vst [vmem:[#allocation48_spill] sm:$0xff] %v6310_v22  ;;  %v1923_v7 = vsub.f32 0.0, %v6284_v55  ;;  %v2419_v28 = vsel %vm2418_vm12, %v5871_v54, %v2417_v25 }
 0x3ad   :  { %v2394_v46 = vsel %vm2392_vm11, %v8893_v53, %v2391_v19  ;;  %v791_v17 = vsel %vm790_vm13, %v5906_v60, %v789_v62  ;;  %4210 = vrsqrt.f32 %v5992_v45  ;;  %1745 = vrot.lane.b32.xlu0 %v1721_v31, %s4911_s30  ;;  %v6321_v41 = vpop.eup %4194  ;;  %v6323_v38 = vmax.f32 %v1883_v4, 1e-15  ;;  %v6331_v19 = vpop.xlane.xlu0 %1837 }
 0x3ae   :  { %8895 = vst [vmem:[#allocation49_spill] sm:$0xff] %v6321_v41  ;;  %v2125_v14 = vsel %vm2124_vm14, %v6157_v11, %v2123_v5  ;;  %vm818_vm4 = vcmp.eq.f32.partialorder %v5945_v16, inf  ;;  %v1192_v15 = vmul.f32 %v1178_v34, %v5305_v29  ;;  %4212 = vpow2.f32 %v6117_v0  ;;  %v4197_v49 = vpop.eup %4196 }
 0x3af   :  { %v6333_v25 = vmul.f32 1.442695, %v1654_v42  ;;  %v6335_v62 = vmax.f32 %v2394_v46, 1e-15  ;;  %v1693_v37 = vsub.f32 %v6310_v22, %v6321_v41  ;;  %4214 = vpow2.f32 %v6125_v6  ;;  %v6342_v5 = vpop.eup %4198 }
 0x3b0   :  { %8896 = vst [vmem:[#allocation50_spill] sm:$0xff] %v6342_v5  ;;  %v6345_v4 = vmul.f32 1.442695, %v6284_v55  ;;  %v8897_v0 = vand.u32 2147483648, %v5906_v60  ;;  %vm2152_vm5 = vcmp.eq.f32.partialorder %v6225_v39, inf  ;;  %1209 = vrot.lane.b32.xlu1 %v1192_v15, %s4909_s28  ;;  %4216 = vrcp.f32 %v6052_v26  ;;  %v6355_v53 = vpop.eup %4200 }
 0x3b1   :  { %8898 = vst [vmem:[#allocation51_spill] sm:$0xff] %v6355_v53  ;;  %v8899_v6 = vand.u32 2147483648, %v5871_v54  ;;  %v8900_v34 = vand.u32 2147483648, %v6157_v11  ;;  %vm820_vm6 = vcmp.eq.f32.partialorder %v5945_v16, 0.0  ;;  %4218 = vrsqrt.f32 %v6289_v50  ;;  %v6383_v31 = vpop.xlane.xlu0 %2098 }
 0x3b2   :  { %v794_v42 = vsel %vm792_vm15, %v8897_v0, %v791_v17  ;;  %v1701_v17 = vmul.f32 0.5, %v1693_v37  ;;  %v4203_v15 = vpop.eup %4202  ;;  %v6367_v0 = vmul.f32 1.442695, %v1923_v7  ;;  %v1927_v26 = vsub.f32 0.0, %v6323_v38 }
 0x3b3   :  { %v2422_v46 = vsel %vm2420_vm2, %v8899_v6, %v2419_v28  ;;  %v2128_v60 = vsel %vm2126_vm3, %v8900_v34, %v2125_v14  ;;  %4220 = vrsqrt.f32 %v6045_v24  ;;  %v1164_v54 = vsub.f32 %v6342_v5, %v6355_v53 }
 0x3b4   :  { %v6373_v28 = vmax.f32 %v794_v42, 1e-15  ;;  %v817_v11 = vmul.f32 %v4191_v36, %v5945_v16  ;;  %vm2154_vm7 = vcmp.eq.f32.partialorder %v6225_v39, 0.0  ;;  %v1714_v14 = vmul.f32 %v4203_v15, %v1701_v17  ;;  %v4205_v37 = vpop.eup %4204  ;;  %v6390_v15 = vpop.xlane.xlu1 %772 }
 0x3b5   :  { %4222 = vrcp.f32 %v6054_v12  ;;  %v6378_v6 = vmax.f32 %v2422_v46, 1e-15  ;;  %v6380_v7 = vmax.f32 %v2128_v60, 1e-15  ;;  %v1172_v34 = vmul.f32 0.5, %v1164_v54  ;;  %v6385_v53 = vpop.eup %4206 }
 0x3b6   :  { %4224 = vpow2.f32 %v6128_v9  ;;  %8901 = vst [vmem:[#allocation52_spill] sm:$0xff] %v6385_v53  ;;  %v2151_v42 = vmul.f32 %v4197_v49, %v6225_v39  ;;  %v1725_v17 = vmul.f32 %v1714_v14, %v5323_v47  ;;  %v6393_v12 = vpop.eup %4208  ;;  %v6396_v46 = vmul.f32 1.442695, %v6323_v38 }
 0x3b7   :  { %4226 = vpow2.f32 %v6146_v21  ;;  %8902 = vst [vmem:[#allocation53_spill] sm:$0xff] %v6393_v12  ;;  %v6398_v9 = vmul.f32 1.442695, %v1927_v26  ;;  %vm1055_vm8 = vcmp.eq.f32.partialorder %v5992_v45, inf  ;;  %v1186_v49 = vmul.f32 %v4205_v37, %v1172_v34  ;;  %v4211_v60 = vpop.eup %4210 }
 0x3b8   :  { %4228 = vrsqrt.f32 %v6337_v20  ;;  %v856_v54 = vsub.f32 0.0, %v6373_v28  ;;  %v819_v14 = vsel %vm818_vm4, %v5945_v16, %v817_v11  ;;  %1753 = vrot.lane.b32.xlu0 %v1725_v17, %s4911_s30  ;;  %v1962_v21 = vsub.f32 %v6385_v53, %v6393_v12  ;;  %v6410_v26 = vpop.eup %4212  ;;  %v6443_v30 = vpop.xlane.xlu1 %1037 }
 0x3b9   :  { %4230 = vpow2.f32 %v6149_v2  ;;  %8903 = vst [vmem:[#allocation54_spill] sm:$0xff] %v6410_v26  ;;  %v2196_v36 = vsub.f32 0.0, %v6380_v7  ;;  %v1196_v34 = vmul.f32 %v1186_v49, %v5334_v56  ;;  %v6416_v5 = vpop.eup %4214  ;;  %v6419_v11 = vmul.f32 1.442695, %v6373_v28 }
 0x3ba   :  { %4232 = vpow2.f32 %v6160_v1  ;;  %8904 = vst [vmem:[#allocation55_spill] sm:$0xff] %v6416_v5  ;;  %v2153_v17 = vsel %vm2152_vm5, %v6225_v39, %v2151_v42  ;;  %vm1057_vm9 = vcmp.eq.f32.partialorder %v5992_v45, 0.0  ;;  %v1970_v2 = vmul.f32 0.5, %v1962_v21  ;;  %v4217_v12 = vpop.eup %4216  ;;  %v6438_v21 = vpop.xlane.xlu0 %2110 }
 0x3bb   :  { %4234 = vrcp.f32 %v6069_v63  ;;  %v6427_v37 = vmul.f32 1.442695, %v6380_v7  ;;  %v8905_v1 = vand.u32 2147483648, %v5945_v16  ;;  %vm2397_vm10 = vcmp.eq.f32.partialorder %v6289_v50, inf  ;;  %1217 = vrot.lane.b32.xlu1 %v1196_v34, %s4909_s28  ;;  %v4219_v63 = vpop.eup %4218 }
 0x3bc   :  { %4236 = vrsqrt.f32 %v6096_v18  ;;  %v1425_v42 = vsub.f32 %v6410_v26, %v6416_v5  ;;  %v6440_v53 = vmul.f32 1.442695, %v856_v54  ;;  %v1054_v41 = vmul.f32 %v4211_v60, %v5992_v45 }
 0x3bd   :  { %v822_v49 = vsel %vm820_vm6, %v8905_v1, %v819_v14  ;;  %v1979_v22 = vmul.f32 %v4217_v12, %v1970_v2  ;;  %4238 = vrcp.f32 %v6100_v52  ;;  %v4221_v16 = vpop.eup %4220  ;;  %v6446_v14 = vmul.f32 1.442695, %v2196_v36 }
 0x3be   :  { %v8906_v34 = vand.u32 2147483648, %v6225_v39  ;;  %v1433_v5 = vmul.f32 0.5, %v1425_v42  ;;  %4240 = vpow2.f32 %v6154_v40  ;;  %v6453_v26 = vmax.f32 %v822_v49, 1e-15 }
 0x3bf   :  { %v4223_v54 = vpop.eup %4222  ;;  %vm2399_vm11 = vcmp.eq.f32.partialorder %v6289_v50, 0.0  ;;  %v1994_v52 = vmul.f32 %v1979_v22, %v5297_v43  ;;  %4242 = vpow2.f32 %v6168_v27  ;;  %v1056_v49 = vsel %vm1055_vm8, %v5992_v45, %v1054_v41 }
 0x3c0   :  { %v2156_v1 = vsel %vm2154_vm7, %v8906_v34, %v2153_v17  ;;  %v6459_v36 = vpop.eup %4224  ;;  %4244 = vrsqrt.f32 %v6390_v15  ;;  %v1443_v40 = vmul.f32 %v4223_v54, %v1433_v5  ;;  %v2396_v22 = vmul.f32 %v4219_v63, %v6289_v50 }
 0x3c1   :  { %8907 = vst [vmem:[#allocation56_spill] sm:$0xff] %v6459_v36  ;;  %v6464_v17 = vpop.eup %4226  ;;  %v6466_v2 = vmax.f32 %v2156_v1, 1e-15  ;;  %vm1083_vm12 = vcmp.eq.f32.partialorder %v6045_v24, inf  ;;  %2018 = vrot.lane.b32.xlu0 %v1994_v52, %s4912_s5  ;;  %4246 = vrcp.f32 %v6109_v44  ;;  %v6480_v1 = vpop.xlane.xlu0 %2371  ;;  %v860_v63 = vsub.f32 0.0, %v6453_v26 }
 0x3c2   :  { %8908 = vst [vmem:[#allocation57_spill] sm:$0xff] %v6464_v17  ;;  %v4229_v27 = vpop.eup %4228  ;;  %v1457_v42 = vmul.f32 %v1443_v40, %v5305_v29  ;;  %v1966_v34 = vsub.f32 %v6459_v36, %v6464_v17  ;;  %4248 = vpow2.f32 %v6175_v3  ;;  %v6487_v52 = vpop.xlane.xlu1 %1302  ;;  %v6493_v5 = vmul.f32 1.442695, %v6453_v26 }
 0x3c3   :  { %v6482_v41 = vpop.eup %4230  ;;  %4250 = vpow2.f32 %v6190_v58  ;;  %v8911_v3 = vand.u32 2147483648, %v5992_v45  ;;  %vm1085_vm13 = vcmp.eq.f32.partialorder %v6045_v24, 0.0  ;;  %v2200_v58 = vsub.f32 0.0, %v6466_v2 }
 0x3c4   :  { %8909 = vst [vmem:[#allocation58_spill] sm:$0xff] %v6482_v41  ;;  %v6490_v40 = vpop.eup %4232  ;;  %1474 = vrot.lane.b32.xlu1 %v1457_v42, %s4910_s29  ;;  %4252 = vrsqrt.f32 %v6142_v59  ;;  %v1974_v44 = vmul.f32 0.5, %v1966_v34  ;;  %v2398_v39 = vsel %vm2397_vm10, %v6289_v50, %v2396_v22  ;;  %v6512_v17 = vmul.f32 1.442695, %v860_v63 }
 0x3c5   :  { %8910 = vst [vmem:[#allocation59_spill] sm:$0xff] %v6490_v40  ;;  %v1059_v12 = vsel %vm1057_vm9, %v8911_v3, %v1056_v49  ;;  %v4235_v54 = vpop.eup %4234  ;;  %4254 = vrsqrt.f32 %v6443_v30  ;;  %v1429_v45 = vsub.f32 %v6482_v41, %v6490_v40  ;;  %v1082_v3 = vmul.f32 %v4221_v16, %v6045_v24  ;;  %v6530_v63 = vpop.xlane.xlu0 %2383 }
 0x3c6   :  { %v4237_v49 = vpop.eup %4236  ;;  %v1987_v60 = vmul.f32 %v4235_v54, %v1974_v44  ;;  %4256 = vrcp.f32 %v6134_v32  ;;  %v6514_v36 = vmax.f32 %v1059_v12, 1e-15  ;;  %vm1320_vm14 = vcmp.eq.f32.partialorder %v6096_v18, inf  ;;  %v6559_v42 = vpop.xlane.xlu1 %1567 }
 0x3c7   :  { %v4239_v34 = vpop.eup %4238  ;;  %v1437_v22 = vmul.f32 0.5, %v1429_v45  ;;  %4258 = vpow2.f32 %v6265_v23  ;;  %v6521_v40 = vmul.f32 1.442695, %v6466_v2  ;;  %v8914_v16 = vand.u32 2147483648, %v6289_v50 }
 0x3c8   :  { %8912 = vst [vmem:[#allocation60_spill] sm:$0xff] %v6514_v36  ;;  %v6518_v33 = vpop.eup %4240  ;;  %vm825_vm15 = vcmp.eq.f32.partialorder %v6390_v15, inf  ;;  %v1998_v12 = vmul.f32 %v1987_v60, %v5323_v47  ;;  %4260 = vpow2.f32 %v6303_v10  ;;  %v6534_v23 = vmul.f32 1.442695, %v2200_v58 }
 0x3c9   :  { %8913 = vst [vmem:[#allocation61_spill] sm:$0xff] %v6518_v33  ;;  %v2401_v32 = vsel %vm2399_vm11, %v8914_v16, %v2398_v39  ;;  %v6532_v54 = vpop.eup %4242  ;;  %vm2425_vm2 = vcmp.eq.f32.partialorder %v6337_v20, inf  ;;  %v1451_v44 = vmul.f32 %v4239_v34, %v1437_v22  ;;  %4262 = vrsqrt.f32 %v6188_v51 }
 0x3ca   :  { %8915 = vst [vmem:[#allocation62_spill] sm:$0xff] %v6532_v54  ;;  %v4245_v39 = vpop.eup %4244  ;;  %v1084_v60 = vsel %vm1083_vm12, %v6045_v24, %v1082_v3  ;;  %vm1322_vm3 = vcmp.eq.f32.partialorder %v6096_v18, 0.0  ;;  %2026 = vrot.lane.b32.xlu0 %v1998_v12, %s4912_s5  ;;  %v2235_v10 = vsub.f32 %v6518_v33, %v6532_v54  ;;  %4264 = vpow2.f32 %v6292_v48 }
 0x3cb   :  { %v2468_v58 = vsub.f32 0.0, %v6335_v62  ;;  %v4247_v45 = vpop.eup %4246  ;;  %v1121_v34 = vsub.f32 0.0, %v6514_v36  ;;  %v6549_v22 = vmax.f32 %v2401_v32, 1e-15  ;;  %vm827_vm4 = vcmp.eq.f32.partialorder %v6390_v15, 0.0 }
 0x3cc   :  { %v1461_v3 = vmul.f32 %v1451_v44, %v5334_v56  ;;  %4266 = vpow2.f32 %v6333_v25  ;;  %v6554_v16 = vpop.eup %4248  ;;  %v2424_v12 = vmul.f32 %v4229_v27, %v6337_v20  ;;  %vm2427_vm5 = vcmp.eq.f32.partialorder %v6337_v20, 0.0 }
 0x3cd   :  { %8916 = vst [vmem:[#allocation63_spill] sm:$0xff] %v6554_v16  ;;  %v1319_v48 = vmul.f32 %v4237_v49, %v6096_v18  ;;  %v2243_v50 = vmul.f32 0.5, %v2235_v10  ;;  %4268 = vrcp.f32 %v6220_v35  ;;  %v6562_v32 = vpop.eup %4250  ;;  %v8918_v54 = vand.u32 2147483648, %v6045_v24 }
 0x3ce   :  { %8917 = vst [vmem:[#allocation64_spill] sm:$0xff] %v6562_v32  ;;  %v824_v44 = vmul.f32 %v4245_v39, %v6390_v15  ;;  %vm1348_vm6 = vcmp.eq.f32.partialorder %v6142_v59, inf  ;;  %1482 = vrot.lane.b32.xlu1 %v1461_v3, %s4910_s29  ;;  %4270 = vrsqrt.f32 %v6487_v52  ;;  %v2452_v27 = vmul.f32 1.442695, %v6335_v62  ;;  %v4253_v49 = vpop.eup %4252 }
 0x3cf   :  { %v1087_v25 = vsel %vm1085_vm13, %v8918_v54, %v1084_v60  ;;  %vm1090_vm7 = vcmp.eq.f32.partialorder %v6443_v30, inf  ;;  %v2252_v35 = vmul.f32 %v4247_v45, %v2243_v50  ;;  %v1690_v10 = vsub.f32 %v6554_v16, %v6562_v32  ;;  %v6577_v54 = vpop.xlane.xlu0 %760  ;;  %v4255_v39 = vpop.eup %4254 }
 0x3d0   :  { %4272 = vrsqrt.f32 %v6227_v57  ;;  %v2476_v24 = vmul.f32 1.442695, %v2468_v58  ;;  %v6580_v60 = vmul.f32 1.442695, %v6514_v36  ;;  %v6582_v3 = vmul.f32 1.442695, %v1121_v34  ;;  %v4257_v41 = vpop.eup %4256 }
 0x3d1   :  { %4274 = vrcp.f32 %v6256_v8  ;;  %v1321_v50 = vsel %vm1320_vm14, %v6096_v18, %v1319_v48  ;;  %vm1350_vm8 = vcmp.eq.f32.partialorder %v6142_v59, 0.0  ;;  %v2267_v58 = vmul.f32 %v2252_v35, %v5297_v43  ;;  %v6592_v32 = vpop.eup %4258 }
 0x3d2   :  { %8919 = vst [vmem:[#allocation65_spill] sm:$0xff] %v6582_v3  ;;  %v1698_v45 = vmul.f32 0.5, %v1690_v10  ;;  %4276 = vrsqrt.f32 %v6559_v42  ;;  %8920 = vst [vmem:[#allocation66_spill] sm:$0xff] %v6592_v32  ;;  %v6594_v34 = vmax.f32 %v1087_v25, 1e-15  ;;  %v826_v8 = vsel %vm825_vm15, %v6390_v15, %v824_v44  ;;  %v6601_v33 = vpop.eup %4260 }
 0x3d3   :  { %vm1092_vm9 = vcmp.eq.f32.partialorder %v6443_v30, 0.0  ;;  %4278 = vpow2.f32 %v2452_v27  ;;  %v2472_v48 = vsub.f32 0.0, %v6378_v6  ;;  %8921 = vst [vmem:[#allocation67_spill] sm:$0xff] %v6601_v33  ;;  %v2426_v35 = vsel %vm2425_vm2, %v6337_v20, %v2424_v12  ;;  %2291 = vrot.lane.b32.xlu0 %v2267_v58, %s4913_s6  ;;  %v4263_v16 = vpop.eup %4262 }
 0x3d4   :  { %v1347_v10 = vmul.f32 %v4253_v49, %v6142_v59  ;;  %v1708_v25 = vmul.f32 %v4257_v41, %v1698_v45  ;;  %4280 = vpow2.f32 %v2476_v24  ;;  %v8922_v44 = vand.u32 2147483648, %v6096_v18  ;;  %v6616_v12 = vpop.eup %4264 }
 0x3d5   :  { %v1089_v36 = vmul.f32 %v4255_v39, %v6443_v30  ;;  %v2239_v3 = vsub.f32 %v6592_v32, %v6601_v33  ;;  %4282 = vrsqrt.f32 %v6282_v13  ;;  %8923 = vst [vmem:[#allocation68_spill] sm:$0xff] %v6616_v12  ;;  %v8924_v49 = vand.u32 2147483648, %v6390_v15 }
 0x3d6   :  { %v1324_v27 = vsel %vm1322_vm3, %v8922_v44, %v1321_v50  ;;  %v1722_v24 = vmul.f32 %v1708_v25, %v5305_v29  ;;  %4284 = vpow2.f32 %v6345_v4  ;;  %v2460_v18 = vmul.f32 1.442695, %v6378_v6  ;;  %v6625_v50 = vpop.xlane.xlu0 %1025  ;;  %v6627_v39 = vpop.eup %4266 }
 0x3d7   :  { %v829_v41 = vsel %vm827_vm4, %v8924_v49, %v826_v8  ;;  %8925 = vst [vmem:[#allocation69_spill] sm:$0xff] %v6627_v39  ;;  %v8926_v58 = vand.u32 2147483648, %v6337_v20  ;;  %v2247_v44 = vmul.f32 0.5, %v2239_v3  ;;  %4286 = vpow2.f32 %v6367_v0  ;;  %v4269_v8 = vpop.eup %4268 }
 0x3d8   :  { %v2484_v15 = vmul.f32 1.442695, %v2472_v48  ;;  %v6634_v49 = vmax.f32 %v1324_v27, 1e-15  ;;  %v1349_v4 = vsel %vm1348_vm6, %v6142_v59, %v1347_v10  ;;  %vm1585_vm10 = vcmp.eq.f32.partialorder %v6188_v51, inf  ;;  %1747 = vrot.lane.b32.xlu1 %v1722_v24, %s4911_s30  ;;  %v4271_v20 = vpop.eup %4270 }
 0x3d9   :  { %v2429_v45 = vsel %vm2427_vm5, %v8926_v58, %v2426_v35  ;;  %v1694_v25 = vsub.f32 %v6616_v12, %v6627_v39  ;;  %4288 = vrcp.f32 %v6335_v62  ;;  %v6644_v3 = vmax.f32 %v829_v41, 1e-15  ;;  %v6649_v35 = vpop.xlane.xlu1 %1840 }
 0x3da   :  { %v1091_v0 = vsel %vm1090_vm7, %v6443_v30, %v1089_v36  ;;  %v2260_v48 = vmul.f32 %v4269_v8, %v2247_v44  ;;  %4290 = vrcp.f32 %v6284_v55  ;;  %v6652_v10 = vpop.eup %4272  ;;  %v1125_v27 = vsub.f32 0.0, %v6594_v34  ;;  %v6675_v12 = vpop.xlane.xlu0 %1290 }
 0x3db   :  { %8927 = vst [vmem:[#allocation70_spill] sm:$0xff] %v6644_v3  ;;  %vm1355_vm11 = vcmp.eq.f32.partialorder %v6487_v52, inf  ;;  %v1702_v24 = vmul.f32 0.5, %v1694_v25  ;;  %4292 = vpow2.f32 %v2460_v18  ;;  %v4275_v41 = vpop.eup %4274  ;;  %v6658_v58 = vmul.f32 1.442695, %v6594_v34 }
 0x3dc   :  { %v8928_v36 = vand.u32 2147483648, %v6142_v59  ;;  %vm1587_vm12 = vcmp.eq.f32.partialorder %v6188_v51, 0.0  ;;  %v2271_v55 = vmul.f32 %v2260_v48, %v5323_v47  ;;  %4294 = vpow2.f32 %v2484_v15  ;;  %v6666_v8 = vpop.eup %4276 }
 0x3dd   :  { %v6668_v25 = vmax.f32 %v2429_v45, 1e-15  ;;  %v8929_v18 = vand.u32 2147483648, %v6443_v30  ;;  %v1716_v39 = vmul.f32 %v4275_v41, %v1702_v24  ;;  %4296 = vrsqrt.f32 %v6649_v35  ;;  %v6677_v59 = vpop.eup %4278 }
 0x3de   :  { %v1352_v44 = vsel %vm1350_vm8, %v8928_v36, %v1349_v4  ;;  %8930 = vst [vmem:[#allocation71_spill] sm:$0xff] %v6677_v59  ;;  %v1386_v4 = vsub.f32 0.0, %v6634_v49  ;;  %v861_v15 = vsub.f32 0.0, %v6644_v3  ;;  %v1584_v48 = vmul.f32 %v4263_v16, %v6188_v51  ;;  %2299 = vrot.lane.b32.xlu0 %v2271_v55, %s4913_s6  ;;  %v6685_v30 = vpop.eup %4280 }
 0x3df   :  { %v1094_v62 = vsel %vm1092_vm9, %v8929_v18, %v1091_v0  ;;  %vm1357_vm13 = vcmp.eq.f32.partialorder %v6487_v52, 0.0  ;;  %4298 = vpow2.f32 %v6396_v46  ;;  %8931 = vst [vmem:[#allocation72_spill] sm:$0xff] %v6685_v30  ;;  %v6687_v45 = vmul.f32 1.442695, %v1125_v27  ;;  %v6693_v41 = vpop.eup %4282  ;;  %v6701_v46 = vpop.xlane.xlu1 %2113 }
 0x3e0   :  { %v6689_v0 = vmax.f32 %v1352_v44, 1e-15  ;;  %v1726_v24 = vmul.f32 %v1716_v39, %v5334_v56  ;;  %4300 = vpow2.f32 %v6398_v9  ;;  %v6695_v36 = vmax.f32 %v1094_v62, 1e-15  ;;  %v6703_v27 = vpop.eup %4284  ;;  %v6729_v39 = vpop.xlane.xlu0 %1555 }
 0x3e1   :  { %v1354_v16 = vmul.f32 %v4271_v20, %v6487_v52  ;;  %v2508_v55 = vsub.f32 %v6677_v59, %v6685_v30  ;;  %4302 = vrcp.f32 %v6378_v6  ;;  %8933 = vst [vmem:[#allocation74_spill] sm:$0xff] %v6703_v27  ;;  %v6706_v44 = vmul.f32 1.442695, %v6634_v49  ;;  %v6715_v62 = vpop.eup %4286 }
 0x3e2   :  { %8932 = vst [vmem:[#allocation73_spill] sm:$0xff] %v6695_v36  ;;  %v6709_v9 = vmul.f32 1.442695, %v6644_v3  ;;  %vm1613_vm14 = vcmp.eq.f32.partialorder %v6227_v57, inf  ;;  %1755 = vrot.lane.b32.xlu1 %v1726_v24, %s4911_s30  ;;  %8934 = vst [vmem:[#allocation75_spill] sm:$0xff] %v6715_v62  ;;  %v1586_v30 = vsel %vm1585_vm10, %v6188_v51, %v1584_v48  ;;  %v1390_v32 = vsub.f32 0.0, %v6689_v0 }
 0x3e3   :  { %v6717_v6 = vmul.f32 1.442695, %v1386_v4  ;;  %v6719_v18 = vmul.f32 1.442695, %v861_v15  ;;  %v2516_v59 = vmul.f32 0.5, %v2508_v55  ;;  %v4289_v33 = vpop.eup %4288  ;;  %v1963_v24 = vsub.f32 %v6703_v27, %v6715_v62 }
 0x3e4   :  { %4304 = vrcp.f32 %v6323_v38  ;;  %v4291_v4 = vpop.eup %4290  ;;  %v1126_v15 = vsub.f32 0.0, %v6695_v36  ;;  %v1356_v48 = vsel %vm1355_vm11, %v6487_v52, %v1354_v16  ;;  %vm1620_vm15 = vcmp.eq.f32.partialorder %v6559_v42, inf }
 0x3e5   :  { %v2525_v55 = vmul.f32 %v4289_v33, %v2516_v59  ;;  %4306 = vpow2.f32 %v6427_v37  ;;  %v6737_v3 = vpop.eup %4292  ;;  %v8936_v38 = vand.u32 2147483648, %v6188_v51  ;;  %vm1615_vm2 = vcmp.eq.f32.partialorder %v6227_v57, 0.0 }
 0x3e6   :  { %8935 = vst [vmem:[#allocation76_spill] sm:$0xff] %v6737_v3  ;;  %v1971_v62 = vmul.f32 0.5, %v1963_v24  ;;  %4308 = vpow2.f32 %v6446_v14  ;;  %v6746_v16 = vpop.eup %4294  ;;  %v6749_v33 = vmul.f32 1.442695, %v6689_v0  ;;  %v6752_v37 = vmul.f32 1.442695, %v6695_v36 }
 0x3e7   :  { %v1589_v20 = vsel %vm1587_vm12, %v8936_v38, %v1586_v30  ;;  %8937 = vst [vmem:[#allocation77_spill] sm:$0xff] %v6746_v16  ;;  %v1612_v59 = vmul.f32 %v6652_v10, %v6227_v57  ;;  %vm1858_vm3 = vcmp.eq.f32.partialorder %v6282_v13, inf  ;;  %v2540_v51 = vmul.f32 %v2525_v55, %v5297_v43  ;;  %v4297_v30 = vpop.eup %4296 }
 0x3e8   :  { %8938 = vst [vmem:[#allocation78_spill] sm:$0xff] %v6752_v37  ;;  %v8939_v24 = vand.u32 2147483648, %v6487_v52  ;;  %vm1622_vm4 = vcmp.eq.f32.partialorder %v6559_v42, 0.0  ;;  %v1981_v38 = vmul.f32 %v4291_v4, %v1971_v62  ;;  %v2512_v27 = vsub.f32 %v6737_v3, %v6746_v16 }
 0x3e9   :  { %4310 = vrcp.f32 %v6380_v7  ;;  %v6766_v36 = vpop.eup %4298  ;;  %v6768_v10 = vmul.f32 1.442695, %v1390_v32  ;;  %v6770_v37 = vmul.f32 1.442695, %v1126_v15  ;;  %v6772_v43 = vmax.f32 %v1589_v20, 1e-15  ;;  %2564 = vrot.lane.b32.xlu0 %v2540_v51, %s4902_s26  ;;  %v6784_v20 = vpop.xlane.xlu0 %1828 }
 0x3ea   :  { %v1359_v14 = vsel %vm1357_vm13, %v8939_v24, %v1356_v48  ;;  %8940 = vst [vmem:[#allocation79_spill] sm:$0xff] %v6766_v36  ;;  %vm1893_vm5 = vcmp.eq.f32.partialorder %v6649_v35, inf  ;;  %4312 = vpow2.f32 %v6493_v5  ;;  %v6777_v52 = vpop.eup %4300  ;;  %v1619_v62 = vmul.f32 %v6666_v8, %v6559_v42 }
 0x3eb   :  { %8941 = vst [vmem:[#allocation80_spill] sm:$0xff] %v6777_v52  ;;  %vm1860_vm6 = vcmp.eq.f32.partialorder %v6282_v13, 0.0  ;;  %v1995_v7 = vmul.f32 %v1981_v38, %v5305_v29  ;;  %v2520_v32 = vmul.f32 0.5, %v2512_v27  ;;  %4314 = vpow2.f32 %v6512_v17  ;;  %v4303_v4 = vpop.eup %4302 }
 0x3ec   :  { %v6786_v15 = vmax.f32 %v1359_v14, 1e-15  ;;  %v1614_v5 = vsel %vm1613_vm14, %v6227_v57, %v1612_v59  ;;  %4316 = vrsqrt.f32 %v6331_v19  ;;  %v1967_v8 = vsub.f32 %v6766_v36, %v6777_v52 }
 0x3ed   :  { %v1857_v48 = vmul.f32 %v6693_v41, %v6282_v13  ;;  %vm1895_vm7 = vcmp.eq.f32.partialorder %v6649_v35, 0.0  ;;  %2020 = vrot.lane.b32.xlu1 %v1995_v7, %s4912_s5  ;;  %v2533_v17 = vmul.f32 %v4303_v4, %v2520_v32  ;;  %4318 = vpow2.f32 %v6521_v40 }
 0x3ee   :  { %v2469_v27 = vsub.f32 0.0, %v6549_v22  ;;  %v6801_v55 = vmul.f32 1.442695, %v6772_v43  ;;  %v1651_v59 = vsub.f32 0.0, %v6772_v43  ;;  %v1975_v51 = vmul.f32 0.5, %v1967_v8  ;;  %v4305_v24 = vpop.eup %4304 }
 0x3ef   :  { %4320 = vpow2.f32 %v6534_v23  ;;  %v1621_v41 = vsel %vm1620_vm15, %v6559_v42, %v1619_v62  ;;  %v1892_v14 = vmul.f32 %v4297_v30, %v6649_v35  ;;  %v2544_v38 = vmul.f32 %v2533_v17, %v5323_v47  ;;  %v6811_v40 = vpop.eup %4306 }
 0x3f0   :  { %4322 = vrcp.f32 %v6453_v26  ;;  %8942 = vst [vmem:[#allocation81_spill] sm:$0xff] %v6811_v40  ;;  %v8943_v7 = vand.u32 2147483648, %v6227_v57  ;;  %v1989_v4 = vmul.f32 %v4305_v24, %v1975_v51  ;;  %v2454_v23 = vmul.f32 1.442695, %v6549_v22  ;;  %v6819_v8 = vpop.eup %4308  ;;  %v6827_v57 = vpop.xlane.xlu0 %2101 }
 0x3f1   :  { %4324 = vrsqrt.f32 %v6701_v46  ;;  %8944 = vst [vmem:[#allocation82_spill] sm:$0xff] %v6819_v8  ;;  %v1391_v30 = vsub.f32 0.0, %v6786_v15  ;;  %v1859_v47 = vsel %vm1858_vm3, %v6282_v13, %v1857_v48  ;;  %2572 = vrot.lane.b32.xlu0 %v2544_v38, %s4902_s26  ;;  %v2478_v26 = vmul.f32 1.442695, %v2469_v27 }
 0x3f2   :  { %v1617_v32 = vsel %vm1615_vm2, %v8943_v7, %v1614_v5  ;;  %4326 = vrsqrt.f32 %v6383_v31  ;;  %v8945_v62 = vand.u32 2147483648, %v6559_v42  ;;  %v1999_v17 = vmul.f32 %v1989_v4, %v5334_v56 }
 0x3f3   :  { %v2236_v51 = vsub.f32 %v6811_v40, %v6819_v8  ;;  %4328 = vrcp.f32 %v6466_v2  ;;  %v4311_v48 = vpop.eup %4310  ;;  %v6838_v24 = vmul.f32 1.442695, %v6786_v15  ;;  %v6840_v38 = vmax.f32 %v1617_v32, 1e-15  ;;  %v6855_v32 = vpop.xlane.xlu1 %2386 }
 0x3f4   :  { %v1624_v5 = vsel %vm1622_vm4, %v8945_v62, %v1621_v41  ;;  %v1894_v27 = vsel %vm1893_vm5, %v6649_v35, %v1892_v14  ;;  %v6846_v41 = vpop.eup %4312  ;;  %v6848_v7 = vmul.f32 1.442695, %v1651_v59  ;;  %v8947_v4 = vand.u32 2147483648, %v6282_v13  ;;  %2028 = vrot.lane.b32.xlu1 %v1999_v17, %s4912_s5 }
 0x3f5   :  { %8946 = vst [vmem:[#allocation83_spill] sm:$0xff] %v6846_v41  ;;  %v2244_v62 = vmul.f32 0.5, %v2236_v51  ;;  %4330 = vpow2.f32 %v2454_v23  ;;  %v6857_v8 = vpop.eup %4314  ;;  %v6859_v14 = vmul.f32 1.442695, %v1391_v30  ;;  %v6861_v42 = vmax.f32 %v1624_v5, 1e-15 }
 0x3f6   :  { %v1862_v2 = vsel %vm1860_vm6, %v8947_v4, %v1859_v47  ;;  %8948 = vst [vmem:[#allocation84_spill] sm:$0xff] %v6857_v8  ;;  %vm1886_vm8 = vcmp.eq.f32.partialorder %v6331_v19, inf  ;;  %4332 = vpow2.f32 %v2478_v26  ;;  %v2473_v59 = vsub.f32 0.0, %v6668_v25  ;;  %v4317_v40 = vpop.eup %4316  ;;  %v6879_v4 = vpop.xlane.xlu0 %2374 }
 0x3f7   :  { %8949 = vst [vmem:[#allocation85_spill] sm:$0xff] %v6861_v42  ;;  %v8950_v13 = vand.u32 2147483648, %v6649_v35  ;;  %v2254_v17 = vmul.f32 %v4311_v48, %v2244_v62  ;;  %4334 = vrsqrt.f32 %v6438_v21  ;;  %v900_v23 = vsub.f32 %v6846_v41, %v6857_v8  ;;  %v6872_v30 = vpop.eup %4318 }
 0x3f8   :  { %8951 = vst [vmem:[#allocation86_spill] sm:$0xff] %v6872_v30  ;;  %v1655_v5 = vsub.f32 0.0, %v6840_v38  ;;  %v6875_v51 = vmax.f32 %v1862_v2, 1e-15  ;;  %4336 = vrsqrt.f32 %v6855_v32  ;;  %vm1888_vm9 = vcmp.eq.f32.partialorder %v6331_v19, 0.0 }
 0x3f9   :  { %v1897_v47 = vsel %vm1895_vm7, %v8950_v13, %v1894_v27  ;;  %v6881_v35 = vpop.eup %4320  ;;  %v2268_v48 = vmul.f32 %v2254_v17, %v5305_v29  ;;  %v908_v27 = vmul.f32 0.5, %v900_v23  ;;  %4338 = vrcp.f32 %v6549_v22 }
 0x3fa   :  { %8952 = vst [vmem:[#allocation87_spill] sm:$0xff] %v6881_v35  ;;  %v2462_v62 = vmul.f32 1.442695, %v6668_v25  ;;  %v4323_v13 = vpop.eup %4322  ;;  %v6887_v2 = vmax.f32 %v1897_v47, 1e-15  ;;  %vm2166_vm10 = vcmp.eq.f32.partialorder %v6701_v46, inf  ;;  %v2240_v26 = vsub.f32 %v6872_v30, %v6881_v35 }
 0x3fb   :  { %4340 = vpow2.f32 %v6658_v58  ;;  %v2486_v8 = vmul.f32 1.442695, %v2473_v59  ;;  %v4325_v41 = vpop.eup %4324  ;;  %v1656_v52 = vsub.f32 0.0, %v6861_v42  ;;  %v1885_v17 = vmul.f32 %v4317_v40, %v6331_v19  ;;  %2293 = vrot.lane.b32.xlu1 %v2268_v48, %s4913_s6  ;;  %v6903_v59 = vpop.permute.xlu0 %942 }
 0x3fc   :  { %8953 = vst [vmem:[#allocation88_spill] sm:$0xff] %v6887_v2  ;;  %vm2131_vm11 = vcmp.eq.f32.partialorder %v6383_v31, inf  ;;  %v923_v22 = vmul.f32 %v4323_v13, %v908_v27  ;;  %4342 = vpow2.f32 %v6687_v45  ;;  %v4327_v47 = vpop.eup %4326  ;;  %v6899_v23 = vmul.f32 1.442695, %v6840_v38 }
 0x3fd   :  { %v2248_v35 = vmul.f32 0.5, %v2240_v26  ;;  %4344 = vrsqrt.f32 %v6480_v1  ;;  %v4329_v30 = vpop.eup %4328  ;;  %v6906_v40 = vmul.f32 1.442695, %v6861_v42  ;;  %v1924_v48 = vsub.f32 0.0, %v6875_v51  ;;  %v8968_v42 = vld [vmem:[#allocation33_spill] sm:$0xff] }
 0x3fe   :  { %vm2168_vm12 = vcmp.eq.f32.partialorder %v6701_v46, 0.0  ;;  %v932_v45 = vmul.f32 %v923_v22, %v5342_v61  ;;  %4346 = vpow2.f32 %v2462_v62  ;;  %v6911_v27 = vmul.f32 1.442695, %v1655_v5 }
 0x3ff   :  { %8954 = vst [vmem:[#allocation89_spill] sm:$0xff] %v6906_v40  ;;  %v1929_v26 = vsub.f32 0.0, %v6887_v2  ;;  %vm2133_vm13 = vcmp.eq.f32.partialorder %v6383_v31, 0.0  ;;  %v2262_v13 = vmul.f32 %v4329_v30, %v2248_v35  ;;  %4348 = vpow2.f32 %v2486_v8  ;;  %v6915_v58 = vpop.eup %4330 }
 0x400   :  { %8955 = vst [vmem:[#allocation90_spill] sm:$0xff] %v6915_v58  ;;  %v6917_v36 = vmul.f32 1.442695, %v1656_v52  ;;  %v1887_v16 = vsel %vm1886_vm8, %v6331_v19, %v1885_v17  ;;  %v2165_v3 = vmul.f32 %v4325_v41, %v6701_v46  ;;  %954 = vrot.lane.b32.xlu0 %v932_v45, %s4908_s2  ;;  %4350 = vrcp.f32 %v6594_v34  ;;  %v6925_v5 = vpop.eup %4332  ;;  %v951_v34 = vpop.permute.xlu0 %950 }
 0x401   :  { %8957 = vst [vmem:[#allocation92_spill] sm:$0xff] %v6925_v5  ;;  %v6928_v62 = vmul.f32 1.442695, %v6875_v51  ;;  %v2130_v8 = vmul.f32 %v4327_v47, %v6383_v31  ;;  %v2272_v52 = vmul.f32 %v2262_v13, %v5334_v56  ;;  %4352 = vrcp.f32 %v6668_v25  ;;  %v4335_v30 = vpop.eup %4334 }
 0x402   :  { %8956 = vst [vmem:[#allocation91_spill] sm:$0xff] %v6917_v36  ;;  %v6933_v35 = vmul.f32 1.442695, %v1924_v48  ;;  %v2509_v41 = vsub.f32 %v6915_v58, %v6925_v5  ;;  %4354 = vpow2.f32 %v6419_v11  ;;  %v6939_v22 = vpop.eup %4336  ;;  %v6942_v45 = vmul.f32 1.442695, %v6887_v2 }
 0x403   :  { %v6944_v47 = vmul.f32 1.442695, %v1929_v26  ;;  %v8960_v25 = vand.u32 2147483648, %v6331_v19  ;;  %2301 = vrot.lane.b32.xlu1 %v2272_v52, %s4913_s6  ;;  %4356 = vpow2.f32 %v6440_v53  ;;  %v4339_v13 = vpop.eup %4338  ;;  %v2167_v11 = vsel %vm2166_vm10, %v6701_v46, %v2165_v3  ;;  %v8962_v53 = vld [vmem:[#allocation28_spill] sm:$0xff]  ;;  %v8965_v3 = vld [vmem:[#allocation31_spill] sm:$0xff] }
 0x404   :  { %8958 = vst [vmem:[#allocation93_spill] sm:$0xff] %v6942_v45  ;;  %vm2159_vm14 = vcmp.eq.f32.partialorder %v6438_v21, inf  ;;  %v2517_v17 = vmul.f32 0.5, %v2509_v41  ;;  %4358 = vrsqrt.f32 %v6530_v63  ;;  %v2132_v19 = vsel %vm2131_vm11, %v6383_v31, %v2130_v8  ;;  %v8967_v26 = vld [vmem:[#allocation32_spill] sm:$0xff] }
 0x405   :  { %8959 = vst [vmem:[#allocation94_spill] sm:$0xff] %v6944_v47  ;;  %v1890_v48 = vsel %vm1888_vm9, %v8960_v25, %v1887_v16  ;;  %v6958_v5 = vpop.eup %4340  ;;  %4360 = vrsqrt.f32 %v6577_v54  ;;  %v8963_v16 = vld [vmem:[#allocation29_spill] sm:$0xff]  ;;  %v8964_v25 = vld [vmem:[#allocation30_spill] sm:$0xff]  ;;  %v1143_v47 = vadd.f32 %v8968_v42, %v8967_v26  ;;  %v8969_v8 = vand.u32 2147483648, %v6701_v46 }
 0x406   :  { %8961 = vst [vmem:[#allocation95_spill] sm:$0xff] %v6958_v5  ;;  %v878_v52 = vadd.f32 %v8963_v16, %v8962_v53  ;;  %v882_v58 = vadd.f32 %v8965_v3, %v8964_v25  ;;  %v6968_v2 = vpop.eup %4342  ;;  %v6970_v41 = vmax.f32 %v1890_v48, 1e-15  ;;  %v2527_v45 = vmul.f32 %v4339_v13, %v2517_v17  ;;  %v1208_v13 = vpop.permute.xlu0 %1207 }
 0x407   :  { %8966 = vst [vmem:[#allocation28_spill] sm:$0xff] %v6968_v2  ;;  %4362 = vrcp.f32 %v6373_v28  ;;  %v4345_v40 = vpop.eup %4344  ;;  %v2170_v36 = vsel %vm2168_vm12, %v8969_v8, %v2167_v11  ;;  %v1165_v53 = vsub.f32 %v6958_v5, %v6968_v2  ;;  %v8971_v17 = vand.u32 2147483648, %v6383_v31 }
 0x408   :  { %4364 = vpow2.f32 %v6768_v10  ;;  %v886_v16 = vmul.f32 0.5, %v878_v52  ;;  %v6982_v48 = vpop.eup %4346  ;;  %vm2161_vm15 = vcmp.eq.f32.partialorder %v6438_v21, 0.0  ;;  %v2541_v42 = vmul.f32 %v2527_v45, %v5305_v29 }
 0x409   :  { %8970 = vst [vmem:[#allocation29_spill] sm:$0xff] %v6982_v48  ;;  %v2135_v28 = vsel %vm2133_vm13, %v8971_v17, %v2132_v19  ;;  %4366 = vpow2.f32 %v6749_v33  ;;  %v890_v46 = vmul.f32 0.5, %v882_v58  ;;  %v6991_v11 = vpop.eup %4348  ;;  %v2158_v10 = vmul.f32 %v4335_v30, %v6438_v21  ;;  %v8974_v33 = vld [vmem:[#allocation65_spill] sm:$0xff]  ;;  %v8978_v17 = vld [vmem:[#allocation34_spill] sm:$0xff] }
 0x40a   :  { %8972 = vst [vmem:[#allocation30_spill] sm:$0xff] %v6991_v11  ;;  %vm2404_vm2 = vcmp.eq.f32.partialorder %v6480_v1, inf  ;;  %v1173_v26 = vmul.f32 0.5, %v1165_v53  ;;  %4368 = vpow2.f32 %v6580_v60  ;;  %v966_v19 = vsel %vm67_vm0, %v886_v16, %v6903_v59  ;;  %v4351_v52 = vpop.eup %4350  ;;  %2566 = vrot.lane.b32.xlu1 %v2541_v42, %s4902_s26  ;;  %v8976_v16 = vld [vmem:[#allocation60_spill] sm:$0xff] }
 0x40b   :  { %v2513_v29 = vsub.f32 %v6982_v48, %v6991_v11  ;;  %4370 = vpow2.f32 %v8974_v33  ;;  %975 = vst.msk [vmem:[#allocation8 + $0x40] sm:$0xff] %vm76_vm1, %v966_v19  ;;  %v970_v58 = vsel %vm67_vm0, %v890_v46, %v951_v34  ;;  %v1151_v30 = vmul.f32 0.5, %v1143_v47  ;;  %v4353_v45 = vpop.eup %4352  ;;  %v1216_v19 = vpop.permute.xlu0 %1215  ;;  %v8981_v33 = vld [vmem:[#allocation37_spill] sm:$0xff] }
 0x40c   :  { %v1928_v60 = vsub.f32 0.0, %v6970_v41  ;;  %v7007_v25 = vmax.f32 %v2170_v36, 1e-15  ;;  %v1188_v59 = vmul.f32 %v4351_v52, %v1173_v26  ;;  %4372 = vrcp.f32 %v6689_v0  ;;  %979 = vst.msk [vmem:[#allocation8 + $0x60] sm:$0xff] %vm76_vm1, %v970_v58  ;;  %v7011_v3 = vpop.eup %4354 }
 0x40d   :  { %8975 = vst [vmem:[#allocation31_spill] sm:$0xff] %v7011_v3  ;;  %v7013_v8 = vmax.f32 %v2135_v28, 1e-15  ;;  %v2521_v53 = vmul.f32 0.5, %v2513_v29  ;;  %4374 = vrcp.f32 %v8976_v16  ;;  %v1231_v34 = vsel %vm67_vm0, %v1151_v30, %v1208_v13  ;;  %v7018_v47 = vpop.eup %4356  ;;  %v8979_v28 = vld [vmem:[#allocation35_spill] sm:$0xff] }
 0x40e   :  { %8977 = vst [vmem:[#allocation32_spill] sm:$0xff] %v7018_v47  ;;  %v2160_v36 = vsel %vm2159_vm14, %v6438_v21, %v2158_v10  ;;  %vm2406_vm3 = vcmp.eq.f32.partialorder %v6480_v1, 0.0  ;;  %v1197_v0 = vmul.f32 %v1188_v59, %v5342_v61  ;;  %4376 = vpow2.f32 %v6706_v44  ;;  %1240 = vst.msk [vmem:[#allocation8 + $0x80] sm:$0xff] %vm76_vm1, %v1231_v34  ;;  %v4359_v46 = vpop.eup %4358 }
 0x40f   :  { %v1147_v42 = vadd.f32 %v8979_v28, %v8978_v17  ;;  %v2403_v13 = vmul.f32 %v4345_v40, %v6480_v1  ;;  %vm2432_vm4 = vcmp.eq.f32.partialorder %v6530_v63, inf  ;;  %v2535_v26 = vmul.f32 %v4353_v45, %v2521_v53  ;;  %v7034_v52 = vpop.eup %4360  ;;  %v8980_v40 = vld [vmem:[#allocation36_spill] sm:$0xff] }
 0x410   :  { %v896_v10 = vsub.f32 %v7011_v3, %v7018_v47  ;;  %4378 = vpow2.f32 %v6717_v6  ;;  %v7037_v44 = vmul.f32 1.442695, %v6970_v41  ;;  %1219 = vrot.lane.b32.xlu0 %v1197_v0, %s4909_s28  ;;  %v1408_v58 = vadd.f32 %v8981_v33, %v8980_v40  ;;  %v8983_v33 = vld [vmem:[#allocation17_spill] sm:$0xff] }
 0x411   :  { %4380 = vrsqrt.f32 %v6625_v50  ;;  %v1155_v29 = vmul.f32 0.5, %v1147_v42  ;;  %v4363_v30 = vpop.eup %4362  ;;  %v7043_v45 = vmul.f32 1.442695, %v1928_v60  ;;  %v2545_v59 = vmul.f32 %v2535_v26, %v5334_v56 }
 0x412   :  { %v904_v6 = vmul.f32 0.5, %v896_v10  ;;  %v7047_v16 = vpop.eup %4364  ;;  %v8982_v0 = vand.u32 2147483648, %v6438_v21  ;;  %vm2434_vm5 = vcmp.eq.f32.partialorder %v6530_v63, 0.0  ;;  %v2197_v42 = vsub.f32 0.0, %v7013_v8 }
 0x413   :  { %v1235_v60 = vsel %vm67_vm0, %v1155_v29, %v1216_v19  ;;  %v7058_v56 = vpop.eup %4366  ;;  %v2405_v26 = vsel %vm2404_vm2, %v6480_v1, %v2403_v13  ;;  %2574 = vrot.lane.b32.xlu1 %v2545_v59, %s4902_s26  ;;  %4382 = vrcp.f32 %v6634_v49  ;;  %v1416_v29 = vmul.f32 0.5, %v1408_v58  ;;  %v1473_v49 = vpop.permute.xlu0 %1472  ;;  %v8984_v59 = vld [vmem:[#allocation38_spill] sm:$0xff] }
 0x414   :  { %v2163_v17 = vsel %vm2161_vm15, %v8982_v0, %v2160_v36  ;;  %v915_v10 = vmul.f32 %v4363_v30, %v904_v6  ;;  %1244 = vst.msk [vmem:[#allocation8 + $0xa0] sm:$0xff] %vm76_vm1, %v1235_v60  ;;  %v7067_v21 = vpop.eup %4368  ;;  %v2431_v36 = vmul.f32 %v4359_v46, %v6530_v63  ;;  %v1430_v19 = vsub.f32 %v7058_v56, %v7047_v16  ;;  %v8985_v6 = vld [vmem:[#allocation39_spill] sm:$0xff] }
 0x415   :  { %4384 = vpow2.f32 %v6899_v23  ;;  %v7073_v40 = vpop.eup %4370  ;;  %v7075_v13 = vmax.f32 %v2163_v17, 1e-15  ;;  %v879_v0 = vadd.f32 %v8985_v6, %v8984_v59  ;;  %vm797_vm6 = vcmp.eq.f32.partialorder %v6577_v54, inf }
 0x416   :  { %v928_v30 = vmul.f32 %v915_v10, %v8983_v33  ;;  %4386 = vpow2.f32 %v6911_v27  ;;  %v4373_v60 = vpop.eup %4372  ;;  %v1438_v46 = vmul.f32 0.5, %v1430_v19  ;;  %v1161_v23 = vsub.f32 %v7067_v21, %v7073_v40 }
 0x417   :  { %4388 = vrsqrt.f32 %v6675_v12  ;;  %v1496_v58 = vsel %vm67_vm0, %v1416_v29, %v1473_v49  ;;  %v4375_v17 = vpop.eup %4374  ;;  %v7088_v10 = vmul.f32 1.442695, %v7013_v8  ;;  %v7090_v27 = vmul.f32 1.442695, %v2197_v42 }
 0x418   :  { %v8986_v59 = vand.u32 2147483648, %v6480_v1  ;;  %946 = vrot.lane.b32.xlu1 %v928_v30, %s4908_s2  ;;  %4390 = vpow2.f32 %v6801_v55  ;;  %1505 = vst.msk [vmem:[#allocation8 + $0xc0] sm:$0xff] %vm76_vm1, %v1496_v58  ;;  %v7099_v19 = vpop.eup %4376  ;;  %v2433_v29 = vsel %vm2432_vm4, %v6530_v63, %v2431_v36  ;;  %vm1062_vm7 = vcmp.eq.f32.partialorder %v6625_v50, inf }
 0x419   :  { %v1453_v42 = vmul.f32 %v4373_v60, %v1438_v46  ;;  %v1169_v49 = vmul.f32 0.5, %v1161_v23  ;;  %4392 = vpow2.f32 %v6848_v7  ;;  %v887_v30 = vmul.f32 0.5, %v879_v0  ;;  %v945_v46 = vpop.permute.xlu1 %944 }
 0x41a   :  { %v2408_v6 = vsel %vm2406_vm3, %v8986_v59, %v2405_v26  ;;  %v7106_v1 = vpop.eup %4378  ;;  %v2201_v26 = vsub.f32 0.0, %v7075_v13  ;;  %4394 = vrcp.f32 %v6840_v38  ;;  %vm799_vm8 = vcmp.eq.f32.partialorder %v6577_v54, 0.0 }
 0x41b   :  { %v4381_v58 = vpop.eup %4380  ;;  %v7111_v59 = vmax.f32 %v2408_v6, 1e-15  ;;  %v1462_v36 = vmul.f32 %v1453_v42, %v5342_v61  ;;  %v1180_v60 = vmul.f32 %v4375_v17, %v1169_v49  ;;  %v1426_v7 = vsub.f32 %v7099_v19, %v7106_v1 }
 0x41c   :  { %v8987_v23 = vand.u32 2147483648, %v6530_v63  ;;  %v796_v38 = vmul.f32 %v7034_v52, %v6577_v54  ;;  %vm1064_vm9 = vcmp.eq.f32.partialorder %v6625_v50, 0.0  ;;  %4396 = vrcp.f32 %v6772_v43  ;;  %v8988_v63 = vld [vmem:[#allocation40_spill] sm:$0xff] }
 0x41d   :  { %v967_v0 = vsel %vm67_vm0, %v887_v30, %v945_v46  ;;  %1484 = vrot.lane.b32.xlu0 %v1462_v36, %s4910_s29  ;;  %v1193_v17 = vmul.f32 %v1180_v60, %v8983_v33  ;;  %v1434_v6 = vmul.f32 0.5, %v1426_v7  ;;  %4398 = vpow2.f32 %v6928_v62  ;;  %v4383_v52 = vpop.eup %4382  ;;  %v8993_v46 = vld [vmem:[#allocation45_spill] sm:$0xff] }
 0x41e   :  { %v2436_v34 = vsel %vm2434_vm5, %v8987_v23, %v2433_v29  ;;  %976 = vst.msk [vmem:[#allocation8 + $0x48] sm:$0xff] %vm76_vm1, %v967_v0  ;;  %v8989_v29 = vld [vmem:[#allocation41_spill] sm:$0xff]  ;;  %v7134_v49 = vmul.f32 1.442695, %v7075_v13  ;;  %v7138_v43 = vmul.f32 %v6939_v22, %v6855_v32  ;;  %v1061_v30 = vmul.f32 %v4381_v58, %v6625_v50  ;;  %v8991_v58 = vld [vmem:[#allocation43_spill] sm:$0xff] }
 0x41f   :  { %v1412_v42 = vadd.f32 %v8989_v29, %v8988_v63  ;;  %4400 = vpow2.f32 %v6933_v35  ;;  %v7142_v36 = vpop.eup %4384  ;;  %v7144_v62 = vmul.f32 1.442695, %v2201_v26  ;;  %v7146_v60 = vmax.f32 %v2436_v34, 1e-15  ;;  %1211 = vrot.lane.b32.xlu1 %v1193_v17, %s4909_s28  ;;  %v8990_v26 = vld [vmem:[#allocation42_spill] sm:$0xff] }
 0x420   :  { %v1445_v7 = vmul.f32 %v4383_v52, %v1434_v6  ;;  %v7150_v23 = vpop.eup %4386  ;;  %v798_v22 = vsel %vm797_vm6, %v6577_v54, %v796_v38  ;;  %4402 = vrsqrt.f32 %v6729_v39  ;;  %v7157_v35 = vmul.f32 1.442695, %v7111_v59 }
 0x421   :  { %v883_v34 = vadd.f32 %v8991_v58, %v8990_v26  ;;  %v4389_v0 = vpop.eup %4388  ;;  %vm1327_vm10 = vcmp.eq.f32.partialorder %v6675_v12, inf  ;;  %v1695_v6 = vsub.f32 %v7142_v36, %v7150_v23  ;;  %4404 = vrcp.f32 %v6875_v51  ;;  %v1481_v26 = vpop.permute.xlu0 %1480  ;;  %v8992_v58 = vld [vmem:[#allocation44_spill] sm:$0xff] }
 0x422   :  { %v1458_v17 = vmul.f32 %v1445_v7, %v8983_v33  ;;  %v1420_v63 = vmul.f32 0.5, %v1412_v42  ;;  %v7166_v38 = vpop.eup %4390  ;;  %v1063_v29 = vsel %vm1062_vm7, %v6625_v50, %v1061_v30  ;;  %4406 = vpow2.f32 %v7037_v44 }
 0x423   :  { %v2470_v52 = vsub.f32 0.0, %v7111_v59  ;;  %v1673_v7 = vadd.f32 %v8993_v46, %v8992_v58  ;;  %v7175_v55 = vpop.eup %4392  ;;  %v1703_v51 = vmul.f32 0.5, %v1695_v6  ;;  %4408 = vpow2.f32 %v7043_v45 }
 0x424   :  { %1476 = vrot.lane.b32.xlu1 %v1458_v17, %s4910_s29  ;;  %v2474_v42 = vsub.f32 0.0, %v7146_v60  ;;  %v1500_v30 = vsel %vm67_vm0, %v1420_v63, %v1481_v26  ;;  %v4395_v28 = vpop.eup %4394  ;;  %v8994_v44 = vand.u32 2147483648, %v6577_v54  ;;  %vm1329_vm11 = vcmp.eq.f32.partialorder %v6675_v12, 0.0  ;;  %v953_v54 = vpop.permute.xlu1 %952 }
 0x425   :  { %v1691_v46 = vsub.f32 %v7166_v38, %v7175_v55  ;;  %4410 = vrsqrt.f32 %v6784_v20  ;;  %1509 = vst.msk [vmem:[#allocation8 + $0xe0] sm:$0xff] %vm76_vm1, %v1500_v30  ;;  %v891_v45 = vmul.f32 0.5, %v883_v34  ;;  %v8995_v17 = vand.u32 2147483648, %v6625_v50 }
 0x426   :  { %v801_v53 = vsel %vm799_vm8, %v8994_v44, %v798_v22  ;;  %v1326_v63 = vmul.f32 %v4389_v0, %v6675_v12  ;;  %v1718_v26 = vmul.f32 %v4395_v28, %v1703_v51  ;;  %4412 = vrcp.f32 %v6970_v41  ;;  %v4397_v22 = vpop.eup %4396 }
 0x427   :  { %v1066_v6 = vsel %vm1064_vm9, %v8995_v17, %v1063_v29  ;;  %v1699_v58 = vmul.f32 0.5, %v1691_v46  ;;  %4414 = vpow2.f32 %v7088_v10  ;;  %v971_v44 = vsel %vm67_vm0, %v891_v45, %v953_v54  ;;  %v7200_v34 = vpop.eup %4398  ;;  %v8996_v29 = vld [vmem:[#allocation46_spill] sm:$0xff] }
 0x428   :  { %v1681_v30 = vmul.f32 0.5, %v1673_v7  ;;  %v7202_v47 = vmax.f32 %v801_v53, 1e-15  ;;  %v1727_v50 = vmul.f32 %v1718_v26, %v5342_v61  ;;  %4416 = vpow2.f32 %v7090_v27  ;;  %980 = vst.msk [vmem:[#allocation8 + $0x68] sm:$0xff] %vm76_vm1, %v971_v44  ;;  %v8997_v7 = vld [vmem:[#allocation47_spill] sm:$0xff]  ;;  %v1746_v26 = vpop.permute.xlu0 %1745  ;;  %v8999_v44 = vld [vmem:[#allocation49_spill] sm:$0xff] }
 0x429   :  { %v2480_v28 = vmul.f32 1.442695, %v2470_v52  ;;  %v7207_v41 = vpop.eup %4400  ;;  %v7209_v0 = vmax.f32 %v1066_v6, 1e-15  ;;  %vm1592_vm12 = vcmp.eq.f32.partialorder %v6729_v39, inf  ;;  %v1710_v10 = vmul.f32 %v4397_v22, %v1699_v58 }
 0x42a   :  { %4418 = vrsqrt.f32 %v6827_v57  ;;  %v1144_v53 = vadd.f32 %v8997_v7, %v8996_v29  ;;  %1757 = vrot.lane.b32.xlu0 %v1727_v50, %s4911_s30  ;;  %v1964_v27 = vsub.f32 %v7200_v34, %v7207_v41  ;;  %v2464_v52 = vmul.f32 1.442695, %v7146_v60  ;;  %v4403_v46 = vpop.eup %4402 }
 0x42b   :  { %4420 = vpow2.f32 %v7134_v49  ;;  %v2488_v51 = vmul.f32 1.442695, %v2474_v42  ;;  %v1328_v45 = vsel %vm1327_vm10, %v6675_v12, %v1326_v63  ;;  %v1723_v17 = vmul.f32 %v1710_v10, %v8983_v33  ;;  %v4405_v54 = vpop.eup %4404  ;;  %v8998_v49 = vld [vmem:[#allocation48_spill] sm:$0xff] }
 0x42c   :  { %4422 = vpow2.f32 %v7144_v62  ;;  %v1729_v6 = vmul.f32 -1.0, %v1681_v30  ;;  %v857_v22 = vsub.f32 0.0, %v7202_v47  ;;  %v1972_v58 = vmul.f32 0.5, %v1964_v27  ;;  %v7229_v50 = vpop.eup %4406 }
 0x42d   :  { %4424 = vrcp.f32 %v7013_v8  ;;  %v1677_v42 = vadd.f32 %v8999_v44, %v8998_v49  ;;  %v1122_v29 = vsub.f32 0.0, %v7209_v0  ;;  %vm1594_vm13 = vcmp.eq.f32.partialorder %v6729_v39, 0.0  ;;  %1749 = vrot.lane.b32.xlu1 %v1723_v17, %s4911_s30  ;;  %v7237_v30 = vpop.eup %4408  ;;  %v1210_v17 = vpop.permute.xlu1 %1209 }
 0x42e   :  { %4426 = vrcp.f32 %v7075_v13  ;;  %v1769_v62 = vsel %vm67_vm0, %v1729_v6, %v1746_v26  ;;  %v1152_v63 = vmul.f32 0.5, %v1144_v53  ;;  %v9000_v8 = vand.u32 2147483648, %v6675_v12  ;;  %v9004_v53 = vld [vmem:[#allocation53_spill] sm:$0xff] }
 0x42f   :  { %v1591_v7 = vmul.f32 %v4403_v46, %v6729_v39  ;;  %v1983_v27 = vmul.f32 %v4405_v54, %v1972_v58  ;;  %4428 = vpow2.f32 %v7157_v35  ;;  %1778 = vst.msk [vmem:[#allocation8 + $0x100] sm:$0xff] %vm76_vm1, %v1769_v62  ;;  %v4411_v13 = vpop.eup %4410  ;;  %vm1865_vm14 = vcmp.eq.f32.partialorder %v6784_v20, inf }
 0x430   :  { %v1331_v10 = vsel %vm1329_vm11, %v9000_v8, %v1328_v45  ;;  %v1968_v6 = vsub.f32 %v7229_v50, %v7237_v30  ;;  %4430 = vpow2.f32 %v2480_v28  ;;  %v1232_v12 = vsel %vm67_vm0, %v1152_v63, %v1210_v17  ;;  %v4413_v45 = vpop.eup %4412 }
 0x431   :  { %v844_v46 = vmul.f32 1.442695, %v7202_v47  ;;  %v1996_v35 = vmul.f32 %v1983_v27, %v8983_v33  ;;  %4432 = vrsqrt.f32 %v6879_v4  ;;  %1241 = vst.msk [vmem:[#allocation8 + $0x88] sm:$0xff] %vm76_vm1, %v1232_v12  ;;  %v1685_v26 = vmul.f32 0.5, %v1677_v42  ;;  %v7256_v54 = vpop.eup %4414  ;;  %v9002_v27 = vld [vmem:[#allocation51_spill] sm:$0xff]  ;;  %v9003_v12 = vld [vmem:[#allocation52_spill] sm:$0xff] }
 0x432   :  { %v868_v58 = vmul.f32 1.442695, %v857_v22  ;;  %v7258_v49 = vmax.f32 %v1331_v10, 1e-15  ;;  %v1976_v44 = vmul.f32 0.5, %v1968_v6  ;;  %4434 = vpow2.f32 %v2464_v52  ;;  %v7260_v28 = vpop.eup %4416  ;;  %v9001_v52 = vld [vmem:[#allocation50_spill] sm:$0xff] }
 0x433   :  { %v1109_v62 = vmul.f32 1.442695, %v7209_v0  ;;  %v1133_v63 = vmul.f32 1.442695, %v1122_v29  ;;  %v1593_v8 = vsel %vm1592_vm12, %v6729_v39, %v1591_v7  ;;  %vm1867_vm15 = vcmp.eq.f32.partialorder %v6784_v20, 0.0  ;;  %2022 = vrot.lane.b32.xlu1 %v1996_v35, %s4912_s5 }
 0x434   :  { %4436 = vpow2.f32 %v2488_v51  ;;  %v4419_v42 = vpop.eup %4418  ;;  %v1991_v22 = vmul.f32 %v4413_v45, %v1976_v44  ;;  %v2237_v10 = vsub.f32 %v7256_v54, %v7260_v28  ;;  %v1148_v17 = vadd.f32 %v9002_v27, %v9001_v52  ;;  %v1218_v27 = vpop.permute.xlu1 %1217 }
 0x435   :  { %4438 = vrcp.f32 %v7111_v59  ;;  %v7273_v29 = vpop.eup %4420  ;;  %v1864_v6 = vmul.f32 %v4411_v13, %v6784_v20  ;;  %v1733_v7 = vmul.f32 -1.0, %v1685_v26  ;;  %v1946_v35 = vadd.f32 %v9004_v53, %v9003_v12  ;;  %v1754_v59 = vpop.permute.xlu0 %1753 }
 0x436   :  { %4440 = vpow2.f32 %v844_v46  ;;  %v7278_v51 = vpop.eup %4422  ;;  %v1387_v45 = vsub.f32 0.0, %v7258_v49  ;;  %v2000_v44 = vmul.f32 %v1991_v22, %v5342_v61  ;;  %v2245_v3 = vmul.f32 0.5, %v2237_v10 }
 0x437   :  { %4442 = vpow2.f32 %v868_v58  ;;  %v4425_v2 = vpop.eup %4424  ;;  %v9005_v52 = vand.u32 2147483648, %v6729_v39  ;;  %v2241_v46 = vsub.f32 %v7273_v29, %v7278_v51  ;;  %v1773_v53 = vsel %vm67_vm0, %v1733_v7, %v1754_v59 }
 0x438   :  { %4444 = vrcp.f32 %v7146_v60  ;;  %v4427_v26 = vpop.eup %4426  ;;  %v1374_v22 = vmul.f32 1.442695, %v7258_v49  ;;  %vm2138_vm2 = vcmp.eq.f32.partialorder %v6827_v57, inf  ;;  %2030 = vrot.lane.b32.xlu0 %v2000_v44, %s4912_s5  ;;  %v2256_v58 = vmul.f32 %v4425_v2, %v2245_v3  ;;  %1782 = vst.msk [vmem:[#allocation8 + $0x120] sm:$0xff] %vm76_vm1, %v1773_v53 }
 0x439   :  { %v1596_v13 = vsel %vm1594_vm13, %v9005_v52, %v1593_v8  ;;  %4446 = vpow2.f32 %v6709_v9  ;;  %v1156_v39 = vmul.f32 0.5, %v1148_v17  ;;  %v7296_v8 = vpop.eup %4428  ;;  %v1866_v60 = vsel %vm1865_vm14, %v6784_v20, %v1864_v6 }
 0x43a   :  { %v2249_v10 = vmul.f32 0.5, %v2241_v46  ;;  %4448 = vpow2.f32 %v6719_v18  ;;  %v1954_v7 = vmul.f32 0.5, %v1946_v35  ;;  %v7302_v12 = vpop.eup %4430  ;;  %v7304_v44 = vmax.f32 %v1596_v13, 1e-15  ;;  %v9008_v13 = vld [vmem:[#allocation55_spill] sm:$0xff] }
 0x43b   :  { %v2269_v9 = vmul.f32 %v2256_v58, %v8983_v33  ;;  %4450 = vrcp.f32 %v7202_v47  ;;  %v1236_v2 = vsel %vm67_vm0, %v1156_v39, %v1218_v27  ;;  %v4433_v3 = vpop.eup %4432  ;;  %v1398_v17 = vmul.f32 1.442695, %v1387_v45  ;;  %v9007_v45 = vld [vmem:[#allocation54_spill] sm:$0xff]  ;;  %v9011_v27 = vld [vmem:[#allocation56_spill] sm:$0xff] }
 0x43c   :  { %vm2140_vm3 = vcmp.eq.f32.partialorder %v6827_v57, 0.0  ;;  %v2264_v6 = vmul.f32 %v4427_v26, %v2249_v10  ;;  %v2510_v18 = vsub.f32 %v7296_v8, %v7302_v12  ;;  %4452 = vpow2.f32 %v1109_v62  ;;  %1245 = vst.msk [vmem:[#allocation8 + $0xa8] sm:$0xff] %vm76_vm1, %v1236_v2  ;;  %v7314_v35 = vpop.eup %4434  ;;  %v9009_v58 = vld [vmem:[#allocation70_spill] sm:$0xff] }
 0x43d   :  { %v9006_v59 = vand.u32 2147483648, %v6784_v20  ;;  %v2137_v52 = vmul.f32 %v4419_v42, %v6827_v57  ;;  %2295 = vrot.lane.b32.xlu1 %v2269_v9, %s4913_s6  ;;  %4454 = vpow2.f32 %v1133_v63  ;;  %v1409_v46 = vadd.f32 %v9008_v13, %v9007_v45  ;;  %v2019_v63 = vpop.permute.xlu0 %2018  ;;  %v9012_v9 = vld [vmem:[#allocation57_spill] sm:$0xff] }
 0x43e   :  { %v7324_v53 = vpop.eup %4436  ;;  %v2273_v62 = vmul.f32 %v2264_v6, %v5342_v61  ;;  %v2518_v26 = vmul.f32 0.5, %v2510_v18  ;;  %4456 = vrcp.f32 %v9009_v58  ;;  %v2002_v39 = vmul.f32 -1.0, %v1954_v7 }
 0x43f   :  { %v1869_v47 = vsel %vm1867_vm15, %v9006_v59, %v1866_v60  ;;  %v4439_v10 = vpop.eup %4438  ;;  %v1652_v20 = vsub.f32 0.0, %v7304_v44  ;;  %v2514_v42 = vsub.f32 %v7314_v35, %v7324_v53  ;;  %v9010_v60 = vld [vmem:[#allocation78_spill] sm:$0xff]  ;;  %v1950_v2 = vadd.f32 %v9012_v9, %v9011_v27  ;;  %v9013_v9 = vld [vmem:[#allocation73_spill] sm:$0xff] }
 0x440   :  { %4458 = vpow2.f32 %v9010_v60  ;;  %v7334_v59 = vpop.eup %4440  ;;  %v7336_v45 = vmax.f32 %v1869_v47, 1e-15  ;;  %2303 = vrot.lane.b32.xlu0 %v2273_v62, %s4913_s6  ;;  %v2529_v6 = vmul.f32 %v4439_v10, %v2518_v26  ;;  %v2042_v7 = vsel %vm67_vm0, %v2002_v39, %v2019_v63  ;;  %v1475_v39 = vpop.permute.xlu1 %1474 }
 0x441   :  { %4460 = vpow2.f32 %v6770_v37  ;;  %v7342_v18 = vpop.eup %4442  ;;  %v1639_v13 = vmul.f32 1.442695, %v7304_v44  ;;  %vm2411_vm4 = vcmp.eq.f32.partialorder %v6879_v4, inf  ;;  %v2522_v58 = vmul.f32 0.5, %v2514_v42  ;;  %2051 = vst.msk [vmem:[#allocation8 + $0x140] sm:$0xff] %vm76_vm1, %v2042_v7 }
 0x442   :  { %4462 = vrcp.f32 %v7209_v0  ;;  %v1417_v47 = vmul.f32 0.5, %v1409_v46  ;;  %v4445_v60 = vpop.eup %4444  ;;  %v2139_v37 = vsel %vm2138_vm2, %v6827_v57, %v2137_v52  ;;  %v2542_v62 = vmul.f32 %v2529_v6, %v8983_v33 }
 0x443   :  { %v897_v26 = vsub.f32 %v7334_v59, %v7342_v18  ;;  %4464 = vpow2.f32 %v1374_v22  ;;  %v7354_v10 = vpop.eup %4446  ;;  %v2537_v42 = vmul.f32 %v4445_v60, %v2522_v58  ;;  %v1958_v46 = vmul.f32 0.5, %v1950_v2  ;;  %v9015_v60 = vld [vmem:[#allocation58_spill] sm:$0xff] }
 0x444   :  { %4466 = vpow2.f32 %v1398_v17  ;;  %v1497_v0 = vsel %vm67_vm0, %v1417_v47, %v1475_v39  ;;  %v7358_v63 = vpop.eup %4448  ;;  %v1663_v27 = vmul.f32 1.442695, %v1652_v20  ;;  %v1925_v52 = vsub.f32 0.0, %v7336_v45  ;;  %2568 = vrot.lane.b32.xlu1 %v2542_v62, %s4902_s26  ;;  %v9016_v62 = vld [vmem:[#allocation59_spill] sm:$0xff] }
 0x445   :  { %v905_v33 = vmul.f32 0.5, %v897_v26  ;;  %4468 = vrcp.f32 %v9013_v9  ;;  %1506 = vst.msk [vmem:[#allocation8 + $0xc8] sm:$0xff] %vm76_vm1, %v1497_v0  ;;  %v4451_v22 = vpop.eup %4450  ;;  %vm2439_vm5 = vcmp.eq.f32.partialorder %v6855_v32, inf  ;;  %v9014_v17 = vand.u32 2147483648, %v6827_v57 }
 0x446   :  { %v2546_v6 = vmul.f32 %v2537_v42, %v5342_v61  ;;  %v901_v20 = vsub.f32 %v7354_v10, %v7358_v63  ;;  %4470 = vpow2.f32 %v6838_v24  ;;  %v7373_v7 = vpop.eup %4452  ;;  %v2410_v58 = vmul.f32 %v4433_v3, %v6879_v4  ;;  %v9018_v24 = vld [vmem:[#allocation62_spill] sm:$0xff] }
 0x447   :  { %v2142_v2 = vsel %vm2140_vm3, %v9014_v17, %v2139_v37  ;;  %v917_v47 = vmul.f32 %v4451_v22, %v905_v33  ;;  %4472 = vpow2.f32 %v6859_v14  ;;  %v1413_v26 = vadd.f32 %v9016_v62, %v9015_v60  ;;  %v7379_v39 = vpop.eup %4454  ;;  %v9017_v37 = vld [vmem:[#allocation61_spill] sm:$0xff]  ;;  %v2027_v22 = vpop.permute.xlu0 %2026 }
 0x448   :  { %2576 = vrot.lane.b32.xlu0 %v2546_v6, %s4902_s26  ;;  %v909_v61 = vmul.f32 0.5, %v901_v20  ;;  %4474 = vrcp.f32 %v7258_v49  ;;  %v2006_v57 = vmul.f32 -1.0, %v1958_v46  ;;  %v2219_v42 = vadd.f32 %v9018_v24, %v9017_v37  ;;  %v4457_v0 = vpop.eup %4456  ;;  %v9019_v33 = vld [vmem:[#allocation21_spill] sm:$0xff]  ;;  %v9021_v37 = vld [vmem:[#allocation64_spill] sm:$0xff] }
 0x449   :  { %v2414_v3 = vand.u32 2147483648, %v6879_v4  ;;  %v929_v9 = vmul.f32 %v917_v47, %v9019_v33  ;;  %v1162_v14 = vsub.f32 %v7373_v7, %v7379_v39  ;;  %4476 = vpow2.f32 %v1639_v13 }
 0x44a   :  { %v7389_v17 = vpop.eup %4458  ;;  %vm2441_vm6 = vcmp.eq.f32.partialorder %v6855_v32, 0.0  ;;  %v1936_v6 = vmul.f32 1.442695, %v1925_v52  ;;  %v925_v49 = vmul.f32 %v4457_v0, %v909_v61  ;;  %4478 = vpow2.f32 %v1663_v27  ;;  %v1483_v61 = vpop.permute.xlu1 %1482 }
 0x44b   :  { %v2046_v46 = vsel %vm67_vm0, %v2006_v57, %v2027_v22  ;;  %v7394_v20 = vpop.eup %4460  ;;  %v7396_v60 = vmax.f32 %v2142_v2, 1e-15  ;;  %v2412_v47 = vsel %vm2411_vm4, %v6879_v4, %v2410_v58  ;;  %948 = vrot.lane.b32.xlu1 %v929_v9, %s4908_s2  ;;  %v1170_v13 = vmul.f32 0.5, %v1162_v14  ;;  %v9020_v2 = vld [vmem:[#allocation63_spill] sm:$0xff]  ;;  %v9022_v58 = vld [vmem:[#allocation25_spill] sm:$0xff] }
 0x44c   :  { %2055 = vst.msk [vmem:[#allocation8 + $0x160] sm:$0xff] %vm76_vm1, %v2046_v46  ;;  %v1421_v62 = vmul.f32 0.5, %v1413_v26  ;;  %v4463_v52 = vpop.eup %4462  ;;  %v1166_v27 = vsub.f32 %v7389_v17, %v7394_v20  ;;  %4480 = vrcp.f32 %v6786_v15  ;;  %v2227_v57 = vmul.f32 0.5, %v2219_v42  ;;  %v9023_v14 = vld [vmem:[#allocation91_spill] sm:$0xff]  ;;  %v9024_v42 = vld [vmem:[#allocation89_spill] sm:$0xff] }
 0x44d   :  { %v1674_v24 = vadd.f32 %v9021_v37, %v9020_v2  ;;  %v7408_v0 = vpop.eup %4464  ;;  %v933_v22 = vmul.f32 %v925_v49, %v9022_v58  ;;  %v1182_v9 = vmul.f32 %v4463_v52, %v1170_v13  ;;  %4482 = vpow2.f32 %v9023_v14  ;;  %v9026_v37 = vld [vmem:[#allocation66_spill] sm:$0xff]  ;;  %v9027_v14 = vld [vmem:[#allocation67_spill] sm:$0xff] }
 0x44e   :  { %v1501_v26 = vsel %vm67_vm0, %v1421_v62, %v1483_v61  ;;  %v7414_v46 = vpop.eup %4466  ;;  %v1912_v5 = vmul.f32 1.442695, %v7336_v45  ;;  %vm2413_vm7 = vcmp.eq.f32.partialorder %v6879_v4, 0.0  ;;  %v1174_v15 = vmul.f32 0.5, %v1166_v27 }
 0x44f   :  { %4484 = vpow2.f32 %v9024_v42  ;;  %1510 = vst.msk [vmem:[#allocation8 + $0xe8] sm:$0xff] %vm76_vm1, %v1501_v26  ;;  %v4469_v2 = vpop.eup %4468  ;;  %v2440_v49 = vsel %vm2439_vm5, %v6855_v32, %v7138_v43  ;;  %v2198_v13 = vsub.f32 0.0, %v7396_v60  ;;  %v2415_v62 = vsel %vm2413_vm7, %v2414_v3, %v2412_v47  ;;  %956 = vrot.lane.b32.xlu1 %v933_v22, %s4908_s2  ;;  %v2292_v3 = vpop.permute.xlu0 %2291 }
 0x450   :  { %v1427_v52 = vsub.f32 %v7408_v0, %v7414_v46  ;;  %v7428_v4 = vpop.eup %4470  ;;  %4486 = vpow2.f32 %v1936_v6  ;;  %v2275_v27 = vmul.f32 -1.0, %v2227_v57  ;;  %v1682_v61 = vmul.f32 0.5, %v1674_v24  ;;  %v9029_v57 = vld [vmem:[#allocation68_spill] sm:$0xff]  ;;  %v9030_v24 = vld [vmem:[#allocation69_spill] sm:$0xff] }
 0x451   :  { %9025 = vst [vmem:[#allocation33_spill] sm:$0xff] %v7428_v4  ;;  %v2223_v26 = vadd.f32 %v9027_v14, %v9026_v37  ;;  %v7432_v42 = vpop.eup %4472  ;;  %v1194_v43 = vmul.f32 %v1182_v9, %v9019_v33  ;;  %v1190_v11 = vmul.f32 %v4469_v2, %v1174_v15  ;;  %4488 = vrcp.f32 %v7304_v44 }
 0x452   :  { %9028 = vst [vmem:[#allocation65_spill] sm:$0xff] %v7432_v42  ;;  %v1435_v48 = vmul.f32 0.5, %v1427_v52  ;;  %v4475_v47 = vpop.eup %4474  ;;  %v1431_v22 = vsub.f32 %v7428_v4, %v7432_v42  ;;  %4490 = vpow2.f32 %v1912_v5  ;;  %v2315_v6 = vsel %vm67_vm0, %v2275_v27, %v2292_v3  ;;  %v9033_v3 = vld [vmem:[#allocation94_spill] sm:$0xff]  ;;  %v9036_v4 = vld [vmem:[#allocation93_spill] sm:$0xff] }
 0x453   :  { %v1678_v37 = vadd.f32 %v9030_v24, %v9029_v57  ;;  %v7442_v14 = vpop.eup %4476  ;;  %v9031_v9 = vand.u32 2147483648, %v6855_v32  ;;  %v2185_v44 = vmul.f32 1.442695, %v7396_v60  ;;  %v2209_v2 = vmul.f32 1.442695, %v2198_v13  ;;  %1213 = vrot.lane.b32.xlu1 %v1194_v43, %s4909_s28  ;;  %2324 = vst.msk [vmem:[#allocation8 + $0x180] sm:$0xff] %vm76_vm1, %v2315_v6 }
 0x454   :  { %v7449_v52 = vmax.f32 %v2415_v62, 1e-15  ;;  %v7453_v5 = vpop.eup %4478  ;;  %v1439_v27 = vmul.f32 0.5, %v1431_v22  ;;  %4492 = vpow2.f32 %v9033_v3  ;;  %v1730_v57 = vmul.f32 -1.0, %v1682_v61  ;;  %v9034_v13 = vld [vmem:[#allocation85_spill] sm:$0xff]  ;;  %v1748_v62 = vpop.permute.xlu1 %1747  ;;  %v9035_v43 = vld [vmem:[#allocation27_spill] sm:$0xff] }
 0x455   :  { %v2443_v15 = vsel %vm2441_vm6, %v9031_v9, %v2440_v49  ;;  %9032 = vst [vmem:[#allocation60_spill] sm:$0xff] %v7453_v5  ;;  %v2231_v24 = vmul.f32 0.5, %v2223_v26  ;;  %v1198_v42 = vmul.f32 %v1190_v11, %v9022_v58  ;;  %v1447_v32 = vmul.f32 %v4475_v47, %v1435_v48 }
 0x456   :  { %v1692_v49 = vsub.f32 %v7442_v14, %v7453_v5  ;;  %4494 = vrcp.f32 %v9034_v13  ;;  %v4481_v9 = vpop.eup %4480  ;;  %v7462_v6 = vmul.f32 %v9035_v43, %v9035_v43  ;;  %v1770_v61 = vsel %vm67_vm0, %v1730_v57, %v1748_v62 }
 0x457   :  { %4496 = vpow2.f32 %v9036_v4  ;;  %v1686_v26 = vmul.f32 0.5, %v1678_v37  ;;  %v7467_v22 = vpop.eup %4482  ;;  %v2193_v48 = vmul.f32 1.442695, %v7007_v25  ;;  %v9037_v11 = vsub.f32 0.0, %v7007_v25  ;;  %1221 = vrot.lane.b32.xlu1 %v1198_v42, %s4909_s28  ;;  %1779 = vst.msk [vmem:[#allocation8 + $0x108] sm:$0xff] %vm76_vm1, %v1770_v61 }
 0x458   :  { %v7472_v3 = vmax.f32 %v2443_v15, 1e-15  ;;  %4498 = vpow2.f32 %v2209_v2  ;;  %v1455_v4 = vmul.f32 %v4481_v9, %v1439_v27  ;;  %v1700_v43 = vmul.f32 0.5, %v1692_v49  ;;  %v2300_v2 = vpop.permute.xlu0 %2299  ;;  %v9038_v49 = vld [vmem:[#allocation71_spill] sm:$0xff] }
 0x459   :  { %v2217_v47 = vmul.f32 1.442695, %v9037_v11  ;;  %v7476_v13 = vpop.eup %4484  ;;  %v2279_v57 = vmul.f32 -1.0, %v2231_v24  ;;  %v2471_v37 = vsub.f32 0.0, %v7449_v52  ;;  %v1459_v62 = vmul.f32 %v1447_v32, %v9019_v33  ;;  %v9039_v24 = vld [vmem:[#allocation72_spill] sm:$0xff] }
 0x45a   :  { %v1696_v5 = vsub.f32 %v7476_v13, %v7467_v22  ;;  %4500 = vpow2.f32 %v2185_v44  ;;  %v7484_v15 = vadd.f32 %v7058_v56, %v7047_v16  ;;  %v7486_v42 = vpop.eup %4486  ;;  %v1734_v27 = vmul.f32 -1.0, %v1686_v26  ;;  %v9040_v56 = vld [vmem:[#allocation74_spill] sm:$0xff]  ;;  %v9041_v44 = vld [vmem:[#allocation75_spill] sm:$0xff] }
 0x45b   :  { %4502 = vrcp.f32 %v7336_v45  ;;  %v2492_v9 = vadd.f32 %v9039_v24, %v9038_v49  ;;  %v7493_v32 = vadd.f32 %v7073_v40, %v7067_v21  ;;  %v4489_v61 = vpop.eup %4488  ;;  %1478 = vrot.lane.b32.xlu1 %v1459_v62, %s4910_s29  ;;  %v2319_v16 = vsel %vm67_vm0, %v2279_v57, %v2300_v2  ;;  %v1756_v62 = vpop.permute.xlu1 %1755 }
 0x45c   :  { %4504 = vpow2.f32 %v2217_v47  ;;  %v1947_v11 = vadd.f32 %v9041_v44, %v9040_v56  ;;  %v2475_v45 = vsub.f32 0.0, %v7472_v3  ;;  %v7501_v26 = vpop.eup %4490  ;;  %v1463_v49 = vmul.f32 %v1455_v4, %v9022_v58  ;;  %2328 = vst.msk [vmem:[#allocation8 + $0x1a0] sm:$0xff] %vm76_vm1, %v2319_v16 }
 0x45d   :  { %v1712_v24 = vmul.f32 %v4489_v61, %v1700_v43  ;;  %4506 = vpow2.f32 %v2193_v48  ;;  %v2482_v21 = vmul.f32 1.442695, %v2471_v37  ;;  %v1704_v40 = vmul.f32 0.5, %v1696_v5  ;;  %v9042_v48 = vld [vmem:[#allocation88_spill] sm:$0xff] }
 0x45e   :  { %v1965_v47 = vsub.f32 %v7501_v26, %v7486_v42  ;;  %v7509_v57 = vadd.f32 %v7106_v1, %v7099_v19  ;;  %v7513_v2 = vadd.f32 %v7150_v23, %v7142_v36  ;;  %v7515_v56 = vpop.eup %4492  ;;  %v2613_v43 = vsel %vm67_vm0, 0.0, %v7462_v6 }
 0x45f   :  { %4508 = vrcp.f32 %v9042_v48  ;;  %v1774_v5 = vsel %vm67_vm0, %v1734_v27, %v1756_v62  ;;  %v2458_v4 = vmul.f32 1.442695, %v7449_v52  ;;  %1486 = vrot.lane.b32.xlu1 %v1463_v49, %s4910_s29  ;;  %v2500_v19 = vmul.f32 0.5, %v2492_v9  ;;  %v9045_v62 = vld [vmem:[#allocation79_spill] sm:$0xff]  ;;  %v9046_v48 = vld [vmem:[#allocation80_spill] sm:$0xff] }
 0x460   :  { %v4495_v37 = vpop.eup %4494  ;;  %4510 = vrcp.f32 %v7396_v60  ;;  %1783 = vst.msk [vmem:[#allocation8 + $0x128] sm:$0xff] %vm76_vm1, %v1774_v5  ;;  %v1955_v1 = vmul.f32 0.5, %v1947_v11  ;;  %v2490_v36 = vmul.f32 1.442695, %v2475_v45  ;;  %v1724_v61 = vmul.f32 %v1712_v24, %v9019_v33 }
 0x461   :  { %v7527_v23 = vpop.eup %4496  ;;  %4512 = vpow2.f32 %v2482_v21  ;;  %v7532_v27 = vadd.f32 %v7175_v55, %v7166_v38  ;;  %v7536_v16 = vadd.f32 %v7207_v41, %v7200_v34  ;;  %v1720_v60 = vmul.f32 %v4495_v37, %v1704_v40  ;;  %v9043_v55 = vld [vmem:[#allocation76_spill] sm:$0xff]  ;;  %v9044_v38 = vld [vmem:[#allocation77_spill] sm:$0xff] }
 0x462   :  { %v7538_v44 = vpop.eup %4498  ;;  %v1973_v49 = vmul.f32 0.5, %v1965_v47  ;;  %v1969_v9 = vsub.f32 %v7527_v23, %v7515_v56  ;;  %v7544_v11 = vadd.f32 %v7237_v30, %v7229_v50  ;;  %4514 = vpow2.f32 %v2458_v4 }
 0x463   :  { %v2466_v45 = vmul.f32 1.442695, %v7472_v3  ;;  %v2496_v24 = vadd.f32 %v9044_v38, %v9043_v55  ;;  %v7551_v34 = vadd.f32 %v7260_v28, %v7256_v54  ;;  %1751 = vrot.lane.b32.xlu1 %v1724_v61, %s4911_s30  ;;  %4516 = vrcp.f32 %v7007_v25  ;;  %v2565_v28 = vpop.permute.xlu0 %2564 }
 0x464   :  { %v7553_v41 = vpop.eup %4500  ;;  %v2548_v21 = vmul.f32 -1.0, %v2500_v19  ;;  %v7559_v50 = vadd.f32 %v7278_v51, %v7273_v29  ;;  %v7563_v30 = vadd.f32 %v7302_v12, %v7296_v8  ;;  %v2621_v47 = vsel %vm76_vm1, %v2613_v43, 0.0 }
 0x465   :  { %v4503_v40 = vpop.eup %4502  ;;  %v2238_v54 = vsub.f32 %v7553_v41, %v7538_v44  ;;  %4518 = vpow2.f32 %v2490_v36  ;;  %v1951_v25 = vadd.f32 %v9046_v48, %v9045_v62  ;;  %v1728_v4 = vmul.f32 %v1720_v60, %v9022_v58  ;;  %v2021_v36 = vpop.permute.xlu1 %2020 }
 0x466   :  { %v4505_v5 = vpop.eup %4504  ;;  %v1985_v29 = vmul.f32 %v4503_v40, %v1973_v49  ;;  %v1977_v51 = vmul.f32 0.5, %v1969_v9  ;;  %v2588_v8 = vsel %vm67_vm0, %v2548_v21, %v2565_v28  ;;  %v2003_v43 = vmul.f32 -1.0, %v1955_v1 }
 0x467   :  { %v4507_v12 = vpop.eup %4506  ;;  %2597 = vst.msk [vmem:[#allocation8 + $0x1c0] sm:$0xff] %vm76_vm1, %v2588_v8  ;;  %4520 = vpow2.f32 %v2466_v45  ;;  %v2504_v37 = vmul.f32 0.5, %v2496_v24  ;;  %v7576_v19 = vadd.f32 %v7324_v53, %v7314_v35  ;;  %2622 = vadd.xlane.f32.xlu0 %v2621_v47  ;;  %1759 = vrot.lane.b32.xlu1 %v1728_v4, %s4911_s30  ;;  %v7581_v61 = vadd.f32 %v7342_v18, %v7334_v59  ;;  %v2573_v40 = vpop.permute.xlu0 %2572  ;;  %v9047_v47 = vld [vmem:[#allocation81_spill] sm:$0xff] }
 0x468   :  { %v2246_v49 = vmul.f32 0.5, %v2238_v54  ;;  %v2242_v9 = vsub.f32 %v4507_v12, %v4505_v5  ;;  %v2043_v1 = vsel %vm67_vm0, %v2003_v43, %v2021_v36  ;;  %v1959_v45 = vmul.f32 0.5, %v1951_v25  ;;  %v9048_v54 = vld [vmem:[#allocation82_spill] sm:$0xff]  ;;  %v9049_v25 = vld [vmem:[#allocation33_spill] sm:$0xff] }
 0x469   :  { %v4509_v60 = vpop.eup %4508  ;;  %v1997_v38 = vmul.f32 %v1985_v29, %v9019_v33  ;;  %2052 = vst.msk [vmem:[#allocation8 + $0x148] sm:$0xff] %vm76_vm1, %v2043_v1  ;;  %v7589_v53 = vadd.f32 %v7358_v63, %v7354_v10  ;;  %4522 = vrcp.f32 %v7449_v52  ;;  %v2552_v59 = vmul.f32 -1.0, %v2504_v37  ;;  %v9050_v4 = vld [vmem:[#allocation65_spill] sm:$0xff]  ;;  %v2029_v8 = vpop.permute.xlu1 %2028  ;;  %v9053_v1 = vld [vmem:[#allocation87_spill] sm:$0xff] }
 0x46a   :  { %v4511_v55 = vpop.eup %4510  ;;  %v1993_v35 = vmul.f32 %v4509_v60, %v1977_v51  ;;  %v7594_v18 = vadd.f32 %v7379_v39, %v7373_v7  ;;  %v7598_v21 = vadd.f32 %v7394_v20, %v7389_v17  ;;  %v2220_v28 = vadd.f32 %v9048_v54, %v9047_v47 }
 0x46b   :  { %v4513_v24 = vpop.eup %4512  ;;  %2024 = vrot.lane.b32.xlu1 %v1997_v38, %s4912_s5  ;;  %v7605_v10 = vadd.f32 %v7414_v46, %v7408_v0  ;;  %v2258_v52 = vmul.f32 %v4511_v55, %v2246_v49  ;;  %v2250_v62 = vmul.f32 0.5, %v2242_v9  ;;  %v2592_v7 = vsel %vm67_vm0, %v2552_v59, %v2573_v40  ;;  %v9051_v0 = vld [vmem:[#allocation60_spill] sm:$0xff]  ;;  %v9052_v9 = vld [vmem:[#allocation86_spill] sm:$0xff] }
 0x46c   :  { %v4515_v63 = vpop.eup %4514  ;;  %v2007_v39 = vmul.f32 -1.0, %v1959_v45  ;;  %v2001_v17 = vmul.f32 %v1993_v35, %v9022_v58  ;;  %2601 = vst.msk [vmem:[#allocation8 + $0x1e0] sm:$0xff] %vm76_vm1, %v2592_v7  ;;  %v7613_v29 = vadd.f32 %v9050_v4, %v9049_v25  ;;  %v7617_v46 = vadd.f32 %v9051_v0, %v7442_v14  ;;  %v9055_v38 = vld [vmem:[#allocation84_spill] sm:$0xff]  ;;  %v9058_v4 = vld [vmem:[#allocation19_spill] sm:$0xff]  ;;  %v9059_v0 = vld [vmem:[#allocation18_spill] sm:$0xff] }
 0x46d   :  { %v4517_v48 = vpop.eup %4516  ;;  %v2511_v20 = vsub.f32 %v4515_v63, %v4513_v24  ;;  %4524 = vrcp.f32 %v7472_v3  ;;  %v7622_v43 = vadd.f32 %v7476_v13, %v7467_v22  ;;  %v7626_v37 = vadd.f32 %v7501_v26, %v7486_v42  ;;  %v2294_v40 = vpop.permute.xlu1 %2293 }
 0x46e   :  { %v7630_v36 = vadd.f32 %v7527_v23, %v7515_v56  ;;  %v2047_v14 = vsel %vm67_vm0, %v2007_v39, %v2029_v8  ;;  %v2228_v60 = vmul.f32 0.5, %v2220_v28  ;;  %v7637_v3 = vadd.f32 %v7553_v41, %v7538_v44  ;;  %v9054_v41 = vld [vmem:[#allocation83_spill] sm:$0xff] }
 0x46f   :  { %v4519_v51 = vpop.eup %4518  ;;  %2032 = vrot.lane.b32.xlu1 %v2001_v17, %s4912_s5  ;;  %v2270_v13 = vmul.f32 %v2258_v52, %v9019_v33  ;;  %v2266_v49 = vmul.f32 %v4517_v48, %v2250_v62  ;;  %2056 = vst.msk [vmem:[#allocation8 + $0x168] sm:$0xff] %vm76_vm1, %v2047_v14  ;;  %v2519_v42 = vmul.f32 0.5, %v2511_v20  ;;  %v7641_v56 = vadd.f32 %v4507_v12, %v4505_v5  ;;  %v9056_v48 = vld [vmem:[#allocation90_spill] sm:$0xff]  ;;  %v9057_v17 = vld [vmem:[#allocation92_spill] sm:$0xff] }
 0x470   :  { %v7643_v23 = vadd.f32 %v4515_v63, %v4513_v24  ;;  %v2224_v45 = vadd.f32 %v9053_v1, %v9052_v9  ;;  %v2276_v44 = vmul.f32 -1.0, %v2228_v60  ;;  %v884_v35 = vadd.f32 %v9055_v38, %v9054_v41  ;;  %v9062_v9 = vld [vmem:[#allocation30_spill] sm:$0xff]  ;;  %v9065_v38 = vld [vmem:[#allocation24_spill] sm:$0xff] }
 0x471   :  { %v4521_v22 = vpop.eup %4520  ;;  %v2274_v47 = vmul.f32 %v2266_v49, %v9022_v58  ;;  %v2493_v20 = vadd.f32 %v9057_v17, %v9056_v48  ;;  %vm2845_vm10 = vcmask 125952  }
 0x472   :  { %v2515_v26 = vsub.f32 %v4521_v22, %v4519_v51  ;;  %v7647_v55 = vadd.f32 %v4521_v22, %v4519_v51  ;;  %v2316_v12 = vsel %vm67_vm0, %v2276_v44, %v2294_v40  ;;  %v2232_v24 = vmul.f32 0.5, %v2224_v45  ;;  %v955_v52 = vpop.permute.xlu0 %954  ;;  %v9060_v22 = vld [vmem:[#allocation20_spill] sm:$0xff]  ;;  %v9063_v45 = vld [vmem:[#allocation95_spill] sm:$0xff] }
 0x473   :  { %2297 = vrot.lane.b32.xlu1 %v2270_v13, %s4913_s6  ;;  %v4523_v59 = vpop.eup %4522  ;;  %2325 = vst.msk [vmem:[#allocation8 + $0x188] sm:$0xff] %vm76_vm1, %v2316_v12  ;;  %v892_v28 = vmul.f32 0.5, %v884_v35  ;;  %v7665_v51 = vadd.f32 %v9059_v0, %v9058_v4  ;;  %v2501_v60 = vmul.f32 0.5, %v2493_v20  ;;  %v7676_v13 = vadd.f32 %v9060_v22, %v9058_v4  ;;  %v9064_v44 = vld [vmem:[#allocation28_spill] sm:$0xff] }
 0x474   :  { %v2531_v54 = vmul.f32 %v4523_v59, %v2519_v42  ;;  %v2523_v5 = vmul.f32 0.5, %v2515_v26  ;;  %v2280_v25 = vmul.f32 -1.0, %v2232_v24  ;;  %v9061_v26 = vld [vmem:[#allocation29_spill] sm:$0xff]  ;;  %v1149_v41 = vadd.f32 %v9064_v44, %v9063_v45  ;;  %v9068_v22 = vld [vmem:[#allocation16_spill] sm:$0xff] }
 0x475   :  { %v972_v39 = vsel %vm67_vm0, %v892_v28, %v955_v52  ;;  %v2302_v8 = vpop.permute.xlu1 %2301  ;;  %v7681_v49 = vmul.f32 %v7665_v51, %v7665_v51  ;;  %v2549_v42 = vmul.f32 -1.0, %v2501_v60  ;;  %v7691_v35 = vadd.f32 %v9065_v38, %v9058_v4  ;;  %v9067_v52 = vld [vmem:[#allocation32_spill] sm:$0xff] }
 0x476   :  { %v2543_v62 = vmul.f32 %v2531_v54, %v9019_v33  ;;  %981 = vst.msk [vmem:[#allocation8 + $0x70] sm:$0xff] %vm76_vm1, %v972_v39  ;;  %v2320_v33 = vsel %vm67_vm0, %v2280_v25, %v2302_v8  ;;  %v7695_v59 = vmul.f32 %v7676_v13, %v7676_v13  ;;  %v1157_v54 = vmul.f32 0.5, %v1149_v41 }
 0x477   :  { %2305 = vrot.lane.b32.xlu1 %v2274_v47, %s4913_s6  ;;  %v4525_v63 = vpop.eup %4524  ;;  %2329 = vst.msk [vmem:[#allocation8 + $0x1a8] sm:$0xff] %vm76_vm1, %v2320_v33  ;;  %v1422_v25 = vmul.f32 0.5, %v7484_v15  ;;  %v1153_v33 = vmul.f32 0.5, %v7493_v32  ;;  %v1418_v15 = vmul.f32 0.5, %v7509_v57  ;;  %v1683_v57 = vmul.f32 0.5, %v7532_v27 }
 0x478   :  { %v2539_v7 = vmul.f32 %v4525_v63, %v2523_v5  ;;  %v7704_v5 = vmul.f32 %v7691_v35, %v7691_v35  ;;  %v9066_v63 = vld [vmem:[#allocation31_spill] sm:$0xff]  ;;  %v1956_v27 = vmul.f32 0.5, %v7536_v16 }
 0x479   :  { %v1731_v44 = vmul.f32 -1.0, %v1683_v57 }
 0x47a   :  { %v2547_v14 = vmul.f32 %v2539_v7, %v9022_v58  ;;  %v2497_v58 = vadd.f32 %v9062_v9, %v9061_v26  ;;  %v1687_v9 = vmul.f32 0.5, %v7513_v2 }
 0x47b   :  { %2570 = vrot.lane.b32.xlu1 %v2543_v62, %s4902_s26  ;;  %v880_v62 = vadd.f32 %v9067_v52, %v9066_v63  ;;  %v2233_v52 = vmul.f32 0.5, %v7559_v50  ;;  %v2506_v50 = vmul.f32 0.5, %v7576_v19 }
 0x47c   :  { %v2567_v1 = vpop.permute.xlu1 %2566  ;;  %v2505_v47 = vmul.f32 0.5, %v2497_v58 }
 0x47d   :  { %2862 = vrot.lane.b32.xlu0 %v7462_v6, %s4908_s2  ;;  %v2589_v40 = vsel %vm67_vm0, %v2549_v42, %v2567_v1  ;;  %v888_v48 = vmul.f32 0.5, %v880_v62  ;;  %v7734_v42 = vadd.f32 %v9068_v22, %v9058_v4  ;;  %v1735_v4 = vmul.f32 -1.0, %v1687_v9  ;;  %v9071_v9 = vld [vmem:[#allocation26_spill] sm:$0xff] }
 0x47e   :  { %2598 = vst.msk [vmem:[#allocation8 + $0x1c8] sm:$0xff] %vm76_vm1, %v2589_v40  ;;  %v2553_v28 = vmul.f32 -1.0, %v2505_v47  ;;  %v2004_v40 = vmul.f32 -1.0, %v1956_v27  ;;  %v7810_v57 = vmul.f32 %v9071_v9, %v9071_v9 }
 0x47f   :  { %2578 = vrot.lane.b32.xlu1 %v2547_v14, %s4902_s26  ;;  %v7746_v58 = vmul.f32 %v7734_v42, %v7734_v42  ;;  %s4914_s26 = smov [#allocation8]  }
 0x480   :  { %s3758_s7 = sshll.u32 %s4914_s26, 4  ;;  %s3759_s7 = int_to_ptr.vmem [resolvable:$true] %s3758_s7 }
 0x481   :  { %2866 = vrot.lane.b32.xlu0 %v7681_v49, %s4908_s2  ;;  %v2614_v45 = vsel %vm67_vm0, 0.0, %v7746_v58  ;;  %s4848_s8 = scalar_lea.vmem %s3759_s7, 8192  ;;  %p4853_p11 = scmp.lt.s32.totalorder %s3759_s7, %s3759_s7 }
 0x482   :  { %v1220_v12 = vpop.permute.xlu0 %1219  ;;  %p4849_p10 = scmp.ne.s32.totalorder %s3759_s7, %s4848_s8  ;;  %p4854_p12 = scmp.lt.s32.totalorder %s4848_s8, %s4848_s8 }
 0x483   :  { %v1237_v24 = vsel %vm67_vm0, %v1157_v54, %v1220_v12  ;;  %v1960_v54 = vmul.f32 0.5, %v7544_v11 }
 0x484   :  { %1246 = vst.msk [vmem:[#allocation8 + $0xb0] sm:$0xff] %vm76_vm1, %v1237_v24  ;;  %v2229_v24 = vmul.f32 0.5, %v7551_v34  ;;  %p4855_p13 = por %p4854_p12, %p4853_p11 }
 0x485   :  { %2870 = vrot.lane.b32.xlu0 %v7695_v59, %s4908_s2  ;;  %v2575_v7 = vpop.permute.xlu1 %2574  ;;  %v2008_v16 = vmul.f32 -1.0, %v1960_v54 }
 0x486   :  { %v2593_v39 = vsel %vm67_vm0, %v2553_v28, %v2575_v7  ;;  %v2277_v11 = vmul.f32 -1.0, %v2229_v24  ;;  %p4856_p0 = pnand %p4855_p13, %p4849_p10 }
 0x487   :  { %2602 = vst.msk [vmem:[#allocation8 + $0x1e8] sm:$0xff] %vm76_vm1, %v2593_v39  ;;  %v2281_v39 = vmul.f32 -1.0, %v2233_v52 }
 0x489   :  { %2874 = vrot.lane.b32.xlu0 %v7704_v5, %s4908_s2 }
 0x48a   :  { %v947_v17 = vpop.permute.xlu1 %946 }
 0x48b   :  { %v968_v20 = vsel %vm67_vm0, %v888_v48, %v947_v17  ;;  %v2502_v48 = vmul.f32 0.5, %v7563_v30 }
 0x48c   :  { %977 = vst.msk [vmem:[#allocation8 + $0x50] sm:$0xff] %vm76_vm1, %v968_v20 }
 0x48d   :  { %3159 = vrot.lane.b32.xlu0 %v7462_v6, %s4909_s28  ;;  %v2550_v20 = vmul.f32 -1.0, %v2502_v48 }
 0x48f   :  { %v1485_v0 = vpop.permute.xlu0 %1484 }
 0x490   :  { %v1502_v8 = vsel %vm67_vm0, %v1422_v25, %v1485_v0  ;;  %v9069_v25 = vld [vmem:[#allocation22_spill] sm:$0xff] }
 0x491   :  { %3163 = vrot.lane.b32.xlu0 %v7681_v49, %s4909_s28  ;;  %1511 = vst.msk [vmem:[#allocation8 + $0xf0] sm:$0xff] %vm76_vm1, %v1502_v8  ;;  %v1212_v14 = vpop.permute.xlu1 %1211  ;;  %v7789_v0 = vmul.f32 %v9069_v25, %v9069_v25 }
 0x492   :  { %v1233_v60 = vsel %vm67_vm0, %v1153_v33, %v1212_v14  ;;  %v2554_v33 = vmul.f32 -1.0, %v2506_v50 }
 0x493   :  { %1242 = vst.msk [vmem:[#allocation8 + $0x90] sm:$0xff] %vm76_vm1, %v1233_v60  ;;  %v9070_v60 = vld [vmem:[#allocation23_spill] sm:$0xff] }
 0x494   :  { %v7798_v22 = vmul.f32 %v9070_v60, %v9070_v60 }
 0x495   :  { %3167 = vrot.lane.b32.xlu0 %v7695_v59, %s4909_s28 }
 0x496   :  { %v1477_v32 = vpop.permute.xlu1 %1476 }
 0x497   :  { %v1498_v26 = vsel %vm67_vm0, %v1418_v15, %v1477_v32  ;;  %v889_v15 = vmul.f32 0.5, %v7581_v61  ;;  %v1154_v61 = vmul.f32 0.5, %v7594_v18 }
 0x498   :  { %1507 = vst.msk [vmem:[#allocation8 + $0xd0] sm:$0xff] %vm76_vm1, %v1498_v26 }
 0x499   :  { %3171 = vrot.lane.b32.xlu0 %v7704_v5, %s4909_s28 }
 0x49c   :  { %v1758_v1 = vpop.permute.xlu0 %1757 }
 0x49d   :  { %3456 = vrot.lane.b32.xlu0 %v7462_v6, %s4910_s29  ;;  %v1775_v2 = vsel %vm67_vm0, %v1735_v4, %v1758_v1  ;;  %v2624_v6 = vsel %vm76_vm1, %v2614_v45, 0.0  ;;  %v893_v4 = vmul.f32 0.5, %v7589_v53 }
 0x49e   :  { %1784 = vst.msk [vmem:[#allocation8 + $0x130] sm:$0xff] %vm76_vm1, %v1775_v2  ;;  %v2615_v2 = vsel %vm67_vm0, 0.0, %v7681_v49 }
 0x49f   :  { %v1750_v41 = vpop.permute.xlu1 %1749  ;;  %v2627_v53 = vsel %vm76_vm1, %v2615_v2, 0.0 }
 0x4a0   :  { %v1771_v38 = vsel %vm67_vm0, %v1731_v44, %v1750_v41 }
 0x4a1   :  { %3460 = vrot.lane.b32.xlu0 %v7681_v49, %s4910_s29  ;;  %1780 = vst.msk [vmem:[#allocation8 + $0x110] sm:$0xff] %vm76_vm1, %v1771_v38  ;;  %v1419_v49 = vmul.f32 0.5, %v7605_v10 }
 0x4a3   :  { %2625 = vadd.xlane.f32.xlu1 %v2624_v6  ;;  %v1158_v6 = vmul.f32 0.5, %v7598_v21  ;;  %v1423_v21 = vmul.f32 0.5, %v7613_v29 }
 0x4a5   :  { %3464 = vrot.lane.b32.xlu0 %v7695_v59, %s4910_s29  ;;  %v2023_v47 = vpop.permute.xlu1 %2022 }
 0x4a6   :  { %v2044_v12 = vsel %vm67_vm0, %v2004_v40, %v2023_v47  ;;  %v1684_v47 = vmul.f32 0.5, %v7617_v46  ;;  %v1957_v46 = vmul.f32 0.5, %v7626_v37 }
 0x4a7   :  { %2053 = vst.msk [vmem:[#allocation8 + $0x150] sm:$0xff] %vm76_vm1, %v2044_v12 }
 0x4a8   :  { %v1732_v10 = vmul.f32 -1.0, %v1684_v47 }
 0x4a9   :  { %3468 = vrot.lane.b32.xlu0 %v7704_v5, %s4910_s29 }
 0x4aa   :  { %v2031_v28 = vpop.permute.xlu0 %2030 }
 0x4ab   :  { %v2048_v63 = vsel %vm67_vm0, %v2008_v16, %v2031_v28  ;;  %v1688_v16 = vmul.f32 0.5, %v7622_v43  ;;  %v2005_v43 = vmul.f32 -1.0, %v1957_v46 }
 0x4ac   :  { %2057 = vst.msk [vmem:[#allocation8 + $0x170] sm:$0xff] %vm76_vm1, %v2048_v63 }
 0x4ad   :  { %v1736_v29 = vmul.f32 -1.0, %v1688_v16 }
 0x4af   :  { %v2296_v62 = vpop.permute.xlu1 %2295 }
 0x4b0   :  { %v2317_v7 = vsel %vm67_vm0, %v2277_v11, %v2296_v62 }
 0x4b1   :  { %2326 = vst.msk [vmem:[#allocation8 + $0x190] sm:$0xff] %vm76_vm1, %v2317_v7  ;;  %v2230_v7 = vmul.f32 0.5, %v7637_v3 }
 0x4b2   :  { %v2304_v17 = vpop.permute.xlu0 %2303 }
 0x4b3   :  { %v2321_v34 = vsel %vm67_vm0, %v2281_v39, %v2304_v17  ;;  %v2278_v17 = vmul.f32 -1.0, %v2230_v7 }
 0x4b4   :  { %2864 = vrot.lane.b32.xlu1 %v7746_v58, %s4908_s2  ;;  %2330 = vst.msk [vmem:[#allocation8 + $0x1b0] sm:$0xff] %vm76_vm1, %v2321_v34 }
 0x4b6   :  { %v2569_v8 = vpop.permute.xlu1 %2568 }
 0x4b7   :  { %v2590_v30 = vsel %vm67_vm0, %v2550_v20, %v2569_v8  ;;  %v2503_v8 = vmul.f32 0.5, %v7643_v23 }
 0x4b8   :  { %2868 = vrot.lane.b32.xlu1 %v7789_v0, %s4908_s2  ;;  %2599 = vst.msk [vmem:[#allocation8 + $0x1d0] sm:$0xff] %vm76_vm1, %v2590_v30 }
 0x4ba   :  { %v2577_v14 = vpop.permute.xlu0 %2576 }
 0x4bb   :  { %v2594_v19 = vsel %vm67_vm0, %v2554_v33, %v2577_v14  ;;  %v2551_v33 = vmul.f32 -1.0, %v2503_v8  ;;  %v2507_v14 = vmul.f32 0.5, %v7647_v55 }
 0x4bc   :  { %2603 = vst.msk [vmem:[#allocation8 + $0x1f0] sm:$0xff] %vm76_vm1, %v2594_v19  ;;  %2872 = vrot.lane.b32.xlu1 %v7798_v22, %s4908_s2 }
 0x4bd   :  { %v949_v32 = vpop.permute.xlu1 %948 }
 0x4be   :  { %v969_v26 = vsel %vm67_vm0, %v889_v15, %v949_v32  ;;  %v2555_v15 = vmul.f32 -1.0, %v2507_v14 }
 0x4bf   :  { %978 = vst.msk [vmem:[#allocation8 + $0x58] sm:$0xff] %vm76_vm1, %v969_v26 }
 0x4c0   :  { %2876 = vrot.lane.b32.xlu1 %v7810_v57, %s4908_s2 }
 0x4c1   :  { %v957_v1 = vpop.permute.xlu1 %956 }
 0x4c2   :  { %v973_v45 = vsel %vm67_vm0, %v893_v4, %v957_v1 }
 0x4c3   :  { %982 = vst.msk [vmem:[#allocation8 + $0x78] sm:$0xff] %vm76_vm1, %v973_v45 }
 0x4c4   :  { %3161 = vrot.lane.b32.xlu1 %v7746_v58, %s4909_s28 }
 0x4c5   :  { %v1214_v44 = vpop.permute.xlu1 %1213 }
 0x4c6   :  { %v1234_v41 = vsel %vm67_vm0, %v1154_v61, %v1214_v44 }
 0x4c7   :  { %1243 = vst.msk [vmem:[#allocation8 + $0x98] sm:$0xff] %vm76_vm1, %v1234_v41 }
 0x4c8   :  { %2628 = vadd.xlane.f32.xlu0 %v2627_v53  ;;  %3165 = vrot.lane.b32.xlu1 %v7789_v0, %s4909_s28 }
 0x4c9   :  { %v1222_v27 = vpop.permute.xlu1 %1221 }
 0x4ca   :  { %v1238_v18 = vsel %vm67_vm0, %v1158_v6, %v1222_v27 }
 0x4cb   :  { %1247 = vst.msk [vmem:[#allocation8 + $0xb8] sm:$0xff] %vm76_vm1, %v1238_v18 }
 0x4cc   :  { %3169 = vrot.lane.b32.xlu1 %v7798_v22, %s4909_s28 }
 0x4cd   :  { %v1479_v38 = vpop.permute.xlu1 %1478 }
 0x4ce   :  { %v1499_v40 = vsel %vm67_vm0, %v1419_v49, %v1479_v38 }
 0x4cf   :  { %1508 = vst.msk [vmem:[#allocation8 + $0xd8] sm:$0xff] %vm76_vm1, %v1499_v40 }
 0x4d0   :  { %3173 = vrot.lane.b32.xlu1 %v7810_v57, %s4909_s28 }
 0x4d1   :  { %v1487_v54 = vpop.permute.xlu1 %1486 }
 0x4d2   :  { %v1503_v12 = vsel %vm67_vm0, %v1423_v21, %v1487_v54 }
 0x4d3   :  { %1512 = vst.msk [vmem:[#allocation8 + $0xf8] sm:$0xff] %vm76_vm1, %v1503_v12 }
 0x4d4   :  { %3458 = vrot.lane.b32.xlu1 %v7746_v58, %s4910_s29  ;;  %v1961_v58 = vmul.f32 0.5, %v7630_v36  ;;  %v2234_v36 = vmul.f32 0.5, %v7641_v56 }
 0x4d5   :  { %v1752_v24 = vpop.permute.xlu1 %1751 }
 0x4d6   :  { %v1772_v28 = vsel %vm67_vm0, %v1732_v10, %v1752_v24  ;;  %v2009_v37 = vmul.f32 -1.0, %v1961_v58  ;;  %v2282_v20 = vmul.f32 -1.0, %v2234_v36 }
 0x4d7   :  { %1781 = vst.msk [vmem:[#allocation8 + $0x118] sm:$0xff] %vm76_vm1, %v1772_v28 }
 0x4d8   :  { %3462 = vrot.lane.b32.xlu1 %v7789_v0, %s4910_s29 }
 0x4d9   :  { %v1760_v63 = vpop.permute.xlu1 %1759 }
 0x4da   :  { %v1776_v52 = vsel %vm67_vm0, %v1736_v29, %v1760_v63 }
 0x4db   :  { %1785 = vst.msk [vmem:[#allocation8 + $0x138] sm:$0xff] %vm76_vm1, %v1776_v52 }
 0x4dc   :  { %3466 = vrot.lane.b32.xlu1 %v7798_v22, %s4910_s29 }
 0x4dd   :  { %v2025_v11 = vpop.permute.xlu1 %2024 }
 0x4de   :  { %v2045_v62 = vsel %vm67_vm0, %v2005_v43, %v2025_v11 }
 0x4df   :  { %2054 = vst.msk [vmem:[#allocation8 + $0x158] sm:$0xff] %vm76_vm1, %v2045_v62 }
 0x4e0   :  { %3470 = vrot.lane.b32.xlu1 %v7810_v57, %s4910_s29 }
 0x4e1   :  { %v2033_v39 = vpop.permute.xlu1 %2032 }
 0x4e2   :  { %v2049_v48 = vsel %vm67_vm0, %v2009_v37, %v2033_v39 }
 0x4e3   :  { %2058 = vst.msk [vmem:[#allocation8 + $0x178] sm:$0xff] %vm76_vm1, %v2049_v48 }
 0x4e5   :  { %v2298_v34 = vpop.permute.xlu1 %2297 }
 0x4e6   :  { %v2318_v50 = vsel %vm67_vm0, %v2278_v17, %v2298_v34 }
 0x4e7   :  { %2327 = vst.msk [vmem:[#allocation8 + $0x198] sm:$0xff] %vm76_vm1, %v2318_v50 }
 0x4e9   :  { %v2306_v30 = vpop.permute.xlu1 %2305 }
 0x4ea   :  { %v2322_v3 = vsel %vm67_vm0, %v2282_v20, %v2306_v30  ;;  %v9072_v20 = vld [vmem:[#allocation27_spill] sm:$0xff] }
 0x4eb   :  { %2331 = vst.msk [vmem:[#allocation8 + $0x1b8] sm:$0xff] %vm76_vm1, %v2322_v3 }
 0x4ed   :  { %v2571_v19 = vpop.permute.xlu1 %2570 }
 0x4ee   :  { %v2591_v56 = vsel %vm67_vm0, %v2551_v33, %v2571_v19 }
 0x4ef   :  { %2600 = vst.msk [vmem:[#allocation8 + $0x1d8] sm:$0xff] %vm76_vm1, %v2591_v56 }
 0x4f1   :  { %v2579_v32 = vpop.permute.xlu1 %2578 }
 0x4f2   :  { %v2595_v23 = vsel %vm67_vm0, %v2555_v15, %v2579_v32 }
 0x4f3   :  { %2604 = vst.msk [vmem:[#allocation8 + $0x1f8] sm:$0xff] %vm76_vm1, %v2595_v23 }
 0x4f4   :  { %v2623_v26 = vpop.xlane.xlu0 %2622 }
 0x4f5   :  { %4526 = vrsqrt.f32 %v2623_v26  ;;  %vm2647_vm8 = vcmp.eq.f32.partialorder %v2623_v26, inf  ;;  %v2650_v44 = vand.u32 2147483648, %v2623_v26  ;;  %vm2649_vm9 = vcmp.eq.f32.partialorder %v2623_v26, 0.0 }
 0x4f8   :  { %v2863_v4 = vpop.permute.xlu0 %2862 }
 0x4f9   :  { %v2886_v61 = vsel %vm67_vm0, 0.0, %v2863_v4 }
 0x4fa   :  { %v2894_v6 = vsel %vm76_vm1, %v2886_v61, 0.0 }
 0x4fc   :  { %v7887_v1 = vpop.permute.xlu0 %2866 }
 0x4ff   :  { %v4527_v45 = vpop.eup %4526 }
 0x500   :  { %v2646_v55 = vmul.f32 %v4527_v45, %v2623_v26  ;;  %v2871_v2 = vpop.permute.xlu0 %2870 }
 0x501   :  { %v2890_v18 = vsel %vm67_vm0, 0.0, %v2871_v2  ;;  %v2616_v2 = vsel %vm67_vm0, 0.0, %v7789_v0 }
 0x502   :  { %v2648_v41 = vsel %vm2647_vm8, %v2623_v26, %v2646_v55  ;;  %v2906_v21 = vsel %vm76_vm1, %v2890_v18, 0.0  ;;  %v2620_v18 = vsel %vm67_vm0, 0.0, %v7810_v57 }
 0x503   :  { %v2651_v53 = vsel %vm2649_vm9, %v2650_v44, %v2648_v41  ;;  %v2630_v44 = vsel %vm76_vm1, %v2616_v2, 0.0 }
 0x504   :  { %v2701_v27 = vmax.f32 %v2651_v53, 1e-15  ;;  %v2875_v49 = vpop.permute.xlu0 %2874  ;;  %2895 = vadd.xlane.f32.xlu1 %v2894_v6  ;;  %v2618_v53 = vsel %vm67_vm0, 0.0, %v7798_v22  ;;  %v2642_v22 = vsel %vm76_vm1, %v2620_v18, 0.0 }
 0x505   :  { %v2892_v54 = vsel %vm67_vm0, 0.0, %v2875_v49  ;;  %v2636_v6 = vsel %vm76_vm1, %v2618_v53, 0.0 }
 0x506   :  { %v2709_v38 = vmul.f32 1.442695, %v2701_v27  ;;  %v2725_v40 = vsub.f32 0.0, %v2701_v27  ;;  %v2912_v10 = vsel %vm76_vm1, %v2892_v54, 0.0 }
 0x508   :  { %v2733_v47 = vmul.f32 1.442695, %v2725_v40  ;;  %v3160_v12 = vpop.permute.xlu0 %3159  ;;  %2907 = vadd.xlane.f32.xlu1 %v2906_v21  ;;  %4528 = vpow2.f32 %v2709_v38  ;;  %v2888_v38 = vsel %vm67_vm0, 0.0, %v7887_v1 }
 0x509   :  { %v3183_v16 = vsel %vm67_vm0, 0.0, %v3160_v12  ;;  %v2900_v21 = vsel %vm76_vm1, %v2888_v38, 0.0 }
 0x50a   :  { %4530 = vpow2.f32 %v2733_v47  ;;  %v3191_v28 = vsel %vm76_vm1, %v3183_v16, 0.0 }
 0x50b   :  { %4532 = vrcp.f32 %v2701_v27 }
 0x50c   :  { %v3164_v24 = vpop.permute.xlu0 %3163  ;;  %2913 = vadd.xlane.f32.xlu1 %v2912_v10 }
 0x50d   :  { %v3185_v29 = vsel %vm67_vm0, 0.0, %v3164_v24 }
 0x50e   :  { %v3197_v52 = vsel %vm76_vm1, %v3185_v29, 0.0 }
 0x510   :  { %v3168_v46 = vpop.permute.xlu0 %3167  ;;  %3192 = vadd.xlane.f32.xlu1 %v3191_v28 }
 0x511   :  { %v3187_v58 = vsel %vm67_vm0, 0.0, %v3168_v46 }
 0x512   :  { %v4529_v63 = vpop.eup %4528  ;;  %v3203_v39 = vsel %vm76_vm1, %v3187_v58, 0.0 }
 0x514   :  { %v4531_v43 = vpop.eup %4530  ;;  %v3172_v11 = vpop.permute.xlu0 %3171  ;;  %3198 = vadd.xlane.f32.xlu1 %v3197_v52 }
 0x515   :  { %v2765_v62 = vsub.f32 %v4529_v63, %v4531_v43  ;;  %v2749_v37 = vadd.f32 %v4531_v43, %v4529_v63  ;;  %v4533_v48 = vpop.eup %4532  ;;  %v3189_v17 = vsel %vm67_vm0, 0.0, %v3172_v11 }
 0x516   :  { %v3209_v30 = vsel %vm76_vm1, %v3189_v17, 0.0 }
 0x517   :  { %v2773_v7 = vmul.f32 0.5, %v2765_v62  ;;  %v2757_v50 = vmul.f32 0.5, %v2749_v37 }
 0x518   :  { %v3457_v36 = vpop.permute.xlu0 %3456  ;;  %3204 = vadd.xlane.f32.xlu1 %v3203_v39 }
 0x519   :  { %v2782_v34 = vmul.f32 %v4533_v48, %v2773_v7  ;;  %v3480_v3 = vsel %vm67_vm0, 0.0, %v3457_v36 }
 0x51a   :  { %v3488_v56 = vsel %vm76_vm1, %v3480_v3, 0.0 }
 0x51b   :  { %v2797_v8 = vmul.f32 %v2782_v34, %v9072_v20 }
 0x51c   :  { %v3461_v33 = vpop.permute.xlu0 %3460  ;;  %3210 = vadd.xlane.f32.xlu1 %v3209_v30 }
 0x51d   :  { %v2805_v14 = vsel %vm67_vm0, %v2757_v50, %v2797_v8  ;;  %v3482_v15 = vsel %vm67_vm0, 0.0, %v3461_v33 }
 0x51e   :  { %v3835_v19 = vpack.c.bf16 %v2805_v14, %v2805_v14  ;;  %v3494_v23 = vsel %vm76_vm1, %v3482_v15, 0.0 }
 0x520   :  { %2846 = vst.msk [vmem:[#allocation9] sm:$0xf] %vm2845_vm10, %v3835_v19  ;;  %v3465_v32 = vpop.permute.xlu0 %3464  ;;  %3489 = vadd.xlane.f32.xlu1 %v3488_v56 }
 0x521   :  { %v3484_v26 = vsel %vm67_vm0, 0.0, %v3465_v32 }
 0x522   :  { %v3500_v45 = vsel %vm76_vm1, %v3484_v26, 0.0 }
 0x524   :  { %3495 = vadd.xlane.f32.xlu1 %v3494_v23  ;;  %v3469_v4 = vpop.permute.xlu0 %3468 }
 0x525   :  { %v3486_v55 = vsel %vm67_vm0, 0.0, %v3469_v4 }
 0x526   :  { %v3506_v61 = vsel %vm76_vm1, %v3486_v55, 0.0 }
 0x528   :  { %3501 = vadd.xlane.f32.xlu1 %v3500_v45 }
 0x52c   :  { %3507 = vadd.xlane.f32.xlu1 %v3506_v61 }
 0x530   :  { %v2626_v41 = vpop.xlane.xlu1 %2625  ;;  %2631 = vadd.xlane.f32.xlu1 %v2630_v44 }
 0x531   :  { %4534 = vrsqrt.f32 %v2626_v41  ;;  %vm2654_vm11 = vcmp.eq.f32.partialorder %v2626_v41, inf  ;;  %v2657_v10 = vand.u32 2147483648, %v2626_v41  ;;  %vm2656_vm12 = vcmp.eq.f32.partialorder %v2626_v41, 0.0 }
 0x534   :  { %v2865_v27 = vpop.permute.xlu1 %2864  ;;  %2637 = vadd.xlane.f32.xlu1 %v2636_v6 }
 0x535   :  { %v2887_v0 = vsel %vm67_vm0, 0.0, %v2865_v27 }
 0x536   :  { %v2897_v49 = vsel %vm76_vm1, %v2887_v0, 0.0 }
 0x537   :  { %2898 = vadd.xlane.f32.xlu0 %v2897_v49 }
 0x538   :  { %v2869_v40 = vpop.permute.xlu1 %2868  ;;  %2643 = vadd.xlane.f32.xlu1 %v2642_v22 }
 0x539   :  { %v2889_v57 = vsel %vm67_vm0, 0.0, %v2869_v40 }
 0x53a   :  { %v2903_v1 = vsel %vm76_vm1, %v2889_v57, 0.0 }
 0x53b   :  { %v4535_v47 = vpop.eup %4534  ;;  %2901 = vadd.xlane.f32.xlu0 %v2900_v21 }
 0x53c   :  { %v2653_v54 = vmul.f32 %v4535_v47, %v2626_v41  ;;  %v2873_v12 = vpop.permute.xlu1 %2872 }
 0x53d   :  { %v2891_v28 = vsel %vm67_vm0, 0.0, %v2873_v12 }
 0x53e   :  { %v2655_v16 = vsel %vm2654_vm11, %v2626_v41, %v2653_v54  ;;  %v2909_v43 = vsel %vm76_vm1, %v2891_v28, 0.0  ;;  %v2617_v28 = vsel %vm67_vm0, 0.0, %v7695_v59 }
 0x53f   :  { %v2658_v24 = vsel %vm2656_vm12, %v2657_v10, %v2655_v16  ;;  %2904 = vadd.xlane.f32.xlu0 %v2903_v1 }
 0x540   :  { %v2702_v29 = vmax.f32 %v2658_v24, 1e-15  ;;  %v2877_v46 = vpop.permute.xlu1 %2876 }
 0x541   :  { %v2893_v58 = vsel %vm67_vm0, 0.0, %v2877_v46  ;;  %v2633_v46 = vsel %vm76_vm1, %v2617_v28, 0.0 }
 0x542   :  { %v2711_v63 = vmul.f32 1.442695, %v2702_v29  ;;  %v2726_v52 = vsub.f32 0.0, %v2702_v29  ;;  %v2915_v37 = vsel %vm76_vm1, %v2893_v58, 0.0 }
 0x543   :  { %2910 = vadd.xlane.f32.xlu0 %v2909_v43 }
 0x544   :  { %v2735_v11 = vmul.f32 1.442695, %v2726_v52  ;;  %v3162_v62 = vpop.permute.xlu1 %3161  ;;  %4536 = vpow2.f32 %v2711_v63  ;;  %v2619_v63 = vsel %vm67_vm0, 0.0, %v7704_v5 }
 0x545   :  { %v3184_v7 = vsel %vm67_vm0, 0.0, %v3162_v62  ;;  %v2639_v52 = vsel %vm76_vm1, %v2619_v63, 0.0 }
 0x546   :  { %4538 = vpow2.f32 %v2735_v11  ;;  %v3194_v48 = vsel %vm76_vm1, %v3184_v7, 0.0 }
 0x547   :  { %2916 = vadd.xlane.f32.xlu0 %v2915_v37  ;;  %4540 = vrcp.f32 %v2702_v29 }
 0x548   :  { %v3166_v39 = vpop.permute.xlu1 %3165 }
 0x549   :  { %v3186_v17 = vsel %vm67_vm0, 0.0, %v3166_v39 }
 0x54a   :  { %v3200_v34 = vsel %vm76_vm1, %v3186_v17, 0.0 }
 0x54b   :  { %3195 = vadd.xlane.f32.xlu0 %v3194_v48 }
 0x54c   :  { %v3170_v36 = vpop.permute.xlu1 %3169 }
 0x54d   :  { %v3188_v8 = vsel %vm67_vm0, 0.0, %v3170_v36 }
 0x54e   :  { %v4537_v50 = vpop.eup %4536  ;;  %v3206_v14 = vsel %vm76_vm1, %v3188_v8, 0.0 }
 0x54f   :  { %3201 = vadd.xlane.f32.xlu0 %v3200_v34 }
 0x550   :  { %v4539_v30 = vpop.eup %4538  ;;  %v3174_v3 = vpop.permute.xlu1 %3173 }
 0x551   :  { %v2766_v33 = vsub.f32 %v4537_v50, %v4539_v30  ;;  %v2750_v19 = vadd.f32 %v4539_v30, %v4537_v50  ;;  %v3190_v15 = vsel %vm67_vm0, 0.0, %v3174_v3  ;;  %v4541_v32 = vpop.eup %4540 }
 0x552   :  { %v3212_v45 = vsel %vm76_vm1, %v3190_v15, 0.0 }
 0x553   :  { %v2774_v56 = vmul.f32 0.5, %v2766_v33  ;;  %3207 = vadd.xlane.f32.xlu0 %v3206_v14  ;;  %v2758_v55 = vmul.f32 0.5, %v2750_v19 }
 0x554   :  { %v3459_v23 = vpop.permute.xlu1 %3458 }
 0x555   :  { %v2784_v26 = vmul.f32 %v4541_v32, %v2774_v56  ;;  %v2629_v4 = vpop.xlane.xlu0 %2628  ;;  %v3481_v2 = vsel %vm67_vm0, 0.0, %v3459_v23 }
 0x556   :  { %4542 = vrsqrt.f32 %v2629_v4  ;;  %v3491_v6 = vsel %vm76_vm1, %v3481_v2, 0.0  ;;  %vm2661_vm13 = vcmp.eq.f32.partialorder %v2629_v4, inf  ;;  %v2664_v21 = vand.u32 2147483648, %v2629_v4 }
 0x557   :  { %v2798_v61 = vmul.f32 %v2784_v26, %v7734_v42  ;;  %3213 = vadd.xlane.f32.xlu0 %v3212_v45  ;;  %vm2663_vm14 = vcmp.eq.f32.partialorder %v2629_v4, 0.0 }
 0x558   :  { %v3463_v44 = vpop.permute.xlu1 %3462 }
 0x559   :  { %v2806_v41 = vsel %vm67_vm0, %v2758_v55, %v2798_v61  ;;  %v3483_v27 = vsel %vm67_vm0, 0.0, %v3463_v44 }
 0x55a   :  { %v3836_v53 = vpack.c.bf16 %v2806_v41, %v2806_v41  ;;  %v3497_v0 = vsel %vm76_vm1, %v3483_v27, 0.0 }
 0x55b   :  { %3492 = vadd.xlane.f32.xlu0 %v3491_v6 }
 0x55c   :  { %2847 = vst.msk [vmem:[#allocation9 + $0x4] sm:$0xf] %vm2845_vm10, %v3836_v53  ;;  %v3467_v18 = vpop.permute.xlu1 %3466 }
 0x55d   :  { %v3485_v49 = vsel %vm67_vm0, 0.0, %v3467_v18 }
 0x55e   :  { %v3503_v47 = vsel %vm76_vm1, %v3485_v49, 0.0 }
 0x55f   :  { %3498 = vadd.xlane.f32.xlu0 %v3497_v0 }
 0x560   :  { %v4543_v38 = vpop.eup %4542  ;;  %v3471_v22 = vpop.permute.xlu1 %3470 }
 0x561   :  { %v2660_v40 = vmul.f32 %v4543_v38, %v2629_v4  ;;  %v3487_v54 = vsel %vm67_vm0, 0.0, %v3471_v22 }
 0x562   :  { %v3509_v16 = vsel %vm76_vm1, %v3487_v54, 0.0 }
 0x563   :  { %v2662_v57 = vsel %vm2661_vm13, %v2629_v4, %v2660_v40  ;;  %3504 = vadd.xlane.f32.xlu0 %v3503_v47 }
 0x564   :  { %v2665_v12 = vsel %vm2663_vm14, %v2664_v21, %v2662_v57 }
 0x565   :  { %v2703_v10 = vmax.f32 %v2665_v12, 1e-15 }
 0x567   :  { %v2713_v1 = vmul.f32 1.442695, %v2703_v10  ;;  %v2727_v24 = vsub.f32 0.0, %v2703_v10  ;;  %3510 = vadd.xlane.f32.xlu0 %v3509_v16 }
 0x569   :  { %v2737_v29 = vmul.f32 1.442695, %v2727_v24  ;;  %4544 = vpow2.f32 %v2713_v1 }
 0x56b   :  { %4546 = vpow2.f32 %v2737_v29  ;;  %2634 = vadd.xlane.f32.xlu0 %v2633_v46 }
 0x56c   :  { %4548 = vrcp.f32 %v2703_v10 }
 0x56f   :  { %2640 = vadd.xlane.f32.xlu0 %v2639_v52 }
 0x573   :  { %v4545_v43 = vpop.eup %4544 }
 0x575   :  { %v4547_v58 = vpop.eup %4546 }
 0x576   :  { %v2767_v11 = vsub.f32 %v4545_v43, %v4547_v58  ;;  %v2751_v62 = vadd.f32 %v4547_v58, %v4545_v43  ;;  %v4549_v59 = vpop.eup %4548 }
 0x578   :  { %v2775_v37 = vmul.f32 0.5, %v2767_v11  ;;  %v2759_v39 = vmul.f32 0.5, %v2751_v62 }
 0x57a   :  { %v2786_v7 = vmul.f32 %v4549_v59, %v2775_v37 }
 0x57c   :  { %v2799_v48 = vmul.f32 %v2786_v7, %v7665_v51 }
 0x57e   :  { %v2807_v17 = vsel %vm67_vm0, %v2759_v39, %v2799_v48 }
 0x57f   :  { %v3837_v36 = vpack.c.bf16 %v2807_v17, %v2807_v17 }
 0x581   :  { %2848 = vst.msk [vmem:[#allocation9 + $0x8] sm:$0xf] %vm2845_vm10, %v3837_v36 }
 0x591   :  { %v2896_v5 = vpop.xlane.xlu1 %2895 }
 0x592   :  { %4550 = vrsqrt.f32 %v2896_v5  ;;  %vm2920_vm1 = vcmp.eq.f32.partialorder %v2896_v5, inf  ;;  %v2923_v33 = vand.u32 2147483648, %v2896_v5  ;;  %vm2922_vm15 = vcmp.eq.f32.partialorder %v2896_v5, 0.0 }
 0x595   :  { %v2908_v34 = vpop.xlane.xlu1 %2907 }
 0x596   :  { %4552 = vrsqrt.f32 %v2908_v34  ;;  %vm2948_vm2 = vcmp.eq.f32.partialorder %v2908_v34, inf  ;;  %v2951_v26 = vand.u32 2147483648, %v2908_v34  ;;  %vm2950_vm3 = vcmp.eq.f32.partialorder %v2908_v34, 0.0 }
 0x599   :  { %v2914_v50 = vpop.xlane.xlu1 %2913 }
 0x59a   :  { %4554 = vrsqrt.f32 %v2914_v50  ;;  %vm2962_vm4 = vcmp.eq.f32.partialorder %v2914_v50, inf  ;;  %vm2964_vm5 = vcmp.eq.f32.partialorder %v2914_v50, 0.0  ;;  %v2965_v27 = vand.u32 2147483648, %v2914_v50 }
 0x59c   :  { %v4551_v8 = vpop.eup %4550 }
 0x59d   :  { %v2919_v30 = vmul.f32 %v4551_v8, %v2896_v5  ;;  %v3193_v3 = vpop.xlane.xlu1 %3192 }
 0x59e   :  { %4556 = vrsqrt.f32 %v3193_v3  ;;  %vm3217_vm6 = vcmp.eq.f32.partialorder %v3193_v3, inf  ;;  %vm3219_vm7 = vcmp.eq.f32.partialorder %v3193_v3, 0.0  ;;  %v3220_v54 = vand.u32 2147483648, %v3193_v3 }
 0x59f   :  { %v2921_v14 = vsel %vm2920_vm1, %v2896_v5, %v2919_v30 }
 0x5a0   :  { %v4553_v19 = vpop.eup %4552  ;;  %v2924_v56 = vsel %vm2922_vm15, %v2923_v33, %v2921_v14 }
 0x5a1   :  { %v2974_v15 = vmax.f32 %v2924_v56, 1e-15  ;;  %v2947_v32 = vmul.f32 %v4553_v19, %v2908_v34  ;;  %v3199_v23 = vpop.xlane.xlu1 %3198 }
 0x5a2   :  { %4558 = vrsqrt.f32 %v3199_v23  ;;  %vm3231_vm8 = vcmp.eq.f32.partialorder %v3199_v23, inf  ;;  %vm3233_vm9 = vcmp.eq.f32.partialorder %v3199_v23, 0.0  ;;  %v3234_v43 = vand.u32 2147483648, %v3199_v23 }
 0x5a3   :  { %v2982_v4 = vmul.f32 1.442695, %v2974_v15  ;;  %v2998_v45 = vsub.f32 0.0, %v2974_v15  ;;  %v2949_v55 = vsel %vm2948_vm2, %v2908_v34, %v2947_v32  ;;  %4560 = vrcp.f32 %v2974_v15 }
 0x5a4   :  { %v4555_v61 = vpop.eup %4554  ;;  %v2952_v2 = vsel %vm2950_vm3, %v2951_v26, %v2949_v55 }
 0x5a5   :  { %4562 = vpow2.f32 %v2982_v4  ;;  %v3006_v44 = vmul.f32 1.442695, %v2998_v45  ;;  %v2978_v41 = vmax.f32 %v2952_v2, 1e-15  ;;  %v2961_v53 = vmul.f32 %v4555_v61, %v2914_v50  ;;  %v7994_v6 = vpop.xlane.xlu1 %3204 }
 0x5a6   :  { %4564 = vrsqrt.f32 %v7994_v6  ;;  %vm3245_vm11 = vcmp.eq.f32.partialorder %v7994_v6, inf  ;;  %vm3247_vm12 = vcmp.eq.f32.partialorder %v7994_v6, 0.0 }
 0x5a7   :  { %4566 = vpow2.f32 %v3006_v44  ;;  %v2990_v18 = vmul.f32 1.442695, %v2978_v41  ;;  %v3002_v0 = vsub.f32 0.0, %v2978_v41  ;;  %v2963_v49 = vsel %vm2962_vm4, %v2914_v50, %v2961_v53 }
 0x5a8   :  { %v4557_v38 = vpop.eup %4556  ;;  %4568 = vrcp.f32 %v2978_v41  ;;  %v2966_v22 = vsel %vm2964_vm5, %v2965_v27, %v2963_v49  ;;  %v3248_v50 = vand.u32 2147483648, %v7994_v6 }
 0x5a9   :  { %4570 = vpow2.f32 %v2990_v18  ;;  %v3014_v40 = vmul.f32 1.442695, %v3002_v0  ;;  %v2980_v21 = vmax.f32 %v2966_v22, 1e-15  ;;  %v3216_v47 = vmul.f32 %v4557_v38, %v3193_v3  ;;  %v7997_v57 = vpop.xlane.xlu1 %3210 }
 0x5aa   :  { %4572 = vrsqrt.f32 %v7997_v57  ;;  %vm3259_vm13 = vcmp.eq.f32.partialorder %v7997_v57, inf  ;;  %vm3261_vm14 = vcmp.eq.f32.partialorder %v7997_v57, 0.0  ;;  %v3262_v55 = vand.u32 2147483648, %v7997_v57 }
 0x5ab   :  { %4574 = vpow2.f32 %v3014_v40  ;;  %v2994_v12 = vmul.f32 1.442695, %v2980_v21  ;;  %v3004_v10 = vsub.f32 0.0, %v2980_v21  ;;  %v3218_v16 = vsel %vm3217_vm6, %v3193_v3, %v3216_v47 }
 0x5ac   :  { %v4559_v1 = vpop.eup %4558  ;;  %4576 = vrcp.f32 %v2980_v21  ;;  %v3221_v24 = vsel %vm3219_vm7, %v3220_v54, %v3218_v16 }
 0x5ad   :  { %4578 = vpow2.f32 %v2994_v12  ;;  %v3018_v28 = vmul.f32 1.442695, %v3004_v10  ;;  %v3271_v29 = vmax.f32 %v3221_v24, 1e-15  ;;  %v3230_v46 = vmul.f32 %v4559_v1, %v3199_v23  ;;  %v8000_v63 = vpop.xlane.xlu1 %3489  ;;  %v8002_v52 = vpop.eup %4560 }
 0x5ae   :  { %4580 = vrsqrt.f32 %v8000_v63  ;;  %vm3514_vm1 = vcmp.eq.f32.partialorder %v8000_v63, inf  ;;  %vm3516_vm15 = vcmp.eq.f32.partialorder %v8000_v63, 0.0  ;;  %v3517_v40 = vand.u32 2147483648, %v8000_v63 }
 0x5af   :  { %v8005_v58 = vpop.eup %4562  ;;  %4582 = vpow2.f32 %v3018_v28  ;;  %v3279_v11 = vmul.f32 1.442695, %v3271_v29  ;;  %v3295_v62 = vsub.f32 0.0, %v3271_v29  ;;  %v3232_v37 = vsel %vm3231_vm8, %v3199_v23, %v3230_v46 }
 0x5b0   :  { %v4565_v59 = vpop.eup %4564  ;;  %4584 = vrcp.f32 %v3271_v29  ;;  %v3235_v7 = vsel %vm3233_vm9, %v3234_v43, %v3232_v37 }
 0x5b1   :  { %v8007_v39 = vpop.eup %4566  ;;  %4586 = vpow2.f32 %v3279_v11  ;;  %v3303_v48 = vmul.f32 1.442695, %v3295_v62  ;;  %v3273_v17 = vmax.f32 %v3235_v7, 1e-15  ;;  %v3244_v36 = vmul.f32 %v4565_v59, %v7994_v6  ;;  %v8010_v5 = vpop.xlane.xlu1 %3495 }
 0x5b2   :  { %v8012_v34 = vpop.eup %4568  ;;  %4588 = vrsqrt.f32 %v8010_v5  ;;  %v8023_v56 = vadd.f32 %v8007_v39, %v8005_v58  ;;  %vm3528_vm2 = vcmp.eq.f32.partialorder %v8010_v5, inf  ;;  %vm3530_vm3 = vcmp.eq.f32.partialorder %v8010_v5, 0.0 }
 0x5b3   :  { %v8018_v8 = vpop.eup %4570  ;;  %4590 = vpow2.f32 %v3303_v48  ;;  %v3283_v30 = vmul.f32 1.442695, %v3273_v17  ;;  %v3297_v3 = vsub.f32 0.0, %v3273_v17  ;;  %v3246_v33 = vsel %vm3245_vm11, %v7994_v6, %v3244_v36 }
 0x5b4   :  { %9073 = vst [vmem:[#allocation34_spill] sm:$0xff] %v8018_v8  ;;  %v4573_v14 = vpop.eup %4572  ;;  %4592 = vrcp.f32 %v3273_v17  ;;  %v3249_v19 = vsel %vm3247_vm12, %v3248_v50, %v3246_v33  ;;  %9074 = vst [vmem:[#allocation35_spill] sm:$0xff] %v8023_v56  ;;  %v3038_v48 = vsub.f32 %v8005_v58, %v8007_v39 }
 0x5b5   :  { %v8025_v15 = vpop.eup %4574  ;;  %4594 = vpow2.f32 %v3283_v30  ;;  %v3307_v32 = vmul.f32 1.442695, %v3297_v3  ;;  %v3275_v23 = vmax.f32 %v3249_v19, 1e-15  ;;  %v3258_v26 = vmul.f32 %v4573_v14, %v7997_v57  ;;  %v8028_v4 = vpop.xlane.xlu1 %3501 }
 0x5b6   :  { %9075 = vst [vmem:[#allocation36_spill] sm:$0xff] %v8025_v15  ;;  %v8030_v45 = vpop.eup %4576  ;;  %4596 = vrsqrt.f32 %v8028_v4  ;;  %vm3542_vm4 = vcmp.eq.f32.partialorder %v8028_v4, inf  ;;  %vm3544_vm5 = vcmp.eq.f32.partialorder %v8028_v4, 0.0 }
 0x5b7   :  { %v8036_v61 = vpop.eup %4578  ;;  %4598 = vpow2.f32 %v3307_v32  ;;  %v3287_v2 = vmul.f32 1.442695, %v3275_v23  ;;  %v3299_v44 = vsub.f32 0.0, %v3275_v23  ;;  %v3260_v41 = vsel %vm3259_vm13, %v7997_v57, %v3258_v26 }
 0x5b8   :  { %9076 = vst [vmem:[#allocation37_spill] sm:$0xff] %v8036_v61  ;;  %v4581_v53 = vpop.eup %4580  ;;  %4600 = vrcp.f32 %v3275_v23  ;;  %v3263_v6 = vsel %vm3261_vm14, %v3262_v55, %v3260_v41  ;;  %v3046_v55 = vmul.f32 0.5, %v3038_v48 }
 0x5b9   :  { %v8039_v27 = vpop.eup %4582  ;;  %4602 = vpow2.f32 %v3287_v2  ;;  %v3311_v18 = vmul.f32 1.442695, %v3299_v44  ;;  %v3277_v0 = vmax.f32 %v3263_v6, 1e-15  ;;  %v3513_v49 = vmul.f32 %v4581_v53, %v8000_v63  ;;  %v8042_v38 = vpop.xlane.xlu1 %3507 }
 0x5ba   :  { %9077 = vst [vmem:[#allocation17_spill] sm:$0xff] %v8039_v27  ;;  %v8044_v22 = vpop.eup %4584  ;;  %4604 = vrsqrt.f32 %v8042_v38  ;;  %vm3556_vm6 = vcmp.eq.f32.partialorder %v8042_v38, inf  ;;  %vm3558_vm7 = vcmp.eq.f32.partialorder %v8042_v38, 0.0 }
 0x5bb   :  { %v8050_v21 = vpop.eup %4586  ;;  %4606 = vpow2.f32 %v3311_v18  ;;  %v3291_v47 = vmul.f32 1.442695, %v3277_v0  ;;  %v3301_v57 = vsub.f32 0.0, %v3277_v0  ;;  %v3515_v54 = vsel %vm3514_vm1, %v8000_v63, %v3513_v49 }
 0x5bc   :  { %9078 = vst [vmem:[#allocation38_spill] sm:$0xff] %v8050_v21  ;;  %v4589_v12 = vpop.eup %4588  ;;  %4608 = vrcp.f32 %v3277_v0  ;;  %v3518_v10 = vsel %vm3516_vm15, %v3517_v40, %v3515_v54  ;;  %v3531_v63 = vand.u32 2147483648, %v8010_v5 }
 0x5bd   :  { %v8053_v16 = vpop.eup %4590  ;;  %4610 = vpow2.f32 %v3291_v47  ;;  %v3315_v1 = vmul.f32 1.442695, %v3301_v57  ;;  %v3568_v24 = vmax.f32 %v3518_v10, 1e-15  ;;  %v3527_v28 = vmul.f32 %v4589_v12, %v8010_v5  ;;  %v8056_v29 = vpop.xlane.xlu1 %2631 }
 0x5be   :  { %9079 = vst [vmem:[#allocation39_spill] sm:$0xff] %v8053_v16  ;;  %v8058_v46 = vpop.eup %4592  ;;  %4612 = vrsqrt.f32 %v8056_v29  ;;  %v8102_v10 = vmul.f32 %v8002_v52, %v3046_v55  ;;  %vm2668_vm8 = vcmp.eq.f32.partialorder %v8056_v29, inf  ;;  %vm2670_vm9 = vcmp.eq.f32.partialorder %v8056_v29, 0.0 }
 0x5bf   :  { %v8064_v43 = vpop.eup %4594  ;;  %4614 = vpow2.f32 %v3315_v1  ;;  %v3576_v11 = vmul.f32 1.442695, %v3568_v24  ;;  %v3592_v62 = vsub.f32 0.0, %v3568_v24  ;;  %v3529_v37 = vsel %vm3528_vm2, %v8010_v5, %v3527_v28 }
 0x5c0   :  { %9080 = vst [vmem:[#allocation40_spill] sm:$0xff] %v8064_v43  ;;  %v4597_v59 = vpop.eup %4596  ;;  %4616 = vrcp.f32 %v3568_v24  ;;  %v3532_v7 = vsel %vm3530_vm3, %v3531_v63, %v3529_v37  ;;  %v3545_v5 = vand.u32 2147483648, %v8028_v4  ;;  %v3042_v1 = vsub.f32 %v8018_v8, %v8025_v15 }
 0x5c1   :  { %v8069_v17 = vpop.eup %4598  ;;  %4618 = vpow2.f32 %v3576_v11  ;;  %v3600_v36 = vmul.f32 1.442695, %v3592_v62  ;;  %v3570_v50 = vmax.f32 %v3532_v7, 1e-15  ;;  %v3541_v30 = vmul.f32 %v4597_v59, %v8028_v4  ;;  %v8072_v3 = vpop.xlane.xlu1 %2637 }
 0x5c2   :  { %9081 = vst [vmem:[#allocation41_spill] sm:$0xff] %v8069_v17  ;;  %v8074_v33 = vpop.eup %4600  ;;  %4620 = vrsqrt.f32 %v8072_v3  ;;  %v2671_v62 = vand.u32 2147483648, %v8056_v29  ;;  %vm2682_vm11 = vcmp.eq.f32.partialorder %v8072_v3, inf  ;;  %vm2684_vm12 = vcmp.eq.f32.partialorder %v8072_v3, 0.0 }
 0x5c3   :  { %v8080_v58 = vpop.eup %4602  ;;  %4622 = vpow2.f32 %v3600_v36  ;;  %v3580_v39 = vmul.f32 1.442695, %v3570_v50  ;;  %v3594_v14 = vsub.f32 0.0, %v3570_v50  ;;  %v3543_v19 = vsel %vm3542_vm4, %v8028_v4, %v3541_v30 }
 0x5c4   :  { %v4605_v32 = vpop.eup %4604  ;;  %4624 = vrcp.f32 %v3570_v50  ;;  %v3546_v23 = vsel %vm3544_vm5, %v3545_v5, %v3543_v19  ;;  %v8083_v26 = vpop.xlane.xlu0 %2898  ;;  %v3559_v4 = vand.u32 2147483648, %v8042_v38  ;;  %v8121_v30 = vmul.f32 0.5, %v3042_v1 }
 0x5c5   :  { %v8085_v2 = vpop.eup %4606  ;;  %4626 = vpow2.f32 %v3580_v39  ;;  %v3604_v44 = vmul.f32 1.442695, %v3594_v14  ;;  %v3572_v41 = vmax.f32 %v3546_v23, 1e-15  ;;  %v3555_v53 = vmul.f32 %v4605_v32, %v8042_v38  ;;  %v8097_v47 = vpop.xlane.xlu1 %2643 }
 0x5c6   :  { %v8088_v6 = vpop.eup %4608  ;;  %4628 = vrsqrt.f32 %v8083_v26  ;;  %v3044_v23 = vsub.f32 %v8036_v61, %v8039_v27  ;;  %vm2927_vm13 = vcmp.eq.f32.partialorder %v8083_v26, inf  ;;  %vm2929_vm14 = vcmp.eq.f32.partialorder %v8083_v26, 0.0 }
 0x5c7   :  { %v8094_v18 = vpop.eup %4610  ;;  %4630 = vpow2.f32 %v3604_v44  ;;  %v3584_v0 = vmul.f32 1.442695, %v3572_v41  ;;  %v3596_v49 = vsub.f32 0.0, %v3572_v41  ;;  %v3557_v40 = vsel %vm3556_vm6, %v8042_v38, %v3555_v53 }
 0x5c8   :  { %v4613_v57 = vpop.eup %4612  ;;  %4632 = vrcp.f32 %v3572_v41  ;;  %v3560_v54 = vsel %vm3558_vm7, %v3559_v4, %v3557_v40  ;;  %v8099_v12 = vpop.xlane.xlu0 %2901  ;;  %vm2696_vm1 = vcmp.eq.f32.partialorder %v8097_v47, inf  ;;  %vm2698_vm15 = vcmp.eq.f32.partialorder %v8097_v47, 0.0 }
 0x5c9   :  { %v8106_v24 = vpop.eup %4614  ;;  %4634 = vpow2.f32 %v3584_v0  ;;  %v3608_v28 = vmul.f32 1.442695, %v3596_v49  ;;  %v3574_v63 = vmax.f32 %v3560_v54, 1e-15  ;;  %v2667_v38 = vmul.f32 %v4613_v57, %v8056_v29 }
 0x5ca   :  { %v8109_v11 = vpop.eup %4616  ;;  %4636 = vrsqrt.f32 %v8097_v47  ;;  %vm2934_vm2 = vcmp.eq.f32.partialorder %v8099_v12, inf  ;;  %vm2936_vm3 = vcmp.eq.f32.partialorder %v8099_v12, 0.0 }
 0x5cb   :  { %v8115_v52 = vpop.eup %4618  ;;  %4638 = vpow2.f32 %v3608_v28  ;;  %v3588_v37 = vmul.f32 1.442695, %v3574_v63  ;;  %v3598_v59 = vsub.f32 0.0, %v3574_v63  ;;  %v2669_v7 = vsel %vm2668_vm8, %v8056_v29, %v2667_v38 }
 0x5cc   :  { %v4621_v48 = vpop.eup %4620  ;;  %4640 = vrcp.f32 %v3574_v63  ;;  %v2672_v36 = vsel %vm2670_vm9, %v2671_v62, %v2669_v7  ;;  %v8119_v50 = vpop.xlane.xlu0 %2904  ;;  %v2685_v29 = vand.u32 2147483648, %v8072_v3 }
 0x5cd   :  { %v8123_v5 = vpop.eup %4622  ;;  %4642 = vpow2.f32 %v3588_v37  ;;  %v3612_v39 = vmul.f32 1.442695, %v3598_v59  ;;  %v2704_v14 = vmax.f32 %v2672_v36, 1e-15  ;;  %v2681_v19 = vmul.f32 %v4621_v48, %v8072_v3 }
 0x5ce   :  { %v8126_v32 = vpop.eup %4624  ;;  %4644 = vrsqrt.f32 %v8099_v12  ;;  %v2699_v48 = vand.u32 2147483648, %v8097_v47  ;;  %vm2941_vm4 = vcmp.eq.f32.partialorder %v8119_v50, inf  ;;  %vm2943_vm5 = vcmp.eq.f32.partialorder %v8119_v50, 0.0 }
 0x5cf   :  { %9082 = vst [vmem:[#allocation42_spill] sm:$0xff] %v8126_v32  ;;  %v8133_v55 = vpop.eup %4626  ;;  %4646 = vpow2.f32 %v3612_v39  ;;  %v2715_v44 = vmul.f32 1.442695, %v2704_v14  ;;  %v2728_v41 = vsub.f32 0.0, %v2704_v14  ;;  %v2683_v53 = vsel %vm2682_vm11, %v8072_v3, %v2681_v19 }
 0x5d0   :  { %v4629_v4 = vpop.eup %4628  ;;  %4648 = vrcp.f32 %v2704_v14  ;;  %v2686_v0 = vsel %vm2684_vm12, %v2685_v29, %v2683_v53  ;;  %v8140_v49 = vpop.xlane.xlu0 %2910  ;;  %v2930_v3 = vand.u32 2147483648, %v8083_v26 }
 0x5d1   :  { %v8142_v40 = vpop.eup %4630  ;;  %4650 = vpow2.f32 %v2715_v44  ;;  %v2739_v57 = vmul.f32 1.442695, %v2728_v41  ;;  %v2706_v54 = vmax.f32 %v2686_v0, 1e-15  ;;  %v2926_v1 = vmul.f32 %v4629_v4, %v8083_v26 }
 0x5d2   :  { %v8145_v28 = vpop.eup %4632  ;;  %4652 = vrsqrt.f32 %v8119_v50  ;;  %v8170_v41 = vmul.f32 0.5, %v3044_v23  ;;  %vm2955_vm6 = vcmp.eq.f32.partialorder %v8140_v49, inf  ;;  %vm2957_vm7 = vcmp.eq.f32.partialorder %v8140_v49, 0.0 }
 0x5d3   :  { %9083 = vst [vmem:[#allocation43_spill] sm:$0xff] %v8145_v28  ;;  %v8151_v63 = vpop.eup %4634  ;;  %4654 = vpow2.f32 %v2739_v57  ;;  %v2719_v38 = vmul.f32 1.442695, %v2706_v54  ;;  %v2730_v62 = vsub.f32 0.0, %v2706_v54  ;;  %v2928_v37 = vsel %vm2927_vm13, %v8083_v26, %v2926_v1 }
 0x5d4   :  { %9084 = vst [vmem:[#allocation44_spill] sm:$0xff] %v8151_v63  ;;  %v4637_v59 = vpop.eup %4636  ;;  %4656 = vrcp.f32 %v2706_v54  ;;  %v2931_v7 = vsel %vm2929_vm14, %v2930_v3, %v2928_v37  ;;  %v8160_v36 = vpop.xlane.xlu0 %2916  ;;  %v2937_v26 = vand.u32 2147483648, %v8099_v12 }
 0x5d5   :  { %v8162_v39 = vpop.eup %4638  ;;  %4658 = vpow2.f32 %v2719_v38  ;;  %v2743_v14 = vmul.f32 1.442695, %v2730_v62  ;;  %v2975_v19 = vmax.f32 %v2931_v7, 1e-15  ;;  %v2695_v29 = vmul.f32 %v4637_v59, %v8097_v47 }
 0x5d6   :  { %9085 = vst [vmem:[#allocation45_spill] sm:$0xff] %v8162_v39  ;;  %v8165_v44 = vpop.eup %4640  ;;  %4660 = vrsqrt.f32 %v8140_v49  ;;  %v2944_v7 = vand.u32 2147483648, %v8119_v50  ;;  %vm2969_vm8 = vcmp.eq.f32.partialorder %v8160_v36, inf  ;;  %vm2971_vm9 = vcmp.eq.f32.partialorder %v8160_v36, 0.0 }
 0x5d7   :  { %9086 = vst [vmem:[#allocation46_spill] sm:$0xff] %v8165_v44  ;;  %v8172_v53 = vpop.eup %4642  ;;  %4662 = vpow2.f32 %v2743_v14  ;;  %v2984_v4 = vmul.f32 1.442695, %v2975_v19  ;;  %v2999_v0 = vsub.f32 0.0, %v2975_v19  ;;  %v2697_v57 = vsel %vm2696_vm1, %v8097_v47, %v2695_v29 }
 0x5d8   :  { %9087 = vst [vmem:[#allocation47_spill] sm:$0xff] %v8172_v53  ;;  %v4645_v54 = vpop.eup %4644  ;;  %4664 = vrcp.f32 %v2975_v19  ;;  %v2700_v1 = vsel %vm2698_vm15, %v2699_v48, %v2697_v57  ;;  %v8181_v23 = vpop.xlane.xlu0 %3195  ;;  %v3335_v47 = vsub.f32 %v8050_v21, %v8053_v16  ;;  %v2958_v57 = vand.u32 2147483648, %v8140_v49 }
 0x5d9   :  { %v8183_v3 = vpop.eup %4646  ;;  %4666 = vpow2.f32 %v2984_v4  ;;  %v3008_v38 = vmul.f32 1.442695, %v2999_v0  ;;  %v2708_v62 = vmax.f32 %v2700_v1, 1e-15  ;;  %v2933_v37 = vmul.f32 %v4645_v54, %v8099_v12 }
 0x5da   :  { %9088 = vst [vmem:[#allocation48_spill] sm:$0xff] %v8183_v3  ;;  %v4649_v59 = vpop.eup %4648  ;;  %4668 = vrsqrt.f32 %v8160_v36  ;;  %vm3224_vm11 = vcmp.eq.f32.partialorder %v8181_v23, inf  ;;  %vm3226_vm12 = vcmp.eq.f32.partialorder %v8181_v23, 0.0 }
 0x5db   :  { %v4651_v48 = vpop.eup %4650  ;;  %4670 = vpow2.f32 %v3008_v38  ;;  %v2723_v14 = vmul.f32 1.442695, %v2708_v62  ;;  %v2732_v19 = vsub.f32 0.0, %v2708_v62  ;;  %v2935_v29 = vsel %vm2934_vm2, %v8099_v12, %v2933_v37 }
 0x5dc   :  { %v4653_v4 = vpop.eup %4652  ;;  %4672 = vrcp.f32 %v2708_v62  ;;  %v2938_v0 = vsel %vm2936_vm3, %v2937_v26, %v2935_v29  ;;  %v8198_v54 = vpop.xlane.xlu0 %3201  ;;  %v8203_v12 = vmul.f32 0.5, %v3335_v47 }
 0x5dd   :  { %v4655_v1 = vpop.eup %4654  ;;  %4674 = vpow2.f32 %v2723_v14  ;;  %v2747_v38 = vmul.f32 1.442695, %v2732_v19  ;;  %v2976_v16 = vmax.f32 %v2938_v0, 1e-15  ;;  %v2940_v21 = vmul.f32 %v4653_v4, %v8119_v50 }
 0x5de   :  { %v4657_v27 = vpop.eup %4656  ;;  %v2768_v61 = vsub.f32 %v4651_v48, %v4655_v1  ;;  %4676 = vrsqrt.f32 %v8181_v23  ;;  %v2972_v14 = vand.u32 2147483648, %v8160_v36  ;;  %v2752_v29 = vadd.f32 %v4655_v1, %v4651_v48 }
 0x5df   :  { %v4659_v26 = vpop.eup %4658  ;;  %4678 = vpow2.f32 %v2747_v38  ;;  %v3000_v62 = vsub.f32 0.0, %v2976_v16  ;;  %v2942_v37 = vsel %vm2941_vm4, %v8119_v50, %v2940_v21  ;;  %v2986_v0 = vmul.f32 1.442695, %v2976_v16 }
 0x5e0   :  { %v4661_v19 = vpop.eup %4660  ;;  %v2776_v4 = vmul.f32 0.5, %v2768_v61  ;;  %v2945_v15 = vsel %vm2943_vm5, %v2944_v7, %v2942_v37  ;;  %v8212_v47 = vpop.xlane.xlu0 %3207  ;;  %4680 = vrcp.f32 %v2976_v16  ;;  %v3227_v61 = vand.u32 2147483648, %v8181_v23 }
 0x5e1   :  { %v4663_v8 = vpop.eup %4662  ;;  %v3010_v38 = vmul.f32 1.442695, %v3000_v62  ;;  %v2977_v56 = vmax.f32 %v2945_v15, 1e-15  ;;  %v2954_v44 = vmul.f32 %v4661_v19, %v8140_v49  ;;  %4682 = vrsqrt.f32 %v8198_v54 }
 0x5e2   :  { %v8215_v21 = vpop.eup %4664  ;;  %v2788_v28 = vmul.f32 %v4649_v59, %v2776_v4  ;;  %v2770_v53 = vsub.f32 %v4659_v26, %v4663_v8  ;;  %v2754_v7 = vadd.f32 %v4663_v8, %v4659_v26  ;;  %v2760_v59 = vmul.f32 0.5, %v2752_v29 }
 0x5e3   :  { %v8220_v50 = vpop.eup %4666  ;;  %v2988_v48 = vmul.f32 1.442695, %v2977_v56  ;;  %v3001_v1 = vsub.f32 0.0, %v2977_v56  ;;  %v2956_v15 = vsel %vm2955_vm6, %v8140_v49, %v2954_v44  ;;  %4684 = vpow2.f32 %v2986_v0 }
 0x5e4   :  { %v4669_v16 = vpop.eup %4668  ;;  %v2800_v62 = vmul.f32 %v2788_v28, %v9069_v25  ;;  %v2778_v37 = vmul.f32 0.5, %v2770_v53  ;;  %v8227_v19 = vpop.xlane.xlu0 %3213  ;;  %4686 = vpow2.f32 %v3010_v38  ;;  %v2959_v26 = vsel %vm2957_vm7, %v2958_v57, %v2956_v15 }
 0x5e5   :  { %v8229_v4 = vpop.eup %4670  ;;  %v3012_v8 = vmul.f32 1.442695, %v3001_v1  ;;  %v2968_v3 = vmul.f32 %v4669_v16, %v8160_v36  ;;  %4688 = vrcp.f32 %v2977_v56  ;;  %v2979_v28 = vmax.f32 %v2959_v26, 1e-15 }
 0x5e6   :  { %v4673_v44 = vpop.eup %4672  ;;  %v2808_v32 = vsel %vm67_vm0, %v2760_v59, %v2800_v62  ;;  %v2792_v29 = vmul.f32 %v4657_v27, %v2778_v37  ;;  %v2762_v63 = vmul.f32 0.5, %v2754_v7  ;;  %4690 = vpow2.f32 %v2988_v48 }
 0x5e7   :  { %v4675_v53 = vpop.eup %4674  ;;  %v3838_v0 = vpack.c.bf16 %v2808_v32, %v2808_v32  ;;  %v2970_v38 = vsel %vm2969_vm8, %v8160_v36, %v2968_v3  ;;  %4692 = vpow2.f32 %v3012_v8  ;;  %v2992_v57 = vmul.f32 1.442695, %v2979_v28 }
 0x5e8   :  { %v4677_v1 = vpop.eup %4676  ;;  %v2802_v49 = vmul.f32 %v2792_v29, %v9070_v60  ;;  %v3003_v15 = vsub.f32 0.0, %v2979_v28  ;;  %v8240_v16 = vpop.xlane.xlu0 %3492  ;;  %v2973_v56 = vsel %vm2971_vm9, %v2972_v14, %v2970_v38  ;;  %vm3238_vm13 = vcmp.eq.f32.partialorder %v8198_v54, inf }
 0x5e9   :  { %v4679_v59 = vpop.eup %4678  ;;  %2849 = vst.msk [vmem:[#allocation9 + $0xc] sm:$0xf] %vm2845_vm10, %v3838_v0  ;;  %v3223_v27 = vmul.f32 %v4677_v1, %v8181_v23  ;;  %4694 = vrsqrt.f32 %v8212_v47  ;;  %vm3240_vm14 = vcmp.eq.f32.partialorder %v8198_v54, 0.0  ;;  %v2981_v37 = vmax.f32 %v2973_v56, 1e-15 }
 0x5ea   :  { %v2810_v32 = vsel %vm67_vm0, %v2762_v63, %v2802_v49  ;;  %v2772_v3 = vsub.f32 %v4675_v53, %v4679_v59  ;;  %4696 = vrcp.f32 %v2979_v28  ;;  %v8251_v7 = vpop.eup %4680  ;;  %v3016_v62 = vmul.f32 1.442695, %v3003_v15 }
 0x5eb   :  { %v3840_v48 = vpack.c.bf16 %v2810_v32, %v2810_v32  ;;  %v3225_v36 = vsel %vm3224_vm11, %v8181_v23, %v3223_v27  ;;  %v4683_v14 = vpop.eup %4682  ;;  %v2756_v8 = vadd.f32 %v4679_v59, %v4675_v53  ;;  %4698 = vpow2.f32 %v2992_v57 }
 0x5ec   :  { %v2780_v26 = vmul.f32 0.5, %v2772_v3  ;;  %v3228_v63 = vsel %vm3226_vm12, %v3227_v61, %v3225_v36  ;;  %v8258_v29 = vpop.xlane.xlu0 %3498  ;;  %4700 = vpow2.f32 %v3016_v62  ;;  %v2996_v28 = vmul.f32 1.442695, %v2981_v37 }
 0x5ed   :  { %2851 = vst.msk [vmem:[#allocation9 + $0x14] sm:$0xf] %vm2845_vm10, %v3840_v48  ;;  %v3005_v0 = vsub.f32 0.0, %v2981_v37  ;;  %v3272_v38 = vmax.f32 %v3228_v63, 1e-15  ;;  %v8261_v1 = vpop.eup %4684  ;;  %4702 = vrcp.f32 %v2981_v37  ;;  %v3237_v15 = vmul.f32 %v4683_v14, %v8198_v54 }
 0x5ee   :  { %v2796_v49 = vmul.f32 %v4673_v44, %v2780_v26  ;;  %v3241_v53 = vand.u32 2147483648, %v8198_v54  ;;  %v8265_v57 = vpop.eup %4686  ;;  %4704 = vpow2.f32 %v2996_v28  ;;  %v2764_v27 = vmul.f32 0.5, %v2756_v8 }
 0x5ef   :  { %v3020_v23 = vmul.f32 1.442695, %v3005_v0  ;;  %v3281_v61 = vmul.f32 1.442695, %v3272_v38  ;;  %v3296_v59 = vsub.f32 0.0, %v3272_v38  ;;  %v8267_v56 = vpop.eup %4688  ;;  %4706 = vrcp.f32 %v3272_v38 }
 0x5f0   :  { %v2804_v32 = vmul.f32 %v2796_v49, %v9071_v9  ;;  %v3239_v44 = vsel %vm3238_vm13, %v8198_v54, %v3237_v15  ;;  %v8273_v3 = vpop.xlane.xlu0 %3504  ;;  %v8275_v48 = vpop.eup %4690  ;;  %v8281_v36 = vmul.f32 %v8102_v10, %v9072_v20  ;;  %v3063_v63 = vmul.f32 %v8012_v34, %v8121_v30 }
 0x5f1   :  { %4708 = vpow2.f32 %v3020_v23  ;;  %v3305_v62 = vmul.f32 1.442695, %v3296_v59  ;;  %v3242_v37 = vsel %vm3240_vm14, %v3241_v53, %v3239_v44  ;;  %v8283_v14 = vpop.eup %4692  ;;  %v3067_v54 = vmul.f32 %v8030_v45, %v8170_v41 }
 0x5f2   :  { %9089 = vst [vmem:[#allocation49_spill] sm:$0xff] %v8283_v14  ;;  %v2812_v8 = vsel %vm67_vm0, %v2764_v27, %v2804_v32  ;;  %4710 = vpow2.f32 %v3281_v61  ;;  %v3274_v26 = vmax.f32 %v3242_v37, 1e-15  ;;  %v3352_v10 = vmul.f32 %v8044_v22, %v8203_v12 }
 0x5f3   :  { %v4695_v28 = vpop.eup %4694  ;;  %v3842_v0 = vpack.c.bf16 %v2812_v8, %v2812_v8  ;;  %4712 = vpow2.f32 %v3305_v62  ;;  %vm3252_vm1 = vcmp.eq.f32.partialorder %v8212_v47, inf  ;;  %v3255_v34 = vand.u32 2147483648, %v8212_v47 }
 0x5f4   :  { %v8293_v38 = vpop.eup %4696  ;;  %v3285_v49 = vmul.f32 1.442695, %v3274_v26  ;;  %v3298_v15 = vsub.f32 0.0, %v3274_v26  ;;  %4714 = vrcp.f32 %v3274_v26  ;;  %v3251_v53 = vmul.f32 %v4695_v28, %v8212_v47  ;;  %v8296_v23 = vpop.xlane.xlu0 %3510 }
 0x5f5   :  { %2853 = vst.msk [vmem:[#allocation9 + $0x1c] sm:$0xf] %vm2845_vm10, %v3842_v0  ;;  %4716 = vrsqrt.f32 %v8227_v19  ;;  %v3337_v45 = vsub.f32 %v8064_v43, %v8069_v17  ;;  %v8304_v22 = vpop.eup %4698  ;;  %vm3254_vm15 = vcmp.eq.f32.partialorder %v8212_v47, 0.0  ;;  %v3039_v59 = vsub.f32 %v8220_v50, %v8229_v4 }
 0x5f6   :  { %4718 = vpow2.f32 %v3285_v49  ;;  %v3309_v30 = vmul.f32 1.442695, %v3298_v15  ;;  %v3253_v41 = vsel %vm3252_vm1, %v8212_v47, %v3251_v53  ;;  %v8308_v12 = vpop.eup %4700  ;;  %v8314_v27 = vmul.f32 %v3063_v63, %v7676_v13 }
 0x5f7   :  { %v3256_v61 = vsel %vm3254_vm15, %v3255_v34, %v3253_v41  ;;  %4720 = vrsqrt.f32 %v8240_v16  ;;  %v8316_v32 = vpop.eup %4702  ;;  %v8321_v37 = vmul.f32 %v3067_v54, %v7691_v35  ;;  %v8324_v47 = vmul.f32 %v3352_v10, %v9072_v20 }
 0x5f8   :  { %4722 = vpow2.f32 %v3309_v30  ;;  %v3276_v44 = vmax.f32 %v3256_v61, 1e-15  ;;  %v8318_v62 = vpop.xlane.xlu0 %2634  ;;  %v8326_v8 = vpop.eup %4704  ;;  %vm3266_vm2 = vcmp.eq.f32.partialorder %v8227_v19, inf  ;;  %v3047_v26 = vmul.f32 0.5, %v3039_v59 }
 0x5f9   :  { %9090 = vst [vmem:[#allocation50_spill] sm:$0xff] %v8326_v8  ;;  %4724 = vrsqrt.f32 %v8258_v29  ;;  %v8330_v63 = vmul.f32 0.5, %v3337_v45  ;;  %v8332_v28 = vpop.eup %4706  ;;  %vm3268_vm3 = vcmp.eq.f32.partialorder %v8227_v19, 0.0  ;;  %v3269_v54 = vand.u32 2147483648, %v8227_v19 }
 0x5fa   :  { %v3289_v0 = vmul.f32 1.442695, %v3276_v44  ;;  %v3300_v49 = vsub.f32 0.0, %v3276_v44  ;;  %4726 = vrcp.f32 %v3276_v44  ;;  %vm3521_vm4 = vcmp.eq.f32.partialorder %v8240_v16, inf }
 0x5fb   :  { %v8336_v10 = vpop.eup %4708  ;;  %v3057_v15 = vmul.f32 %v8215_v21, %v3047_v26  ;;  %4728 = vrsqrt.f32 %v8273_v3  ;;  %v3040_v53 = vsub.f32 %v8261_v1, %v8265_v57  ;;  %v3041_v34 = vsub.f32 %v8275_v48, %v8283_v14 }
 0x5fc   :  { %9091 = vst [vmem:[#allocation51_spill] sm:$0xff] %v8336_v10  ;;  %v8345_v45 = vpop.eup %4710  ;;  %4730 = vpow2.f32 %v3289_v0  ;;  %v3313_v30 = vmul.f32 1.442695, %v3300_v49  ;;  %vm3523_vm5 = vcmp.eq.f32.partialorder %v8240_v16, 0.0  ;;  %v3524_v41 = vand.u32 2147483648, %v8240_v16  ;;  %v8354_v17 = vpop.xlane.xlu0 %2640 }
 0x5fd   :  { %v8350_v59 = vpop.eup %4712  ;;  %v3071_v21 = vmul.f32 %v3057_v15, %v7734_v42  ;;  %4732 = vrsqrt.f32 %v8296_v23  ;;  %v3048_v44 = vmul.f32 0.5, %v3040_v53  ;;  %v3049_v26 = vmul.f32 0.5, %v3041_v34 }
 0x5fe   :  { %9092 = vst [vmem:[#allocation52_spill] sm:$0xff] %v8350_v59  ;;  %v8356_v43 = vpop.eup %4714  ;;  %4734 = vpow2.f32 %v3313_v30  ;;  %vm3535_vm6 = vcmp.eq.f32.partialorder %v8258_v29, inf  ;;  %v3043_v61 = vsub.f32 %v8304_v22, %v8308_v12  ;;  %vm3537_vm7 = vcmp.eq.f32.partialorder %v8258_v29, 0.0 }
 0x5ff   :  { %v4717_v31 = vpop.eup %4716  ;;  %v3890_v15 = vpack.i.bf16 %v3071_v21, %v8281_v36  ;;  %v3059_v53 = vmul.f32 %v8251_v7, %v3048_v44  ;;  %v3061_v34 = vmul.f32 %v8267_v56, %v3049_v26  ;;  %4736 = vrsqrt.f32 %v8318_v62 }
 0x600   :  { %v8367_v14 = vpop.eup %4718  ;;  %v3265_v30 = vmul.f32 %v4717_v31, %v8227_v19  ;;  %vm3549_vm8 = vcmp.eq.f32.partialorder %v8273_v3, inf  ;;  %v3051_v0 = vmul.f32 0.5, %v3043_v61  ;;  %4738 = vrsqrt.f32 %v8354_v17 }
 0x601   :  { %v4721_v36 = vpop.eup %4720  ;;  %3891 = vrot.lane.b32.xlu0 %v3890_v15, %s4908_s2  ;;  %vm3551_vm9 = vcmp.eq.f32.partialorder %v8273_v3, 0.0  ;;  %v3072_v7 = vmul.f32 %v3059_v53, %v7665_v51  ;;  %v3073_v56 = vmul.f32 %v3061_v34, %v9069_v25  ;;  %v3045_v21 = vsub.f32 %v8326_v8, %v8336_v10 }
 0x602   :  { %v8381_v44 = vpop.eup %4722  ;;  %v3267_v61 = vsel %vm3266_vm2, %v8227_v19, %v3265_v30  ;;  %v3520_v26 = vmul.f32 %v4721_v36, %v8240_v16  ;;  %vm3563_vm11 = vcmp.eq.f32.partialorder %v8296_v23, inf  ;;  %v3065_v15 = vmul.f32 %v8293_v38, %v3051_v0 }
 0x603   :  { %v3336_v53 = vsub.f32 %v8345_v45, %v8350_v59  ;;  %v4725_v34 = vpop.eup %4724  ;;  %v3270_v31 = vsel %vm3268_vm3, %v3269_v54, %v3267_v61  ;;  %vm3565_vm12 = vcmp.eq.f32.partialorder %v8296_v23, 0.0  ;;  %v3895_v49 = vpack.i.bf16 %v3073_v56, %v3072_v7 }
 0x604   :  { %v3053_v10 = vmul.f32 0.5, %v3045_v21  ;;  %v3338_v30 = vsub.f32 %v8367_v14, %v8381_v44  ;;  %v8396_v8 = vpop.eup %4726  ;;  %v3278_v36 = vmax.f32 %v3270_v31, 1e-15  ;;  %v3522_v38 = vsel %vm3521_vm4, %v8240_v16, %v3520_v26 }
 0x605   :  { %v3534_v0 = vmul.f32 %v4725_v34, %v8258_v29  ;;  %v3075_v59 = vmul.f32 %v3065_v15, %v9070_v60  ;;  %v4729_v19 = vpop.eup %4728  ;;  %v3525_v54 = vsel %vm3523_vm5, %v3524_v41, %v3522_v38  ;;  %3896 = vrot.lane.b32.xlu1 %v3895_v49, %s4908_s2  ;;  %vm2675_vm13 = vcmp.eq.f32.partialorder %v8318_v62, inf }
 0x606   :  { %v3069_v7 = vmul.f32 %v8316_v32, %v3053_v10  ;;  %v8408_v56 = vmul.f32 0.5, %v3336_v53  ;;  %v8410_v31 = vmul.f32 0.5, %v3338_v30  ;;  %v8412_v21 = vpop.eup %4730  ;;  %v3293_v61 = vmul.f32 1.442695, %v3278_v36 }
 0x607   :  { %v3302_v26 = vsub.f32 0.0, %v3278_v36  ;;  %4740 = vrcp.f32 %v3278_v36  ;;  %v3569_v15 = vmax.f32 %v3525_v54, 1e-15  ;;  %v4733_v34 = vpop.eup %4732  ;;  %v3536_v16 = vsel %vm3535_vm6, %v8258_v29, %v3534_v0 }
 0x608   :  { %v3548_v41 = vmul.f32 %v4729_v19, %v8273_v3  ;;  %vm2677_vm14 = vcmp.eq.f32.partialorder %v8318_v62, 0.0  ;;  %v3900_v32 = vpack.i.bf16 %v3075_v59, %v8314_v27  ;;  %vm2689_vm1 = vcmp.eq.f32.partialorder %v8354_v17, inf  ;;  %v8422_v49 = vpop.eup %4734 }
 0x609   :  { %v3077_v10 = vmul.f32 %v3069_v7, %v9071_v9  ;;  %4742 = vpow2.f32 %v3293_v61  ;;  %v3317_v53 = vmul.f32 1.442695, %v3302_v26  ;;  %v3578_v30 = vmul.f32 1.442695, %v3569_v15  ;;  %v4737_v38 = vpop.eup %4736 }
 0x60a   :  { %v3593_v36 = vsub.f32 0.0, %v3569_v15  ;;  %vm2691_vm15 = vcmp.eq.f32.partialorder %v8354_v17, 0.0  ;;  %4744 = vrcp.f32 %v3569_v15  ;;  %v9093_v0 = vand.u32 2147483648, %v8258_v29  ;;  %3901 = vrot.lane.b32.xlu1 %v3900_v32, %s4908_s2  ;;  %v4739_v54 = vpop.eup %4738 }
 0x60b   :  { %v3550_v27 = vsel %vm3549_vm8, %v8273_v3, %v3548_v41  ;;  %v3562_v59 = vmul.f32 %v4733_v34, %v8296_v23  ;;  %4746 = vpow2.f32 %v3317_v53  ;;  %v9094_v26 = vand.u32 2147483648, %v8273_v3 }
 0x60c   :  { %v3539_v19 = vsel %vm3537_vm7, %v9093_v0, %v3536_v16  ;;  %v3602_v7 = vmul.f32 1.442695, %v3593_v36  ;;  %4748 = vpow2.f32 %v3578_v30  ;;  %v2674_v41 = vmul.f32 %v4737_v38, %v8318_v62 }
 0x60d   :  { %v3571_v61 = vmax.f32 %v3539_v19, 1e-15  ;;  %v3553_v15 = vsel %vm3551_vm9, %v9094_v26, %v3550_v27  ;;  %v3564_v16 = vsel %vm3563_vm11, %v8296_v23, %v3562_v59  ;;  %v9095_v53 = vand.u32 2147483648, %v8296_v23 }
 0x60e   :  { %v3573_v29 = vmax.f32 %v3553_v15, 1e-15  ;;  %4750 = vpow2.f32 %v3602_v7  ;;  %v2676_v27 = vsel %vm2675_vm13, %v8318_v62, %v2674_v41  ;;  %v2688_v38 = vmul.f32 %v4739_v54, %v8354_v17 }
 0x60f   :  { %v3582_v34 = vmul.f32 1.442695, %v3571_v61  ;;  %v3595_v32 = vsub.f32 0.0, %v3571_v61  ;;  %v3567_v36 = vsel %vm3565_vm12, %v9095_v53, %v3564_v16  ;;  %4752 = vrcp.f32 %v3571_v61 }
 0x610   :  { %v3586_v0 = vmul.f32 1.442695, %v3573_v29  ;;  %v3597_v3 = vsub.f32 0.0, %v3573_v29  ;;  %v3575_v19 = vmax.f32 %v3567_v36, 1e-15  ;;  %v9096_v23 = vand.u32 2147483648, %v8318_v62 }
 0x611   :  { %4754 = vpow2.f32 %v3582_v34  ;;  %v3606_v30 = vmul.f32 1.442695, %v3595_v32  ;;  %v8450_v15 = vpop.eup %4740  ;;  %v2690_v16 = vsel %vm2689_vm1, %v8354_v17, %v2688_v38  ;;  %v3905_v41 = vpack.i.bf16 %v3077_v10, %v8321_v37 }
 0x612   :  { %4756 = vpow2.f32 %v3586_v0  ;;  %v3610_v59 = vmul.f32 1.442695, %v3597_v3  ;;  %v3590_v7 = vmul.f32 1.442695, %v3575_v19  ;;  %v3599_v26 = vsub.f32 0.0, %v3575_v19 }
 0x613   :  { %4758 = vpow2.f32 %v3606_v30  ;;  %v2679_v61 = vsel %vm2677_vm14, %v9096_v23, %v2676_v27  ;;  %v9097_v32 = vand.u32 2147483648, %v8354_v17  ;;  %v8464_v36 = vpop.eup %4742  ;;  %3906 = vrot.lane.b32.xlu1 %v3905_v41, %s4908_s2  ;;  %v3354_v62 = vmul.f32 %v8332_v28, %v8408_v56 }
 0x614   :  { %4760 = vpow2.f32 %v3610_v59  ;;  %v3614_v54 = vmul.f32 1.442695, %v3599_v26  ;;  %v2705_v34 = vmax.f32 %v2679_v61, 1e-15  ;;  %v3356_v37 = vmul.f32 %v8058_v46, %v8330_v63  ;;  %v4745_v10 = vpop.eup %4744 }
 0x615   :  { %v2693_v53 = vsel %vm2691_vm15, %v9097_v32, %v2690_v16  ;;  %4762 = vrcp.f32 %v3573_v29  ;;  %v3358_v17 = vmul.f32 %v8356_v43, %v8410_v31  ;;  %v8473_v27 = vpop.eup %4746  ;;  %v3368_v59 = vmul.f32 %v3354_v62, %v7734_v42 }
 0x616   :  { %v2707_v0 = vmax.f32 %v2693_v53, 1e-15  ;;  %4764 = vpow2.f32 %v3590_v7  ;;  %v2717_v3 = vmul.f32 1.442695, %v2705_v34  ;;  %v2729_v30 = vsub.f32 0.0, %v2705_v34  ;;  %v8476_v26 = vpop.eup %4748 }
 0x617   :  { %4766 = vpow2.f32 %v3614_v54  ;;  %v3369_v46 = vmul.f32 %v3356_v37, %v7665_v51  ;;  %v3370_v63 = vmul.f32 %v3358_v17, %v9069_v25  ;;  %v3910_v43 = vpack.i.bf16 %v3368_v59, %v8324_v47 }
 0x618   :  { %v2721_v29 = vmul.f32 1.442695, %v2707_v0  ;;  %v2731_v38 = vsub.f32 0.0, %v2707_v0  ;;  %4768 = vrcp.f32 %v3575_v19  ;;  %v2741_v28 = vmul.f32 1.442695, %v2729_v30  ;;  %v8480_v56 = vpop.eup %4750 }
 0x619   :  { %4770 = vpow2.f32 %v2717_v3  ;;  %v3339_v31 = vsub.f32 %v8080_v58, %v8085_v2  ;;  %v4753_v23 = vpop.eup %4752  ;;  %v3915_v61 = vpack.i.bf16 %v3370_v63, %v3369_v46  ;;  %v3340_v19 = vsub.f32 %v8412_v21, %v8422_v49  ;;  %3911 = vrot.lane.b32.xlu0 %v3910_v43, %s4909_s28 }
 0x61a   :  { %v2745_v7 = vmul.f32 1.442695, %v2731_v38  ;;  %4772 = vpow2.f32 %v2741_v28  ;;  %v3341_v16 = vsub.f32 %v8094_v18, %v8106_v24  ;;  %v3342_v47 = vsub.f32 %v8464_v36, %v8473_v27 }
 0x61b   :  { %v8489_v41 = vpop.eup %4754  ;;  %4774 = vrcp.f32 %v2705_v34  ;;  %v3347_v54 = vmul.f32 0.5, %v3339_v31  ;;  %v3632_v32 = vsub.f32 %v8115_v52, %v8123_v5  ;;  %3916 = vrot.lane.b32.xlu1 %v3915_v61, %s4909_s28  ;;  %v3348_v62 = vmul.f32 0.5, %v3340_v19 }
 0x61c   :  { %v8496_v53 = vpop.eup %4756  ;;  %4776 = vpow2.f32 %v2721_v29  ;;  %v3349_v37 = vmul.f32 0.5, %v3341_v16  ;;  %v3633_v3 = vsub.f32 %v8476_v26, %v8480_v56  ;;  %v3350_v17 = vmul.f32 0.5, %v3342_v47  ;;  %v9099_v47 = vld [vmem:[#allocation44_spill] sm:$0xff] }
 0x61d   :  { %v8501_v34 = vpop.eup %4758  ;;  %4778 = vpow2.f32 %v2745_v7  ;;  %v3360_v30 = vmul.f32 %v8074_v33, %v3347_v54  ;;  %v3640_v38 = vmul.f32 0.5, %v3632_v32  ;;  %v3362_v28 = vmul.f32 %v8396_v8, %v3348_v62 }
 0x61e   :  { %9098 = vst [vmem:[#allocation53_spill] sm:$0xff] %v8501_v34  ;;  %v8504_v59 = vpop.eup %4760  ;;  %4780 = vrcp.f32 %v2707_v0  ;;  %v3364_v29 = vmul.f32 %v8088_v6, %v3349_v37  ;;  %v3641_v46 = vmul.f32 0.5, %v3633_v3  ;;  %v3366_v31 = vmul.f32 %v8450_v15, %v3350_v17 }
 0x61f   :  { %v4763_v63 = vpop.eup %4762  ;;  %v3371_v43 = vmul.f32 %v3360_v30, %v7676_v13  ;;  %v3649_v61 = vmul.f32 %v8109_v11, %v3640_v38  ;;  %v3634_v33 = vsub.f32 %v8133_v55, %v8142_v40  ;;  %v3372_v19 = vmul.f32 %v3362_v28, %v9070_v60  ;;  %v9100_v28 = vld [vmem:[#allocation42_spill] sm:$0xff] }
 0x620   :  { %v8513_v7 = vpop.eup %4764  ;;  %v3373_v0 = vmul.f32 %v3364_v29, %v7691_v35  ;;  %v3651_v8 = vmul.f32 %v4745_v10, %v3641_v46  ;;  %v3635_v6 = vsub.f32 %v8489_v41, %v8501_v34  ;;  %v3374_v54 = vmul.f32 %v3366_v31, %v9071_v9  ;;  %v9101_v31 = vld [vmem:[#allocation48_spill] sm:$0xff]  ;;  %v9102_v34 = vld [vmem:[#allocation47_spill] sm:$0xff] }
 0x621   :  { %v8519_v16 = vpop.eup %4766  ;;  %v3664_v15 = vmul.f32 %v3649_v61, %v9072_v20  ;;  %v3642_v11 = vmul.f32 0.5, %v3634_v33  ;;  %v3636_v32 = vsub.f32 %v9099_v47, %v8162_v39  ;;  %v3920_v37 = vpack.i.bf16 %v3372_v19, %v3371_v43 }
 0x622   :  { %v4769_v62 = vpop.eup %4768  ;;  %v3665_v3 = vmul.f32 %v3651_v8, %v7734_v42  ;;  %v3643_v30 = vmul.f32 0.5, %v3635_v6  ;;  %v3637_v10 = vsub.f32 %v8496_v53, %v8504_v59  ;;  %v3925_v38 = vpack.i.bf16 %v3374_v54, %v3373_v0  ;;  %v9103_v54 = vld [vmem:[#allocation43_spill] sm:$0xff] }
 0x623   :  { %v4771_v17 = vpop.eup %4770  ;;  %v3653_v29 = vmul.f32 %v9100_v28, %v3642_v11  ;;  %v3644_v46 = vmul.f32 0.5, %v3636_v32  ;;  %v3638_v20 = vsub.f32 %v9102_v34, %v9101_v31  ;;  %3921 = vrot.lane.b32.xlu0 %v3920_v37, %s4909_s28  ;;  %v3639_v42 = vsub.f32 %v8513_v7, %v8519_v16 }
 0x624   :  { %v4773_v61 = vpop.eup %4772  ;;  %v3930_v33 = vpack.i.bf16 %v3665_v3, %v3664_v15  ;;  %v3655_v39 = vmul.f32 %v4753_v23, %v3643_v30  ;;  %v3645_v43 = vmul.f32 0.5, %v3637_v10  ;;  %3926 = vrot.lane.b32.xlu1 %v3925_v38, %s4909_s28  ;;  %v8540_v30 = vadd.f32 %v8229_v4, %v8220_v50 }
 0x625   :  { %v4775_v19 = vpop.eup %4774  ;;  %v2753_v8 = vadd.f32 %v4773_v61, %v4771_v17  ;;  %v2769_v6 = vsub.f32 %v4771_v17, %v4773_v61  ;;  %v3666_v0 = vmul.f32 %v3653_v29, %v7665_v51  ;;  %v3657_v11 = vmul.f32 %v9103_v54, %v3644_v46 }
 0x626   :  { %v4777_v32 = vpop.eup %4776  ;;  %v3667_v28 = vmul.f32 %v3655_v39, %v9069_v25  ;;  %v3659_v31 = vmul.f32 %v4763_v63, %v3645_v43  ;;  %v3646_v37 = vmul.f32 0.5, %v3638_v20  ;;  %v3647_v15 = vmul.f32 0.5, %v3639_v42  ;;  %v9104_v39 = vld [vmem:[#allocation46_spill] sm:$0xff] }
 0x627   :  { %v4779_v23 = vpop.eup %4778  ;;  %v2777_v3 = vmul.f32 0.5, %v2769_v6  ;;  %3931 = vrot.lane.b32.xlu0 %v3930_v33, %s4910_s29  ;;  %v3668_v51 = vmul.f32 %v3657_v11, %v7676_v13  ;;  %v2761_v20 = vmul.f32 0.5, %v2753_v8 }
 0x628   :  { %v4781_v10 = vpop.eup %4780  ;;  %v2771_v17 = vsub.f32 %v4777_v32, %v4779_v23  ;;  %v3935_v38 = vpack.i.bf16 %v3667_v28, %v3666_v0  ;;  %v3669_v29 = vmul.f32 %v3659_v31, %v9070_v60  ;;  %v3661_v63 = vmul.f32 %v9104_v39, %v3646_v37 }
 0x629   :  { %v2790_v25 = vmul.f32 %v4775_v19, %v2777_v3  ;;  %v3663_v46 = vmul.f32 %v4769_v62, %v3647_v15  ;;  %v2755_v61 = vadd.f32 %v4779_v23, %v4777_v32  ;;  %v3024_v60 = vadd.f32 %v8265_v57, %v8261_v1 }
 0x62a   :  { %v2779_v50 = vmul.f32 0.5, %v2771_v17  ;;  %3936 = vrot.lane.b32.xlu1 %v3935_v38, %s4910_s29  ;;  %v3940_v4 = vpack.i.bf16 %v3669_v29, %v3668_v51  ;;  %v3670_v43 = vmul.f32 %v3661_v63, %v7691_v35 }
 0x62b   :  { %v2801_v33 = vmul.f32 %v2790_v25, %v7676_v13  ;;  %v3671_v42 = vmul.f32 %v3663_v46, %v9071_v9 }
 0x62c   :  { %4859 = shalt.err (!%p4856_p0)
}
 0x62d   :  { %s4860_s11 = scalar_lea.hbm %s8751_s3, 8192 }
 0x62e   :  { %p4861_p1 = scmp.ne.s32.totalorder %s8751_s3, %s4860_s11  ;;  %p4864_p2 = scmp.lt.u32.totalorder %s4860_s11, %s8751_s3 }
 0x630   :  { %p4866_p3 = pnand %p4864_p2, %p4861_p1 }
 0x632   :  { %4869 = shalt.err (!%p4866_p3)
}
 0x633   :  { %3764 = dma.vmem_to_hbm [thread:$0]  %s3759_s7, 8192, %s8751_s3, [#allocation4], %s4904_s1, %s4904_s1, %s4905_s13   ;;  %v2794_v13 = vmul.f32 %v4781_v10, %v2779_v50  ;;  %v9105_v9 = vld [vmem:[#allocation49_spill] sm:$0xff]  ;;  %v3027_v57 = vadd.f32 %v8308_v12, %v8304_v22  ;;  %v2809_v31 = vsel %vm67_vm0, %v2761_v20, %v2801_v33  ;;  %v3945_v19 = vpack.i.bf16 %v3671_v42, %v3670_v43  ;;  %v9107_v54 = vld [vmem:[#allocation50_spill] sm:$0xff]  ;;  %v9108_v11 = vld [vmem:[#allocation51_spill] sm:$0xff] }
 0x634   :  { %3941 = vrot.lane.b32.xlu0 %v3940_v4, %s4910_s29  ;;  %v3025_v1 = vadd.f32 %v9105_v9, %v8275_v48  ;;  %v3839_v8 = vpack.c.bf16 %v2809_v31, %v2809_v31  ;;  %v2763_v6 = vmul.f32 0.5, %v2755_v61  ;;  %v3029_v32 = vadd.f32 %v9108_v11, %v9107_v54  ;;  %v9109_v22 = vld [vmem:[#allocation52_spill] sm:$0xff]  ;;  %v9114_v10 = vld [vmem:[#allocation34_spill] sm:$0xff]  ;;  %v9117_v9 = vld [vmem:[#allocation17_spill] sm:$0xff]  ;;  %s4915_s3 = smov [#allocation9]  }
 0x635   :  { %v2803_v0 = vmul.f32 %v2794_v13, %v7691_v35  ;;  %3946 = vrot.lane.b32.xlu1 %v3945_v19, %s4910_s29  ;;  %v8583_v12 = vadd.f32 %v9109_v22, %v8345_v45  ;;  %v8587_v28 = vadd.f32 %v8381_v44, %v8367_v14  ;;  %v8591_v35 = vadd.f32 %v8085_v2, %v8080_v58  ;;  %v9110_v44 = vld [vmem:[#allocation53_spill] sm:$0xff]  ;;  %v9115_v17 = vld [vmem:[#allocation36_spill] sm:$0xff]  ;;  %v9118_v11 = vld [vmem:[#allocation38_spill] sm:$0xff]  ;;  %s3770_s1 = sshll.u32 %s4915_s3, 4  ;;  %s3771_s1 = int_to_ptr.vmem [resolvable:$true] %s3770_s1 }
 0x636   :  { %2850 = vst.msk [vmem:[#allocation9 + $0x10] sm:$0xf] %vm2845_vm10, %v3839_v8  ;;  %v8595_v15 = vadd.f32 %v8422_v49, %v8412_v21  ;;  %v8600_v23 = vadd.f32 %v8106_v24, %v8094_v18  ;;  %v8604_v45 = vadd.f32 %v8473_v27, %v8464_v36  ;;  %v8608_v14 = vadd.f32 %v8123_v5, %v8115_v52  ;;  %v9111_v24 = vld [vmem:[#allocation45_spill] sm:$0xff]  ;;  %v9112_v5 = vld [vmem:[#allocation48_spill] sm:$0xff]  ;;  %v9113_v36 = vld [vmem:[#allocation35_spill] sm:$0xff]  ;;  %s4870_s13 = scalar_lea.vmem %s3771_s1, 2048  ;;  %p4875_p5 = scmp.lt.s32.totalorder %s3771_s1, %s3771_s1 }
 0x637   :  { %v2811_v48 = vsel %vm67_vm0, %v2763_v6, %v2803_v0  ;;  %v8612_v58 = vadd.f32 %v8480_v56, %v8476_v26  ;;  %v8616_v2 = vadd.f32 %v8142_v40, %v8133_v55  ;;  %v8620_v18 = vadd.f32 %v9110_v44, %v8489_v41  ;;  %v9116_v13 = vld [vmem:[#allocation37_spill] sm:$0xff]  ;;  %p4871_p4 = scmp.ne.s32.totalorder %s3771_s1, %s4870_s13  ;;  %p4876_p6 = scmp.lt.s32.totalorder %s4870_s13, %s4870_s13 }
 0x638   :  { %v3841_v37 = vpack.c.bf16 %v2811_v48, %v2811_v48  ;;  %v8624_v21 = vadd.f32 %v9111_v24, %v9099_v47  ;;  %v8628_v52 = vadd.f32 %v8504_v59, %v8496_v53  ;;  %v8632_v49 = vadd.f32 %v9112_v5, %v9102_v34  ;;  %v9119_v48 = vld [vmem:[#allocation39_spill] sm:$0xff]  ;;  %v9120_v24 = vld [vmem:[#allocation40_spill] sm:$0xff]  ;;  %v9121_v5 = vld [vmem:[#allocation41_spill] sm:$0xff] }
 0x639   :  { %v8636_v55 = vadd.f32 %v8519_v16, %v8513_v7  ;;  %v3030_v27 = vmul.f32 0.5, %v9113_v36  ;;  %v3031_v26 = vmul.f32 0.5, %v8540_v30  ;;  %v3026_v7 = vadd.f32 %v9115_v17, %v9114_v10  ;;  %p4877_p7 = por %p4876_p6, %p4875_p5 }
 0x63a   :  { %2852 = vst.msk [vmem:[#allocation9 + $0x18] sm:$0xf] %vm2845_vm10, %v3841_v37  ;;  %v3032_v16 = vmul.f32 0.5, %v3024_v60  ;;  %v3033_v29 = vmul.f32 0.5, %v3025_v1  ;;  %v3035_v4 = vmul.f32 0.5, %v3027_v57  ;;  %v3028_v1 = vadd.f32 %v9117_v9, %v9116_v13 }
 0x63b   :  { %v3034_v20 = vmul.f32 0.5, %v3026_v7  ;;  %v3037_v6 = vmul.f32 0.5, %v3029_v32  ;;  %v3319_v22 = vadd.f32 %v9119_v48, %v9118_v11  ;;  %v3628_v48 = vmul.f32 0.5, %v8624_v21  ;;  %p4878_p8 = pnand %p4877_p7, %p4871_p4 }
 0x63c   :  { %v3036_v31 = vmul.f32 0.5, %v3028_v1 }
 0x63d   :  { %v3327_v32 = vmul.f32 0.5, %v3319_v22 }
 0x673   :  { %v3892_v40 = vpop.permute.xlu0 %3891 }
 0x674   :  { %v3894_v56 = vunpack.i.h.bf16 %v3892_v40  ;;  %v3893_v41 = vunpack.i.l.bf16 %v3892_v40  ;;  %v3321_v40 = vadd.f32 %v9121_v5, %v9120_v24 }
 0x676   :  { %v3111_v47 = vsel %vm67_vm0, %v3031_v26, %v3894_v56  ;;  %v3110_v53 = vsel %vm67_vm0, %v3030_v27, %v3893_v41  ;;  %v3328_v27 = vmul.f32 0.5, %v8583_v12 }
 0x677   :  { %v3844_v59 = vpack.c.bf16 %v3111_v47, %v3111_v47  ;;  %v3843_v34 = vpack.c.bf16 %v3110_v53, %v3110_v53  ;;  %v3897_v3 = vpop.permute.xlu1 %3896  ;;  %v3329_v47 = vmul.f32 0.5, %v3321_v40 }
 0x678   :  { %v3899_v38 = vunpack.i.h.bf16 %v3897_v3  ;;  %v3898_v51 = vunpack.i.l.bf16 %v3897_v3 }
 0x679   :  { %3152 = vst.msk [vmem:[#allocation9 + $0x24] sm:$0xf] %vm2845_vm10, %v3844_v59  ;;  %3151 = vst.msk [vmem:[#allocation9 + $0x20] sm:$0xf] %vm2845_vm10, %v3843_v34  ;;  %v3330_v34 = vmul.f32 0.5, %v8587_v28 }
 0x67a   :  { %v3112_v30 = vsel %vm67_vm0, %v3032_v16, %v3898_v51  ;;  %v3113_v25 = vsel %vm67_vm0, %v3033_v29, %v3899_v38  ;;  %v3331_v29 = vmul.f32 0.5, %v8591_v35  ;;  %v3625_v35 = vmul.f32 0.5, %v8612_v58 }
 0x67b   :  { %v3845_v39 = vpack.c.bf16 %v3112_v30, %v3112_v30  ;;  %v3846_v63 = vpack.c.bf16 %v3113_v25, %v3113_v25  ;;  %v3332_v30 = vmul.f32 0.5, %v8595_v15 }
 0x67c   :  { %v3902_v46 = vpop.permute.xlu1 %3901 }
 0x67d   :  { %v3904_v61 = vunpack.i.h.bf16 %v3902_v46  ;;  %v3903_v50 = vunpack.i.l.bf16 %v3902_v46  ;;  %3153 = vst.msk [vmem:[#allocation9 + $0x28] sm:$0xf] %vm2845_vm10, %v3845_v39  ;;  %3154 = vst.msk [vmem:[#allocation9 + $0x2c] sm:$0xf] %vm2845_vm10, %v3846_v63  ;;  %v3333_v46 = vmul.f32 0.5, %v8600_v23 }
 0x67f   :  { %v3114_v33 = vsel %vm67_vm0, %v3034_v20, %v3903_v50  ;;  %v3115_v43 = vsel %vm67_vm0, %v3035_v4, %v3904_v61  ;;  %v3334_v50 = vmul.f32 0.5, %v8604_v45 }
 0x680   :  { %v3847_v42 = vpack.c.bf16 %v3114_v33, %v3114_v33  ;;  %v3848_v60 = vpack.c.bf16 %v3115_v43, %v3115_v43  ;;  %v3624_v43 = vmul.f32 0.5, %v8608_v14  ;;  %v3626_v14 = vmul.f32 0.5, %v8616_v2 }
 0x681   :  { %v3629_v2 = vmul.f32 0.5, %v8628_v52 }
 0x682   :  { %3155 = vst.msk [vmem:[#allocation9 + $0x30] sm:$0xf] %vm2845_vm10, %v3847_v42  ;;  %3156 = vst.msk [vmem:[#allocation9 + $0x34] sm:$0xf] %vm2845_vm10, %v3848_v60 }
 0x685   :  { %v3907_v57 = vpop.permute.xlu1 %3906 }
 0x686   :  { %v3909_v19 = vunpack.i.h.bf16 %v3907_v57  ;;  %v3908_v8 = vunpack.i.l.bf16 %v3907_v57 }
 0x688   :  { %v3116_v0 = vsel %vm67_vm0, %v3036_v31, %v3908_v8  ;;  %v3117_v54 = vsel %vm67_vm0, %v3037_v6, %v3909_v19  ;;  %v3627_v31 = vmul.f32 0.5, %v8620_v18 }
 0x689   :  { %v3849_v37 = vpack.c.bf16 %v3116_v0, %v3116_v0  ;;  %v3850_v44 = vpack.c.bf16 %v3117_v54, %v3117_v54 }
 0x68b   :  { %3157 = vst.msk [vmem:[#allocation9 + $0x38] sm:$0xf] %vm2845_vm10, %v3849_v37  ;;  %3158 = vst.msk [vmem:[#allocation9 + $0x3c] sm:$0xf] %vm2845_vm10, %v3850_v44  ;;  %v3912_v36 = vpop.permute.xlu0 %3911 }
 0x68c   :  { %v3914_v26 = vunpack.i.h.bf16 %v3912_v36  ;;  %v3913_v56 = vunpack.i.l.bf16 %v3912_v36  ;;  %v3630_v36 = vmul.f32 0.5, %v8632_v49 }
 0x68d   :  { %v3917_v41 = vpop.permute.xlu1 %3916 }
 0x68e   :  { %v3919_v53 = vunpack.i.h.bf16 %v3917_v41  ;;  %v3918_v59 = vunpack.i.l.bf16 %v3917_v41  ;;  %v3408_v3 = vsel %vm67_vm0, %v3328_v27, %v3914_v26  ;;  %v3407_v10 = vsel %vm67_vm0, %v3327_v32, %v3913_v56 }
 0x68f   :  { %v3852_v17 = vpack.c.bf16 %v3408_v3, %v3408_v3  ;;  %v3851_v7 = vpack.c.bf16 %v3407_v10, %v3407_v10  ;;  %v3631_v27 = vmul.f32 0.5, %v8636_v55 }
 0x690   :  { %v3409_v16 = vsel %vm67_vm0, %v3329_v47, %v3918_v59  ;;  %v3410_v12 = vsel %vm67_vm0, %v3330_v34, %v3919_v53 }
 0x691   :  { %v3853_v38 = vpack.c.bf16 %v3409_v16, %v3409_v16  ;;  %v3854_v51 = vpack.c.bf16 %v3410_v12, %v3410_v12  ;;  %3449 = vst.msk [vmem:[#allocation9 + $0x44] sm:$0xf] %vm2845_vm10, %v3852_v17  ;;  %3448 = vst.msk [vmem:[#allocation9 + $0x40] sm:$0xf] %vm2845_vm10, %v3851_v7 }
 0x693   :  { %3450 = vst.msk [vmem:[#allocation9 + $0x48] sm:$0xf] %vm2845_vm10, %v3853_v38  ;;  %3451 = vst.msk [vmem:[#allocation9 + $0x4c] sm:$0xf] %vm2845_vm10, %v3854_v51 }
 0x695   :  { %v3922_v28 = vpop.permute.xlu0 %3921 }
 0x696   :  { %v3924_v25 = vunpack.i.h.bf16 %v3922_v28  ;;  %v3923_v39 = vunpack.i.l.bf16 %v3922_v28  ;;  %v3927_v63 = vpop.permute.xlu1 %3926 }
 0x697   :  { %v3929_v20 = vunpack.i.h.bf16 %v3927_v63  ;;  %v3928_v61 = vunpack.i.l.bf16 %v3927_v63 }
 0x698   :  { %v3412_v4 = vsel %vm67_vm0, %v3332_v30, %v3924_v25  ;;  %v3411_v33 = vsel %vm67_vm0, %v3331_v29, %v3923_v39 }
 0x699   :  { %v3856_v15 = vpack.c.bf16 %v3412_v4, %v3412_v4  ;;  %v3855_v42 = vpack.c.bf16 %v3411_v33, %v3411_v33  ;;  %v3413_v60 = vsel %vm67_vm0, %v3333_v46, %v3928_v61  ;;  %v3414_v23 = vsel %vm67_vm0, %v3334_v50, %v3929_v20  ;;  %v3932_v13 = vpop.permute.xlu0 %3931 }
 0x69a   :  { %v3857_v45 = vpack.c.bf16 %v3413_v60, %v3413_v60  ;;  %v3858_v9 = vpack.c.bf16 %v3414_v23, %v3414_v23  ;;  %v3934_v1 = vunpack.i.h.bf16 %v3932_v13  ;;  %v3933_v57 = vunpack.i.l.bf16 %v3932_v13 }
 0x69b   :  { %3453 = vst.msk [vmem:[#allocation9 + $0x54] sm:$0xf] %vm2845_vm10, %v3856_v15  ;;  %3452 = vst.msk [vmem:[#allocation9 + $0x50] sm:$0xf] %vm2845_vm10, %v3855_v42 }
 0x69c   :  { %v3937_v58 = vpop.permute.xlu1 %3936  ;;  %3454 = vst.msk [vmem:[#allocation9 + $0x58] sm:$0xf] %vm2845_vm10, %v3857_v45  ;;  %3455 = vst.msk [vmem:[#allocation9 + $0x5c] sm:$0xf] %vm2845_vm10, %v3858_v9  ;;  %v3705_v19 = vsel %vm67_vm0, %v3625_v35, %v3934_v1  ;;  %v3704_v8 = vsel %vm67_vm0, %v3624_v43, %v3933_v57 }
 0x69d   :  { %v3939_v6 = vunpack.i.h.bf16 %v3937_v58  ;;  %v3938_v0 = vunpack.i.l.bf16 %v3937_v58  ;;  %v3860_v54 = vpack.c.bf16 %v3705_v19, %v3705_v19  ;;  %v3859_v11 = vpack.c.bf16 %v3704_v8, %v3704_v8 }
 0x69f   :  { %v3706_v18 = vsel %vm67_vm0, %v3626_v14, %v3938_v0  ;;  %v3707_v37 = vsel %vm67_vm0, %v3627_v31, %v3939_v6  ;;  %3746 = vst.msk [vmem:[#allocation9 + $0x64] sm:$0xf] %vm2845_vm10, %v3860_v54  ;;  %3745 = vst.msk [vmem:[#allocation9 + $0x60] sm:$0xf] %vm2845_vm10, %v3859_v11 }
 0x6a0   :  { %v3861_v5 = vpack.c.bf16 %v3706_v18, %v3706_v18  ;;  %v3862_v40 = vpack.c.bf16 %v3707_v37, %v3707_v37 }
 0x6a2   :  { %3747 = vst.msk [vmem:[#allocation9 + $0x68] sm:$0xf] %vm2845_vm10, %v3861_v5  ;;  %3748 = vst.msk [vmem:[#allocation9 + $0x6c] sm:$0xf] %vm2845_vm10, %v3862_v40 }
 0x6a6   :  { %v3942_v22 = vpop.permute.xlu0 %3941 }
 0x6a7   :  { %v3944_v44 = vunpack.i.h.bf16 %v3942_v22  ;;  %v3943_v24 = vunpack.i.l.bf16 %v3942_v22  ;;  %v3947_v32 = vpop.permute.xlu1 %3946 }
 0x6a8   :  { %v3949_v41 = vunpack.i.h.bf16 %v3947_v32  ;;  %v3948_v47 = vunpack.i.l.bf16 %v3947_v32 }
 0x6a9   :  { %v3709_v21 = vsel %vm67_vm0, %v3629_v2, %v3944_v44  ;;  %v3708_v52 = vsel %vm67_vm0, %v3628_v48, %v3943_v24 }
 0x6aa   :  { %v3864_v26 = vpack.c.bf16 %v3709_v21, %v3709_v21  ;;  %v3863_v56 = vpack.c.bf16 %v3708_v52, %v3708_v52  ;;  %v3710_v49 = vsel %vm67_vm0, %v3630_v36, %v3948_v47  ;;  %v3711_v55 = vsel %vm67_vm0, %v3631_v27, %v3949_v41 }
 0x6ab   :  { %v3865_v53 = vpack.c.bf16 %v3710_v49, %v3710_v49  ;;  %v3866_v59 = vpack.c.bf16 %v3711_v55, %v3711_v55 }
 0x6ac   :  { %3750 = vst.msk [vmem:[#allocation9 + $0x74] sm:$0xf] %vm2845_vm10, %v3864_v26  ;;  %3749 = vst.msk [vmem:[#allocation9 + $0x70] sm:$0xf] %vm2845_vm10, %v3863_v56 }
 0x6ad   :  { %3751 = vst.msk [vmem:[#allocation9 + $0x78] sm:$0xf] %vm2845_vm10, %v3865_v53  ;;  %3752 = vst.msk [vmem:[#allocation9 + $0x7c] sm:$0xf] %vm2845_vm10, %v3866_v59 }
 0x6ae   :  { %4881 = shalt.err (!%p4878_p8)
}
 0x6af   :  { %s4882_s21 = scalar_lea.hbm %s8752_s4, 2048 }
 0x6b0   :  { %p4883_p9 = scmp.ne.s32.totalorder %s8752_s4, %s4882_s21  ;;  %p4886_p10 = scmp.lt.u32.totalorder %s4882_s21, %s8752_s4 }
 0x6b2   :  { %p4888_p11 = pnand %p4886_p10, %p4883_p9 }
 0x6b4   :  { %4891 = shalt.err (!%p4888_p11)
}
 0x6b5   :  { %s4916_s0 = smov 4  }
 0x6b6   :  { %3776 = dma.vmem_to_hbm [thread:$0]  %s3771_s1, 2048, %s8752_s4, [#allocation10], %s4911_s30, %s4911_s30, %s4916_s0  }
 0x6b7   :  { %4896 = dma.done.wait [#allocation4], 8192  }
 0x6b8   :  { %4897 = vsyncadd [#allocation4], 4294959104 }
 0x6b9   :  { %4898 = dma.done.wait [#allocation10], 2048  }
 0x6ba   :  { %4899 = vsyncadd [#allocation10], 4294965248 }
 0x6bb   :  { %3783 = vsyncpa [#allocation3], 1 }
 0x6bc   :  { %3784 = vsyncpa [#allocation6], 1 }
 0x6bd   :  { %3785 = vsyncpa [#allocation4], 1 }
 0x6be   :  { %3786 = vsyncpa [#allocation10], 1 }

</bundles_post_ra>
